<compile_context>
chip_gen: v7x
topology: tpu7x:2x2x1
jax: 0.10.0
libtpu: 0.0.40
codegen_flags: <defaults>
</compile_context>

<pallas_src>
import math

import jax
import jax.numpy as jnp
import numpy as np
from jax import lax
from jax.experimental import pallas as pl
from jax.experimental.pallas import tpu as pltpu


def _round_up(v, m):
    return ((v + m - 1) // m) * m


# ---------------------------------------------------------------------------
# PositionalEncoder (NeRF-style sin/cos encoding) — optimized Pallas kernel.
# ---------------------------------------------------------------------------
def make_positional_encoder(freq=10.0, num_bands=5, dimensionality=3, base=2.0,
                            tile_rows=2048):
    feat_per_dim = 2 * num_bands + 1
    out_dim = dimensionality * feat_per_dim
    # torch: scales = logspace(0, log(freq/2)/log(base), num_bands, base=base)
    end = math.log(freq / 2.0) / math.log(base)
    step = (end / (num_bands - 1)) if num_bands > 1 else 0.0
    log_base = math.log(base)

    def kernel(xt_ref, o_ref):
        # xt_ref: (dimensionality, T), o_ref: (out_dim, T); rows live on the lane axis.
        band = lax.broadcasted_iota(jnp.int32, (num_bands, 1), 0).astype(jnp.float32)
        scales_pi = jnp.exp(band * (step * log_base)) * math.pi          # (nb, 1)
        for d in range(dimensionality):          # static unroll; dimensionality is tiny
            xd = xt_ref[d:d + 1, :]              # (1, T) lane-dense
            xs = xd * scales_pi                  # (nb, T)
            r = d * feat_per_dim
            o_ref[r:r + num_bands, :] = jnp.sin(xs)
            o_ref[r + num_bands:r + 2 * num_bands, :] = jnp.cos(xs)
            o_ref[r + 2 * num_bands:r + feat_per_dim, :] = xd

    def encode(x):
        lead = x.shape[:-1]
        xr = x[..., :dimensionality].astype(jnp.float32).reshape(-1, dimensionality)
        rows = xr.shape[0]
        tile = _round_up(min(tile_rows, _round_up(rows, 128)), 128)
        grid = pl.cdiv(rows, tile)
        rows_p = grid * tile
        xt = jnp.transpose(xr)                                           # (dim, rows)
        if rows_p != rows:
            xt = jnp.pad(xt, ((0, 0), (0, rows_p - rows)))
        out_t = pl.pallas_call(
            kernel,
            out_shape=jax.ShapeDtypeStruct((out_dim, rows_p), jnp.float32),
            grid=(grid,),
            in_specs=[pl.BlockSpec((dimensionality, tile), lambda i: (0, i))],
            out_specs=pl.BlockSpec((out_dim, tile), lambda i: (0, i)),
            compiler_params=pltpu.CompilerParams(
                dimension_semantics=("parallel",)),
        )(xt)
        out = jnp.transpose(out_t[:, :rows]).reshape(*lead, out_dim)
        return out.astype(x.dtype)

    def reference(x):
        x32 = x.astype(jnp.float32)
        scales = np.exp(np.linspace(0.0, end, num_bands) * log_base).astype(np.float32)
        xd = x32[..., :dimensionality, None]
        xs = xd * jnp.asarray(scales) * math.pi
        feat = jnp.concatenate([jnp.sin(xs), jnp.cos(xs), xd], axis=-1)
        return feat.reshape(*x.shape[:-1], out_dim).astype(x.dtype)

    return encode, reference, out_dim


# ---------------------------------------------------------------------------
# Small fused Pallas kernels for the transformer blocks (full-VMEM blocks;
# module dims E=33 / head_dim=11 are tiny, so no tiling grid is needed).
# ---------------------------------------------------------------------------
def _linear(x, w, b, act=None):
    T = x.shape[0]
    out = w.shape[1]

    def kernel(x_ref, w_ref, b_ref, o_ref):
        y = jnp.dot(x_ref[...], w_ref[...],
                    preferred_element_type=jnp.float32) + b_ref[...]
        if act == "sigmoid":
            y = 1.0 / (1.0 + jnp.exp(-y))
        o_ref[...] = y.astype(o_ref.dtype)

    return pl.pallas_call(
        kernel, out_shape=jax.ShapeDtypeStruct((T, out), jnp.float32))(x, w, b)


def _attention(q, k, v, scale):
    # q, k, v: (B*H, S, head_dim)
    BH, S, hd = q.shape

    def kernel(q_ref, k_ref, v_ref, o_ref):
        s = jnp.einsum('bqd,bkd->bqk', q_ref[...], k_ref[...],
                       preferred_element_type=jnp.float32) * scale
        m = jnp.max(s, axis=-1, keepdims=True)
        e = jnp.exp(s - m)
        p = e / jnp.sum(e, axis=-1, keepdims=True)
        o_ref[...] = jnp.einsum('bqk,bkd->bqd', p, v_ref[...],
                                preferred_element_type=jnp.float32).astype(o_ref.dtype)

    return pl.pallas_call(
        kernel, out_shape=jax.ShapeDtypeStruct((BH, S, hd), jnp.float32))(q, k, v)


def _attn_out_residual_ln(x, a, w_o, b_o, gamma, beta, eps=1e-5):
    T, E = x.shape

    def kernel(x_ref, a_ref, w_ref, b_ref, g_ref, be_ref, o_ref):
        att = jnp.dot(a_ref[...], w_ref[...],
                      preferred_element_type=jnp.float32) + b_ref[...]
        z = x_ref[...] + att
        mu = jnp.mean(z, axis=-1, keepdims=True)
        zc = z - mu
        var = jnp.mean(zc * zc, axis=-1, keepdims=True)
        o_ref[...] = (zc * lax.rsqrt(var + eps) * g_ref[...] + be_ref[...]).astype(o_ref.dtype)

    return pl.pallas_call(
        kernel, out_shape=jax.ShapeDtypeStruct((T, E), jnp.float32))(x, a, w_o, b_o, gamma, beta)


def _ffn_residual_ln(x, w1, b1, w2, b2, gamma, beta, eps=1e-5):
    T, E = x.shape

    def kernel(x_ref, w1_ref, b1_ref, w2_ref, b2_ref, g_ref, be_ref, o_ref):
        xv = x_ref[...]
        h = jnp.maximum(jnp.dot(xv, w1_ref[...],
                                preferred_element_type=jnp.float32) + b1_ref[...], 0.0)
        y = jnp.dot(h, w2_ref[...],
                    preferred_element_type=jnp.float32) + b2_ref[...]
        z = xv + y
        mu = jnp.mean(z, axis=-1, keepdims=True)
        zc = z - mu
        var = jnp.mean(zc * zc, axis=-1, keepdims=True)
        o_ref[...] = (zc * lax.rsqrt(var + eps) * g_ref[...] + be_ref[...]).astype(o_ref.dtype)

    return pl.pallas_call(
        kernel, out_shape=jax.ShapeDtypeStruct((T, E), jnp.float32))(x, w1, b1, w2, b2, gamma, beta)


def _layer_norm_ref(z, g, b, eps=1e-5):
    mu = jnp.mean(z, axis=-1, keepdims=True)
    var = jnp.mean((z - mu) ** 2, axis=-1, keepdims=True)
    return (z - mu) * lax.rsqrt(var + eps) * g + b


# ---------------------------------------------------------------------------
# Full SirenWithTransformer forward (Pallas) + pure-JAX reference.
# ---------------------------------------------------------------------------
def make_siren_with_transformer(pos_params, inter_fdim=64, num_transformer_layers=2,
                                num_heads=3, use_sigmoid=True, pe_tile_rows=2048):
    encode, pe_reference, in_dim = make_positional_encoder(**pos_params,
                                                           tile_rows=pe_tile_rows)
    assert in_dim % num_heads == 0
    head_dim = in_dim // num_heads
    scale = 1.0 / math.sqrt(head_dim)

    def init_params(key):
        E, F = in_dim, inter_fdim
        ks = list(jax.random.split(key, num_transformer_layers * 12 + 2))

        def nxt():
            return ks.pop()

        def w(k, shape, s=0.1):
            return s * jax.random.normal(k, shape, jnp.float32)

        layers = []
        for _ in range(num_transformer_layers):
            layers.append(dict(
                w_qkv=w(nxt(), (E, 3 * E)), b_qkv=w(nxt(), (1, 3 * E), 0.01),
                w_o=w(nxt(), (E, E)),       b_o=w(nxt(), (1, E), 0.01),
                g1=1.0 + w(nxt(), (1, E), 0.05), be1=w(nxt(), (1, E), 0.05),
                w1=w(nxt(), (E, F)),        b1=w(nxt(), (1, F), 0.01),
                w2=w(nxt(), (F, E)),        b2=w(nxt(), (1, E), 0.01),
                g2=1.0 + w(nxt(), (1, E), 0.05), be2=w(nxt(), (1, E), 0.05),
            ))
        return dict(layers=layers,
                    w_head=w(nxt(), (E, 1)), b_head=w(nxt(), (1, 1), 0.01))

    def forward(x, params):
        S, B = x.shape[0], x.shape[1]
        E, H, hd = in_dim, num_heads, head_dim
        h = encode(x).reshape(S * B, E)                       # token rows, S-major
        for p in params["layers"]:
            qkv = _linear(h, p["w_qkv"], p["b_qkv"])          # (T, 3E)
            q, k, v = qkv[:, :E], qkv[:, E:2 * E], qkv[:, 2 * E:]

            def heads(z):
                return z.reshape(S, B, H, hd).transpose(1, 2, 0, 3).reshape(B * H, S, hd)

            a = _attention(heads(q), heads(k), heads(v), scale)       # (B*H, S, hd)
            a = a.reshape(B, H, S, hd).transpose(2, 0, 1, 3).reshape(S * B, E)
            h = _attn_out_residual_ln(h, a, p["w_o"], p["b_o"], p["g1"], p["be1"])
            h = _ffn_residual_ln(h, p["w1"], p["b1"], p["w2"], p["b2"], p["g2"], p["be2"])
        y = _linear(h, params["w_head"], params["b_head"],
                    act="sigmoid" if use_sigmoid else None)
        return y.reshape(S, B, 1)

    def forward_ref(x, params):
        E, H, hd = in_dim, num_heads, head_dim
        h = pe_reference(x).astype(jnp.float32)               # (S, B, E)
        S, B = h.shape[0], h.shape[1]
        for p in params["layers"]:
            qkv = h @ p["w_qkv"] + p["b_qkv"]
            q, k, v = qkv[..., :E], qkv[..., E:2 * E], qkv[..., 2 * E:]
            qh = q.reshape(S, B, H, hd)
            kh = k.reshape(S, B, H, hd)
            vh = v.reshape(S, B, H, hd)
            s = jnp.einsum('sbhd,tbhd->bhst', qh, kh) * scale
            wgt = jax.nn.softmax(s, axis=-1)
            a = jnp.einsum('bhst,tbhd->sbhd', wgt, vh).reshape(S, B, E)
            att = a @ p["w_o"] + p["b_o"]
            h = _layer_norm_ref(h + att, p["g1"], p["be1"])
            ff = jnp.maximum(h @ p["w1"] + p["b1"], 0.0) @ p["w2"] + p["b2"]
            h = _layer_norm_ref(h + ff, p["g2"], p["be2"])
        logits = h @ params["w_head"] + params["b_head"]
        return jax.nn.sigmoid(logits) if use_sigmoid else logits

    return encode, pe_reference, init_params, forward, forward_ref


if __name__ == "__main__":
    key = jax.random.PRNGKey(0)
    k_pe, k_x, k_p = jax.random.split(key, 3)

    pos_params = dict(freq=10.0, num_bands=5, dimensionality=3, base=2.0)
    encode, pe_ref, init_params, forward, forward_ref = make_siren_with_transformer(
        pos_params, inter_fdim=64, num_transformer_layers=2, num_heads=3)

    # 1) PositionalEncoder kernel: exercises multi-tile grid (tile=2048) + padded tail.
    x_pe = jax.random.normal(k_pe, (5000, 3), dtype=jnp.float32)
    y_pe = encode(x_pe)
    jax.block_until_ready(y_pe)
    np.testing.assert_allclose(np.asarray(y_pe), np.asarray(pe_ref(x_pe)),
                               rtol=1e-4, atol=1e-4)

    # 2) Full SirenWithTransformer forward: x = (seq=16, batch=4, xyz=3).
    x = jax.random.normal(k_x, (16, 4, 3), dtype=jnp.float32)
    params = init_params(k_p)
    y = jax.jit(forward)(x, params)
    jax.block_until_ready(y)
    assert y.shape == (16, 4, 1), y.shape
    y_ref = forward_ref(x, params)
    # Loose tolerance: Pallas/MXU f32 matmul emulation vs XLA default precision.
    np.testing.assert_allclose(np.asarray(y), np.asarray(y_ref), rtol=2e-2, atol=2e-2)

    print("KERNEL_OK")
</pallas_src>

<mosaic_0001>
module attributes {stable_mosaic.version = 11 : i64} {
  func.func @kernel(%arg0: i32, %arg1: memref<3x2048xf32, #tpu.memory_space<vmem>>, %arg2: memref<33x2048xf32, #tpu.memory_space<vmem>>) attributes {dimension_semantics = [#tpu.dimension_semantics<parallel>], iteration_bounds = array<i64: 3>, scalar_prefetch = 0 : i64, scratch_operands = 0 : i64, tpu.core_type = #tpu.core_type<tc>, window_params = [{transform_indices = @transform_0, window_bounds = array<i64: 3, 2048>}, {transform_indices = @transform_1, window_bounds = array<i64: 33, 2048>}]} {
    %0 = tpu.iota {dimensions = array<i32: 0>} : vector<5x1xi32>
    %1 = arith.sitofp %0 : vector<5x1xi32> to vector<5x1xf32>
    %cst = arith.constant 0.402359486 : f32
    %2 = vector.broadcast %cst : f32 to vector<5x1xf32>
    %3 = arith.mulf %1, %2 : vector<5x1xf32>
    %4 = math.exp %3 : vector<5x1xf32>
    %cst_0 = arith.constant 3.14159274 : f32
    %5 = vector.broadcast %cst_0 : f32 to vector<5x1xf32>
    %6 = arith.mulf %4, %5 : vector<5x1xf32>
    %c0 = arith.constant 0 : index
    %c0_1 = arith.constant 0 : index
    %7 = vector.load %arg1[%c0, %c0_1] : memref<3x2048xf32, #tpu.memory_space<vmem>>, vector<1x2048xf32>
    %8 = vector.broadcast %7 : vector<1x2048xf32> to vector<5x2048xf32>
    %9 = vector.broadcast %6 : vector<5x1xf32> to vector<5x2048xf32>
    %10 = arith.mulf %8, %9 : vector<5x2048xf32>
    %11 = math.sin %10 : vector<5x2048xf32>
    %c0_2 = arith.constant 0 : index
    %c0_3 = arith.constant 0 : index
    %12 = vector.load %arg2[%c0_2, %c0_3] : memref<33x2048xf32, #tpu.memory_space<vmem>>, vector<5x2048xf32>
    tpu.vector_store %arg2[%c0_2, %c0_3], %11 {strides = array<i32>} : memref<33x2048xf32, #tpu.memory_space<vmem>>, vector<5x2048xf32>,
    %13 = math.cos %10 : vector<5x2048xf32>
    %c5 = arith.constant 5 : index
    %c0_4 = arith.constant 0 : index
    %14 = vector.load %arg2[%c5, %c0_4] : memref<33x2048xf32, #tpu.memory_space<vmem>>, vector<5x2048xf32>
    tpu.vector_store %arg2[%c5, %c0_4], %13 {strides = array<i32>} : memref<33x2048xf32, #tpu.memory_space<vmem>>, vector<5x2048xf32>,
    %c10 = arith.constant 10 : index
    %c0_5 = arith.constant 0 : index
    %15 = vector.load %arg2[%c10, %c0_5] : memref<33x2048xf32, #tpu.memory_space<vmem>>, vector<1x2048xf32>
    tpu.vector_store %arg2[%c10, %c0_5], %7 {strides = array<i32>} : memref<33x2048xf32, #tpu.memory_space<vmem>>, vector<1x2048xf32>,
    %c1 = arith.constant 1 : index
    %c0_6 = arith.constant 0 : index
    %16 = vector.load %arg1[%c1, %c0_6] : memref<3x2048xf32, #tpu.memory_space<vmem>>, vector<1x2048xf32>
    %17 = vector.broadcast %16 : vector<1x2048xf32> to vector<5x2048xf32>
    %18 = vector.broadcast %6 : vector<5x1xf32> to vector<5x2048xf32>
    %19 = arith.mulf %17, %18 : vector<5x2048xf32>
    %20 = math.sin %19 : vector<5x2048xf32>
    %c11 = arith.constant 11 : index
    %c0_7 = arith.constant 0 : index
    %21 = vector.load %arg2[%c11, %c0_7] : memref<33x2048xf32, #tpu.memory_space<vmem>>, vector<5x2048xf32>
    tpu.vector_store %arg2[%c11, %c0_7], %20 {strides = array<i32>} : memref<33x2048xf32, #tpu.memory_space<vmem>>, vector<5x2048xf32>,
    %22 = math.cos %19 : vector<5x2048xf32>
    %c16 = arith.constant 16 : index
    %c0_8 = arith.constant 0 : index
    %23 = vector.load %arg2[%c16, %c0_8] : memref<33x2048xf32, #tpu.memory_space<vmem>>, vector<5x2048xf32>
    tpu.vector_store %arg2[%c16, %c0_8], %22 {strides = array<i32>} : memref<33x2048xf32, #tpu.memory_space<vmem>>, vector<5x2048xf32>,
    %c21 = arith.constant 21 : index
    %c0_9 = arith.constant 0 : index
    %24 = vector.load %arg2[%c21, %c0_9] : memref<33x2048xf32, #tpu.memory_space<vmem>>, vector<1x2048xf32>
    tpu.vector_store %arg2[%c21, %c0_9], %16 {strides = array<i32>} : memref<33x2048xf32, #tpu.memory_space<vmem>>, vector<1x2048xf32>,
    %c2 = arith.constant 2 : index
    %c0_10 = arith.constant 0 : index
    %25 = vector.load %arg1[%c2, %c0_10] : memref<3x2048xf32, #tpu.memory_space<vmem>>, vector<1x2048xf32>
    %26 = vector.broadcast %25 : vector<1x2048xf32> to vector<5x2048xf32>
    %27 = vector.broadcast %6 : vector<5x1xf32> to vector<5x2048xf32>
    %28 = arith.mulf %26, %27 : vector<5x2048xf32>
    %29 = math.sin %28 : vector<5x2048xf32>
    %c22 = arith.constant 22 : index
    %c0_11 = arith.constant 0 : index
    %30 = vector.load %arg2[%c22, %c0_11] : memref<33x2048xf32, #tpu.memory_space<vmem>>, vector<5x2048xf32>
    tpu.vector_store %arg2[%c22, %c0_11], %29 {strides = array<i32>} : memref<33x2048xf32, #tpu.memory_space<vmem>>, vector<5x2048xf32>,
    %31 = math.cos %28 : vector<5x2048xf32>
    %c27 = arith.constant 27 : index
    %c0_12 = arith.constant 0 : index
    %32 = vector.load %arg2[%c27, %c0_12] : memref<33x2048xf32, #tpu.memory_space<vmem>>, vector<5x2048xf32>
    tpu.vector_store %arg2[%c27, %c0_12], %31 {strides = array<i32>} : memref<33x2048xf32, #tpu.memory_space<vmem>>, vector<5x2048xf32>,
    %c32 = arith.constant 32 : index
    %c0_13 = arith.constant 0 : index
    %33 = vector.load %arg2[%c32, %c0_13] : memref<33x2048xf32, #tpu.memory_space<vmem>>, vector<1x2048xf32>
    tpu.vector_store %arg2[%c32, %c0_13], %25 {strides = array<i32>} : memref<33x2048xf32, #tpu.memory_space<vmem>>, vector<1x2048xf32>,
    return
  }
  func.func @transform_0(%arg0: i32) -> (i32, i32) {
    %c0_i32 = arith.constant 0 : i32
    %c0_i32_0 = arith.constant 0 : i32
    return %c0_i32, %arg0 : i32, i32
  }
  func.func @transform_1(%arg0: i32) -> (i32, i32) {
    %c0_i32 = arith.constant 0 : i32
    %c0_i32_0 = arith.constant 0 : i32
    return %c0_i32, %arg0 : i32, i32
  }
}

</mosaic_0001>

<bundles_post_ra>
// kernel: tpu_custom_call.1
= control target key start
LH: loop header
LB: loop body
LE: loop exit
PB: predicated region body
PF: predicated region fallthrough
CT: control target
= control target key end

     0   :  { %6 = vsyncpa [#allocation3], 0  ;;  %s17352_s0 = inlined_call_operand.hbm [shape: f32[3,6144], index: 0, kind: input, shape index: {}]   ;;  %s17353_s1 = inlined_call_operand.hbm [shape: f32[33,6144], index: 1, kind: output, shape index: {}]  }
   0x1   :  { %8 = vsyncpa [#allocation3 + $0x1], 0 }
   0x2   :  { %9 = vsyncpa [#allocation4], 0 }
   0x3   :  { %11 = vsyncpa [#allocation4 + $0x1], 0  ;;  %s11784_s6 = smov 0   ;;  %s11786_s7 = smov 0  }
   0x4   :  { %s11788_s8 = smov 0   ;;  %s11790_s9 = smov 0  }
   0x5 LB: > { %s11805_s10 = sadd.s32 4294967295, %s11761_s9   ;;  %s10808_s11 = sadd.s32 4294967294, %s11761_s9   ;;  %s11761_s9 = sphi %s11790_s9, %s17932_s9   ;;  %s11757_s8 = sphi %s11788_s8, %s17931_s8   ;;  %s11753_s7 = sphi %s11786_s7, %s17930_s7   ;;  %s11749_s6 = sphi %s11784_s6, %s17929_s6  }
   0x6   : > { %s11809_s12 = sadd.s32 1, %s11761_s9   ;;  %s24_s13 = sadd.s32 1, %s11757_s8 }
   0x7   : > { %s21_s14 = ssub.s32 %s11761_s9, %s11809_s12  ;;  %p31_p0 = scmp.ne.s32.totalorder %s11757_s8, %s11753_s7 }
   0x8   : > { %p22_p1 = scmp.eq.s32.totalorder %s21_s14, 0  ;;  %p32_p2 = scmp.eq.s32.totalorder %s11761_s9, 0 }
   0x9   : > { %p37_p3 = scmp.ne.s32.totalorder %s11753_s7, %s11749_s6  ;;  %p38_p4 = scmp.eq.s32.totalorder %s11805_s10, 0 }
   0xa   : > { %s11821_s15 = scalar_select %p22_p1, %s11757_s8, %s24_s13  }
   0xb   : > { %p11823_p5 = por %p32_p2, %p31_p0  ;;  %p11827_p6 = por %p38_p4, %p37_p3 }
   0xc   : > { %p61_p7 = scmp.eq.s32.totalorder %s11805_s10, 2  ;;  %p67_p8 = scmp.eq.s32.totalorder %s10808_s11, 2 }
   0xd   : > { %p11428_p9 = scmp.lt.s32.totalorder %s11761_s9, 3  ;;  %s87_s20 = sand.u32 1, %s11757_s8  }
   0xe   : > { %p11833_p10 = por %p61_p7, %p31_p0  ;;  %p11837_p11 = por %p67_p8, %p37_p3 }
   0xf   : > { %s11221_s21 = sshll.u32 %s11761_s9, 10  ;;  %s10811_s22 = sshll.u32 %s87_s20, 6 }
  0x10   : > { %s17572_s18 = scalar_select %p11833_p10, 1, 0 }
  0x11   : > { %s17573_s19 = scalar_select %p11837_p11, 1, 0 }
  0x12   : > { %s11846_s25 = scalar_lea.hbm %s17352_s0, %s11221_s21  ;;  %s91_s26 = scalar_lea.vmem [#allocation2], %s10811_s22 }
  0x13   : > { %s99_s27 = sshll.u32 %s91_s26, 4  ;;  %p11850_p12 = pnand %p11428_p9, %p11823_p5  ;;  %s11854_s27 = int_to_ptr.vmem [resolvable:$true] %s99_s27 }
  0x14   : > { %s88_s29 = scalar_lea.sflag [#allocation3], %s87_s20  ;;  %s11665_s30 = scalar_lea.hbm %s11846_s25, 1024 }
  0x15   : > { %p11666_p1 = scmp.ne.s32.totalorder %s11846_s25, %s11665_s30  ;;  %p11667_p2 = pneg %p11850_p12 }
  0x16   : > { %s11670_s4 = scalar_lea.hbm %s17352_s0, 3072  ;;  %p11671_p5 = scmp.lt.u32.totalorder %s11846_s25, %s17352_s0 }
  0x17   : > { %p11668_p3 = pnand %p11667_p2, %p11666_p1  ;;  %p11672_p7 = scmp.lt.u32.totalorder %s11670_s4, %s11665_s30 }
  0x18   : > { %p11674_p9 = scmp.lt.u32.totalorder %s11665_s30, %s11846_s25 }
  0x19   : > { %p11669_p4 = pneg %p11668_p3  ;;  %p11673_p8 = por %p11672_p7, %p11671_p5 }
  0x1b   : > { %p11675_p13 = por %p11674_p9, %p11673_p8 }
  0x1d   : > { %p11676_p0 = pnand %p11675_p13, %p11669_p4 }
  0x1f   : > { %11679 = shalt.err (!%p11676_p0)
}
  0x20   : > { %s11680_s13 = scalar_lea.vmem %s11854_s27, 1024  ;;  %s11763_s14 = smov [#allocation2]  }
  0x21   : > { %p11681_p1 = scmp.ne.s32.totalorder %s11854_s27, %s11680_s13  ;;  %s11685_s16 = sshll.u32 %s11763_s14, 4  ;;  %s11686_s16 = int_to_ptr.vmem [resolvable:$false] %s11685_s16 }
  0x22   : > { %s11687_s20 = scalar_lea.vmem %s11686_s16, 2048  ;;  %p11688_p10 = scmp.lt.s32.totalorder %s11854_s27, %s11686_s16 }
  0x23   : > { %p11683_p3 = pnand %p11681_p1, %p11667_p2  ;;  %p11689_p5 = scmp.lt.s32.totalorder %s11687_s20, %s11680_s13 }
  0x25   : > { %p11684_p11 = pneg %p11683_p3  ;;  %p11690_p7 = por %p11689_p5, %p11688_p10 }
  0x27   : > { %p11691_p8 = pnand %p11690_p7, %p11684_p11 }
  0x29   : > { %11694 = shalt.err (!%p11691_p8)
}
  0x2a   : > { %11423 = dma.hbm_to_vmem [thread:$0]  (!%p11850_p12), %s11846_s25, 1024, %s11854_s27, %s88_s29  }
  0x2b   : > { %p17575_p13 = scmp.lt.s32.totalorder %s11761_s9, 4  ;;  %p17576_p0 = scmp.ge.s32.totalorder %s11761_s9, 1 }
  0x2d   : > { %p105_p2 = pnand %p17576_p0, %p17575_p13 }
  0x2f   : > { %108 = sbr.rel (%p105_p2) target bundleno = 1447 (0x5a7), region = 24 }
  0x36   : > { %s11888_s21 = sand.u32 1, %s11753_s7  }
  0x37   : > { %s10815_s22 = sshll.u32 %s11888_s21, 6  ;;  %s111_s23 = scalar_lea.sflag [#allocation3], %s11888_s21 }
  0x38   : > { %s11892_s24 = scalar_lea.vmem [#allocation2], %s10815_s22 }
  0x39   : > { %11740 = dma.done.wait (%p11827_p6), %s111_s23, 1024  }
  0x3a   : > { %11742 = vsyncadd (%p11827_p6), %s111_s23, 4294966272  ;;  %v135_v0 = vlaneseq  ;;  %s11223_s25 = smul.u32 640, %s11888_s21  ;;  %v11903_v4 = vld [vmem:[%s11892_s24] ss:$4 sm:$0xff]  ;;  %v17366_v49 = vmov 683565275  }
  0x3b   : > { %v17361_v51 = vmov 2475754826   ;;  %v17359_v53 = vmov 2131351028   ;;  %v17363_v55 = vmov 2102212464  }
  0x3c   : > { %v11899_v1 = vshrl.u32 %v135_v0, 7  ;;  %s11905_s26 = scalar_lea.vmem [#allocation5], %s11223_s25  ;;  %v17373_v57 = vmov 920167782   ;;  %s11222_s17 = sshll.u32 %s11805_s10, 11 }
  0x3d   : > { %10945 = vst [vmem:[%s11905_s26 + $0x82] ss:$8 sm:$0xf] %v11903_v4  ;;  %10946 = vst [vmem:[%s11905_s26 + $0x82] ss:$8 sm:$0xf0] %v11903_v4  ;;  %s17305_s30 = scalar_lea.hbm %s17353_s1, %s11222_s17 }
  0x3e   : > { %v137_v2 = vcvt.s32.f32 %v11899_v1  ;;  %v11912_v6 = vsub.s32 0, %v11899_v1  ;;  %v11915_v7 = vsub.s32 1, %v11899_v1  ;;  %v11918_v8 = vsub.s32 2, %v11899_v1  ;;  %s10735_s27 = sshll.u32 %s11905_s26, 4  ;;  %s10722_s10 = scalar_lea.sflag [#allocation4], %s11888_s21  ;;  %s17307_s27 = int_to_ptr.vmem [resolvable:$true] %s10735_s27 }
  0x3f   : > { %v11942_v21 = vsub.s32 3, %v11899_v1  ;;  %v11952_v36 = vsub.s32 4, %v11899_v1  ;;  %v11958_v39 = vsub.s32 5, %v11899_v1  ;;  %s11695_s2 = scalar_lea.vmem %s17307_s27, 10240  ;;  %p17927_p10 = scmp.ne.s32.totalorder %s17572_s18, 0 }
  0x40   : > { %v138_v3 = vmul.f32 0.4023595, %v137_v2  ;;  %17577 = vst [vmem:[#allocation8_spill] sm:$0xff] %v11915_v7  ;;  %17578 = vst [vmem:[#allocation9_spill] sm:$0xff] %v11918_v8  ;;  %v150_v9 = vrot.slane %v11903_v4, %v11912_v6  ;;  %v154_v10 = vrot.slane %v11903_v4, %v11915_v7  ;;  %v158_v12 = vrot.slane %v11903_v4, %v11918_v8  ;;  %p11696_p6 = scmp.ne.s32.totalorder %s17307_s27, %s11695_s2  ;;  %s11770_s3 = smov [#allocation5]  }
  0x41   : > { %17580 = vst [vmem:[#allocation11_spill] sm:$0xff] %v11942_v21  ;;  %v162_v30 = vrot.slane %v11903_v4, %v11942_v21  ;;  %17581 = vst [vmem:[#allocation12_spill] sm:$0xff] %v11952_v36  ;;  %v17357_v2 = vmov 1326507024   ;;  %s11699_s4 = sshll.u32 %s11770_s3, 4  ;;  %s11700_s4 = int_to_ptr.vmem [resolvable:$false] %s11699_s4 }
  0x42   : > { %v139_v5 = vmul.f32 1.442695, %v138_v3  ;;  %17582 = vst [vmem:[#allocation13_spill] sm:$0xff] %v11958_v39  ;;  %p11697_p11 = pnand %p11696_p6, %p17927_p10  ;;  %s11701_s5 = scalar_lea.vmem %s11700_s4, 20480 }
  0x43   : > { %p11702_p4 = scmp.lt.s32.totalorder %s17307_s27, %s11700_s4  ;;  %p11703_p9 = scmp.lt.s32.totalorder %s11701_s5, %s11695_s2 }
  0x44   : > { %11471 = vpow2.f32 %v139_v5  ;;  %p11698_p12 = pneg %p11697_p11 }
  0x45   : > { %p11704_p1 = por %p11703_p9, %p11702_p4 }
  0x47   : > { %p11705_p3 = pnand %p11704_p1, %p11698_p12 }
  0x4e   : > { %v11472_v11 = vpop.eup %11471 }
  0x4f   : > { %v11926_v13 = vmul.f32 3.1415927, %v11472_v11 }
  0x51   : > { %17579 = vst [vmem:[#allocation10_spill] sm:$0xff] %v11926_v13  ;;  %v11929_v14 = vmul.f32 %v150_v9, %v11926_v13  ;;  %v11932_v15 = vmul.f32 %v154_v10, %v11926_v13  ;;  %v11935_v16 = vmul.f32 %v158_v12, %v11926_v13  ;;  %v11955_v38 = vmul.f32 %v162_v30, %v11926_v13 }
  0x53   : > { %v243_v17 = vand.u32 2147483647, %v11929_v14  ;;  %v246_v18 = vand.u32 2139095040, %v11929_v14  ;;  %v347_v19 = vand.u32 2147483647, %v11932_v15  ;;  %v350_v20 = vand.u32 2139095040, %v11932_v15 }
  0x54   : > { %v454_v26 = vand.u32 2139095040, %v11935_v16  ;;  %v451_v43 = vand.u32 2147483647, %v11935_v16  ;;  %vm245_vm13 = vcmp.lt.s32.totalorder %v11929_v14, 0 }
  0x55   : > { %v247_v22 = vshrl.u32 %v246_v18, 23  ;;  %v250_v23 = vand.u32 8388607, %v243_v17  ;;  %v351_v24 = vshrl.u32 %v350_v20, 23  ;;  %v354_v25 = vand.u32 8388607, %v347_v19 }
  0x56   : > { %v455_v29 = vshrl.u32 %v454_v26, 23  ;;  %vm12082_vm14 = vcmp.le.f32.partialorder %v243_v17, 0.7853982 }
  0x57   : > { %v10817_v27 = vadd.s32 4294967169, %v247_v22  ;;  %v10821_v28 = vadd.s32 4294967169, %v351_v24  ;;  %v251_v32 = vor.u32 8388608, %v250_v23  ;;  %v355_v33 = vor.u32 8388608, %v354_v25 }
  0x58   : > { %v10825_v35 = vadd.s32 4294967169, %v455_v29 }
  0x59   : > { %v253_v31 = vadd.s32 1, %v10817_v27  ;;  %v357_v34 = vadd.s32 1, %v10821_v28  ;;  %v11961_v44 = vshll.u32 %v251_v32, 8  ;;  %v11963_v46 = vshll.u32 %v355_v33, 8 }
  0x5a   : > { %v11965_v47 = vadd.s32 1, %v10825_v35 }
  0x5b   : > { %vm254_vm0 = vcmp.gt.s32.totalorder %v253_v31, 0  ;;  %vm358_vm1 = vcmp.gt.s32.totalorder %v357_v34, 0 }
  0x5c   : > { %v255_v37 = vsel %vm254_vm0, %v253_v31, 0  ;;  %v359_v42 = vsel %vm358_vm1, %v357_v34, 0  ;;  %vm462_vm6 = vcmp.gt.s32.totalorder %v11965_v47, 0 }
  0x5d   : > { %v256_v40 = vshrl.u32 %v255_v37, 5  ;;  %v257_v41 = vand.u32 31, %v255_v37  ;;  %v361_v45 = vand.u32 31, %v359_v42  ;;  %v11972_v59 = vshrl.u32 %v359_v42, 5 }
  0x5f   : > { %v258_v48 = vsub.s32 32, %v257_v41  ;;  %v260_v50 = vshll.u32 %v17366_v49, %v257_v41  ;;  %v263_v52 = vshll.u32 %v17361_v51, %v257_v41  ;;  %v266_v54 = vshll.u32 %v17359_v53, %v257_v41 }
  0x60   : > { %v269_v56 = vshll.u32 %v17363_v55, %v257_v41  ;;  %v272_v58 = vshll.u32 %v17373_v57, %v257_v41  ;;  %vm275_vm2 = vcmp.lt.s32.totalorder %v256_v40, 1  ;;  %vm276_vm3 = vcmp.lt.s32.totalorder %v256_v40, 2 }
  0x61   : > { %v259_v60 = vshrl.u32 %v17366_v49, %v258_v48  ;;  %v261_v61 = vshrl.u32 %v17361_v51, %v258_v48  ;;  %v264_v62 = vshrl.u32 %v17359_v53, %v258_v48  ;;  %v267_v63 = vshrl.u32 %v17363_v55, %v258_v48 }
  0x62   : > { %v270_v0 = vshrl.u32 %v17373_v57, %v258_v48  ;;  %v273_v3 = vshrl.u32 %v17357_v2, %v258_v48  ;;  %vm278_vm4 = vcmp.lt.s32.totalorder %v256_v40, 4  ;;  %v362_v11 = vsub.s32 32, %v361_v45 }
  0x63   : > { %v262_v5 = vor.u32 %v261_v61, %v260_v50  ;;  %v265_v9 = vor.u32 %v264_v62, %v263_v52  ;;  %v268_v10 = vor.u32 %v267_v63, %v266_v54  ;;  %vm277_vm5 = vcmp.lt.s32.totalorder %v256_v40, 3 }
  0x64   : > { %v271_v12 = vor.u32 %v270_v0, %v269_v56  ;;  %v274_v18 = vor.u32 %v273_v3, %v272_v58  ;;  %v364_v20 = vshll.u32 %v17366_v49, %v361_v45  ;;  %v367_v29 = vshll.u32 %v17361_v51, %v361_v45 }
  0x65   : > { %v279_v22 = vsel %vm275_vm2, %v259_v60, %v262_v5  ;;  %v280_v23 = vsel %vm278_vm4, %v268_v10, 2102212464  ;;  %v283_v24 = vsel %vm275_vm2, %v262_v5, %v265_v9  ;;  %v287_v25 = vsel %vm275_vm2, %v265_v9, %v268_v10 }
  0x66   : > { %v281_v26 = vsel %vm277_vm5, %v265_v9, %v280_v23  ;;  %v284_v27 = vsel %vm278_vm4, %v271_v12, 920167782  ;;  %v288_v28 = vsel %vm278_vm4, %v274_v18, 1326507024  ;;  %v363_v32 = vshrl.u32 %v17366_v49, %v362_v11 }
  0x67   : > { %v285_v30 = vsel %vm277_vm5, %v268_v10, %v284_v27  ;;  %v289_v31 = vsel %vm277_vm5, %v271_v12, %v288_v28  ;;  %v365_v33 = vshrl.u32 %v17361_v51, %v362_v11  ;;  %v282_v34 = vsel %vm276_vm3, %v279_v22, %v281_v26 }
  0x68   : > { %v286_v35 = vsel %vm276_vm3, %v283_v24, %v285_v30  ;;  %v290_v37 = vsel %vm276_vm3, %v287_v25, %v289_v31  ;;  %v368_v41 = vshrl.u32 %v17359_v53, %v362_v11  ;;  %v370_v58 = vshll.u32 %v17359_v53, %v361_v45 }
  0x69   : > { %v11993_v42 = vmul.u32.u64.low %v11961_v44, %v290_v37  ;;  %v11994_v48 = vmul.u32.u64.high %v11961_v44, %v290_v37, %v11993_v42  ;;  %v11997_v50 = vmul.u32.u64.low %v11961_v44, %v286_v35  ;;  %v11998_v52 = vmul.u32.u64.high %v11961_v44, %v286_v35, %v11997_v50 }
  0x6a   : > { %v366_v54 = vor.u32 %v365_v33, %v364_v20  ;;  %v369_v56 = vor.u32 %v368_v41, %v367_v29  ;;  %v371_v60 = vshrl.u32 %v17363_v55, %v362_v11  ;;  %v373_v40 = vshll.u32 %v17363_v55, %v361_v45 }
  0x6b   : > { %v374_v61 = vshrl.u32 %v17373_v57, %v362_v11  ;;  %v376_v62 = vshll.u32 %v17373_v57, %v361_v45  ;;  %v377_v63 = vshrl.u32 %v17357_v2, %v362_v11  ;;  %v298_v0 = vmul.u32 %v11961_v44, %v282_v34 }
  0x6c   : > { %v372_v3 = vor.u32 %v371_v60, %v370_v58  ;;  %vm379_vm7 = vcmp.lt.s32.totalorder %v11972_v59, 1  ;;  %vm380_vm8 = vcmp.lt.s32.totalorder %v11972_v59, 2  ;;  %vm300_vm9 = vc.u32 %v11994_v48, %v11997_v50 }
  0x6d   : > { %v301_v5 = vadd.s32 1, %v11998_v52  ;;  %v375_v9 = vor.u32 %v374_v61, %v373_v40  ;;  %vm381_vm10 = vcmp.lt.s32.totalorder %v11972_v59, 3  ;;  %v378_v10 = vor.u32 %v377_v63, %v376_v62 }
  0x6e   : > { %vm382_vm11 = vcmp.lt.s32.totalorder %v11972_v59, 4  ;;  %v383_v45 = vsel %vm379_vm7, %v363_v32, %v366_v54  ;;  %v387_v11 = vsel %vm379_vm7, %v366_v54, %v369_v56  ;;  %v391_v20 = vsel %vm379_vm7, %v369_v56, %v372_v3 }
  0x6f   : > { %v302_v44 = vsel %vm300_vm9, %v301_v5, %v11998_v52  ;;  %v384_v12 = vsel %vm382_vm11, %v372_v3, 2102212464  ;;  %v388_v18 = vsel %vm382_vm11, %v375_v9, 920167782  ;;  %v392_v25 = vsel %vm382_vm11, %v378_v10, 1326507024 }
  0x70   : > { %v303_v22 = vadd.s32 %v302_v44, %v298_v0  ;;  %v385_v23 = vsel %vm381_vm10, %v369_v56, %v384_v12  ;;  %v389_v24 = vsel %vm381_vm10, %v372_v3, %v388_v18  ;;  %v393_v28 = vsel %vm381_vm10, %v375_v9, %v392_v25 }
  0x71   : > { %v386_v26 = vsel %vm380_vm8, %v383_v45, %v385_v23  ;;  %v390_v27 = vsel %vm380_vm8, %v387_v11, %v389_v24  ;;  %v463_v29 = vsel %vm462_vm6, %v11965_v47, 0  ;;  %v394_v31 = vsel %vm380_vm8, %v391_v20, %v393_v28 }
  0x72   : > { %v304_v30 = vadd.s32 536870912, %v303_v22  ;;  %v12026_v32 = vmul.u32.u64.low %v11963_v46, %v390_v27  ;;  %v12027_v33 = vmul.u32.u64.high %v11963_v46, %v390_v27, %v12026_v32  ;;  %v458_v37 = vand.u32 8388607, %v451_v43 }
  0x73   : > { %v12031_v34 = vmul.u32.u64.low %v11963_v46, %v394_v31  ;;  %v12032_v35 = vmul.u32.u64.high %v11963_v46, %v394_v31, %v12031_v34  ;;  %v465_v42 = vand.u32 31, %v463_v29  ;;  %v402_v47 = vmul.u32 %v11963_v46, %v386_v26 }
  0x74   : > { %v12036_v41 = vshrl.u32 %v304_v30, 30  ;;  %v558_v59 = vand.u32 2139095040, %v11955_v38  ;;  %v405_v54 = vadd.s32 1, %v12027_v33  ;;  %v166_v56 = vrot.slane %v11903_v4, %v11952_v36 }
  0x75   : > { %v170_v58 = vrot.slane %v11903_v4, %v11958_v39  ;;  %vm404_vm12 = vc.u32 %v12032_v35, %v12026_v32  ;;  %v459_v60 = vor.u32 8388608, %v458_v37  ;;  %v555_v40 = vand.u32 2147483647, %v11955_v38 }
  0x76   : > { %v306_v52 = vshll.u32 %v12036_v41, 30  ;;  %v406_v46 = vsel %vm404_vm12, %v405_v54, %v12027_v33  ;;  %v466_v62 = vsub.s32 32, %v465_v42  ;;  %v559_v0 = vshrl.u32 %v558_v59, 23  ;;  %v12096_v59 = vld [vmem:[%s11892_s24 + $0x20] ss:$4 sm:$0xff] }
  0x77   : > { %v407_v63 = vadd.s32 %v406_v46, %v402_v47  ;;  %v12054_v5 = vmul.f32 %v166_v56, %v11926_v13  ;;  %v12057_v9 = vmul.f32 %v170_v58, %v11926_v13  ;;  %v12060_v10 = vsub.s32 6, %v11899_v1  ;;  %10947 = vst [vmem:[%s11905_s26 + $0xc2] ss:$8 sm:$0xf] %v12096_v59 }
  0x78   : > { %v12049_v61 = vsub.s32 %v303_v22, %v306_v52  ;;  %v12063_v11 = vshrl.u32 %v463_v29, 5  ;;  %v12065_v44 = vshll.u32 %v459_v60, 8  ;;  %v12069_v12 = vand.u32 8388607, %v555_v40 }
  0x79   : > { %17583 = vst [vmem:[#allocation14_spill] sm:$0xff] %v12060_v10  ;;  %v408_v45 = vadd.s32 536870912, %v407_v63  ;;  %v299_v18 = vadd.s32 %v11997_v50, %v11994_v48  ;;  %v474_v22 = vshll.u32 %v17359_v53, %v465_v42  ;;  %v475_v23 = vshrl.u32 %v17363_v55, %v466_v62  ;;  %10948 = vst [vmem:[%s11905_s26 + $0xc2] ss:$8 sm:$0xf0] %v12096_v59 }
  0x7a   : > { %v309_v3 = vsub.s32 0, %v12049_v61  ;;  %v468_v25 = vshll.u32 %v17366_v49, %v465_v42  ;;  %v469_v26 = vshrl.u32 %v17361_v51, %v466_v62  ;;  %v10829_v27 = vadd.s32 4294967169, %v559_v0 }
  0x7b   : > { %v12076_v24 = vshrl.u32 %v408_v45, 30  ;;  %v471_v50 = vshll.u32 %v17361_v51, %v465_v42  ;;  %v472_v29 = vshrl.u32 %v17359_v53, %v466_v62  ;;  %v477_v30 = vshll.u32 %v17363_v55, %v465_v42 }
  0x7c   : > { %v10818_v20 = vmin.u32 %v309_v3, %v12049_v61  ;;  %v478_v33 = vshrl.u32 %v17373_v57, %v466_v62  ;;  %vm483_vm15 = vcmp.lt.s32.totalorder %v12063_v11, 1  ;;  %vm486_vm0 = vcmp.lt.s32.totalorder %v12063_v11, 4 }
  0x7d   : > { %v410_v31 = vshll.u32 %v12076_v24, 30  ;;  %v329_v34 = vsub.s32 4, %v12036_v41  ;;  %v467_v37 = vshrl.u32 %v17366_v49, %v466_v62  ;;  %v476_v47 = vor.u32 %v475_v23, %v474_v22 }
  0x7e   : > { %v311_v48 = vclz %v10818_v20  ;;  %v470_v54 = vor.u32 %v469_v26, %v468_v25  ;;  %v480_v56 = vshll.u32 %v17373_v57, %v465_v42  ;;  %v481_v58 = vshrl.u32 %v17357_v2, %v466_v62 }
  0x7f   : > { %v12098_v52 = vsub.s32 %v407_v63, %v410_v31  ;;  %v473_v60 = vor.u32 %v472_v29, %v471_v50  ;;  %v479_v46 = vor.u32 %v478_v33, %v477_v30  ;;  %v488_v0 = vsel %vm486_vm0, %v476_v47, 2102212464 }
  0x80   : > { %v10819_v17 = vadd.s32 4294967294, %v311_v48  ;;  %vm484_vm2 = vcmp.lt.s32.totalorder %v12063_v11, 2  ;;  %vm485_vm3 = vcmp.lt.s32.totalorder %v12063_v11, 3  ;;  %v330_v20 = vsel %vm245_vm13, %v329_v34, %v12036_v41 }
  0x81   : > { %v413_v45 = vsub.s32 0, %v12098_v52  ;;  %v482_v23 = vor.u32 %v481_v58, %v480_v56  ;;  %v487_v25 = vsel %vm483_vm15, %v467_v37, %v470_v54  ;;  %v489_v26 = vsel %vm485_vm3, %v473_v60, %v488_v0 }
  0x82   : > { %vm10820_vm1 = vcmp.lt.s32.totalorder %v10819_v17, 0  ;;  %v491_v29 = vsel %vm483_vm15, %v470_v54, %v473_v60  ;;  %v332_v41 = vsel %vm12082_vm14, 0, %v330_v20  ;;  %v403_v30 = vadd.s32 %v12026_v32, %v12032_v35 }
  0x83   : > { %v314_v3 = vsel %vm10820_vm1, 0, %v10819_v17  ;;  %v10822_v22 = vmin.u32 %v413_v45, %v12098_v52  ;;  %v433_v33 = vsub.s32 4, %v12076_v24  ;;  %vm349_vm4 = vcmp.lt.s32.totalorder %v11932_v15, 0 }
  0x84   : > { %v315_v42 = vsub.s32 32, %v314_v3  ;;  %v316_v62 = vshll.u32 %v12049_v61, %v314_v3  ;;  %v319_v63 = vsub.s32 4294967266, %v314_v3  ;;  %v492_v61 = vsel %vm486_vm0, %v479_v46, 920167782 }
  0x85   : > { %v415_v31 = vclz %v10822_v22  ;;  %v495_v37 = vsel %vm483_vm15, %v473_v60, %v476_v47  ;;  %v490_v56 = vsel %vm484_vm2, %v487_v25, %v489_v26  ;;  %v496_v35 = vsel %vm486_vm0, %v482_v23, 1326507024 }
  0x86   : > { %v317_v48 = vshrl.u32 %v299_v18, %v315_v42  ;;  %v320_v50 = vadd.s32 127, %v319_v63  ;;  %v493_v18 = vsel %vm485_vm3, %v476_v47, %v492_v61  ;;  %v497_v3 = vsel %vm485_vm3, %v479_v46, %v496_v35 }
  0x87   : > { %v10823_v54 = vadd.s32 4294967294, %v415_v31  ;;  %v494_v32 = vsel %vm484_vm2, %v491_v29, %v493_v18  ;;  %v565_v45 = vadd.s32 1, %v10829_v27  ;;  %v498_v47 = vsel %vm484_vm2, %v495_v37, %v497_v3 }
  0x88   : > { %v318_v17 = vor.u32 %v317_v48, %v316_v62  ;;  %v321_v34 = vshll.u32 %v320_v50, 23  ;;  %v12145_v60 = vmul.u32.u64.low %v12065_v44, %v494_v32  ;;  %v12146_v42 = vmul.u32.u64.high %v12065_v44, %v494_v32, %v12145_v60 }
  0x89   : > { %vm10824_vm5 = vcmp.lt.s32.totalorder %v10823_v54, 0  ;;  %v12150_v20 = vmul.u32.u64.low %v12065_v44, %v498_v47  ;;  %v12151_v22 = vmul.u32.u64.high %v12065_v44, %v498_v47, %v12150_v20  ;;  %vm566_vm6 = vcmp.gt.s32.totalorder %v565_v45, 0 }
  0x8a   : > { %v322_v58 = vor.u32 4788187, %v321_v34  ;;  %v325_v0 = vcvt.s32.f32 %v318_v17  ;;  %v418_v63 = vsel %vm10824_vm5, 0, %v10823_v54  ;;  %vm12156_vm7 = vcmp.le.f32.partialorder %v347_v19, 0.7853982 }
  0x8b   : > { %v419_v23 = vsub.s32 32, %v418_v63  ;;  %v420_v25 = vshll.u32 %v12098_v52, %v418_v63  ;;  %v423_v46 = vsub.s32 4294967266, %v418_v63  ;;  %v506_v26 = vmul.u32 %v12065_v44, %v490_v56 }
  0x8c   : > { %v323_v62 = vand.u32 2147483647, %v322_v58  ;;  %v567_v48 = vsel %vm566_vm6, %v565_v45, 0  ;;  %v336_v50 = vadd.s32 3, %v332_v41  ;;  %v509_v31 = vadd.s32 1, %v12146_v42 }
  0x8d   : > { %v421_v29 = vshrl.u32 %v403_v30, %v419_v23  ;;  %v424_v61 = vadd.s32 127, %v423_v46  ;;  %vm508_vm8 = vc.u32 %v12151_v22, %v12145_v60  ;;  %v563_v52 = vor.u32 8388608, %v12069_v12 }
  0x8e   : > { %v326_v27 = vmul.f32 %v325_v0, %v323_v62  ;;  %v569_v34 = vand.u32 31, %v567_v48  ;;  %v434_v37 = vsel %vm349_vm4, %v433_v33, %v12076_v24  ;;  %v510_v44 = vsel %vm508_vm8, %v509_v31, %v12146_v42 }
  0x8f   : > { %v422_v18 = vor.u32 %v421_v29, %v420_v25  ;;  %v425_v19 = vshll.u32 %v424_v61, 23  ;;  %v12171_v54 = vand.u32 3, %v332_v41  ;;  %v511_v56 = vadd.s32 %v510_v44, %v506_v26 }
  0x90   : > { %v327_v17 = vxor.u32 2147483648, %v326_v27  ;;  %v570_v32 = vsub.s32 32, %v569_v34  ;;  %v12176_v35 = vand.u32 3, %v336_v50  ;;  %v436_v24 = vsel %vm12156_vm7, 0, %v434_v37 }
  0x91   : > { %v426_v58 = vor.u32 4788187, %v425_v19  ;;  %v429_v0 = vcvt.s32.f32 %v422_v18  ;;  %v512_v33 = vadd.s32 536870912, %v511_v56  ;;  %v12180_v3 = vshrl.u32 %v567_v48, 5 }
  0x92   : > { %v328_v30 = vsel %vm245_vm13, %v327_v17, %v326_v27  ;;  %v572_v45 = vshll.u32 %v17366_v49, %v569_v34  ;;  %v575_v47 = vshll.u32 %v17361_v51, %v569_v34  ;;  %v573_v28 = vshrl.u32 %v17361_v51, %v570_v32 }
  0x93   : > { %v331_v12 = vsel %vm12082_vm14, %v11929_v14, %v328_v30  ;;  %v427_v41 = vand.u32 2147483647, %v426_v58  ;;  %v12184_v42 = vshrl.u32 %v512_v33, 30  ;;  %v576_v62 = vshrl.u32 %v17359_v53, %v570_v32 }
  0x94   : > { %11473 = vcosq.f32 %v331_v12  ;;  %v581_v63 = vshll.u32 %v17363_v55, %v569_v34  ;;  %vm339_vm9 = vcmp.eq.s32.totalorder %v12176_v35, 0  ;;  %vm2018_vm10 = vcmp.eq.s32.totalorder %v12171_v54, 0 }
  0x95   : > { %11475 = vsinq.f32 %v331_v12  ;;  %vm2021_vm11 = vcmp.eq.s32.totalorder %v12171_v54, 2  ;;  %v430_v20 = vmul.f32 %v429_v0, %v427_v41  ;;  %v582_v23 = vshrl.u32 %v17373_v57, %v570_v32 }
  0x96   : > { %vm338_vm12 = vcmp.lt.s32.totalorder %v12176_v35, 2  ;;  %vm342_vm13 = vcmp.eq.s32.totalorder %v12176_v35, 2  ;;  %vm2017_vm14 = vcmp.lt.s32.totalorder %v12171_v54, 2  ;;  %v514_v25 = vshll.u32 %v12184_v42, 30 }
  0x97   : > { %v578_v46 = vshll.u32 %v17359_v53, %v569_v34  ;;  %v579_v27 = vshrl.u32 %v17363_v55, %v570_v32  ;;  %vm335_vm15 = vweird.f32 %v11929_v14  ;;  %v431_v26 = vxor.u32 2147483648, %v430_v20 }
  0x98   : > { %v440_v48 = vadd.s32 3, %v436_v24  ;;  %v12200_v50 = vand.u32 3, %v436_v24  ;;  %vm587_vm0 = vcmp.lt.s32.totalorder %v12180_v3, 1  ;;  %v12203_v29 = vsub.s32 %v511_v56, %v514_v25 }
  0x99   : > { %v574_v61 = vor.u32 %v573_v28, %v572_v45  ;;  %v577_v31 = vor.u32 %v576_v62, %v575_v47  ;;  %v583_v17 = vor.u32 %v582_v23, %v581_v63  ;;  %v432_v18 = vsel %vm349_vm4, %v431_v26, %v430_v20 }
  0x9a   : > { %v584_v19 = vshll.u32 %v17373_v57, %v569_v34  ;;  %v585_v37 = vshrl.u32 %v17357_v2, %v570_v32  ;;  %vm590_vm1 = vcmp.lt.s32.totalorder %v12180_v3, 4  ;;  %v435_v44 = vsel %vm12156_vm7, %v11932_v15, %v432_v18 }
  0x9b   : > { %v517_v30 = vsub.s32 0, %v12203_v29  ;;  %v571_v56 = vshrl.u32 %v17366_v49, %v570_v32  ;;  %v580_v12 = vor.u32 %v579_v27, %v578_v46  ;;  %11477 = vcosq.f32 %v435_v44 }
  0x9c   : > { %v12215_v58 = vand.u32 3, %v440_v48  ;;  %vm589_vm2 = vcmp.lt.s32.totalorder %v12180_v3, 3  ;;  %v12218_v0 = vshll.u32 %v563_v52, 8  ;;  %11479 = vsinq.f32 %v435_v44 }
  0x9d   : > { %v10826_v24 = vmin.u32 %v517_v30, %v12203_v29  ;;  %v592_v11 = vsel %vm590_vm1, %v580_v12, 2102212464  ;;  %v596_v33 = vsel %vm590_vm1, %v583_v17, 920167782  ;;  %vm2124_vm3 = vcmp.eq.s32.totalorder %v12200_v50, 2 }
  0x9e   : > { %v11474_v34 = vpop.eup %11473  ;;  %v586_v45 = vor.u32 %v585_v37, %v584_v19  ;;  %vm588_vm4 = vcmp.lt.s32.totalorder %v12180_v3, 2  ;;  %v595_v52 = vsel %vm587_vm0, %v574_v61, %v577_v31  ;;  %vm2121_vm5 = vcmp.eq.s32.totalorder %v12200_v50, 0 }
  0x9f   : > { %v11476_v41 = vpop.eup %11475  ;;  %v343_v32 = vxor.u32 2147483648, %v11474_v34  ;;  %v507_v28 = vadd.s32 %v12145_v60, %v12151_v22  ;;  %v519_v62 = vclz %v10826_v24  ;;  %v591_v63 = vsel %vm587_vm0, %v571_v56, %v574_v61 }
  0xa0   : > { %v340_v47 = vxor.u32 2147483648, %v11476_v41  ;;  %vm442_vm6 = vcmp.lt.s32.totalorder %v12215_v58, 2  ;;  %vm2120_vm7 = vcmp.lt.s32.totalorder %v12200_v50, 2  ;;  %v593_v25 = vsel %vm589_vm2, %v577_v31, %v592_v11 }
  0xa1   : > { %v344_v20 = vsel %vm342_vm13, %v343_v32, %v11476_v41  ;;  %v2023_v23 = vsel %vm2021_vm11, %v343_v32, %v11476_v41  ;;  %v597_v60 = vsel %vm589_vm2, %v580_v12, %v596_v33  ;;  %vm439_vm8 = vweird.f32 %v11932_v15 }
  0xa2   : > { %v341_v22 = vsel %vm339_vm9, %v11474_v34, %v340_v47  ;;  %v2020_v46 = vsel %vm2018_vm10, %v11474_v34, %v340_v47  ;;  %vm453_vm11 = vcmp.lt.s32.totalorder %v11935_v16, 0  ;;  %v10827_v27 = vadd.s32 4294967294, %v519_v62 }
  0xa3   : > { %v598_v26 = vsel %vm588_vm4, %v595_v52, %v597_v60  ;;  %v345_v48 = vsel %vm338_vm12, %v341_v22, %v344_v20  ;;  %v2024_v61 = vsel %vm2017_vm14, %v2020_v46, %v2023_v23  ;;  %v599_v18 = vsel %vm587_vm0, %v577_v31, %v580_v12 }
  0xa4   : > { %v600_v19 = vsel %vm590_vm1, %v586_v45, 1326507024  ;;  %v346_v37 = vsel %vm335_vm15, nan, %v345_v48  ;;  %v12264_v44 = vsel %vm335_vm15, nan, %v2024_v61  ;;  %vm10828_vm9 = vcmp.lt.s32.totalorder %v10827_v27, 0 }
  0xa5   : > { %v601_v35 = vsel %vm589_vm2, %v583_v17, %v600_v19  ;;  %1907 = vst [vmem:[%s11905_s26] sm:$0x1f] %v346_v37  ;;  %vm12271_vm10 = vcmp.le.f32.partialorder %v451_v43, 0.7853982  ;;  %v522_v31 = vsel %vm10828_vm9, 0, %v10827_v27  ;;  %v594_v24 = vsel %vm588_vm4, %v591_v63, %v593_v25  ;;  %v11478_v43 = vpop.eup %11477 }
  0xa6   : > { %v602_v30 = vsel %vm588_vm4, %v599_v18, %v601_v35  ;;  %v12278_v56 = vmul.u32.u64.low %v12218_v0, %v598_v26  ;;  %v12279_v14 = vmul.u32.u64.high %v12218_v0, %v598_v26, %v12278_v56  ;;  %v523_v12 = vsub.s32 32, %v522_v31  ;;  %v11480_v32 = vpop.eup %11479 }
  0xa7   : > { %v524_v34 = vshll.u32 %v12203_v29, %v522_v31  ;;  %v527_v17 = vsub.s32 4294967266, %v522_v31  ;;  %vm446_vm12 = vcmp.eq.s32.totalorder %v12215_v58, 2  ;;  %v537_v11 = vsub.s32 4, %v12184_v42 }
  0xa8   : > { %v12288_v33 = vmul.u32.u64.low %v12218_v0, %v602_v30  ;;  %v12289_v41 = vmul.u32.u64.high %v12218_v0, %v602_v30, %v12288_v33  ;;  %vm443_vm13 = vcmp.eq.s32.totalorder %v12215_v58, 0  ;;  %v447_v45 = vxor.u32 2147483648, %v11478_v43 }
  0xa9   : > { %v525_v52 = vshrl.u32 %v507_v28, %v523_v12  ;;  %v528_v47 = vadd.s32 127, %v527_v17  ;;  %v444_v29 = vxor.u32 2147483648, %v11480_v32  ;;  %v610_v62 = vmul.u32 %v12218_v0, %v594_v24 }
  0xaa   : > { %v613_v3 = vadd.s32 1, %v12279_v14  ;;  %v662_v63 = vand.u32 2139095040, %v12054_v5  ;;  %v448_v20 = vsel %vm446_vm12, %v447_v45, %v11480_v32  ;;  %v2126_v23 = vsel %vm2124_vm3, %v447_v45, %v11480_v32 }
  0xab   : > { %v526_v25 = vor.u32 %v525_v52, %v524_v34  ;;  %v529_v60 = vshll.u32 %v528_v47, 23  ;;  %v445_v22 = vsel %vm443_vm13, %v11478_v43, %v444_v29  ;;  %v2123_v46 = vsel %vm2121_vm5, %v11478_v43, %v444_v29 }
  0xac   : > { %v538_v28 = vsel %vm453_vm11, %v537_v11, %v12184_v42  ;;  %vm612_vm14 = vc.u32 %v12289_v41, %v12278_v56  ;;  %v449_v0 = vsel %vm442_vm6, %v445_v22, %v448_v20  ;;  %v2127_v27 = vsel %vm2120_vm7, %v2123_v46, %v2126_v23 }
  0xad   : > { %v530_v26 = vor.u32 4788187, %v529_v60  ;;  %v533_v48 = vcvt.s32.f32 %v526_v25  ;;  %v450_v61 = vsel %vm439_vm8, nan, %v449_v0  ;;  %v12312_v18 = vsel %vm439_vm8, nan, %v2127_v27 }
  0xae   : > { %v614_v42 = vsel %vm612_vm14, %v613_v3, %v12279_v14  ;;  %v663_v19 = vshrl.u32 %v662_v63, 23  ;;  %1908 = vst [vmem:[%s11905_s26 + $0x8] sm:$0x1f] %v450_v61  ;;  %v540_v58 = vsel %vm12271_vm10, 0, %v538_v28  ;;  %v659_v50 = vand.u32 2147483647, %v12054_v5 }
  0xaf   : > { %v531_v37 = vand.u32 2147483647, %v530_v26  ;;  %v615_v35 = vadd.s32 %v614_v42, %v610_v62  ;;  %v766_v30 = vand.u32 2139095040, %v12057_v9  ;;  %v544_v17 = vadd.s32 3, %v540_v58 }
  0xb0   : > { %v10833_v31 = vadd.s32 4294967169, %v663_v19  ;;  %v174_v24 = vrot.slane %v11903_v4, %v12060_v10  ;;  %v666_v11 = vand.u32 8388607, %v659_v50  ;;  %v763_v33 = vand.u32 2147483647, %v12057_v9 }
  0xb1   : > { %v534_v12 = vmul.f32 %v533_v48, %v531_v37  ;;  %v616_v34 = vadd.s32 536870912, %v615_v35  ;;  %v767_v32 = vshrl.u32 %v766_v30, 23  ;;  %v12327_v52 = vand.u32 3, %v540_v58 }
  0xb2   : > { %v669_v15 = vadd.s32 1, %v10833_v31  ;;  %v12332_v3 = vand.u32 3, %v544_v17  ;;  %v12335_v20 = vmul.f32 %v174_v24, %v11926_v13  ;;  %vm557_vm0 = vcmp.lt.s32.totalorder %v11955_v38, 0 }
  0xb3   : > { %v535_v14 = vxor.u32 2147483648, %v534_v12  ;;  %v617_v43 = vshrl.u32 %v616_v34, 30  ;;  %v667_v25 = vor.u32 8388608, %v666_v11  ;;  %v10837_v22 = vadd.s32 4294967169, %v767_v32 }
  0xb4   : > { %vm670_vm15 = vcmp.gt.s32.totalorder %v669_v15, 0  ;;  %v12342_v46 = vand.u32 8388607, %v763_v33  ;;  %vm2227_vm1 = vcmp.eq.s32.totalorder %v12327_v52, 2  ;;  %vm547_vm2 = vcmp.eq.s32.totalorder %v12332_v3, 0 }
  0xb5   : > { %v536_v45 = vsel %vm453_vm11, %v535_v14, %v534_v12  ;;  %v618_v47 = vshll.u32 %v617_v43, 30  ;;  %v671_v29 = vsel %vm670_vm15, %v669_v15, 0  ;;  %v641_v28 = vsub.s32 4, %v617_v43 }
  0xb6   : > { %v539_v62 = vsel %vm12271_vm10, %v11935_v16, %v536_v45  ;;  %v673_v63 = vand.u32 31, %v671_v29  ;;  %vm550_vm3 = vcmp.eq.s32.totalorder %v12332_v3, 2  ;;  %vm2224_vm4 = vcmp.eq.s32.totalorder %v12327_v52, 0 }
  0xb7   : > { %11481 = vcosq.f32 %v539_v62  ;;  %v12338_v23 = vsub.s32 %v615_v35, %v618_v47  ;;  %vm546_vm5 = vcmp.lt.s32.totalorder %v12332_v3, 2  ;;  %vm2223_vm6 = vcmp.lt.s32.totalorder %v12327_v52, 2 }
  0xb8   : > { %11483 = vsinq.f32 %v539_v62  ;;  %v674_v60 = vsub.s32 32, %v673_v63  ;;  %v676_v0 = vshll.u32 %v17366_v49, %v673_v63  ;;  %v679_v26 = vshll.u32 %v17361_v51, %v673_v63 }
  0xb9   : > { %v621_v54 = vsub.s32 0, %v12338_v23  ;;  %v611_v61 = vadd.s32 %v12278_v56, %v12289_v41  ;;  %v12358_v19 = vshrl.u32 %v671_v29, 5  ;;  %v682_v37 = vshll.u32 %v17359_v53, %v673_v63 }
  0xba   : > { %v677_v27 = vshrl.u32 %v17361_v51, %v674_v60  ;;  %v680_v48 = vshrl.u32 %v17359_v53, %v674_v60  ;;  %vm543_vm7 = vweird.f32 %v11935_v16  ;;  %v683_v58 = vshrl.u32 %v17363_v55, %v674_v60 }
  0xbb   : > { %v10830_v42 = vmin.u32 %v621_v54, %v12338_v23  ;;  %v12363_v35 = vshll.u32 %v667_v25, 8  ;;  %v771_v31 = vor.u32 8388608, %v12342_v46  ;;  %v773_v30 = vadd.s32 1, %v10837_v22 }
  0xbc   : > { %v642_v34 = vsel %vm557_vm0, %v641_v28, %v617_v43  ;;  %v675_v56 = vshrl.u32 %v17366_v49, %v674_v60  ;;  %v678_v41 = vor.u32 %v677_v27, %v676_v0  ;;  %v681_v17 = vor.u32 %v680_v48, %v679_v26 }
  0xbd   : > { %v623_v12 = vclz %v10830_v42  ;;  %v685_v15 = vshll.u32 %v17363_v55, %v673_v63  ;;  %v686_v24 = vshrl.u32 %v17373_v57, %v674_v60  ;;  %v688_v14 = vshll.u32 %v17373_v57, %v673_v63 }
  0xbe   : > { %v684_v32 = vor.u32 %v683_v58, %v682_v37  ;;  %v689_v45 = vshrl.u32 %v17357_v2, %v674_v60  ;;  %vm691_vm8 = vcmp.lt.s32.totalorder %v12358_v19, 1  ;;  %vm692_vm11 = vcmp.lt.s32.totalorder %v12358_v19, 2 }
  0xbf   : > { %v10831_v11 = vadd.s32 4294967294, %v623_v12  ;;  %v687_v47 = vor.u32 %v686_v24, %v685_v15  ;;  %vm693_vm9 = vcmp.lt.s32.totalorder %v12358_v19, 3  ;;  %vm694_vm10 = vcmp.lt.s32.totalorder %v12358_v19, 4 }
  0xc0   : > { %vm12379_vm12 = vcmp.le.f32.partialorder %v555_v40, 0.7853982  ;;  %v690_v62 = vor.u32 %v689_v45, %v688_v14  ;;  %v695_v63 = vsel %vm691_vm8, %v675_v56, %v678_v41  ;;  %v696_v25 = vsel %vm694_vm10, %v684_v32, 2102212464 }
  0xc1   : > { %v11482_v43 = vpop.eup %11481  ;;  %vm10832_vm13 = vcmp.lt.s32.totalorder %v10831_v11, 0  ;;  %v699_v28 = vsel %vm691_vm8, %v678_v41, %v681_v17  ;;  %v700_v40 = vsel %vm694_vm10, %v687_v47, 920167782  ;;  %v697_v58 = vsel %vm693_vm9, %v681_v17, %v696_v25 }
  0xc2   : > { %v11484_v60 = vpop.eup %11483  ;;  %v551_v22 = vxor.u32 2147483648, %v11482_v43  ;;  %v626_v54 = vsel %vm10832_vm13, 0, %v10831_v11  ;;  %v701_v12 = vsel %vm693_vm9, %v684_v32, %v700_v40  ;;  %v703_v45 = vsel %vm691_vm8, %v681_v17, %v684_v32 }
  0xc3   : > { %v548_v0 = vxor.u32 2147483648, %v11484_v60  ;;  %v627_v27 = vsub.s32 32, %v626_v54  ;;  %v628_v26 = vshll.u32 %v12338_v23, %v626_v54  ;;  %v631_v48 = vsub.s32 4294967266, %v626_v54 }
  0xc4   : > { %v552_v42 = vsel %vm550_vm3, %v551_v22, %v11484_v60  ;;  %v2229_v37 = vsel %vm2227_vm1, %v551_v22, %v11484_v60  ;;  %v702_v11 = vsel %vm692_vm11, %v699_v28, %v701_v12  ;;  %v704_v52 = vsel %vm694_vm10, %v690_v62, 1326507024 }
  0xc5   : > { %v549_v56 = vsel %vm547_vm2, %v11482_v43, %v548_v0  ;;  %v2226_v23 = vsel %vm2224_vm4, %v11482_v43, %v548_v0  ;;  %v629_v41 = vshrl.u32 %v611_v61, %v627_v27  ;;  %v632_v15 = vadd.s32 127, %v631_v48 }
  0xc6   : > { %v553_v24 = vsel %vm546_vm5, %v549_v56, %v552_v42  ;;  %v2230_v14 = vsel %vm2223_vm6, %v2226_v23, %v2229_v37  ;;  %v12422_v3 = vmul.u32.u64.low %v12363_v35, %v702_v11  ;;  %v12423_v22 = vmul.u32.u64.high %v12363_v35, %v702_v11, %v12422_v3 }
  0xc7   : > { %v554_v25 = vsel %vm543_vm7, nan, %v553_v24  ;;  %v12416_v43 = vsel %vm543_vm7, nan, %v2230_v14  ;;  %v630_v61 = vor.u32 %v629_v41, %v628_v26  ;;  %v633_v60 = vshll.u32 %v632_v15, 23 }
  0xc8   : > { %1909 = vst [vmem:[%s11905_s26 + $0x10] sm:$0x1f] %v554_v25  ;;  %v870_v17 = vand.u32 2139095040, %v12335_v20  ;;  %v705_v16 = vsel %vm693_vm9, %v687_v47, %v704_v52  ;;  %vm774_vm14 = vcmp.gt.s32.totalorder %v773_v30, 0  ;;  %v644_v28 = vsel %vm12379_vm12, 0, %v642_v34 }
  0xc9   : > { %v634_v32 = vor.u32 4788187, %v633_v60  ;;  %v637_v54 = vcvt.s32.f32 %v630_v61  ;;  %v698_v40 = vsel %vm692_vm11, %v695_v63, %v697_v58  ;;  %v706_v62 = vsel %vm692_vm11, %v703_v45, %v705_v16 }
  0xca   : > { %v775_v0 = vsel %vm774_vm14, %v773_v30, 0  ;;  %v12436_v26 = vmul.u32.u64.low %v12363_v35, %v706_v62  ;;  %v12437_v48 = vmul.u32.u64.high %v12363_v35, %v706_v62, %v12436_v26  ;;  %v717_v47 = vadd.s32 1, %v12423_v22 }
  0xcb   : > { %v635_v27 = vand.u32 2147483647, %v634_v32  ;;  %v12439_v42 = vshrl.u32 %v775_v0, 5  ;;  %v777_v37 = vand.u32 31, %v775_v0  ;;  %v12444_v34 = vshll.u32 %v771_v31, 8 }
  0xcc   : > { %v648_v63 = vadd.s32 3, %v644_v28  ;;  %v714_v19 = vmul.u32 %v12363_v35, %v698_v40  ;;  %v871_v58 = vshrl.u32 %v870_v17, 23  ;;  %vm716_vm1 = vc.u32 %v12437_v48, %v12422_v3 }
  0xcd   : > { %v638_v12 = vmul.f32 %v637_v54, %v635_v27  ;;  %v778_v30 = vsub.s32 32, %v777_v37  ;;  %v780_v56 = vshll.u32 %v17366_v49, %v777_v37  ;;  %v783_v23 = vshll.u32 %v17361_v51, %v777_v37 }
  0xce   : > { %vm795_vm15 = vcmp.lt.s32.totalorder %v12439_v42, 1  ;;  %v786_v46 = vshll.u32 %v17359_v53, %v777_v37  ;;  %v789_v31 = vshll.u32 %v17363_v55, %v777_v37  ;;  %v718_v15 = vsel %vm716_vm1, %v717_v47, %v12423_v22 }
  0xcf   : > { %v639_v41 = vxor.u32 2147483648, %v638_v12  ;;  %v781_v35 = vshrl.u32 %v17361_v51, %v778_v30  ;;  %v784_v24 = vshrl.u32 %v17359_v53, %v778_v30  ;;  %vm797_vm2 = vcmp.lt.s32.totalorder %v12439_v42, 3 }
  0xd0   : > { %v719_v11 = vadd.s32 %v718_v15, %v714_v19  ;;  %v787_v45 = vshrl.u32 %v17363_v55, %v778_v30  ;;  %v790_v25 = vshrl.u32 %v17373_v57, %v778_v30  ;;  %v792_v22 = vshll.u32 %v17373_v57, %v777_v37 }
  0xd1   : > { %v640_v14 = vsel %vm557_vm0, %v639_v41, %v638_v12  ;;  %v782_v60 = vor.u32 %v781_v35, %v780_v56  ;;  %v785_v52 = vor.u32 %v784_v24, %v783_v23  ;;  %v793_v16 = vshrl.u32 %v17357_v2, %v778_v30 }
  0xd2   : > { %v643_v61 = vsel %vm12379_vm12, %v11955_v38, %v640_v14  ;;  %v720_v17 = vadd.s32 536870912, %v719_v11  ;;  %v788_v32 = vor.u32 %v787_v45, %v786_v46  ;;  %v791_v54 = vor.u32 %v790_v25, %v789_v31 }
  0xd3   : > { %11485 = vcosq.f32 %v643_v61  ;;  %vm796_vm0 = vcmp.lt.s32.totalorder %v12439_v42, 2  ;;  %vm798_vm3 = vcmp.lt.s32.totalorder %v12439_v42, 4  ;;  %v779_v62 = vshrl.u32 %v17366_v49, %v778_v30 }
  0xd4   : > { %11487 = vsinq.f32 %v643_v61  ;;  %v721_v40 = vshrl.u32 %v720_v17, 30  ;;  %v803_v29 = vsel %vm795_vm15, %v782_v60, %v785_v52  ;;  %v804_v0 = vsel %vm798_vm3, %v791_v54, 920167782 }
  0xd5   : > { %v794_v27 = vor.u32 %v793_v16, %v792_v22  ;;  %v800_v26 = vsel %vm798_vm3, %v788_v32, 2102212464  ;;  %v805_v47 = vsel %vm797_vm2, %v788_v32, %v804_v0  ;;  %v10841_v37 = vadd.s32 4294967169, %v871_v58 }
  0xd6   : > { %v2325_v12 = vand.u32 3, %v644_v28  ;;  %v722_v19 = vshll.u32 %v721_v40, 30  ;;  %v806_v56 = vsel %vm796_vm0, %v803_v29, %v805_v47  ;;  %v807_v23 = vsel %vm795_vm15, %v785_v52, %v788_v32 }
  0xd7   : > { %v649_v41 = vand.u32 3, %v648_v63  ;;  %v808_v30 = vsel %vm798_vm3, %v794_v27, 1326507024  ;;  %v12479_v46 = vmul.u32.u64.low %v12444_v34, %v806_v56  ;;  %v12480_v31 = vmul.u32.u64.high %v12444_v34, %v806_v56, %v12479_v46 }
  0xd8   : > { %v12483_v15 = vsub.s32 %v719_v11, %v722_v19  ;;  %v799_v58 = vsel %vm795_vm15, %v779_v62, %v782_v60  ;;  %v801_v28 = vsel %vm797_vm2, %v785_v52, %v800_v26  ;;  %v809_v35 = vsel %vm797_vm2, %v791_v54, %v808_v30 }
  0xd9   : > { %vm647_vm4 = vweird.f32 %v11955_v38  ;;  %vm661_vm5 = vcmp.lt.s32.totalorder %v12054_v5, 0  ;;  %v810_v63 = vsel %vm796_vm0, %v807_v23, %v809_v35  ;;  %v877_v24 = vadd.s32 1, %v10841_v37 }
  0xda   : > { %vm2326_vm6 = vcmp.lt.s32.totalorder %v2325_v12, 2  ;;  %vm2327_vm7 = vcmp.eq.s32.totalorder %v2325_v12, 0  ;;  %vm12497_vm8 = vcmp.le.f32.partialorder %v659_v50, 0.7853982  ;;  %v725_v11 = vsub.s32 0, %v12483_v15 }
  0xdb   : > { %v867_v45 = vand.u32 2147483647, %v12335_v20  ;;  %v745_v25 = vsub.s32 4, %v721_v40  ;;  %v802_v61 = vsel %vm796_vm0, %v799_v58, %v801_v28  ;;  %vm654_vm11 = vcmp.eq.s32.totalorder %v649_v41, 2 }
  0xdc   : > { %v12506_v60 = vmul.u32.u64.low %v12444_v34, %v810_v63  ;;  %v12507_v52 = vmul.u32.u64.high %v12444_v34, %v810_v63, %v12506_v60  ;;  %vm2330_vm9 = vcmp.eq.s32.totalorder %v2325_v12, 2  ;;  %v10834_v50 = vmin.u32 %v725_v11, %v12483_v15 }
  0xdd   : > { %v11486_v22 = vpop.eup %11485  ;;  %vm878_vm10 = vcmp.gt.s32.totalorder %v877_v24, 0  ;;  %vm650_vm12 = vcmp.lt.s32.totalorder %v649_v41, 2  ;;  %vm651_vm13 = vcmp.eq.s32.totalorder %v649_v41, 0  ;;  %v821_v54 = vadd.s32 1, %v12480_v31 }
  0xde   : > { %v11488_v17 = vpop.eup %11487  ;;  %v655_v32 = vxor.u32 2147483648, %v11486_v22  ;;  %v727_v62 = vclz %v10834_v50  ;;  %v818_v42 = vmul.u32 %v12444_v34, %v802_v61  ;;  %v874_v29 = vand.u32 8388607, %v867_v45 }
  0xdf   : > { %v652_v16 = vxor.u32 2147483648, %v11488_v17  ;;  %v746_v26 = vsel %vm661_vm5, %v745_v25, %v721_v40  ;;  %v879_v47 = vsel %vm878_vm10, %v877_v24, 0  ;;  %vm820_vm14 = vc.u32 %v12507_v52, %v12479_v46 }
  0xe0   : > { %v656_v0 = vsel %vm654_vm11, %v655_v32, %v11488_v17  ;;  %v2332_v27 = vsel %vm2330_vm9, %v655_v32, %v11488_v17  ;;  %v10835_v56 = vadd.s32 4294967294, %v727_v62  ;;  %v715_v30 = vadd.s32 %v12422_v3, %v12437_v48 }
  0xe1   : > { %v653_v37 = vsel %vm651_vm13, %v11486_v22, %v652_v16  ;;  %v2329_v19 = vsel %vm2327_vm7, %v11486_v22, %v652_v16  ;;  %v822_v58 = vsel %vm820_vm14, %v821_v54, %v12480_v31  ;;  %v748_v12 = vsel %vm12497_vm8, 0, %v746_v26 }
  0xe2   : > { %v657_v23 = vsel %vm650_vm12, %v653_v37, %v656_v0  ;;  %v2333_v34 = vsel %vm2326_vm6, %v2329_v19, %v2332_v27  ;;  %vm10836_vm15 = vcmp.lt.s32.totalorder %v10835_v56, 0  ;;  %v823_v35 = vadd.s32 %v822_v58, %v818_v42 }
  0xe3   : > { %v658_v40 = vsel %vm647_vm4, nan, %v657_v23  ;;  %v12528_v28 = vsel %vm647_vm4, nan, %v2333_v34  ;;  %v730_v63 = vsel %vm10836_vm15, 0, %v10835_v56  ;;  %v881_v41 = vand.u32 31, %v879_v47 }
  0xe4   : > { %1910 = vst [vmem:[%s11905_s26 + $0x18] sm:$0x1f] %v658_v40  ;;  %v731_v24 = vsub.s32 32, %v730_v63  ;;  %v732_v3 = vshll.u32 %v12483_v15, %v730_v63  ;;  %v735_v48 = vsub.s32 4294967266, %v730_v63  ;;  %v824_v31 = vadd.s32 536870912, %v823_v35 }
  0xe5   : > { %v875_v11 = vor.u32 8388608, %v874_v29  ;;  %v882_v25 = vsub.s32 32, %v881_v41  ;;  %v12534_v38 = vadd.s32 3, %v748_v12  ;;  %v880_v50 = vshrl.u32 %v879_v47, 5 }
  0xe6   : > { %v733_v61 = vshrl.u32 %v715_v30, %v731_v24  ;;  %v736_v60 = vadd.s32 127, %v735_v48  ;;  %v825_v22 = vshrl.u32 %v824_v31, 30  ;;  %v884_v17 = vshll.u32 %v17366_v49, %v881_v41 }
  0xe7   : > { %v885_v32 = vshrl.u32 %v17361_v51, %v882_v25  ;;  %v887_v54 = vshll.u32 %v17361_v51, %v881_v41  ;;  %vm765_vm1 = vcmp.lt.s32.totalorder %v12057_v9, 0  ;;  %v888_v42 = vshrl.u32 %v17359_v53, %v882_v25 }
  0xe8   : > { %v734_v16 = vor.u32 %v733_v61, %v732_v3  ;;  %v737_v62 = vshll.u32 %v736_v60, 23  ;;  %v826_v15 = vshll.u32 %v825_v22, 30  ;;  %v890_v29 = vshll.u32 %v17359_v53, %v881_v41 }
  0xe9   : > { %v891_v0 = vshrl.u32 %v17363_v55, %v882_v25  ;;  %v893_v27 = vshll.u32 %v17363_v55, %v881_v41  ;;  %v894_v26 = vshrl.u32 %v17373_v57, %v882_v25  ;;  %v12545_v19 = vand.u32 3, %v748_v12 }
  0xea   : > { %v738_v47 = vor.u32 4788187, %v737_v62  ;;  %v741_v37 = vcvt.s32.f32 %v734_v16  ;;  %v12547_v56 = vsub.s32 %v823_v35, %v826_v15  ;;  %v883_v23 = vshrl.u32 %v17366_v49, %v882_v25 }
  0xeb   : > { %v896_v34 = vshll.u32 %v17373_v57, %v881_v41  ;;  %v897_v30 = vshrl.u32 %v17357_v2, %v882_v25  ;;  %v12552_v58 = vshll.u32 %v875_v11, 8  ;;  %v886_v24 = vor.u32 %v885_v32, %v884_v17 }
  0xec   : > { %v739_v40 = vand.u32 2147483647, %v738_v47  ;;  %v829_v63 = vsub.s32 0, %v12547_v56  ;;  %v889_v3 = vor.u32 %v888_v42, %v887_v54  ;;  %v849_v48 = vsub.s32 4, %v825_v22 }
  0xed   : > { %v892_v31 = vor.u32 %v891_v0, %v890_v29  ;;  %v895_v61 = vor.u32 %v894_v26, %v893_v27  ;;  %vm899_vm2 = vcmp.lt.s32.totalorder %v880_v50, 1  ;;  %vm902_vm0 = vcmp.lt.s32.totalorder %v880_v50, 4 }
  0xee   : > { %v742_v12 = vmul.f32 %v741_v37, %v739_v40  ;;  %v10838_v35 = vmin.u32 %v829_v63, %v12547_v56  ;;  %v12557_v60 = vsub.s32 7, %v11899_v1  ;;  %vm12561_vm3 = vcmp.le.f32.partialorder %v763_v33, 0.7853982 }
  0xef   : > { %v898_v11 = vor.u32 %v897_v30, %v896_v34  ;;  %vm900_vm4 = vcmp.lt.s32.totalorder %v880_v50, 2  ;;  %vm901_vm6 = vcmp.lt.s32.totalorder %v880_v50, 3  ;;  %v904_v25 = vsel %vm902_vm0, %v892_v31, 2102212464 }
  0xf0   : > { %17594 = vst [vmem:[#allocation15_spill] sm:$0xff] %v12557_v60  ;;  %v743_v17 = vxor.u32 2147483648, %v742_v12  ;;  %v831_v32 = vclz %v10838_v35  ;;  %v903_v54 = vsel %vm899_vm2, %v883_v23, %v886_v24  ;;  %v907_v16 = vsel %vm899_vm2, %v886_v24, %v889_v3 }
  0xf1   : > { %v819_v1 = vadd.s32 %v12479_v46, %v12507_v52  ;;  %v850_v33 = vsel %vm765_vm1, %v849_v48, %v825_v22  ;;  %v905_v62 = vsel %vm901_vm6, %v889_v3, %v904_v25  ;;  %v908_v15 = vsel %vm902_vm0, %v895_v61, 920167782 }
  0xf2   : > { %v744_v42 = vsel %vm661_vm5, %v743_v17, %v742_v12  ;;  %v10839_v29 = vadd.s32 4294967294, %v831_v32  ;;  %v909_v0 = vsel %vm901_vm6, %v892_v31, %v908_v15  ;;  %v911_v27 = vsel %vm899_vm2, %v889_v3, %v892_v31 }
  0xf3   : > { %v747_v26 = vsel %vm12497_vm8, %v12054_v5, %v744_v42  ;;  %v906_v46 = vsel %vm900_vm4, %v903_v54, %v905_v62  ;;  %v910_v52 = vsel %vm900_vm4, %v907_v16, %v909_v0  ;;  %v912_v22 = vsel %vm902_vm0, %v898_v11, 1326507024 }
  0xf4   : > { %11489 = vcosq.f32 %v747_v26  ;;  %vm10840_vm7 = vcmp.lt.s32.totalorder %v10839_v29, 0  ;;  %v913_v47 = vsel %vm901_vm6, %v895_v61, %v912_v22  ;;  %v178_v37 = vrot.slane %v11903_v4, %v12557_v60 }
  0xf5   : > { %11491 = vsinq.f32 %v747_v26  ;;  %v834_v23 = vsel %vm10840_vm7, 0, %v10839_v29  ;;  %v914_v34 = vsel %vm900_vm4, %v911_v27, %v913_v47  ;;  %v182_v14 = vrot.slane %v12096_v59, %v11912_v6 }
  0xf6   : > { %v835_v30 = vsub.s32 32, %v834_v23  ;;  %v836_v40 = vshll.u32 %v12547_v56, %v834_v23  ;;  %v839_v63 = vsub.s32 4294967266, %v834_v23  ;;  %v12592_v24 = vmul.f32 %v178_v37, %v11926_v13 }
  0xf7   : > { %v12595_v3 = vmul.u32.u64.low %v12552_v58, %v914_v34  ;;  %v12596_v48 = vmul.u32.u64.high %v12552_v58, %v914_v34, %v12595_v3  ;;  %v12599_v4 = vmul.u32.u64.low %v12552_v58, %v910_v52  ;;  %v12600_v31 = vmul.u32.u64.high %v12552_v58, %v910_v52, %v12599_v4 }
  0xf8   : > { %v753_v50 = vand.u32 3, %v12534_v38  ;;  %v837_v61 = vshrl.u32 %v819_v1, %v835_v30  ;;  %v840_v12 = vadd.s32 127, %v839_v63  ;;  %v852_v56 = vsel %vm12561_vm3, 0, %v850_v33 }
  0xf9   : > { %vm751_vm5 = vweird.f32 %v12054_v5  ;;  %vm2429_vm8 = vcmp.lt.s32.totalorder %v12545_v19, 2  ;;  %vm2430_vm11 = vcmp.eq.s32.totalorder %v12545_v19, 0  ;;  %v974_v35 = vand.u32 2139095040, %v12592_v24 }
  0xfa   : > { %v12611_v11 = vmul.f32 %v182_v14, %v11926_v13  ;;  %vm2433_vm9 = vcmp.eq.s32.totalorder %v12545_v19, 2  ;;  %v838_v25 = vor.u32 %v837_v61, %v836_v40  ;;  %v841_v38 = vshll.u32 %v840_v12, 23 }
  0xfb   : > { %v922_v17 = vmul.u32 %v12552_v58, %v906_v46  ;;  %v856_v32 = vadd.s32 3, %v852_v56  ;;  %vm924_vm10 = vc.u32 %v12596_v48, %v12599_v4  ;;  %v925_v54 = vadd.s32 1, %v12600_v31 }
  0xfc   : > { %v975_v16 = vshrl.u32 %v974_v35, 23  ;;  %vm754_vm12 = vcmp.lt.s32.totalorder %v753_v50, 2  ;;  %v842_v1 = vor.u32 4788187, %v841_v38  ;;  %v845_v33 = vcvt.s32.f32 %v838_v25 }
  0xfd   : > { %v971_v62 = vand.u32 2147483647, %v12592_v24  ;;  %vm755_vm13 = vcmp.eq.s32.totalorder %v753_v50, 0  ;;  %v926_v15 = vsel %vm924_vm10, %v925_v54, %v12600_v31  ;;  %v1078_v29 = vand.u32 2139095040, %v12611_v11 }
  0xfe   : > { %v10845_v42 = vadd.s32 4294967169, %v975_v16  ;;  %v11490_v0 = vpop.eup %11489  ;;  %vm758_vm14 = vcmp.eq.s32.totalorder %v753_v50, 2  ;;  %v843_v58 = vand.u32 2147483647, %v842_v1  ;;  %v12621_v27 = vand.u32 3, %v852_v56 }
  0xff   : > { %v927_v26 = vadd.s32 %v926_v15, %v922_v17  ;;  %v11492_v46 = vpop.eup %11491  ;;  %v759_v52 = vxor.u32 2147483648, %v11490_v0  ;;  %v12623_v22 = vand.u32 3, %v856_v32  ;;  %v1075_v37 = vand.u32 2147483647, %v12611_v11 }
 0x100   : > { %v981_v47 = vadd.s32 1, %v10845_v42  ;;  %v756_v23 = vxor.u32 2147483648, %v11492_v46  ;;  %v846_v34 = vmul.f32 %v845_v33, %v843_v58  ;;  %v978_v30 = vand.u32 8388607, %v971_v62 }
 0x101   : > { %v928_v14 = vadd.s32 536870912, %v927_v26  ;;  %v760_v40 = vsel %vm758_vm14, %v759_v52, %v11492_v46  ;;  %v2435_v63 = vsel %vm2433_vm9, %v759_v52, %v11492_v46  ;;  %v1079_v3 = vshrl.u32 %v1078_v29, 23 }
 0x102   : > { %vm982_vm15 = vcmp.gt.s32.totalorder %v981_v47, 0  ;;  %v757_v31 = vsel %vm755_vm13, %v11490_v0, %v756_v23  ;;  %v2432_v61 = vsel %vm2430_vm11, %v11490_v0, %v756_v23  ;;  %v847_v12 = vxor.u32 2147483648, %v846_v34 }
 0x103   : > { %v929_v56 = vshrl.u32 %v928_v14, 30  ;;  %v761_v35 = vsel %vm754_vm12, %v757_v31, %v760_v40  ;;  %v2436_v25 = vsel %vm2429_vm8, %v2432_v61, %v2435_v63  ;;  %v983_v38 = vsel %vm982_vm15, %v981_v47, 0 }
 0x104   : > { %v1082_v17 = vand.u32 8388607, %v1075_v37  ;;  %v762_v32 = vsel %vm751_vm5, nan, %v761_v35  ;;  %v12642_v54 = vsel %vm751_vm5, nan, %v2436_v25  ;;  %v848_v16 = vsel %vm765_vm1, %v847_v12, %v846_v34 }
 0x105   : > { %v930_v1 = vshll.u32 %v929_v56, 30  ;;  %1911 = vst [vmem:[%s11905_s26 + $0x20] sm:$0x1f] %v762_v32  ;;  %v851_v19 = vsel %vm12561_vm3, %v12057_v9, %v848_v16  ;;  %v985_v50 = vand.u32 31, %v983_v38  ;;  %vm869_vm2 = vcmp.lt.s32.totalorder %v12335_v20, 0 }
 0x106   : > { %11493 = vcosq.f32 %v851_v19  ;;  %v979_v15 = vor.u32 8388608, %v978_v30  ;;  %vm862_vm0 = vcmp.eq.s32.totalorder %v12623_v22, 2  ;;  %vm2536_vm4 = vcmp.eq.s32.totalorder %v12621_v27, 2 }
 0x107   : > { %v12650_v33 = vsub.s32 %v927_v26, %v930_v1  ;;  %11495 = vsinq.f32 %v851_v19  ;;  %v986_v5 = vsub.s32 32, %v985_v50  ;;  %v953_v29 = vsub.s32 4, %v929_v56 }
 0x108   : > { %v10849_v0 = vadd.s32 4294967169, %v1079_v3  ;;  %v1083_v58 = vor.u32 8388608, %v1082_v17  ;;  %vm859_vm1 = vcmp.eq.s32.totalorder %v12623_v22, 0  ;;  %vm2533_vm3 = vcmp.eq.s32.totalorder %v12621_v27, 0 }
 0x109   : > { %v933_v42 = vsub.s32 0, %v12650_v33  ;;  %v988_v41 = vshll.u32 %v17366_v49, %v985_v50  ;;  %v989_v26 = vshrl.u32 %v17361_v51, %v986_v5  ;;  %v991_v46 = vshll.u32 %v17361_v51, %v985_v50 }
 0x10a   : > { %v186_v52 = vrot.slane %v12096_v59, %v11915_v7  ;;  %vm858_vm6 = vcmp.lt.s32.totalorder %v12623_v22, 2  ;;  %vm2532_vm7 = vcmp.lt.s32.totalorder %v12621_v27, 2  ;;  %v992_v23 = vshrl.u32 %v17359_v53, %v986_v5 }
 0x10b   : > { %v10842_v47 = vmin.u32 %v933_v42, %v12650_v33  ;;  %v994_v34 = vshll.u32 %v17359_v53, %v985_v50  ;;  %v995_v14 = vshrl.u32 %v17363_v55, %v986_v5  ;;  %vm855_vm5 = vweird.f32 %v12057_v9 }
 0x10c   : > { %v923_v30 = vadd.s32 %v12599_v4, %v12596_v48  ;;  %v984_v40 = vshrl.u32 %v983_v38, 5  ;;  %v997_v63 = vshll.u32 %v17363_v55, %v985_v50  ;;  %v12673_v3 = vshll.u32 %v979_v15, 8 }
 0x10d   : > { %v935_v31 = vclz %v10842_v47  ;;  %v954_v61 = vsel %vm869_vm2, %v953_v29, %v929_v56  ;;  %v1085_v12 = vadd.s32 1, %v10849_v0  ;;  %v12677_v35 = vshll.u32 %v1083_v58, 8 }
 0x10e   : > { %v987_v25 = vshrl.u32 %v17366_v49, %v986_v5  ;;  %v990_v17 = vor.u32 %v989_v26, %v988_v41  ;;  %v993_v32 = vor.u32 %v992_v23, %v991_v46  ;;  %v998_v16 = vshrl.u32 %v17373_v57, %v986_v5 }
 0x10f   : > { %v10843_v1 = vadd.s32 4294967294, %v935_v31  ;;  %v996_v48 = vor.u32 %v995_v14, %v994_v34  ;;  %v1000_v4 = vshll.u32 %v17373_v57, %v985_v50  ;;  %v1001_v38 = vshrl.u32 %v17357_v2, %v986_v5 }
 0x110   : > { %v999_v19 = vor.u32 %v998_v16, %v997_v63  ;;  %vm1003_vm8 = vcmp.lt.s32.totalorder %v984_v40, 1  ;;  %vm1004_vm11 = vcmp.lt.s32.totalorder %v984_v40, 2  ;;  %vm1006_vm9 = vcmp.lt.s32.totalorder %v984_v40, 4  ;;  %v11494_v56 = vpop.eup %11493 }
 0x111   : > { %vm10844_vm10 = vcmp.lt.s32.totalorder %v10843_v1, 0  ;;  %v1002_v15 = vor.u32 %v1001_v38, %v1000_v4  ;;  %vm1005_vm12 = vcmp.lt.s32.totalorder %v984_v40, 3  ;;  %v1008_v42 = vsel %vm1006_vm9, %v996_v48, 2102212464  ;;  %v11496_v29 = vpop.eup %11495 }
 0x112   : > { %v863_v0 = vxor.u32 2147483648, %v11494_v56  ;;  %v938_v58 = vsel %vm10844_vm10, 0, %v10843_v1  ;;  %v1007_v41 = vsel %vm1003_vm8, %v987_v25, %v990_v17  ;;  %v1009_v26 = vsel %vm1005_vm12, %v993_v32, %v1008_v42 }
 0x113   : > { %v860_v50 = vxor.u32 2147483648, %v11496_v29  ;;  %vm12688_vm13 = vcmp.le.f32.partialorder %v867_v45, 0.7853982  ;;  %v939_v46 = vsub.s32 32, %v938_v58  ;;  %v940_v47 = vshll.u32 %v12650_v33, %v938_v58 }
 0x114   : > { %v943_v23 = vsub.s32 4294967266, %v938_v58  ;;  %v864_v34 = vsel %vm862_vm0, %v863_v0, %v11496_v29  ;;  %v2538_v14 = vsel %vm2536_vm4, %v863_v0, %v11496_v29  ;;  %v1011_v63 = vsel %vm1003_vm8, %v990_v17, %v993_v32 }
 0x115   : > { %v1012_v31 = vsel %vm1006_vm9, %v999_v19, 920167782  ;;  %v861_v45 = vsel %vm859_vm1, %v11494_v56, %v860_v50  ;;  %v2535_v25 = vsel %vm2533_vm3, %v11494_v56, %v860_v50  ;;  %v941_v16 = vshrl.u32 %v923_v30, %v939_v46 }
 0x116   : > { %v944_v33 = vadd.s32 127, %v943_v23  ;;  %v865_v1 = vsel %vm858_vm6, %v861_v45, %v864_v34  ;;  %v2539_v4 = vsel %vm2532_vm7, %v2535_v25, %v2538_v14  ;;  %v1013_v38 = vsel %vm1005_vm12, %v996_v48, %v1012_v31 }
 0x117   : > { %v1015_v17 = vsel %vm1003_vm8, %v993_v32, %v996_v48  ;;  %v866_v42 = vsel %vm855_vm5, nan, %v865_v1  ;;  %v12713_v29 = vsel %vm855_vm5, nan, %v2539_v4  ;;  %v942_v56 = vor.u32 %v941_v16, %v940_v47 }
 0x118   : > { %v945_v30 = vshll.u32 %v944_v33, 23  ;;  %1912 = vst [vmem:[%s11905_s26 + $0x28] sm:$0x1f] %v866_v42  ;;  %v1010_v22 = vsel %vm1004_vm11, %v1007_v41, %v1009_v26  ;;  %v1014_v0 = vsel %vm1004_vm11, %v1011_v63, %v1013_v38  ;;  %v1016_v27 = vsel %vm1006_vm9, %v1002_v15, 1326507024 }
 0x119   : > { %vm1086_vm14 = vcmp.gt.s32.totalorder %v1085_v12, 0  ;;  %v949_v50 = vcvt.s32.f32 %v942_v56  ;;  %v1017_v32 = vsel %vm1005_vm12, %v999_v19, %v1016_v27  ;;  %v956_v14 = vsel %vm12688_vm13, 0, %v954_v61 }
 0x11a   : > { %v946_v58 = vor.u32 4788187, %v945_v30  ;;  %v1087_v48 = vsel %vm1086_vm14, %v1085_v12, 0  ;;  %v1018_v46 = vsel %vm1004_vm11, %v1015_v17, %v1017_v32  ;;  %v1026_v19 = vmul.u32 %v12673_v3, %v1010_v22 }
 0x11b   : > { %v12722_v9 = vmul.u32.u64.low %v12673_v3, %v1014_v0  ;;  %v12723_v23 = vmul.u32.u64.high %v12673_v3, %v1014_v0, %v12722_v9  ;;  %v1088_v47 = vshrl.u32 %v1087_v48, 5  ;;  %v1089_v15 = vand.u32 31, %v1087_v48 }
 0x11c   : > { %v947_v34 = vand.u32 2147483647, %v946_v58  ;;  %v12727_v41 = vmul.u32.u64.low %v12673_v3, %v1018_v46  ;;  %v12728_v26 = vmul.u32.u64.high %v12673_v3, %v1018_v46, %v12727_v41  ;;  %vm973_vm6 = vcmp.lt.s32.totalorder %v12592_v24, 0 }
 0x11d   : > { %vm1107_vm15 = vcmp.lt.s32.totalorder %v1088_v47, 1  ;;  %vm1109_vm0 = vcmp.lt.s32.totalorder %v1088_v47, 3  ;;  %v1090_v12 = vsub.s32 32, %v1089_v15  ;;  %v1092_v63 = vshll.u32 %v17366_v49, %v1089_v15 }
 0x11e   : > { %v950_v40 = vmul.f32 %v949_v50, %v947_v34  ;;  %vm1110_vm4 = vcmp.lt.s32.totalorder %v1088_v47, 4  ;;  %v1029_v31 = vadd.s32 1, %v12723_v23  ;;  %v1095_v45 = vshll.u32 %v17361_v51, %v1089_v15 }
 0x11f   : > { %v1098_v25 = vshll.u32 %v17359_v53, %v1089_v15  ;;  %v1101_v16 = vshll.u32 %v17363_v55, %v1089_v15  ;;  %vm1028_vm1 = vc.u32 %v12728_v26, %v12722_v9  ;;  %v1091_v3 = vshrl.u32 %v17366_v49, %v1090_v12 }
 0x120   : > { %v951_v33 = vxor.u32 2147483648, %v950_v40  ;;  %v1104_v61 = vshll.u32 %v17373_v57, %v1089_v15  ;;  %v1030_v1 = vsel %vm1028_vm1, %v1029_v31, %v12723_v23  ;;  %v1093_v4 = vshrl.u32 %v17361_v51, %v1090_v12 }
 0x121   : > { %v1096_v38 = vshrl.u32 %v17359_v53, %v1090_v12  ;;  %v1099_v17 = vshrl.u32 %v17363_v55, %v1090_v12  ;;  %v1031_v56 = vadd.s32 %v1030_v1, %v1026_v19  ;;  %v1102_v30 = vshrl.u32 %v17373_v57, %v1090_v12 }
 0x122   : > { %v952_v42 = vsel %vm869_vm2, %v951_v33, %v950_v40  ;;  %v1105_v22 = vshrl.u32 %v17357_v2, %v1090_v12  ;;  %v1094_v27 = vor.u32 %v1093_v4, %v1092_v63  ;;  %vm1108_vm3 = vcmp.lt.s32.totalorder %v1088_v47, 2 }
 0x123   : > { %v955_v0 = vsel %vm12688_vm13, %v12335_v20, %v952_v42  ;;  %v1097_v58 = vor.u32 %v1096_v38, %v1095_v45  ;;  %v1100_v50 = vor.u32 %v1099_v17, %v1098_v25  ;;  %v1032_v32 = vadd.s32 536870912, %v1031_v56 }
 0x124   : > { %11497 = vcosq.f32 %v955_v0  ;;  %v1103_v48 = vor.u32 %v1102_v30, %v1101_v16  ;;  %v1106_v46 = vor.u32 %v1105_v22, %v1104_v61  ;;  %v960_v41 = vadd.s32 3, %v956_v14 }
 0x125   : > { %11499 = vsinq.f32 %v955_v0  ;;  %v1112_v23 = vsel %vm1110_vm4, %v1100_v50, 2102212464  ;;  %v1115_v34 = vsel %vm1107_vm15, %v1094_v27, %v1097_v58  ;;  %v1033_v15 = vshrl.u32 %v1032_v32, 30 }
 0x126   : > { %v1116_v19 = vsel %vm1110_vm4, %v1103_v48, 920167782  ;;  %v1119_v5 = vsel %vm1107_vm15, %v1097_v58, %v1100_v50  ;;  %v1111_v40 = vsel %vm1107_vm15, %v1091_v3, %v1094_v27  ;;  %v1120_v63 = vsel %vm1110_vm4, %v1106_v46, 1326507024 }
 0x127   : > { %v1117_v12 = vsel %vm1109_vm0, %v1100_v50, %v1116_v19  ;;  %v12764_v31 = vmul.f32 %v186_v52, %v11926_v13  ;;  %v1034_v45 = vshll.u32 %v1033_v15, 30  ;;  %v1113_v25 = vsel %vm1109_vm0, %v1097_v58, %v1112_v23 }
 0x128   : > { %v1118_v16 = vsel %vm1108_vm3, %v1115_v34, %v1117_v12  ;;  %v1121_v33 = vsel %vm1109_vm0, %v1103_v48, %v1120_v63  ;;  %v2634_v61 = vand.u32 3, %v956_v14  ;;  %v961_v38 = vand.u32 3, %v960_v41 }
 0x129   : > { %v1122_v3 = vsel %vm1108_vm3, %v1119_v5, %v1121_v33  ;;  %v12771_v1 = vmul.u32.u64.low %v12677_v35, %v1118_v16  ;;  %v12772_v4 = vmul.u32.u64.high %v12677_v35, %v1118_v16, %v12771_v1  ;;  %v1035_v17 = vsub.s32 %v1031_v56, %v1034_v45 }
 0x12a   : > { %v12776_v52 = vmul.u32.u64.low %v12677_v35, %v1122_v3  ;;  %v12777_v42 = vmul.u32.u64.high %v12677_v35, %v1122_v3, %v12776_v52  ;;  %v1114_v30 = vsel %vm1108_vm3, %v1111_v40, %v1113_v25  ;;  %v1182_v22 = vand.u32 2139095040, %v12764_v31 }
 0x12b   : > { %vm959_vm2 = vweird.f32 %v12335_v20  ;;  %v1037_v14 = vsub.s32 0, %v1035_v17  ;;  %vm2635_vm7 = vcmp.lt.s32.totalorder %v2634_v61, 2  ;;  %vm2636_vm5 = vcmp.eq.s32.totalorder %v2634_v61, 0 }
 0x12c   : > { %v1057_v0 = vsub.s32 4, %v1033_v15  ;;  %v1133_v27 = vadd.s32 1, %v12772_v4  ;;  %vm966_vm8 = vcmp.eq.s32.totalorder %v961_v38, 2  ;;  %vm2639_vm11 = vcmp.eq.s32.totalorder %v2634_v61, 2 }
 0x12d   : > { %v10846_v56 = vmin.u32 %v1037_v14, %v1035_v17  ;;  %v1130_v50 = vmul.u32 %v12677_v35, %v1114_v30  ;;  %vm963_vm9 = vcmp.eq.s32.totalorder %v961_v38, 0  ;;  %vm1132_vm10 = vc.u32 %v12777_v42, %v12771_v1 }
 0x12e   : > { %v11498_v58 = vpop.eup %11497  ;;  %v1183_v48 = vshrl.u32 %v1182_v22, 23  ;;  %vm962_vm12 = vcmp.lt.s32.totalorder %v961_v38, 2  ;;  %v1027_v23 = vadd.s32 %v12722_v9, %v12728_v26  ;;  %v1058_v5 = vsel %vm973_vm6, %v1057_v0, %v1033_v15 }
 0x12f   : > { %v11500_v47 = vpop.eup %11499  ;;  %v967_v32 = vxor.u32 2147483648, %v11498_v58  ;;  %v1039_v34 = vclz %v10846_v56  ;;  %v1134_v35 = vsel %vm1132_vm10, %v1133_v27, %v12772_v4  ;;  %v1179_v33 = vand.u32 2147483647, %v12764_v31 }
 0x130   : > { %v964_v46 = vxor.u32 2147483648, %v11500_v47  ;;  %v1135_v45 = vadd.s32 %v1134_v35, %v1130_v50  ;;  %v10853_v9 = vadd.s32 4294967169, %v1183_v48  ;;  %vm12804_vm14 = vcmp.le.f32.partialorder %v971_v62, 0.7853982 }
 0x131   : > { %v968_v41 = vsel %vm966_vm8, %v967_v32, %v11500_v47  ;;  %v2641_v19 = vsel %vm2639_vm11, %v967_v32, %v11500_v47  ;;  %v10847_v63 = vadd.s32 4294967294, %v1039_v34  ;;  %v1060_v20 = vsel %vm12804_vm14, 0, %v1058_v5 }
 0x132   : > { %v965_v40 = vsel %vm963_vm9, %v11498_v58, %v964_v46  ;;  %v2638_v12 = vsel %vm2636_vm5, %v11498_v58, %v964_v46  ;;  %v1136_v15 = vadd.s32 536870912, %v1135_v45  ;;  %v1189_v38 = vadd.s32 1, %v10853_v9 }
 0x133   : > { %v969_v25 = vsel %vm962_vm12, %v965_v40, %v968_v41  ;;  %v2642_v16 = vsel %vm2635_vm7, %v2638_v12, %v2641_v19  ;;  %vm10848_vm13 = vcmp.lt.s32.totalorder %v10847_v63, 0  ;;  %v1186_v0 = vand.u32 8388607, %v1179_v33 }
 0x134   : > { %v970_v26 = vsel %vm959_vm2, nan, %v969_v25  ;;  %v12799_v3 = vsel %vm959_vm2, nan, %v2642_v16  ;;  %v1042_v61 = vsel %vm10848_vm13, 0, %v10847_v63  ;;  %v12808_v14 = vshrl.u32 %v1136_v15, 30 }
 0x135   : > { %1913 = vst [vmem:[%s11905_s26 + $0x30] sm:$0x1f] %v970_v26  ;;  %v1043_v52 = vsub.s32 32, %v1042_v61  ;;  %v1044_v30 = vshll.u32 %v1035_v17, %v1042_v61  ;;  %v1047_v22 = vsub.s32 4294967266, %v1042_v61  ;;  %vm1190_vm15 = vcmp.gt.s32.totalorder %v1189_v38, 0 }
 0x136   : > { %v1138_v62 = vshll.u32 %v12808_v14, 30  ;;  %v190_v56 = vrot.slane %v12096_v59, %v11918_v8  ;;  %v1191_v50 = vsel %vm1190_vm15, %v1189_v38, 0  ;;  %v1064_v32 = vadd.s32 3, %v1060_v20 }
 0x137   : > { %v1045_v27 = vshrl.u32 %v1027_v23, %v1043_v52  ;;  %v1048_v58 = vadd.s32 127, %v1047_v22  ;;  %v1187_v46 = vor.u32 8388608, %v1186_v0  ;;  %v1193_v34 = vand.u32 31, %v1191_v50 }
 0x138   : > { %v1139_v48 = vsub.s32 %v1135_v45, %v1138_v62  ;;  %v12818_v35 = vmul.f32 %v190_v56, %v11926_v13  ;;  %v12820_v23 = vand.u32 3, %v1060_v20  ;;  %v12822_v63 = vand.u32 3, %v1064_v32 }
 0x139   : > { %v1046_v47 = vor.u32 %v1045_v27, %v1044_v30  ;;  %v1049_v17 = vshll.u32 %v1048_v58, 23  ;;  %v1194_v40 = vsub.s32 32, %v1193_v34  ;;  %v1131_v25 = vadd.s32 %v12771_v1, %v12777_v42 }
 0x13a   : > { %v1141_v5 = vsub.s32 0, %v1139_v48  ;;  %v1161_v45 = vsub.s32 4, %v12808_v14  ;;  %v1196_v9 = vshll.u32 %v17366_v49, %v1193_v34  ;;  %v1199_v26 = vshll.u32 %v17361_v51, %v1193_v34 }
 0x13b   : > { %v1050_v41 = vor.u32 4788187, %v1049_v17  ;;  %v1053_v19 = vcvt.s32.f32 %v1046_v47  ;;  %v12829_v15 = vshll.u32 %v1187_v46, 8  ;;  %v1202_v52 = vshll.u32 %v17359_v53, %v1193_v34 }
 0x13c   : > { %v10850_v16 = vmin.u32 %v1141_v5, %v1139_v48  ;;  %v1286_v30 = vand.u32 2139095040, %v12818_v35  ;;  %v1192_v22 = vshrl.u32 %v1191_v50, 5  ;;  %v1197_v20 = vshrl.u32 %v17361_v51, %v1194_v40 }
 0x13d   : > { %v1051_v12 = vand.u32 2147483647, %v1050_v41  ;;  %v1200_v1 = vshrl.u32 %v17359_v53, %v1194_v40  ;;  %v1203_v42 = vshrl.u32 %v17363_v55, %v1194_v40  ;;  %vm1077_vm0 = vcmp.lt.s32.totalorder %v12611_v11, 0 }
 0x13e   : > { %v1143_v38 = vclz %v10850_v16  ;;  %v1205_v58 = vshll.u32 %v17363_v55, %v1193_v34  ;;  %v1206_v62 = vshrl.u32 %v17373_v57, %v1194_v40  ;;  %v1195_v56 = vshrl.u32 %v17366_v49, %v1194_v40 }
 0x13f   : > { %v1054_v61 = vmul.f32 %v1053_v19, %v1051_v12  ;;  %v1198_v47 = vor.u32 %v1197_v20, %v1196_v9  ;;  %v1201_v17 = vor.u32 %v1200_v1, %v1199_v26  ;;  %v1208_v50 = vshll.u32 %v17373_v57, %v1193_v34 }
 0x140   : > { %v10851_v27 = vadd.s32 4294967294, %v1143_v38  ;;  %v1204_v46 = vor.u32 %v1203_v42, %v1202_v52  ;;  %v1209_v41 = vshrl.u32 %v17357_v2, %v1194_v40  ;;  %vm12849_vm1 = vcmp.le.f32.partialorder %v1075_v37, 0.7853982 }
 0x141   : > { %v1055_v0 = vxor.u32 2147483648, %v1054_v61  ;;  %v1207_v16 = vor.u32 %v1206_v62, %v1205_v58  ;;  %vm1211_vm3 = vcmp.lt.s32.totalorder %v1192_v22, 1  ;;  %vm1213_vm2 = vcmp.lt.s32.totalorder %v1192_v22, 3 }
 0x142   : > { %vm10852_vm4 = vcmp.lt.s32.totalorder %v10851_v27, 0  ;;  %vm1212_vm7 = vcmp.lt.s32.totalorder %v1192_v22, 2  ;;  %vm2739_vm5 = vcmp.eq.s32.totalorder %v12820_v23, 0  ;;  %v1215_v37 = vsel %vm1211_vm3, %v1195_v56, %v1198_v47 }
 0x143   : > { %v1056_v32 = vsel %vm973_vm6, %v1055_v0, %v1054_v61  ;;  %v1146_v12 = vsel %vm10852_vm4, 0, %v10851_v27  ;;  %v1210_v61 = vor.u32 %v1209_v41, %v1208_v50  ;;  %vm1214_vm6 = vcmp.lt.s32.totalorder %v1192_v22, 4 }
 0x144   : > { %v1059_v19 = vsel %vm12804_vm14, %v12592_v24, %v1056_v32  ;;  %v1147_v34 = vsub.s32 32, %v1146_v12  ;;  %v1148_v9 = vshll.u32 %v1139_v48, %v1146_v12  ;;  %v1151_v26 = vsub.s32 4294967266, %v1146_v12 }
 0x145   : > { %11501 = vcosq.f32 %v1059_v19  ;;  %v1216_v38 = vsel %vm1214_vm6, %v1204_v46, 2102212464  ;;  %v1219_v20 = vsel %vm1211_vm3, %v1198_v47, %v1201_v17  ;;  %v1220_v48 = vsel %vm1214_vm6, %v1207_v16, 920167782 }
 0x146   : > { %11503 = vsinq.f32 %v1059_v19  ;;  %v1149_v40 = vshrl.u32 %v1131_v25, %v1147_v34  ;;  %v1152_v4 = vadd.s32 127, %v1151_v26  ;;  %v1217_v52 = vsel %vm1213_vm2, %v1201_v17, %v1216_v38 }
 0x147   : > { %vm2738_vm8 = vcmp.lt.s32.totalorder %v12820_v23, 2  ;;  %v1221_v25 = vsel %vm1213_vm2, %v1204_v46, %v1220_v48  ;;  %v1223_v0 = vsel %vm1211_vm3, %v1201_v17, %v1204_v46  ;;  %vm1063_vm11 = vweird.f32 %v12592_v24 }
 0x148   : > { %v1150_v1 = vor.u32 %v1149_v40, %v1148_v9  ;;  %v1153_v42 = vshll.u32 %v1152_v4, 23  ;;  %v1162_v27 = vsel %vm1077_vm0, %v1161_v45, %v12808_v14  ;;  %v1222_v58 = vsel %vm1212_vm7, %v1219_v20, %v1221_v25 }
 0x149   : > { %v1224_v62 = vsel %vm1214_vm6, %v1210_v61, 1326507024  ;;  %v1287_v56 = vshrl.u32 %v1286_v30, 23  ;;  %v1218_v32 = vsel %vm1212_vm7, %v1215_v37, %v1217_v52  ;;  %v1164_v45 = vsel %vm12849_vm1, 0, %v1162_v27 }
 0x14a   : > { %v1154_v47 = vor.u32 4788187, %v1153_v42  ;;  %v1157_v50 = vcvt.s32.f32 %v1150_v1  ;;  %v1225_v41 = vsel %vm1213_vm2, %v1207_v16, %v1224_v62  ;;  %vm1066_vm9 = vcmp.lt.s32.totalorder %v12822_v63, 2 }
 0x14b   : > { %v1226_v19 = vsel %vm1212_vm7, %v1223_v0, %v1225_v41  ;;  %v12872_v17 = vmul.u32.u64.low %v12829_v15, %v1222_v58  ;;  %v12873_v46 = vmul.u32.u64.high %v12829_v15, %v1222_v58, %v12872_v17  ;;  %v10857_v12 = vadd.s32 4294967169, %v1287_v56  ;;  %v12912_v41 = vld [vmem:[%s11892_s24 + $0x1] ss:$4 sm:$0xff] }
 0x14c   : > { %v1155_v14 = vand.u32 2147483647, %v1154_v47  ;;  %v12879_v30 = vmul.u32.u64.low %v12829_v15, %v1226_v19  ;;  %v12880_v34 = vmul.u32.u64.high %v12829_v15, %v1226_v19, %v12879_v30  ;;  %vm1067_vm10 = vcmp.eq.s32.totalorder %v12822_v63, 0  ;;  %11079 = vst [vmem:[%s11905_s26 + $0x105] ss:$8 sm:$0xf] %v12912_v41 }
 0x14d   : > { %vm2742_vm12 = vcmp.eq.s32.totalorder %v12820_v23, 2  ;;  %v1293_v22 = vadd.s32 1, %v10857_v12  ;;  %vm1070_vm13 = vcmp.eq.s32.totalorder %v12822_v63, 2  ;;  %v1234_v26 = vmul.u32 %v12829_v15, %v1218_v32  ;;  %11080 = vst [vmem:[%s11905_s26 + $0x105] ss:$8 sm:$0xf0] %v12912_v41 }
 0x14e   : > { %v1158_v9 = vmul.f32 %v1157_v50, %v1155_v14  ;;  %v1283_v61 = vand.u32 2147483647, %v12818_v35  ;;  %v1168_v38 = vadd.s32 3, %v1164_v45  ;;  %v1237_v37 = vadd.s32 1, %v12873_v46 }
 0x14f   : > { %v11502_v16 = vpop.eup %11501  ;;  %vm1294_vm14 = vcmp.gt.s32.totalorder %v1293_v22, 0  ;;  %v12889_v48 = vand.u32 3, %v1164_v45  ;;  %vm1236_vm15 = vc.u32 %v12880_v34, %v12872_v17  ;;  %v194_v24 = vrot.slane %v12096_v59, %v11942_v21 }
 0x150   : > { %v11504_v40 = vpop.eup %11503  ;;  %v1071_v4 = vxor.u32 2147483648, %v11502_v16  ;;  %v1159_v20 = vxor.u32 2147483648, %v1158_v9  ;;  %v1238_v42 = vsel %vm1236_vm15, %v1237_v37, %v12873_v46  ;;  %v1295_v25 = vsel %vm1294_vm14, %v1293_v22, 0 }
 0x151   : > { %v1068_v52 = vxor.u32 2147483648, %v11504_v40  ;;  %v1239_v62 = vadd.s32 %v1238_v42, %v1234_v26  ;;  %v12909_v32 = vand.u32 3, %v1168_v38  ;;  %v1290_v23 = vand.u32 8388607, %v1283_v61 }
 0x152   : > { %v1072_v1 = vsel %vm1070_vm13, %v1071_v4, %v11504_v40  ;;  %v2744_v15 = vsel %vm2742_vm12, %v1071_v4, %v11504_v40  ;;  %v1160_v58 = vsel %vm1077_vm0, %v1159_v20, %v1158_v9  ;;  %v1297_v5 = vand.u32 31, %v1295_v25 }
 0x153   : > { %v1069_v0 = vsel %vm1067_vm10, %v11502_v16, %v1068_v52  ;;  %v2741_v27 = vsel %vm2739_vm5, %v11502_v16, %v1068_v52  ;;  %v1163_v50 = vsel %vm12849_vm1, %v12611_v11, %v1160_v58  ;;  %v1240_v63 = vadd.s32 536870912, %v1239_v62 }
 0x154   : > { %v1073_v56 = vsel %vm1066_vm9, %v1069_v0, %v1072_v1  ;;  %v2745_v47 = vsel %vm2738_vm8, %v2741_v27, %v2744_v15  ;;  %11505 = vcosq.f32 %v1163_v50  ;;  %vm2845_vm0 = vcmp.eq.s32.totalorder %v12889_v48, 2 }
 0x155   : > { %v1074_v19 = vsel %vm1063_vm11, nan, %v1073_v56  ;;  %v12918_v46 = vsel %vm1063_vm11, nan, %v2745_v47  ;;  %11507 = vsinq.f32 %v1163_v50  ;;  %v12928_v12 = vshrl.u32 %v1240_v63, 30 }
 0x156   : > { %1914 = vst [vmem:[%s11905_s26 + $0x38] sm:$0x1f] %v1074_v19  ;;  %v198_v14 = vrot.slane %v12096_v59, %v11952_v36  ;;  %vm1171_vm4 = vcmp.eq.s32.totalorder %v12909_v32, 0  ;;  %vm2842_vm1 = vcmp.eq.s32.totalorder %v12889_v48, 0  ;;  %v12936_v45 = vshrl.u32 %v1295_v25, 5 }
 0x157   : > { %v1298_v30 = vsub.s32 32, %v1297_v5  ;;  %v1306_v22 = vshll.u32 %v17359_v53, %v1297_v5  ;;  %vm1170_vm3 = vcmp.lt.s32.totalorder %v12909_v32, 2  ;;  %vm2841_vm2 = vcmp.lt.s32.totalorder %v12889_v48, 2 }
 0x158   : > { %v1242_v16 = vshll.u32 %v12928_v12, 30  ;;  %v1300_v9 = vshll.u32 %v17366_v49, %v1297_v5  ;;  %v1303_v26 = vshll.u32 %v17361_v51, %v1297_v5  ;;  %v1309_v40 = vshll.u32 %v17363_v55, %v1297_v5 }
 0x159   : > { %vm1167_vm6 = vweird.f32 %v12611_v11  ;;  %v1291_v4 = vor.u32 8388608, %v1290_v23  ;;  %v1301_v38 = vshrl.u32 %v17361_v51, %v1298_v30  ;;  %v1304_v37 = vshrl.u32 %v17359_v53, %v1298_v30 }
 0x15a   : > { %v1307_v52 = vshrl.u32 %v17363_v55, %v1298_v30  ;;  %vm1174_vm7 = vcmp.eq.s32.totalorder %v12909_v32, 2  ;;  %v12950_v20 = vsub.s32 %v1239_v62, %v1242_v16  ;;  %v1299_v1 = vshrl.u32 %v17366_v49, %v1298_v30 }
 0x15b   : > { %v1310_v15 = vshrl.u32 %v17373_v57, %v1298_v30  ;;  %v1312_v25 = vshll.u32 %v17373_v57, %v1297_v5  ;;  %v1313_v0 = vshrl.u32 %v17357_v2, %v1298_v30  ;;  %vm1318_vm5 = vcmp.lt.s32.totalorder %v12936_v45, 4 }
 0x15c   : > { %v1308_v42 = vor.u32 %v1307_v52, %v1306_v22  ;;  %v1245_v27 = vsub.s32 0, %v12950_v20  ;;  %v1302_v58 = vor.u32 %v1301_v38, %v1300_v9  ;;  %v1305_v56 = vor.u32 %v1304_v37, %v1303_v26 }
 0x15d   : > { %v1311_v47 = vor.u32 %v1310_v15, %v1309_v40  ;;  %vm1315_vm8 = vcmp.lt.s32.totalorder %v12936_v45, 1  ;;  %v12961_v50 = vshll.u32 %v1291_v4, 8  ;;  %v12964_v19 = vmul.f32 %v194_v24, %v11926_v13 }
 0x15e   : > { %v1320_v62 = vsel %vm1318_vm5, %v1308_v42, 2102212464  ;;  %v11506_v63 = vpop.eup %11505  ;;  %v1235_v23 = vadd.s32 %v12872_v17, %v12880_v34  ;;  %v10854_v5 = vmin.u32 %v1245_v27, %v12950_v20  ;;  %vm1317_vm11 = vcmp.lt.s32.totalorder %v12936_v45, 3 }
 0x15f   : > { %v1319_v30 = vsel %vm1315_vm8, %v1299_v1, %v1302_v58  ;;  %v11508_v22 = vpop.eup %11507  ;;  %v1175_v16 = vxor.u32 2147483648, %v11506_v63  ;;  %vm1316_vm9 = vcmp.lt.s32.totalorder %v12936_v45, 2  ;;  %v1321_v9 = vsel %vm1317_vm11, %v1305_v56, %v1320_v62 }
 0x160   : > { %v1324_v24 = vsel %vm1318_vm5, %v1311_v47, 920167782  ;;  %v1172_v26 = vxor.u32 2147483648, %v11508_v22  ;;  %v1247_v40 = vclz %v10854_v5  ;;  %v1314_v17 = vor.u32 %v1313_v0, %v1312_v25 }
 0x161   : > { %v1323_v34 = vsel %vm1315_vm8, %v1302_v58, %v1305_v56  ;;  %v1176_v4 = vsel %vm1174_vm7, %v1175_v16, %v11508_v22  ;;  %v2847_v38 = vsel %vm2845_vm0, %v1175_v16, %v11508_v22  ;;  %v1265_v37 = vsub.s32 4, %v12928_v12 }
 0x162   : > { %v1322_v52 = vsel %vm1316_vm9, %v1319_v30, %v1321_v9  ;;  %v1173_v1 = vsel %vm1171_vm4, %v11506_v63, %v1172_v26  ;;  %v2844_v15 = vsel %vm2842_vm1, %v11506_v63, %v1172_v26  ;;  %v10855_v25 = vadd.s32 4294967294, %v1247_v40 }
 0x163   : > { %v1325_v0 = vsel %vm1317_vm11, %v1308_v42, %v1324_v24  ;;  %v1177_v27 = vsel %vm1170_vm3, %v1173_v1, %v1176_v4  ;;  %v2848_v58 = vsel %vm2841_vm2, %v2844_v15, %v2847_v38  ;;  %v1327_v5 = vsel %vm1315_vm8, %v1305_v56, %v1308_v42 }
 0x164   : > { %v1326_v62 = vsel %vm1316_vm9, %v1323_v34, %v1325_v0  ;;  %v1178_v30 = vsel %vm1167_vm6, nan, %v1177_v27  ;;  %v13004_v63 = vsel %vm1167_vm6, nan, %v2848_v58  ;;  %vm10856_vm10 = vcmp.lt.s32.totalorder %v10855_v25, 0 }
 0x165   : > { %v1328_v32 = vsel %vm1318_vm5, %v1314_v17, 1326507024  ;;  %1915 = vst [vmem:[%s11905_s26 + $0x40] sm:$0x1f] %v1178_v30  ;;  %v1250_v48 = vsel %vm10856_vm10, 0, %v10855_v25  ;;  %v13012_v16 = vmul.u32.u64.low %v12961_v50, %v1326_v62  ;;  %v13013_v9 = vmul.u32.u64.high %v12961_v50, %v1326_v62, %v13012_v16 }
 0x166   : > { %v1329_v22 = vsel %vm1317_vm11, %v1311_v47, %v1328_v32  ;;  %v1251_v42 = vsub.s32 32, %v1250_v48  ;;  %v1252_v56 = vshll.u32 %v12950_v20, %v1250_v48  ;;  %v1255_v24 = vsub.s32 4294967266, %v1250_v48 }
 0x167   : > { %v1330_v11 = vsel %vm1316_vm9, %v1327_v5, %v1329_v22  ;;  %vm1181_vm12 = vcmp.lt.s32.totalorder %v12764_v31, 0  ;;  %v13027_v47 = vmul.f32 %v198_v14, %v11926_v13  ;;  %v1390_v45 = vand.u32 2139095040, %v12964_v19 }
 0x168   : > { %v13020_v26 = vmul.u32.u64.low %v12961_v50, %v1330_v11  ;;  %v13021_v40 = vmul.u32.u64.high %v12961_v50, %v1330_v11, %v13020_v26  ;;  %v1253_v17 = vshrl.u32 %v1235_v23, %v1251_v42  ;;  %v1256_v34 = vadd.s32 127, %v1255_v24 }
 0x169   : > { %v1266_v20 = vsel %vm1181_vm12, %v1265_v37, %v12928_v12  ;;  %v1338_v4 = vmul.u32 %v12961_v50, %v1322_v52  ;;  %v1341_v38 = vadd.s32 1, %v13013_v9  ;;  %vm13037_vm13 = vcmp.le.f32.partialorder %v1179_v33, 0.7853982 }
 0x16a   : > { %v1254_v14 = vor.u32 %v1253_v17, %v1252_v56  ;;  %v1257_v15 = vshll.u32 %v1256_v34, 23  ;;  %v1391_v23 = vshrl.u32 %v1390_v45, 23  ;;  %v1268_v25 = vsel %vm13037_vm13, 0, %v1266_v20 }
 0x16b   : > { %vm1340_vm14 = vc.u32 %v13021_v40, %v13012_v16  ;;  %v17356_v12 = vand.u32 2147483647, %v12964_v19  ;;  %v1494_v50 = vand.u32 2139095040, %v13027_v47  ;;  %v1272_v30 = vadd.s32 3, %v1268_v25 }
 0x16c   : > { %v1258_v37 = vor.u32 4788187, %v1257_v15  ;;  %v1261_v52 = vcvt.s32.f32 %v1254_v14  ;;  %v1342_v0 = vsel %vm1340_vm14, %v1341_v38, %v13013_v9  ;;  %v10861_v33 = vadd.s32 4294967169, %v1391_v23 }
 0x16d   : > { %v1343_v27 = vadd.s32 %v1342_v0, %v1338_v4  ;;  %v1495_v58 = vshrl.u32 %v1494_v50, 23  ;;  %v1394_v22 = vand.u32 8388607, %v17356_v12  ;;  %v202_v11 = vrot.slane %v12096_v59, %v11958_v39 }
 0x16e   : > { %v1259_v62 = vand.u32 2147483647, %v1258_v37  ;;  %v1397_v5 = vadd.s32 1, %v10861_v33  ;;  %vm1285_vm0 = vcmp.lt.s32.totalorder %v12818_v35, 0  ;;  %v13052_v17 = vand.u32 3, %v1272_v30 }
 0x16f   : > { %v1344_v32 = vadd.s32 536870912, %v1343_v27  ;;  %v10865_v24 = vadd.s32 4294967169, %v1495_v58  ;;  %v13054_v34 = vand.u32 3, %v1268_v25  ;;  %v17355_v45 = vand.u32 2147483647, %v13027_v47 }
 0x170   : > { %v1262_v48 = vmul.f32 %v1261_v52, %v1259_v62  ;;  %vm1398_vm15 = vcmp.gt.s32.totalorder %v1397_v5, 0  ;;  %vm13061_vm4 = vcmp.le.f32.partialorder %v1283_v61, 0.7853982  ;;  %v13066_v14 = vadd.s32 %v13012_v16, %v13021_v40 }
 0x171   : > { %v1345_v42 = vshrl.u32 %v1344_v32, 30  ;;  %v1399_v56 = vsel %vm1398_vm15, %v1397_v5, 0  ;;  %v1395_v15 = vor.u32 8388608, %v1394_v22  ;;  %v13073_v37 = vadd.s32 1, %v10865_v24 }
 0x172   : > { %v1263_v26 = vxor.u32 2147483648, %v1262_v48  ;;  %v1401_v9 = vand.u32 31, %v1399_v56  ;;  %v13076_v52 = vmul.f32 %v202_v11, %v11926_v13  ;;  %vm1278_vm1 = vcmp.eq.s32.totalorder %v13052_v17, 2 }
 0x173   : > { %v1346_v20 = vshll.u32 %v1345_v42, 30  ;;  %v1369_v61 = vsub.s32 4, %v1345_v42  ;;  %vm2948_vm3 = vcmp.eq.s32.totalorder %v13054_v34, 2  ;;  %vm1275_vm2 = vcmp.eq.s32.totalorder %v13052_v17, 0 }
 0x174   : > { %v1264_v4 = vsel %vm1181_vm12, %v1263_v26, %v1262_v48  ;;  %v1402_v23 = vsub.s32 32, %v1401_v9  ;;  %v1404_v0 = vshll.u32 %v17366_v49, %v1401_v9  ;;  %v1407_v16 = vshll.u32 %v17361_v51, %v1401_v9 }
 0x175   : > { %v1267_v25 = vsel %vm13037_vm13, %v12764_v31, %v1264_v4  ;;  %v13071_v50 = vsub.s32 %v1343_v27, %v1346_v20  ;;  %v1410_v1 = vshll.u32 %v17359_v53, %v1401_v9  ;;  %v1400_v27 = vshrl.u32 %v1399_v56, 5 }
 0x176   : > { %11509 = vcosq.f32 %v1267_v25  ;;  %v1405_v33 = vshrl.u32 %v17361_v51, %v1402_v23  ;;  %v1408_v58 = vshrl.u32 %v17359_v53, %v1402_v23  ;;  %v1411_v62 = vshrl.u32 %v17363_v55, %v1402_v23 }
 0x177   : > { %11511 = vsinq.f32 %v1267_v25  ;;  %v1349_v40 = vsub.s32 0, %v13071_v50  ;;  %v1413_v5 = vshll.u32 %v17363_v55, %v1401_v9  ;;  %vm2945_vm6 = vcmp.eq.s32.totalorder %v13054_v34, 0 }
 0x178   : > { %v13091_v32 = vshll.u32 %v1395_v15, 8  ;;  %v13095_v48 = vand.u32 8388607, %v17355_v45  ;;  %vm1502_vm7 = vcmp.gt.s32.totalorder %v13073_v37, 0  ;;  %vm1274_vm5 = vcmp.lt.s32.totalorder %v13052_v17, 2 }
 0x179   : > { %v10858_v30 = vmin.u32 %v1349_v40, %v13071_v50  ;;  %vm2944_vm8 = vcmp.lt.s32.totalorder %v13054_v34, 2  ;;  %v1370_v22 = vsel %vm1285_vm0, %v1369_v61, %v1345_v42  ;;  %v1403_v56 = vshrl.u32 %v17366_v49, %v1402_v23 }
 0x17a   : > { %v1414_v24 = vshrl.u32 %v17373_v57, %v1402_v23  ;;  %v1598_v11 = vand.u32 2139095040, %v13076_v52  ;;  %vm1271_vm11 = vweird.f32 %v12764_v31  ;;  %v1406_v20 = vor.u32 %v1405_v33, %v1404_v0 }
 0x17b   : > { %v1351_v26 = vclz %v10858_v30  ;;  %v1409_v4 = vor.u32 %v1408_v58, %v1407_v16  ;;  %v1412_v15 = vor.u32 %v1411_v62, %v1410_v1  ;;  %v1416_v40 = vshll.u32 %v17373_v57, %v1401_v9 }
 0x17c   : > { %v1415_v25 = vor.u32 %v1414_v24, %v1413_v5  ;;  %v1417_v45 = vshrl.u32 %v17357_v2, %v1402_v23  ;;  %vm1419_vm9 = vcmp.lt.s32.totalorder %v1400_v27, 1  ;;  %v13110_v42 = vsel %vm13061_vm4, 0, %v1370_v22 }
 0x17d   : > { %v10859_v12 = vadd.s32 4294967294, %v1351_v26  ;;  %vm1421_vm10 = vcmp.lt.s32.totalorder %v1400_v27, 3  ;;  %vm1422_vm12 = vcmp.lt.s32.totalorder %v1400_v27, 4  ;;  %vm1420_vm13 = vcmp.lt.s32.totalorder %v1400_v27, 2 }
 0x17e   : > { %v1418_v61 = vor.u32 %v1417_v45, %v1416_v40  ;;  %v1423_v30 = vsel %vm1419_vm9, %v1403_v56, %v1406_v20  ;;  %v1424_v0 = vsel %vm1422_vm12, %v1412_v15, 2102212464  ;;  %v1427_v9 = vsel %vm1419_vm9, %v1406_v20, %v1409_v4 }
 0x17f   : > { %vm10860_vm14 = vcmp.lt.s32.totalorder %v10859_v12, 0  ;;  %v1425_v16 = vsel %vm1421_vm10, %v1409_v4, %v1424_v0  ;;  %v1428_v33 = vsel %vm1422_vm12, %v1415_v25, 920167782  ;;  %v1431_v62 = vsel %vm1419_vm9, %v1409_v4, %v1412_v15 }
 0x180   : > { %v11510_v23 = vpop.eup %11509  ;;  %v1354_v1 = vsel %vm10860_vm14, 0, %v10859_v12  ;;  %v1429_v58 = vsel %vm1421_vm10, %v1412_v15, %v1428_v33  ;;  %v1432_v5 = vsel %vm1422_vm12, %v1418_v61, 1326507024  ;;  %v1426_v2 = vsel %vm1420_vm13, %v1423_v30, %v1425_v16 }
 0x181   : > { %v11512_v22 = vpop.eup %11511  ;;  %v1279_v24 = vxor.u32 2147483648, %v11510_v23  ;;  %v1355_v45 = vsub.s32 32, %v1354_v1  ;;  %v1356_v26 = vshll.u32 %v13071_v50, %v1354_v1  ;;  %v1359_v56 = vsub.s32 4294967266, %v1354_v1 }
 0x182   : > { %v1276_v40 = vxor.u32 2147483648, %v11512_v22  ;;  %v1430_v0 = vsel %vm1420_vm13, %v1427_v9, %v1429_v58  ;;  %v1433_v20 = vsel %vm1421_vm10, %v1415_v25, %v1432_v5  ;;  %v1503_v25 = vsel %vm1502_vm7, %v13073_v37, 0 }
 0x183   : > { %v1280_v12 = vsel %vm1278_vm1, %v1279_v24, %v11512_v22  ;;  %v2950_v4 = vsel %vm2948_vm3, %v1279_v24, %v11512_v22  ;;  %v1357_v15 = vshrl.u32 %v13066_v14, %v1355_v45  ;;  %v1360_v61 = vadd.s32 127, %v1359_v56 }
 0x184   : > { %v1277_v50 = vsel %vm1275_vm2, %v11510_v23, %v1276_v40  ;;  %v2947_v30 = vsel %vm2945_vm6, %v11510_v23, %v1276_v40  ;;  %v1434_v16 = vsel %vm1420_vm13, %v1431_v62, %v1433_v20  ;;  %v1505_v22 = vand.u32 31, %v1503_v25 }
 0x185   : > { %v1281_v9 = vsel %vm1274_vm5, %v1277_v50, %v1280_v12  ;;  %v2951_v33 = vsel %vm2944_vm8, %v2947_v30, %v2950_v4  ;;  %v1358_v14 = vor.u32 %v1357_v15, %v1356_v26  ;;  %v1361_v1 = vshll.u32 %v1360_v61, 23 }
 0x186   : > { %v1282_v58 = vsel %vm1271_vm11, nan, %v1281_v9  ;;  %v13142_v23 = vsel %vm1271_vm11, nan, %v2951_v33  ;;  %v13145_v27 = vmul.u32.u64.low %v13091_v32, %v1434_v16  ;;  %v13146_v62 = vmul.u32.u64.high %v13091_v32, %v1434_v16, %v13145_v27 }
 0x187   : > { %1916 = vst [vmem:[%s11905_s26 + $0x48] sm:$0x1f] %v1282_v58  ;;  %v1362_v37 = vor.u32 4788187, %v1361_v1  ;;  %v1365_v17 = vcvt.s32.f32 %v1358_v14  ;;  %v13150_v5 = vmul.u32.u64.low %v13091_v32, %v1430_v0  ;;  %v13151_v34 = vmul.u32.u64.high %v13091_v32, %v1430_v0, %v13150_v5 }
 0x188   : > { %v1376_v45 = vadd.s32 3, %v13110_v42  ;;  %v1442_v31 = vmul.u32 %v13091_v32, %v1426_v2  ;;  %v1499_v26 = vor.u32 8388608, %v13095_v48  ;;  %v1504_v56 = vshrl.u32 %v1503_v25, 5 }
 0x189   : > { %v1363_v24 = vand.u32 2147483647, %v1362_v37  ;;  %vm1444_vm15 = vc.u32 %v13146_v62, %v13150_v5  ;;  %v1506_v40 = vsub.s32 32, %v1505_v22  ;;  %v1508_v20 = vshll.u32 %v17366_v49, %v1505_v22 }
 0x18a   : > { %v1445_v0 = vadd.s32 1, %v13151_v34  ;;  %v1511_v4 = vshll.u32 %v17361_v51, %v1505_v22  ;;  %v1599_v15 = vshrl.u32 %v1598_v11, 23  ;;  %v1514_v32 = vshll.u32 %v17359_v53, %v1505_v22 }
 0x18b   : > { %v1366_v12 = vmul.f32 %v1365_v17, %v1363_v24  ;;  %v1509_v61 = vshrl.u32 %v17361_v51, %v1506_v40  ;;  %v1512_v2 = vshrl.u32 %v17359_v53, %v1506_v40  ;;  %v1515_v48 = vshrl.u32 %v17363_v55, %v1506_v40 }
 0x18c   : > { %v1446_v30 = vsel %vm1444_vm15, %v1445_v0, %v13151_v34  ;;  %v1517_v16 = vshll.u32 %v17363_v55, %v1505_v22  ;;  %v1518_v25 = vshrl.u32 %v17373_v57, %v1506_v40  ;;  %v1507_v33 = vshrl.u32 %v17366_v49, %v1506_v40 }
 0x18d   : > { %v1367_v50 = vxor.u32 2147483648, %v1366_v12  ;;  %v1447_v9 = vadd.s32 %v1446_v30, %v1442_v31  ;;  %v1510_v14 = vor.u32 %v1509_v61, %v1508_v20  ;;  %v1513_v11 = vor.u32 %v1512_v2, %v1511_v4 }
 0x18e   : > { %v1519_v58 = vor.u32 %v1518_v25, %v1517_v16  ;;  %v1520_v27 = vshll.u32 %v17373_v57, %v1505_v22  ;;  %v17607_v37 = vmov 1326507024   ;;  %v1516_v0 = vor.u32 %v1515_v48, %v1514_v32 }
 0x18f   : > { %v1368_v1 = vsel %vm1285_vm0, %v1367_v50, %v1366_v12  ;;  %v1521_v17 = vshrl.u32 %v17607_v37, %v1506_v40  ;;  %v1448_v24 = vadd.s32 536870912, %v1447_v9  ;;  %vm1523_vm1 = vcmp.lt.s32.totalorder %v1504_v56, 1 }
 0x190   : > { %v1371_v34 = vsel %vm13061_vm4, %v12818_v35, %v1368_v1  ;;  %vm1525_vm3 = vcmp.lt.s32.totalorder %v1504_v56, 3  ;;  %vm1526_vm2 = vcmp.lt.s32.totalorder %v1504_v56, 4  ;;  %vm1524_vm6 = vcmp.lt.s32.totalorder %v1504_v56, 2 }
 0x191   : > { %11513 = vcosq.f32 %v1371_v34  ;;  %v1522_v31 = vor.u32 %v1521_v17, %v1520_v27  ;;  %v1449_v20 = vshrl.u32 %v1448_v24, 30  ;;  %v1528_v12 = vsel %vm1526_vm2, %v1516_v0, 2102212464 }
 0x192   : > { %11515 = vsinq.f32 %v1371_v34  ;;  %v3046_v4 = vand.u32 3, %v13110_v42  ;;  %v1531_v22 = vsel %vm1523_vm1, %v1510_v14, %v1513_v11  ;;  %v1532_v40 = vsel %vm1526_vm2, %v1519_v58, 920167782 }
 0x193   : > { %v1539_v61 = vshll.u32 %v1499_v26, 8  ;;  %v1450_v2 = vshll.u32 %v1449_v20, 30  ;;  %v1527_v38 = vsel %vm1523_vm1, %v1507_v33, %v1510_v14  ;;  %v1533_v32 = vsel %vm1525_vm3, %v1516_v0, %v1532_v40 }
 0x194   : > { %v1535_v48 = vsel %vm1523_vm1, %v1513_v11, %v1516_v0  ;;  %v1529_v50 = vsel %vm1525_vm3, %v1513_v11, %v1528_v12  ;;  %v1534_v30 = vsel %vm1524_vm6, %v1531_v22, %v1533_v32  ;;  %v1536_v16 = vsel %vm1526_vm2, %v1522_v31, 1326507024 }
 0x195   : > { %v10869_v25 = vadd.s32 4294967169, %v1599_v15  ;;  %vm1375_vm0 = vweird.f32 %v12818_v35  ;;  %v1377_v42 = vand.u32 3, %v1376_v45  ;;  %v13187_v1 = vsub.s32 %v1447_v9, %v1450_v2 }
 0x196   : > { %v1537_v26 = vsel %vm1525_vm3, %v1519_v58, %v1536_v16  ;;  %v13191_v33 = vmul.u32.u64.low %v1539_v61, %v1534_v30  ;;  %v13192_v14 = vmul.u32.u64.high %v1539_v61, %v1534_v30, %v13191_v33  ;;  %v206_v11 = vrot.slane %v12096_v59, %v12060_v10 }
 0x197   : > { %v1538_v27 = vsel %vm1524_vm6, %v1535_v48, %v1537_v26  ;;  %vm1389_vm4 = vcmp.lt.s32.totalorder %v12964_v19, 0  ;;  %v1453_v15 = vsub.s32 0, %v13187_v1  ;;  %v1530_v17 = vsel %vm1524_vm6, %v1527_v38, %v1529_v50 }
 0x198   : > { %v1605_v45 = vadd.s32 1, %v10869_v25  ;;  %vm3047_vm7 = vcmp.lt.s32.totalorder %v3046_v4, 2  ;;  %v13200_v9 = vmul.u32.u64.low %v1539_v61, %v1538_v27  ;;  %v13201_v34 = vmul.u32.u64.high %v1539_v61, %v1538_v27, %v13200_v9 }
 0x199   : > { %v17365_v58 = vand.u32 2147483647, %v13076_v52  ;;  %vm1378_vm5 = vcmp.lt.s32.totalorder %v1377_v42, 2  ;;  %vm3048_vm8 = vcmp.eq.s32.totalorder %v3046_v4, 0  ;;  %vm3051_vm11 = vcmp.eq.s32.totalorder %v3046_v4, 2 }
 0x19a   : > { %v10862_v24 = vmin.u32 %v1453_v15, %v13187_v1  ;;  %vm1379_vm9 = vcmp.eq.s32.totalorder %v1377_v42, 0  ;;  %vm1382_vm10 = vcmp.eq.s32.totalorder %v1377_v42, 2  ;;  %v1546_v31 = vmul.u32 %v1539_v61, %v1530_v17 }
 0x19b   : > { %v11514_v0 = vpop.eup %11513  ;;  %v1549_v12 = vadd.s32 1, %v13192_v14  ;;  %v1473_v2 = vsub.s32 4, %v1449_v20  ;;  %vm1606_vm12 = vcmp.gt.s32.totalorder %v1605_v45, 0  ;;  %v1443_v32 = vadd.s32 %v13150_v5, %v13146_v62 }
 0x19c   : > { %v11516_v56 = vpop.eup %11515  ;;  %v1383_v22 = vxor.u32 2147483648, %v11514_v0  ;;  %v1455_v40 = vclz %v10862_v24  ;;  %vm1548_vm13 = vc.u32 %v13201_v34, %v13191_v33  ;;  %v1602_v48 = vand.u32 8388607, %v17365_v58 }
 0x19d   : > { %v1380_v38 = vxor.u32 2147483648, %v11516_v56  ;;  %v1550_v16 = vsel %vm1548_vm13, %v1549_v12, %v13192_v14  ;;  %v1607_v15 = vsel %vm1606_vm12, %v1605_v45, 0  ;;  %v1474_v17 = vsel %vm1389_vm4, %v1473_v2, %v1449_v20 }
 0x19e   : > { %v1384_v50 = vsel %vm1382_vm10, %v1383_v22, %v11516_v56  ;;  %v3053_v61 = vsel %vm3051_vm11, %v1383_v22, %v11516_v56  ;;  %v10863_v30 = vadd.s32 4294967294, %v1455_v40  ;;  %v1551_v27 = vadd.s32 %v1550_v16, %v1546_v31 }
 0x19f   : > { %v1381_v25 = vsel %vm1379_vm9, %v11514_v0, %v1380_v38  ;;  %v3050_v26 = vsel %vm3048_vm8, %v11514_v0, %v1380_v38  ;;  %v1609_v4 = vand.u32 31, %v1607_v15  ;;  %v17608_v56 = vand.u32 2147483647, %v12964_v19 }
 0x1a0   : > { %v1385_v62 = vsel %vm1378_vm5, %v1381_v25, %v1384_v50  ;;  %v3054_v5 = vsel %vm3047_vm7, %v3050_v26, %v3053_v61  ;;  %vm10864_vm14 = vcmp.lt.s32.totalorder %v10863_v30, 0  ;;  %v1552_v12 = vadd.s32 536870912, %v1551_v27 }
 0x1a1   : > { %v1386_v9 = vsel %vm1375_vm0, nan, %v1385_v62  ;;  %v13224_v14 = vsel %vm1375_vm0, nan, %v3054_v5  ;;  %v1458_v24 = vsel %vm10864_vm14, 0, %v10863_v30  ;;  %vm13232_vm15 = vcmp.le.f32.partialorder %v17608_v56, 0.7853982 }
 0x1a2   : > { %1917 = vst [vmem:[%s11905_s26 + $0x50] sm:$0x1f] %v1386_v9  ;;  %v1459_v0 = vsub.s32 32, %v1458_v24  ;;  %v1460_v42 = vshll.u32 %v13187_v1, %v1458_v24  ;;  %v1463_v45 = vsub.s32 4294967266, %v1458_v24  ;;  %v13228_v31 = vshrl.u32 %v1552_v12, 30 }
 0x1a3   : > { %v1610_v40 = vsub.s32 32, %v1609_v4  ;;  %v13238_v2 = vsel %vm13232_vm15, 0, %v1474_v17  ;;  %v1603_v1 = vor.u32 8388608, %v1602_v48  ;;  %v13242_v50 = vmul.f32 %v206_v11, %v11926_v13 }
 0x1a4   : > { %v1461_v22 = vshrl.u32 %v1443_v32, %v1459_v0  ;;  %v1464_v35 = vadd.s32 127, %v1463_v45  ;;  %v1554_v38 = vshll.u32 %v13228_v31, 30  ;;  %v1608_v16 = vshrl.u32 %v1607_v15, 5 }
 0x1a5   : > { %v1612_v25 = vshll.u32 %v17366_v49, %v1609_v4  ;;  %v1613_v32 = vshrl.u32 %v17361_v51, %v1610_v40  ;;  %v1615_v62 = vshll.u32 %v17361_v51, %v1609_v4  ;;  %v1616_v5 = vshrl.u32 %v17359_v53, %v1610_v40 }
 0x1a6   : > { %v1462_v61 = vor.u32 %v1461_v22, %v1460_v42  ;;  %v1465_v30 = vshll.u32 %v1464_v35, 23  ;;  %v13245_v26 = vsub.s32 %v1551_v27, %v1554_v38  ;;  %v1618_v48 = vshll.u32 %v17359_v53, %v1609_v4 }
 0x1a7   : > { %v1619_v11 = vshrl.u32 %v17363_v55, %v1610_v40  ;;  %v1480_v24 = vadd.s32 3, %v13238_v2  ;;  %v13254_v12 = vshll.u32 %v1603_v1, 8  ;;  %v1702_v27 = vand.u32 2139095040, %v13242_v50 }
 0x1a8   : > { %v1466_v17 = vor.u32 4788187, %v1465_v30  ;;  %v1469_v9 = vcvt.s32.f32 %v1462_v61  ;;  %v1557_v15 = vsub.s32 0, %v13245_v26  ;;  %v1621_v42 = vshll.u32 %v17363_v55, %v1609_v4 }
 0x1a9   : > { %v1622_v45 = vshrl.u32 %v17373_v57, %v1610_v40  ;;  %vm1627_vm1 = vcmp.lt.s32.totalorder %v1608_v16, 1  ;;  %v1611_v22 = vshrl.u32 %v17366_v49, %v1610_v40  ;;  %v1614_v35 = vor.u32 %v1613_v32, %v1612_v25 }
 0x1aa   : > { %v1467_v0 = vand.u32 2147483647, %v1466_v17  ;;  %v10866_v56 = vmin.u32 %v1557_v15, %v13245_v26  ;;  %v1617_v38 = vor.u32 %v1616_v5, %v1615_v62  ;;  %v1620_v30 = vor.u32 %v1619_v11, %v1618_v48 }
 0x1ab   : > { %v1623_v53 = vor.u32 %v1622_v45, %v1621_v42  ;;  %v1624_v1 = vshll.u32 %v17373_v57, %v1609_v4  ;;  %v1547_v51 = vadd.s32 %v13191_v33, %v13201_v34  ;;  %vm1628_vm3 = vcmp.lt.s32.totalorder %v1608_v16, 2 }
 0x1ac   : > { %v1470_v61 = vmul.f32 %v1469_v9, %v1467_v0  ;;  %v1559_v17 = vclz %v10866_v56  ;;  %vm1629_vm2 = vcmp.lt.s32.totalorder %v1608_v16, 3  ;;  %v1577_v58 = vsub.s32 4, %v13228_v31 }
 0x1ad   : > { %v1625_v15 = vshrl.u32 %v17607_v37, %v1610_v40  ;;  %vm1630_vm6 = vcmp.lt.s32.totalorder %v1608_v16, 4  ;;  %v1635_v32 = vsel %vm1627_vm1, %v1614_v35, %v1617_v38  ;;  %v1631_v34 = vsel %vm1627_vm1, %v1611_v22, %v1614_v35 }
 0x1ae   : > { %v1471_v55 = vxor.u32 2147483648, %v1470_v61  ;;  %v10867_v49 = vadd.s32 4294967294, %v1559_v17  ;;  %v1632_v25 = vsel %vm1630_vm6, %v1620_v30, 2102212464  ;;  %v1636_v62 = vsel %vm1630_vm6, %v1623_v53, 920167782 }
 0x1af   : > { %v1626_v33 = vor.u32 %v1625_v15, %v1624_v1  ;;  %v1637_v5 = vsel %vm1629_vm2, %v1620_v30, %v1636_v62  ;;  %v1633_v9 = vsel %vm1629_vm2, %v1617_v38, %v1632_v25  ;;  %v1639_v0 = vsel %vm1627_vm1, %v1617_v38, %v1620_v30 }
 0x1b0   : > { %v1472_v4 = vsel %vm1389_vm4, %v1471_v55, %v1470_v61  ;;  %vm10868_vm0 = vcmp.lt.s32.totalorder %v10867_v49, 0  ;;  %v1638_v48 = vsel %vm1628_vm3, %v1635_v32, %v1637_v5  ;;  %v1634_v22 = vsel %vm1628_vm3, %v1631_v34, %v1633_v9 }
 0x1b1   : > { %v1475_v40 = vsel %vm13232_vm15, %v12964_v19, %v1472_v4  ;;  %v1562_v11 = vsel %vm10868_vm0, 0, %v10867_v49  ;;  %v1640_v55 = vsel %vm1630_vm6, %v1626_v33, 1326507024  ;;  %v1703_v30 = vshrl.u32 %v1702_v27, 23 }
 0x1b2   : > { %11517 = vcosq.f32 %v1475_v40  ;;  %v1563_v42 = vsub.s32 32, %v1562_v11  ;;  %v1564_v45 = vshll.u32 %v13245_v26, %v1562_v11  ;;  %v1567_v56 = vsub.s32 4294967266, %v1562_v11 }
 0x1b3   : > { %11519 = vsinq.f32 %v1475_v40  ;;  %v1641_v20 = vsel %vm1629_vm2, %v1623_v53, %v1640_v55  ;;  %v13284_v35 = vmul.u32.u64.low %v13254_v12, %v1638_v48  ;;  %v13285_v61 = vmul.u32.u64.high %v13254_v12, %v1638_v48, %v13284_v35 }
 0x1b4   : > { %v1565_v1 = vshrl.u32 %v1547_v51, %v1563_v42  ;;  %v1568_v49 = vadd.s32 127, %v1567_v56  ;;  %v1642_v38 = vsel %vm1628_vm3, %v1639_v0, %v1641_v20  ;;  %v1481_v17 = vand.u32 3, %v1480_v24 }
 0x1b5   : > { %vm1493_vm4 = vcmp.lt.s32.totalorder %v13027_v47, 0  ;;  %v13291_v26 = vmul.u32.u64.low %v13254_v12, %v1642_v38  ;;  %v13292_v15 = vmul.u32.u64.high %v13254_v12, %v1642_v38, %v13291_v26  ;;  %v10873_v51 = vadd.s32 4294967169, %v1703_v30 }
 0x1b6   : > { %v1566_v25 = vor.u32 %v1565_v1, %v1564_v45  ;;  %v1569_v53 = vshll.u32 %v1568_v49, 23  ;;  %v1578_v32 = vsel %vm1493_vm4, %v1577_v58, %v13228_v31  ;;  %v1650_v16 = vmul.u32 %v13254_v12, %v1634_v22 }
 0x1b7   : > { %v1653_v27 = vadd.s32 1, %v13285_v61  ;;  %v3587_v24 = vrot.slane %v12264_v44, 3  ;;  %v3588_v62 = vrot.slane %v12312_v18, 3  ;;  %v17611_v4 = vand.u32 2147483647, %v13027_v47 }
 0x1b8   : > { %v1570_v34 = vor.u32 4788187, %v1569_v53  ;;  %v1573_v5 = vcvt.s32.f32 %v1566_v25  ;;  %v1709_v40 = vadd.s32 1, %v10873_v51  ;;  %vm1652_vm5 = vc.u32 %v13292_v15, %v13284_v35 }
 0x1b9   : > { %vm13303_vm7 = vcmp.le.f32.partialorder %v17611_v4, 0.7853982  ;;  %v17368_v44 = vand.u32 2147483647, %v13242_v50  ;;  %v3589_v18 = vrot.slane %v12416_v43, 3  ;;  %v1654_v12 = vsel %vm1652_vm5, %v1653_v27, %v13285_v61 }
 0x1ba   : > { %v1580_v58 = vsel %vm13303_vm7, 0, %v1578_v32  ;;  %3619 = vst [vmem:[%s11905_s26 + $0x80] ss:$-124 sps:$4 sm:$0xe3] %v3587_v24   ;;  %v1571_v31 = vand.u32 2147483647, %v1570_v34  ;;  %v210_v9 = vrot.slane %v12096_v59, %v12557_v60  ;;  %v1655_v0 = vadd.s32 %v1654_v12, %v1650_v16 }
 0x1bb   : > { %3620 = vst [vmem:[%s11905_s26 + $0x88] ss:$-124 sps:$4 sm:$0xe3] %v3588_v62   ;;  %vm1710_vm8 = vcmp.gt.s32.totalorder %v1709_v40, 0  ;;  %vm1486_vm11 = vcmp.eq.s32.totalorder %v1481_v17, 2  ;;  %v13321_v11 = vand.u32 3, %v13238_v2  ;;  %vm1479_vm12 = vweird.f32 %v12964_v19 }
 0x1bc   : > { %v13318_v48 = vpop.eup %11517  ;;  %v1711_v55 = vsel %vm1710_vm8, %v1709_v40, 0  ;;  %3621 = vst [vmem:[%s11905_s26 + $0x90] ss:$-124 sps:$4 sm:$0xe3] %v3589_v18   ;;  %vm1483_vm9 = vcmp.eq.s32.totalorder %v1481_v17, 0  ;;  %v1574_v45 = vmul.f32 %v1573_v5, %v1571_v31  ;;  %vm1482_vm10 = vcmp.lt.s32.totalorder %v1481_v17, 2 }
 0x1bd   : > { %v13324_v42 = vpop.eup %11519  ;;  %v17370_v43 = vxor.u32 2147483648, %v13318_v48  ;;  %v1713_v56 = vand.u32 31, %v1711_v55  ;;  %v1584_v59 = vadd.s32 3, %v1580_v58  ;;  %v1656_v20 = vadd.s32 536870912, %v1655_v0 }
 0x1be   : > { %v17369_v22 = vxor.u32 2147483648, %v13324_v42  ;;  %v1575_v61 = vxor.u32 2147483648, %v1574_v45  ;;  %v1706_v1 = vand.u32 8388607, %v17368_v44  ;;  %v13334_v49 = vmul.f32 %v210_v9, %v11926_v13 }
 0x1bf   : > { %v1488_v2 = vsel %vm1486_vm11, %v17370_v43, %v13324_v42  ;;  %vm1597_vm13 = vcmp.lt.s32.totalorder %v13076_v52, 0  ;;  %v1657_v30 = vshrl.u32 %v1656_v20, 30  ;;  %vm3154_vm14 = vcmp.eq.s32.totalorder %v13321_v11, 2 }
 0x1c0   : > { %v1485_v38 = vsel %vm1483_vm9, %v13318_v48, %v17369_v22  ;;  %v1576_v26 = vsel %vm1493_vm4, %v1575_v61, %v1574_v45  ;;  %v1714_v25 = vsub.s32 32, %v1713_v56  ;;  %vm3151_vm15 = vcmp.eq.s32.totalorder %v13321_v11, 0 }
 0x1c1   : > { %v1489_v17 = vsel %vm1482_vm10, %v1485_v38, %v1488_v2  ;;  %v1579_v32 = vsel %vm13303_vm7, %v13027_v47, %v1576_v26  ;;  %v13350_v51 = vand.u32 3, %v1584_v59  ;;  %v1658_v16 = vshll.u32 %v1657_v30, 30 }
 0x1c2   : > { %v1490_v53 = vsel %vm1479_vm12, nan, %v1489_v17  ;;  %11521 = vcosq.f32 %v1579_v32  ;;  %v13353_v27 = vand.u32 3, %v1580_v58  ;;  %v17614_v24 = vand.u32 2147483647, %v13076_v52 }
 0x1c3   : > { %1918 = vst [vmem:[%s11905_s26 + $0x58] sm:$0x1f] %v1490_v53  ;;  %v1707_v4 = vor.u32 8388608, %v1706_v1  ;;  %v1806_v34 = vand.u32 2139095040, %v13334_v49  ;;  %11523 = vsinq.f32 %v1579_v32  ;;  %v13362_v5 = vsub.s32 %v1655_v0, %v1658_v16 }
 0x1c4   : > { %vm13357_vm1 = vcmp.le.f32.partialorder %v17614_v24, 0.7853982  ;;  %v1681_v33 = vsub.s32 4, %v1657_v30  ;;  %v17617_v40 = vmov 683565275   ;;  %vm1587_vm3 = vcmp.eq.s32.totalorder %v13350_v51, 0 }
 0x1c5   : > { %v1716_v18 = vshll.u32 %v17617_v40, %v1713_v56  ;;  %v17618_v31 = vmov 2475754826   ;;  %v17619_v9 = vmov 2131351028   ;;  %v17620_v59 = vmov 2102212464  }
 0x1c6   : > { %v1717_v12 = vshrl.u32 %v17618_v31, %v1714_v25  ;;  %v1719_v58 = vshll.u32 %v17618_v31, %v1713_v56  ;;  %v1720_v45 = vshrl.u32 %v17619_v9, %v1714_v25  ;;  %v1725_v20 = vshll.u32 %v17620_v59, %v1713_v56 }
 0x1c7   : > { %v1661_v2 = vsub.s32 0, %v13362_v5  ;;  %v1722_v61 = vshll.u32 %v17619_v9, %v1713_v56  ;;  %v1723_v0 = vshrl.u32 %v17620_v59, %v1714_v25  ;;  %v1726_v1 = vshrl.u32 %v17373_v57, %v1714_v25 }
 0x1c8   : > { %vm3150_vm2 = vcmp.lt.s32.totalorder %v13321_v11, 2  ;;  %vm1586_vm6 = vcmp.lt.s32.totalorder %v13350_v51, 2  ;;  %vm1590_vm0 = vcmp.eq.s32.totalorder %v13350_v51, 2  ;;  %v1651_v38 = vadd.s32 %v13284_v35, %v13292_v15 }
 0x1c9   : > { %v1712_v17 = vshrl.u32 %v1711_v55, 5  ;;  %v1728_v26 = vshll.u32 %v17373_v57, %v1713_v56  ;;  %v10870_v53 = vmin.u32 %v1661_v2, %v13362_v5  ;;  %v1729_v32 = vshrl.u32 %v17607_v37, %v1714_v25 }
 0x1ca   : > { %v13382_v16 = vshll.u32 %v1707_v4, 8  ;;  %v1682_v44 = vsel %vm1597_vm13, %v1681_v33, %v1657_v30  ;;  %v1718_v22 = vor.u32 %v1717_v12, %v1716_v18  ;;  %v1727_v43 = vor.u32 %v1726_v1, %v1725_v20 }
 0x1cb   : > { %v1807_v60 = vshrl.u32 %v1806_v34, 23  ;;  %vm1583_vm4 = vweird.f32 %v13027_v47  ;;  %v1663_v35 = vclz %v10870_v53  ;;  %v1721_v15 = vor.u32 %v1720_v45, %v1719_v58 }
 0x1cc   : > { %v1724_v55 = vor.u32 %v1723_v0, %v1722_v61  ;;  %v1730_v56 = vor.u32 %v1729_v32, %v1728_v26  ;;  %v17621_v2 = vxor.u32 2147483648, %v13318_v48  ;;  %vm3257_vm7 = vcmp.eq.s32.totalorder %v13353_v27, 2  ;;  %v11522_v33 = vpop.eup %11521 }
 0x1cd   : > { %v1715_v57 = vshrl.u32 %v17617_v40, %v1714_v25  ;;  %vm1731_vm5 = vcmp.lt.s32.totalorder %v1712_v17, 1  ;;  %vm1734_vm8 = vcmp.lt.s32.totalorder %v1712_v17, 4  ;;  %v10871_v30 = vadd.s32 4294967294, %v1663_v35  ;;  %v11524_v20 = vpop.eup %11523 }
 0x1ce   : > { %v3156_v4 = vsel %vm3154_vm14, %v17621_v2, %v13324_v42  ;;  %v1684_v34 = vsel %vm13357_vm1, 0, %v1682_v44  ;;  %vm1732_vm11 = vcmp.lt.s32.totalorder %v1712_v17, 2  ;;  %vm1733_vm9 = vcmp.lt.s32.totalorder %v1712_v17, 3 }
 0x1cf   : > { %v17622_v18 = vxor.u32 2147483648, %v13324_v42  ;;  %vm3254_vm10 = vcmp.eq.s32.totalorder %v13353_v27, 0  ;;  %v1736_v58 = vsel %vm1734_vm8, %v1724_v55, 2102212464  ;;  %v1740_v45 = vsel %vm1734_vm8, %v1727_v43, 920167782 }
 0x1d0   : > { %v1744_v25 = vsel %vm1734_vm8, %v1730_v56, 1326507024  ;;  %v1591_v61 = vxor.u32 2147483648, %v11522_v33  ;;  %vm10872_vm14 = vcmp.lt.s32.totalorder %v10871_v30, 0  ;;  %v1739_v0 = vsel %vm1731_vm5, %v1718_v22, %v1721_v15 }
 0x1d1   : > { %v3153_v12 = vsel %vm3151_vm15, %v13318_v48, %v17622_v18  ;;  %v1743_v44 = vsel %vm1731_vm5, %v1721_v15, %v1724_v55  ;;  %v1588_v1 = vxor.u32 2147483648, %v11524_v20  ;;  %v1666_v26 = vsel %vm10872_vm14, 0, %v10871_v30 }
 0x1d2   : > { %v1741_v42 = vsel %vm1733_vm9, %v1724_v55, %v1740_v45  ;;  %v1745_v53 = vsel %vm1733_vm9, %v1727_v43, %v1744_v25  ;;  %v1592_v48 = vsel %vm1590_vm0, %v1591_v61, %v11524_v20  ;;  %v1667_v32 = vsub.s32 32, %v1666_v26 }
 0x1d3   : > { %v1668_v35 = vshll.u32 %v13362_v5, %v1666_v26  ;;  %v1735_v56 = vsel %vm1731_vm5, %v1715_v57, %v1718_v22  ;;  %v1589_v2 = vsel %vm1587_vm3, %v11522_v33, %v1588_v1  ;;  %v1671_v18 = vsub.s32 4294967266, %v1666_v26 }
 0x1d4   : > { %v1737_v24 = vsel %vm1733_vm9, %v1721_v15, %v1736_v58  ;;  %v1746_v30 = vsel %vm1732_vm11, %v1743_v44, %v1745_v53  ;;  %v13417_v43 = vsel %vm3150_vm2, %v3153_v12, %v3156_v4  ;;  %v1593_v55 = vsel %vm1586_vm6, %v1589_v2, %v1592_v48 }
 0x1d5   : > { %v1669_v45 = vshrl.u32 %v1651_v38, %v1667_v32  ;;  %v1742_v5 = vsel %vm1732_vm11, %v1739_v0, %v1741_v42  ;;  %v1594_v57 = vsel %vm1583_vm4, nan, %v1593_v55  ;;  %v1672_v22 = vadd.s32 127, %v1671_v18 }
 0x1d6   : > { %v13424_v25 = vadd.s32 3, %v1684_v34  ;;  %v10877_v26 = vadd.s32 4294967169, %v1807_v60  ;;  %1919 = vst [vmem:[%s11905_s26 + $0x60] sm:$0x1f] %v1594_v57  ;;  %v1738_v58 = vsel %vm1732_vm11, %v1735_v56, %v1737_v24  ;;  %v13439_v44 = vsel %vm3257_vm7, %v1591_v61, %v11524_v20 }
 0x1d7   : > { %v1670_v15 = vor.u32 %v1669_v45, %v1668_v35  ;;  %v13429_v11 = vmul.u32.u64.low %v13382_v16, %v1746_v30  ;;  %v13430_v4 = vmul.u32.u64.high %v13382_v16, %v1746_v30, %v13429_v11  ;;  %v1673_v51 = vshll.u32 %v1672_v22, 23 }
 0x1d8   : > { %v13433_v38 = vmul.u32.u64.low %v13382_v16, %v1742_v5  ;;  %v13434_v12 = vmul.u32.u64.high %v13382_v16, %v1742_v5, %v13433_v38  ;;  %v1813_v0 = vadd.s32 1, %v10877_v26  ;;  %v13441_v17 = vand.u32 3, %v1684_v34 }
 0x1d9   : > { %v1677_v60 = vcvt.s32.f32 %v1670_v15  ;;  %v3590_v24 = vrot.slane %v12528_v28, 3  ;;  %v1674_v42 = vor.u32 4788187, %v1673_v51  ;;  %v3591_v53 = vrot.slane %v12642_v54, 3 }
 0x1da   : > { %vm1814_vm15 = vcmp.gt.s32.totalorder %v1813_v0, 0  ;;  %v3592_v48 = vrot.slane %v12713_v29, 3  ;;  %v3256_v32 = vsel %vm3254_vm10, %v11522_v33, %v1588_v1  ;;  %v1754_v35 = vmul.u32 %v13382_v16, %v1738_v58 }
 0x1db   : > { %vm1756_vm3 = vc.u32 %v13430_v4, %v13433_v38  ;;  %v1815_v20 = vsel %vm1814_vm15, %v1813_v0, 0  ;;  %3622 = vst [vmem:[%s11905_s26 + $0x98] ss:$-124 sps:$4 sm:$0xe3] %v3590_v24   ;;  %v1675_v34 = vand.u32 2147483647, %v1674_v42 }
 0x1dc   : > { %v1757_v61 = vadd.s32 1, %v13434_v12  ;;  %v17623_v28 = vand.u32 2147483647, %v13334_v49  ;;  %v1817_v2 = vand.u32 31, %v1815_v20  ;;  %vm3253_vm2 = vcmp.lt.s32.totalorder %v13353_v27, 2 }
 0x1dd   : > { %3623 = vst [vmem:[%s11905_s26 + $0xa0] ss:$-124 sps:$4 sm:$0xe3] %v3591_v53   ;;  %3624 = vst [vmem:[%s11905_s26 + $0xa8] ss:$-124 sps:$4 sm:$0xe3] %v3592_v48   ;;  %v1678_v1 = vmul.f32 %v1677_v60, %v1675_v34 }
 0x1de   : > { %v1810_v56 = vand.u32 8388607, %v17623_v28  ;;  %v3593_v54 = vrot.slane %v12799_v3, 3  ;;  %v3594_v29 = vrot.slane %v12918_v46, 3  ;;  %v3595_v16 = vrot.slane %v13004_v63, 3 }
 0x1df   : > { %v3596_v33 = vrot.slane %v13142_v23, 3  ;;  %v1758_v18 = vsel %vm1756_vm3, %v1757_v61, %v13434_v12  ;;  %v1818_v30 = vsub.s32 32, %v1817_v2  ;;  %v1820_v55 = vshll.u32 %v17617_v40, %v1817_v2 }
 0x1e0   : > { %v1759_v45 = vadd.s32 %v1758_v18, %v1754_v35  ;;  %v13464_v5 = vshrl.u32 %v1815_v20, 5  ;;  %v1823_v57 = vshll.u32 %v17618_v31, %v1817_v2  ;;  %v1829_v22 = vshll.u32 %v17620_v59, %v1817_v2  ;;  %3625 = vst [vmem:[%s11905_s26 + $0xb0] ss:$-124 sps:$4 sm:$0xe3] %v3593_v54  }
 0x1e1   : > { %3626 = vst [vmem:[%s11905_s26 + $0xb8] ss:$-124 sps:$4 sm:$0xe3] %v3594_v29   ;;  %3627 = vst [vmem:[%s11905_s26 + $0xc0] ss:$-124 sps:$4 sm:$0xe3] %v3595_v16   ;;  %v1821_v46 = vshrl.u32 %v17618_v31, %v1818_v30  ;;  %v1824_v63 = vshrl.u32 %v17619_v9, %v1818_v30  ;;  %v1826_v23 = vshll.u32 %v17619_v9, %v1817_v2 }
 0x1e2   : > { %3628 = vst [vmem:[%s11905_s26 + $0xc8] ss:$-124 sps:$4 sm:$0xe3] %v3596_v33   ;;  %v1679_v3 = vxor.u32 2147483648, %v1678_v1  ;;  %v1760_v26 = vadd.s32 536870912, %v1759_v45  ;;  %v1827_v15 = vshrl.u32 %v17620_v59, %v1818_v30  ;;  %v1811_v0 = vor.u32 8388608, %v1810_v56 }
 0x1e3   : > { %v17624_v58 = vmov 920167782   ;;  %v1822_v60 = vor.u32 %v1821_v46, %v1820_v55  ;;  %v1833_v24 = vshrl.u32 %v17607_v37, %v1818_v30  ;;  %v1825_v48 = vor.u32 %v1824_v63, %v1823_v57 }
 0x1e4   : > { %v1830_v11 = vshrl.u32 %v17624_v58, %v1818_v30  ;;  %v1832_v51 = vshll.u32 %v17624_v58, %v1817_v2  ;;  %v1680_v12 = vsel %vm1597_vm13, %v1679_v3, %v1678_v1  ;;  %v13484_v53 = vshrl.u32 %v1760_v26, 30 }
 0x1e5   : > { %v1683_v42 = vsel %vm13357_vm1, %v13076_v52, %v1680_v12  ;;  %v1828_v20 = vor.u32 %v1827_v15, %v1826_v23  ;;  %vm1835_vm6 = vcmp.lt.s32.totalorder %v13464_v5, 1  ;;  %v1819_v28 = vshrl.u32 %v17617_v40, %v1818_v30 }
 0x1e6   : > { %v1831_v35 = vor.u32 %v1830_v11, %v1829_v22  ;;  %11525 = vcosq.f32 %v1683_v42  ;;  %v1834_v34 = vor.u32 %v1833_v24, %v1832_v51  ;;  %v1762_v61 = vshll.u32 %v13484_v53, 30 }
 0x1e7   : > { %11527 = vsinq.f32 %v1683_v42  ;;  %vm1837_vm13 = vcmp.lt.s32.totalorder %v13464_v5, 3  ;;  %v3158_v62 = vsel %vm1479_vm12, nan, %v13417_v43  ;;  %v1689_v56 = vand.u32 3, %v13424_v25 }
 0x1e8   : > { %vm1836_vm1 = vcmp.lt.s32.totalorder %v13464_v5, 2  ;;  %vm1838_vm0 = vcmp.lt.s32.totalorder %v13464_v5, 4  ;;  %v13496_v2 = vsub.s32 %v1759_v45, %v1762_v61  ;;  %v1843_v29 = vsel %vm1835_vm6, %v1822_v60, %v1825_v48 }
 0x1e9   : > { %v1840_v54 = vsel %vm1838_vm0, %v1828_v20, 2102212464  ;;  %v1844_v16 = vsel %vm1838_vm0, %v1831_v35, 920167782  ;;  %v3260_v33 = vsel %vm3253_vm2, %v3256_v32, %v13439_v44  ;;  %v1848_v43 = vsel %vm1838_vm0, %v1834_v34, 1326507024 }
 0x1ea   : > { %v1845_v19 = vsel %vm1837_vm13, %v1828_v20, %v1844_v16  ;;  %v13505_v25 = vshll.u32 %v1811_v0, 8  ;;  %vm1687_vm12 = vweird.f32 %v13076_v52  ;;  %vm3356_vm7 = vcmp.lt.s32.totalorder %v13441_v17, 2 }
 0x1eb   : > { %v1765_v1 = vsub.s32 0, %v13496_v2  ;;  %v1839_v18 = vsel %vm1835_vm6, %v1819_v28, %v1822_v60  ;;  %v1847_v27 = vsel %vm1835_vm6, %v1825_v48, %v1828_v20  ;;  %v1841_v44 = vsel %vm1837_vm13, %v1825_v48, %v1840_v54 }
 0x1ec   : > { %v1846_v32 = vsel %vm1836_vm1, %v1843_v29, %v1845_v19  ;;  %v1849_v30 = vsel %vm1837_vm13, %v1831_v35, %v1848_v43  ;;  %v3597_v55 = vrot.slane %v13224_v14, 3  ;;  %v3261_v45 = vsel %vm1583_vm4, nan, %v3260_v33 }
 0x1ed   : > { %vm3357_vm5 = vcmp.eq.s32.totalorder %v13441_v17, 0  ;;  %vm3360_vm8 = vcmp.eq.s32.totalorder %v13441_v17, 2  ;;  %v10874_v57 = vmin.u32 %v1765_v1, %v13496_v2  ;;  %vm1690_vm11 = vcmp.lt.s32.totalorder %v1689_v56, 2 }
 0x1ee   : > { %v1850_v22 = vsel %vm1836_vm1, %v1847_v27, %v1849_v30  ;;  %v13529_v3 = vmul.u32.u64.low %v13505_v25, %v1846_v32  ;;  %v13530_v46 = vmul.u32.u64.high %v13505_v25, %v1846_v32, %v13529_v3  ;;  %3629 = vst [vmem:[%s11905_s26 + $0xd0] ss:$-124 sps:$4 sm:$0xe3] %v3597_v55   ;;  %vm1691_vm9 = vcmp.eq.s32.totalorder %v1689_v56, 0 }
 0x1ef   : > { %vm1694_vm10 = vcmp.eq.s32.totalorder %v1689_v56, 2  ;;  %v1767_v47 = vclz %v10874_v57  ;;  %v1842_v14 = vsel %vm1836_vm1, %v1839_v18, %v1841_v44  ;;  %v3598_v15 = vrot.slane %v3158_v62, 3 }
 0x1f0   : > { %v11526_v63 = vpop.eup %11525  ;;  %v13537_v23 = vmul.u32.u64.low %v13505_v25, %v1850_v22  ;;  %v13538_v26 = vmul.u32.u64.high %v13505_v25, %v1850_v22, %v13537_v23  ;;  %v3599_v11 = vrot.slane %v3261_v45, 3  ;;  %v1755_v0 = vadd.s32 %v13433_v38, %v13430_v4 }
 0x1f1   : > { %v11528_v51 = vpop.eup %11527  ;;  %v1695_v12 = vxor.u32 2147483648, %v11526_v63  ;;  %v10875_v60 = vadd.s32 4294967294, %v1767_v47  ;;  %v3666_v24 = vrot.slane %v12912_v41, %v11912_v6  ;;  %v1785_v5 = vsub.s32 4, %v13484_v53  ;;  %3630 = vst [vmem:[%s11905_s26 + $0xd8] ss:$-124 sps:$4 sm:$0xe3] %v3598_v15  }
 0x1f2   : > { %v1692_v42 = vxor.u32 2147483648, %v11528_v51  ;;  %v1858_v48 = vmul.u32 %v13505_v25, %v1842_v14  ;;  %3631 = vst [vmem:[%s11905_s26 + $0xe0] ss:$-124 sps:$4 sm:$0xe3] %v3599_v11   ;;  %v3670_v35 = vrot.slane %v12912_v41, %v11915_v7  ;;  %v1861_v38 = vadd.s32 1, %v13530_v46 }
 0x1f3   : > { %v1696_v20 = vsel %vm1694_vm10, %v1695_v12, %v11528_v51  ;;  %v3362_v4 = vsel %vm3360_vm8, %v1695_v12, %v11528_v51  ;;  %vm10876_vm4 = vcmp.lt.s32.totalorder %v10875_v60, 0  ;;  %v13558_v62 = vmul.f32 %v3666_v24, %v11926_v13 }
 0x1f4   : > { %v1693_v34 = vsel %vm1691_vm9, %v11526_v63, %v1692_v42  ;;  %v3359_v61 = vsel %vm3357_vm5, %v11526_v63, %v1692_v42  ;;  %v1770_v28 = vsel %vm10876_vm4, 0, %v10875_v60  ;;  %vm1860_vm14 = vc.u32 %v13538_v26, %v13529_v3 }
 0x1f5   : > { %v1697_v54 = vsel %vm1690_vm11, %v1693_v34, %v1696_v20  ;;  %v3363_v29 = vsel %vm3356_vm7, %v3359_v61, %v3362_v4  ;;  %v1771_v16 = vsub.s32 32, %v1770_v28  ;;  %v1772_v33 = vshll.u32 %v13496_v2, %v1770_v28 }
 0x1f6   : > { %v1698_v19 = vsel %vm1687_vm12, nan, %v1697_v54  ;;  %v3364_v43 = vsel %vm1687_vm12, nan, %v3363_v29  ;;  %v1775_v25 = vsub.s32 4294967266, %v1770_v28  ;;  %vm1701_vm15 = vcmp.lt.s32.totalorder %v13242_v50, 0 }
 0x1f7   : > { %1920 = vst [vmem:[%s11905_s26 + $0x68] sm:$0x1f] %v1698_v19  ;;  %v1773_v56 = vshrl.u32 %v1755_v0, %v1771_v16  ;;  %v1862_v17 = vsel %vm1860_vm14, %v1861_v38, %v13530_v46  ;;  %v3600_v1 = vrot.slane %v3364_v43, 3  ;;  %v1786_v2 = vsel %vm1701_vm15, %v1785_v5, %v13484_v53 }
 0x1f8   : > { %v1776_v18 = vadd.s32 127, %v1775_v25  ;;  %v1863_v27 = vadd.s32 %v1862_v17, %v1858_v48  ;;  %v3762_v52 = vand.u32 2139095040, %v13558_v62  ;;  %v17625_v44 = vand.u32 2147483647, %v13242_v50 }
 0x1f9   : > { %v1774_v30 = vor.u32 %v1773_v56, %v1772_v33  ;;  %3632 = vst [vmem:[%s11905_s26 + $0xe8] ss:$-124 sps:$4 sm:$0xe3] %v3600_v1   ;;  %v3759_v55 = vand.u32 2147483647, %v13558_v62  ;;  %v13586_v46 = vmul.f32 %v3670_v35, %v11926_v13  ;;  %vm1805_vm2 = vcmp.lt.s32.totalorder %v13334_v49, 0 }
 0x1fa   : > { %vm13579_vm3 = vcmp.le.f32.partialorder %v17625_v44, 0.7853982  ;;  %v1777_v45 = vshll.u32 %v1776_v18, 23  ;;  %v1864_v57 = vadd.s32 536870912, %v1863_v27  ;;  %v3763_v22 = vshrl.u32 %v3762_v52, 23 }
 0x1fb   : > { %v1788_v53 = vsel %vm13579_vm3, 0, %v1786_v2  ;;  %v1781_v14 = vcvt.s32.f32 %v1774_v30  ;;  %v3766_v15 = vand.u32 8388607, %v3759_v55  ;;  %v3863_v11 = vand.u32 2147483647, %v13586_v46 }
 0x1fc   : > { %v1778_v47 = vor.u32 4788187, %v1777_v45  ;;  %v1865_v63 = vshrl.u32 %v1864_v57, 30  ;;  %v10951_v23 = vadd.s32 4294967169, %v3763_v22  ;;  %v3866_v51 = vand.u32 2139095040, %v13586_v46 }
 0x1fd   : > { %v1792_v42 = vadd.s32 3, %v1788_v53  ;;  %v3674_v5 = vrot.slane %v12912_v41, %v11918_v8  ;;  %v17628_v4 = vand.u32 2147483647, %v13334_v49  ;;  %v3767_v34 = vor.u32 8388608, %v3766_v15 }
 0x1fe   : > { %v1779_v12 = vand.u32 2147483647, %v1778_v47  ;;  %v1866_v0 = vshll.u32 %v1865_v63, 30  ;;  %v1889_v60 = vsub.s32 4, %v1865_v63  ;;  %v3769_v24 = vadd.s32 1, %v10951_v23 }
 0x1ff   : > { %vm13603_vm13 = vcmp.le.f32.partialorder %v17628_v4, 0.7853982  ;;  %v3867_v28 = vshrl.u32 %v3866_v51, 23  ;;  %v13607_v29 = vand.u32 3, %v1788_v53  ;;  %v13612_v33 = vand.u32 8388607, %v3863_v11 }
 0x200   : > { %v1782_v48 = vmul.f32 %v1781_v14, %v1779_v12  ;;  %v13597_v35 = vsub.s32 %v1863_v27, %v1866_v0  ;;  %v1890_v20 = vsel %vm1805_vm2, %v1889_v60, %v1865_v63  ;;  %vm3770_vm6 = vcmp.gt.s32.totalorder %v3769_v24, 0 }
 0x201   : > { %v3771_v61 = vsel %vm3770_vm6, %v3769_v24, 0  ;;  %v13614_v19 = vand.u32 3, %v1792_v42  ;;  %v13618_v43 = vsel %vm13603_vm13, 0, %v1890_v20  ;;  %v3678_v56 = vrot.slane %v12912_v41, %v11942_v21 }
 0x202   : > { %v1783_v54 = vxor.u32 2147483648, %v1782_v48  ;;  %v1869_v16 = vsub.s32 0, %v13597_v35  ;;  %v3773_v25 = vand.u32 31, %v3771_v61  ;;  %v1859_v1 = vadd.s32 %v13529_v3, %v13538_v26 }
 0x203   : > { %v13628_v2 = vmul.f32 %v3674_v5, %v11926_v13  ;;  %v13633_v44 = vshll.u32 %v3767_v34, 8  ;;  %v10955_v30 = vadd.s32 4294967169, %v3867_v28  ;;  %v13636_v57 = vadd.s32 3, %v13618_v43 }
 0x204   : > { %v1784_v17 = vsel %vm1701_vm15, %v1783_v54, %v1782_v48  ;;  %v10878_v18 = vmin.u32 %v1869_v16, %v13597_v35  ;;  %v3774_v52 = vsub.s32 32, %v3773_v25  ;;  %v3871_v3 = vor.u32 8388608, %v13612_v33 }
 0x205   : > { %17631 = vst [vmem:[#allocation16_spill] sm:$0xff] %v13628_v2  ;;  %v1787_v27 = vsel %vm13579_vm3, %v13242_v50, %v1784_v17  ;;  %v3772_v26 = vshrl.u32 %v3771_v61, 5  ;;  %v3776_v53 = vshll.u32 %v17617_v40, %v3773_v25  ;;  %vm1798_vm1 = vcmp.eq.s32.totalorder %v13614_v19, 2 }
 0x206   : > { %11529 = vcosq.f32 %v1787_v27  ;;  %v1871_v45 = vclz %v10878_v18  ;;  %v3775_v22 = vshrl.u32 %v17617_v40, %v3774_v52  ;;  %vm3463_vm0 = vcmp.eq.s32.totalorder %v13607_v29, 2 }
 0x207   : > { %11531 = vsinq.f32 %v1787_v27  ;;  %v3777_v47 = vshrl.u32 %v17618_v31, %v3774_v52  ;;  %v3779_v14 = vshll.u32 %v17618_v31, %v3773_v25  ;;  %v3780_v63 = vshrl.u32 %v17619_v9, %v3774_v52 }
 0x208   : > { %v10879_v32 = vadd.s32 4294967294, %v1871_v45  ;;  %vm1795_vm12 = vcmp.eq.s32.totalorder %v13614_v19, 0  ;;  %vm3460_vm7 = vcmp.eq.s32.totalorder %v13607_v29, 0  ;;  %v3782_v23 = vshll.u32 %v17619_v9, %v3773_v25 }
 0x209   : > { %v3783_v15 = vshrl.u32 %v17620_v59, %v3774_v52  ;;  %v3785_v51 = vshll.u32 %v17620_v59, %v3773_v25  ;;  %v3786_v12 = vshrl.u32 %v17624_v58, %v3774_v52  ;;  %vm1794_vm5 = vcmp.lt.s32.totalorder %v13614_v19, 2 }
 0x20a   : > { %vm3459_vm8 = vcmp.lt.s32.totalorder %v13607_v29, 2  ;;  %vm10880_vm11 = vcmp.lt.s32.totalorder %v10879_v32, 0  ;;  %v3778_v0 = vor.u32 %v3777_v47, %v3776_v53  ;;  %v3781_v60 = vor.u32 %v3780_v63, %v3779_v14 }
 0x20b   : > { %v3788_v24 = vshll.u32 %v17624_v58, %v3773_v25  ;;  %vm1791_vm9 = vweird.f32 %v13242_v50  ;;  %v1874_v42 = vsel %vm10880_vm11, 0, %v10879_v32  ;;  %v3784_v5 = vor.u32 %v3783_v15, %v3782_v23 }
 0x20c   : > { %v3787_v48 = vor.u32 %v3786_v12, %v3785_v51  ;;  %v3789_v20 = vshrl.u32 %v17607_v37, %v3774_v52  ;;  %v1875_v4 = vsub.s32 32, %v1874_v42  ;;  %v1876_v34 = vshll.u32 %v13597_v35, %v1874_v42 }
 0x20d   : > { %v1879_v61 = vsub.s32 4294967266, %v1874_v42  ;;  %vm3791_vm10 = vcmp.lt.s32.totalorder %v3772_v26, 1  ;;  %vm3792_vm4 = vcmp.lt.s32.totalorder %v3772_v26, 2  ;;  %vm3793_vm14 = vcmp.lt.s32.totalorder %v3772_v26, 3 }
 0x20e   : > { %v3790_v28 = vor.u32 %v3789_v20, %v3788_v24  ;;  %vm3794_vm15 = vcmp.lt.s32.totalorder %v3772_v26, 4  ;;  %v1877_v54 = vshrl.u32 %v1859_v1, %v1875_v4  ;;  %v3795_v25 = vsel %vm3791_vm10, %v3775_v22, %v3778_v0 }
 0x20f   : > { %v1880_v16 = vadd.s32 127, %v1879_v61  ;;  %v3796_v17 = vsel %vm3794_vm15, %v3784_v5, 2102212464  ;;  %v3799_v27 = vsel %vm3791_vm10, %v3778_v0, %v3781_v60  ;;  %v3800_v52 = vsel %vm3794_vm15, %v3787_v48, 920167782 }
 0x210   : > { %v3797_v18 = vsel %vm3793_vm14, %v3781_v60, %v3796_v17  ;;  %v3873_v45 = vadd.s32 1, %v10955_v30  ;;  %v11530_v35 = vpop.eup %11529  ;;  %v1878_v53 = vor.u32 %v1877_v54, %v1876_v34  ;;  %v3801_v47 = vsel %vm3793_vm14, %v3784_v5, %v3800_v52 }
 0x211   : > { %v1881_v32 = vshll.u32 %v1880_v16, 23  ;;  %v3803_v14 = vsel %vm3791_vm10, %v3781_v60, %v3784_v5  ;;  %v11532_v1 = vpop.eup %11531  ;;  %v1799_v63 = vxor.u32 2147483648, %v11530_v35  ;;  %v3798_v22 = vsel %vm3792_vm4, %v3795_v25, %v3797_v18 }
 0x212   : > { %v3802_v23 = vsel %vm3792_vm4, %v3799_v27, %v3801_v47  ;;  %v3804_v15 = vsel %vm3794_vm15, %v3790_v28, 1326507024  ;;  %v1796_v51 = vxor.u32 2147483648, %v11532_v1  ;;  %v1885_v0 = vcvt.s32.f32 %v1878_v53 }
 0x213   : > { %v1882_v12 = vor.u32 4788187, %v1881_v32  ;;  %v3805_v30 = vsel %vm3793_vm14, %v3787_v48, %v3804_v15  ;;  %v1800_v24 = vsel %vm1798_vm1, %v1799_v63, %v11532_v1  ;;  %v3465_v60 = vsel %vm3463_vm0, %v1799_v63, %v11532_v1 }
 0x214   : > { %v3806_v42 = vsel %vm3792_vm4, %v3803_v14, %v3805_v30  ;;  %vm3874_vm3 = vcmp.gt.s32.totalorder %v3873_v45, 0  ;;  %v1797_v5 = vsel %vm1795_vm12, %v11530_v35, %v1796_v51  ;;  %v3462_v20 = vsel %vm3460_vm7, %v11530_v35, %v1796_v51 }
 0x215   : > { %v1883_v4 = vand.u32 2147483647, %v1882_v12  ;;  %v3875_v34 = vsel %vm3874_vm3, %v3873_v45, 0  ;;  %v1801_v48 = vsel %vm1794_vm5, %v1797_v5, %v1800_v24  ;;  %v3466_v61 = vsel %vm3459_vm8, %v3462_v20, %v3465_v60 }
 0x216   : > { %v13683_v28 = vmul.u32.u64.low %v13633_v44, %v3806_v42  ;;  %v13684_v26 = vmul.u32.u64.high %v13633_v44, %v3806_v42, %v13683_v28  ;;  %v1802_v54 = vsel %vm1791_vm9, nan, %v1801_v48  ;;  %v3467_v16 = vsel %vm1791_vm9, nan, %v3466_v61 }
 0x217   : > { %v1886_v25 = vmul.f32 %v1885_v0, %v1883_v4  ;;  %v13690_v17 = vshrl.u32 %v3875_v34, 5  ;;  %1921 = vst [vmem:[%s11905_s26 + $0x70] sm:$0x1f] %v1802_v54  ;;  %v3601_v19 = vrot.slane %v3467_v16, 3  ;;  %v3877_v29 = vand.u32 31, %v3875_v34 }
 0x218   : > { %v13694_v18 = vmul.u32.u64.low %v13633_v44, %v3802_v23  ;;  %v13695_v27 = vmul.u32.u64.high %v13633_v44, %v3802_v23, %v13694_v18  ;;  %v13699_v45 = vand.u32 3, %v13618_v43  ;;  %v3814_v35 = vmul.u32 %v13633_v44, %v3798_v22 }
 0x219   : > { %v1887_v52 = vxor.u32 2147483648, %v1886_v25  ;;  %vm3895_vm6 = vcmp.lt.s32.totalorder %v13690_v17, 1  ;;  %3633 = vst [vmem:[%s11905_s26 + $0xf0] ss:$-124 sps:$4 sm:$0xe3] %v3601_v19   ;;  %v3878_v50 = vsub.s32 32, %v3877_v29  ;;  %v3880_v53 = vshll.u32 %v17617_v40, %v3877_v29 }
 0x21a   : > { %vm3816_vm1 = vc.u32 %v13684_v26, %v13694_v18  ;;  %vm3897_vm0 = vcmp.lt.s32.totalorder %v13690_v17, 3  ;;  %v3883_v47 = vshll.u32 %v17618_v31, %v3877_v29  ;;  %v3886_v43 = vshll.u32 %v17619_v9, %v3877_v29 }
 0x21b   : > { %v1888_v32 = vsel %vm1805_vm2, %v1887_v52, %v1886_v25  ;;  %v3889_v44 = vshll.u32 %v17620_v59, %v3877_v29  ;;  %v3817_v1 = vadd.s32 1, %v13695_v27  ;;  %v3879_v63 = vshrl.u32 %v17617_v40, %v3878_v50 }
 0x21c   : > { %v1891_v14 = vsel %vm13603_vm13, %v13334_v49, %v1888_v32  ;;  %v3881_v22 = vshrl.u32 %v17618_v31, %v3878_v50  ;;  %v3884_v23 = vshrl.u32 %v17619_v9, %v3878_v50  ;;  %v3887_v15 = vshrl.u32 %v17620_v59, %v3878_v50 }
 0x21d   : > { %11533 = vcosq.f32 %v1891_v14  ;;  %v3890_v51 = vshrl.u32 %v17624_v58, %v3878_v50  ;;  %v3818_v38 = vsel %vm3816_vm1, %v3817_v1, %v13695_v27  ;;  %v3892_v0 = vshll.u32 %v17624_v58, %v3877_v29 }
 0x21e   : > { %11535 = vsinq.f32 %v1891_v14  ;;  %v3882_v12 = vor.u32 %v3881_v22, %v3880_v53  ;;  %v3819_v30 = vadd.s32 %v3818_v38, %v3814_v35  ;;  %v3885_v24 = vor.u32 %v3884_v23, %v3883_v47 }
 0x21f   : > { %v3888_v60 = vor.u32 %v3887_v15, %v3886_v43  ;;  %v3891_v42 = vor.u32 %v3890_v51, %v3889_v44  ;;  %v3893_v5 = vshrl.u32 %v17607_v37, %v3878_v50  ;;  %vm3896_vm2 = vcmp.lt.s32.totalorder %v13690_v17, 2 }
 0x220   : > { %vm3898_vm13 = vcmp.lt.s32.totalorder %v13690_v17, 4  ;;  %v13732_v20 = vshll.u32 %v3871_v3, 8  ;;  %vm3761_vm12 = vcmp.lt.s32.totalorder %v13558_v62, 0  ;;  %v3820_v4 = vadd.s32 536870912, %v3819_v30 }
 0x221   : > { %v3900_v34 = vsel %vm3898_vm13, %v3888_v60, 2102212464  ;;  %v3903_v48 = vsel %vm3895_vm6, %v3882_v12, %v3885_v24  ;;  %v3904_v61 = vsel %vm3898_vm13, %v3891_v42, 920167782  ;;  %vm1895_vm7 = vweird.f32 %v13334_v49 }
 0x222   : > { %v1897_v28 = vand.u32 3, %v13636_v57  ;;  %v3894_v54 = vor.u32 %v3893_v5, %v3892_v0  ;;  %v3899_v33 = vsel %vm3895_vm6, %v3879_v63, %v3882_v12  ;;  %v3905_v3 = vsel %vm3897_vm0, %v3888_v60, %v3904_v61  ;;  %v13780_v0 = vld [vmem:[%s11892_s24 + $0x21] ss:$4 sm:$0xff] }
 0x223   : > { %v3821_v16 = vshrl.u32 %v3820_v4, 30  ;;  %v3901_v25 = vsel %vm3897_vm0, %v3885_v24, %v3900_v34  ;;  %v3906_v19 = vsel %vm3896_vm2, %v3903_v48, %v3905_v3  ;;  %v3907_v27 = vsel %vm3895_vm6, %v3885_v24, %v3888_v60  ;;  %11081 = vst [vmem:[%s11905_s26 + $0x145] ss:$8 sm:$0xf] %v13780_v0 }
 0x224   : > { %vm3562_vm5 = vcmp.lt.s32.totalorder %v13699_v45, 2  ;;  %v3908_v57 = vsel %vm3898_vm13, %v3894_v54, 1326507024  ;;  %v13757_v29 = vmul.u32.u64.low %v13732_v20, %v3906_v19  ;;  %v13758_v52 = vmul.u32.u64.high %v13732_v20, %v3906_v19, %v13757_v29  ;;  %11082 = vst [vmem:[%s11905_s26 + $0x145] ss:$8 sm:$0xf0] %v13780_v0 }
 0x225   : > { %vm3563_vm8 = vcmp.eq.s32.totalorder %v13699_v45, 0  ;;  %v3822_v35 = vshll.u32 %v3821_v16, 30  ;;  %v3909_v50 = vsel %vm3897_vm0, %v3891_v42, %v3908_v57  ;;  %v3970_v53 = vand.u32 2139095040, %v13628_v2 }
 0x226   : > { %vm3566_vm11 = vcmp.eq.s32.totalorder %v13699_v45, 2  ;;  %v3845_v32 = vsub.s32 4, %v3821_v16  ;;  %v3902_v47 = vsel %vm3896_vm2, %v3899_v33, %v3901_v25  ;;  %v3910_v43 = vsel %vm3896_vm2, %v3907_v27, %v3909_v50 }
 0x227   : > { %v11534_v44 = vpop.eup %11533  ;;  %vm1902_vm9 = vcmp.eq.s32.totalorder %v1897_v28, 2  ;;  %v13770_v14 = vsub.s32 %v3819_v30, %v3822_v35  ;;  %v13773_v1 = vmul.u32.u64.low %v13732_v20, %v3910_v43  ;;  %v13774_v63 = vmul.u32.u64.high %v13732_v20, %v3910_v43, %v13773_v1 }
 0x228   : > { %v11536_v22 = vpop.eup %11535  ;;  %vm1898_vm10 = vcmp.lt.s32.totalorder %v1897_v28, 2  ;;  %vm1899_vm4 = vcmp.eq.s32.totalorder %v1897_v28, 0  ;;  %v1903_v23 = vxor.u32 2147483648, %v11534_v44  ;;  %v3971_v15 = vshrl.u32 %v3970_v53, 23 }
 0x229   : > { %v1900_v51 = vxor.u32 2147483648, %v11536_v22  ;;  %v3825_v38 = vsub.s32 0, %v13770_v14  ;;  %v3918_v17 = vmul.u32 %v13732_v20, %v3902_v47  ;;  %v3967_v12 = vand.u32 2147483647, %v13628_v2 }
 0x22a   : > { %v1904_v30 = vsel %vm1902_vm9, %v1903_v23, %v11536_v22  ;;  %v3568_v24 = vsel %vm3566_vm11, %v1903_v23, %v11536_v22  ;;  %v3846_v60 = vsel %vm3761_vm12, %v3845_v32, %v3821_v16  ;;  %v3921_v42 = vadd.s32 1, %v13758_v52 }
 0x22b   : > { %v1901_v5 = vsel %vm1899_vm4, %v11534_v44, %v1900_v51  ;;  %v3565_v20 = vsel %vm3563_vm8, %v11534_v44, %v1900_v51  ;;  %v10952_v4 = vmin.u32 %v3825_v38, %v13770_v14  ;;  %v10959_v34 = vadd.s32 4294967169, %v3971_v15 }
 0x22c   : > { %v1905_v48 = vsel %vm1898_vm10, %v1901_v5, %v1904_v30  ;;  %v3569_v61 = vsel %vm3562_vm5, %v3565_v20, %v3568_v24  ;;  %vm13799_vm14 = vcmp.le.f32.partialorder %v3759_v55, 0.7853982  ;;  %vm3920_vm15 = vc.u32 %v13774_v63, %v13757_v29 }
 0x22d   : > { %v1906_v33 = vsel %vm1895_vm7, nan, %v1905_v48  ;;  %v3570_v28 = vsel %vm1895_vm7, nan, %v3569_v61  ;;  %v3827_v3 = vclz %v10952_v4  ;;  %v13811_v45 = vsel %vm13799_vm14, 0, %v3846_v60 }
 0x22e   : > { %1922 = vst [vmem:[%s11905_s26 + $0x78] sm:$0x1f] %v1906_v33  ;;  %v3602_v16 = vrot.slane %v3570_v28, 3  ;;  %v3922_v55 = vsel %vm3920_vm15, %v3921_v42, %v13758_v52  ;;  %v3974_v25 = vand.u32 8388607, %v3967_v12  ;;  %v3977_v57 = vadd.s32 1, %v10959_v34 }
 0x22f   : > { %v10953_v19 = vadd.s32 4294967294, %v3827_v3  ;;  %v3923_v27 = vadd.s32 %v3922_v55, %v3918_v17  ;;  %v3852_v35 = vadd.s32 3, %v13811_v45  ;;  %v13823_v49 = vmul.f32 %v3678_v56, %v11926_v13 }
 0x230   : > { %3634 = vst [vmem:[%s11905_s26 + $0xf8] ss:$-124 sps:$4 sm:$0xe3] %v3602_v16   ;;  %v3815_v50 = vadd.s32 %v13694_v18, %v13684_v26  ;;  %vm3978_vm6 = vcmp.gt.s32.totalorder %v3977_v57, 0  ;;  %v3975_v32 = vor.u32 8388608, %v3974_v25  ;;  %v13835_v26 = vadd.s32 %v13757_v29, %v13774_v63 }
 0x231   : > { %17634 = vst [vmem:[#allocation17_spill] sm:$0xff] %v13823_v49  ;;  %vm10954_vm3 = vcmp.lt.s32.totalorder %v10953_v19, 0  ;;  %v3924_v52 = vadd.s32 536870912, %v3923_v27  ;;  %v3979_v47 = vsel %vm3978_vm6, %v3977_v57, 0  ;;  %v4071_v43 = vand.u32 2147483647, %v13823_v49 }
 0x232   : > { %v3830_v53 = vsel %vm10954_vm3, 0, %v10953_v19  ;;  %v13831_v15 = vand.u32 3, %v3852_v35  ;;  %v3981_v56 = vand.u32 31, %v3979_v47  ;;  %v13838_v30 = vshll.u32 %v3975_v32, 8 }
 0x233   : > { %v3831_v44 = vsub.s32 32, %v3830_v53  ;;  %v3832_v1 = vshll.u32 %v13770_v14, %v3830_v53  ;;  %v3835_v22 = vsub.s32 4294967266, %v3830_v53  ;;  %v13829_v23 = vshrl.u32 %v3924_v52, 30 }
 0x234   : > { %v3982_v17 = vsub.s32 32, %v3981_v56  ;;  %v4074_v24 = vand.u32 2139095040, %v13823_v49  ;;  %v13843_v14 = vand.u32 8388607, %v4071_v43  ;;  %v3980_v20 = vshrl.u32 %v3979_v47, 5 }
 0x235   : > { %v3833_v51 = vshrl.u32 %v3815_v50, %v3831_v44  ;;  %v3836_v38 = vadd.s32 127, %v3835_v22  ;;  %v3926_v18 = vshll.u32 %v13829_v23, 30  ;;  %v3984_v4 = vshll.u32 %v17617_v40, %v3981_v56 }
 0x236   : > { %v3985_v29 = vshrl.u32 %v17618_v31, %v3982_v17  ;;  %v3987_v63 = vshll.u32 %v17618_v31, %v3981_v56  ;;  %v3988_v34 = vshrl.u32 %v17619_v9, %v3982_v17  ;;  %v3990_v28 = vshll.u32 %v17619_v9, %v3981_v56 }
 0x237   : > { %v3834_v60 = vor.u32 %v3833_v51, %v3832_v1  ;;  %v3837_v42 = vshll.u32 %v3836_v38, 23  ;;  %v13845_v5 = vsub.s32 %v3923_v27, %v3926_v18  ;;  %v3991_v3 = vshrl.u32 %v17620_v59, %v3982_v17 }
 0x238   : > { %v3993_v16 = vshll.u32 %v17620_v59, %v3981_v56  ;;  %v4075_v55 = vshrl.u32 %v4074_v24, 23  ;;  %v3682_v25 = vrot.slane %v12912_v41, %v11952_v36  ;;  %vm3865_vm1 = vcmp.lt.s32.totalorder %v13586_v46, 0 }
 0x239   : > { %v3838_v48 = vor.u32 4788187, %v3837_v42  ;;  %v3841_v61 = vcvt.s32.f32 %v3834_v60  ;;  %v3929_v33 = vsub.s32 0, %v13845_v5  ;;  %v3983_v57 = vshrl.u32 %v17617_v40, %v3982_v17 }
 0x23a   : > { %v3994_v35 = vshrl.u32 %v17624_v58, %v3982_v17  ;;  %v3986_v50 = vor.u32 %v3985_v29, %v3984_v4  ;;  %v3989_v52 = vor.u32 %v3988_v34, %v3987_v63  ;;  %v3996_v53 = vshll.u32 %v17624_v58, %v3981_v56 }
 0x23b   : > { %v3839_v19 = vand.u32 2147483647, %v3838_v48  ;;  %v10956_v27 = vmin.u32 %v3929_v33, %v13845_v5  ;;  %v3997_v32 = vshrl.u32 %v17607_v37, %v3982_v17  ;;  %v3992_v1 = vor.u32 %v3991_v3, %v3990_v28 }
 0x23c   : > { %vm3999_vm0 = vcmp.lt.s32.totalorder %v3980_v20, 1  ;;  %v3949_v22 = vsub.s32 4, %v13829_v23  ;;  %v3995_v51 = vor.u32 %v3994_v35, %v3993_v16  ;;  %vm4000_vm2 = vcmp.lt.s32.totalorder %v3980_v20, 2 }
 0x23d   : > { %v3842_v47 = vmul.f32 %v3841_v61, %v3839_v19  ;;  %v3931_v44 = vclz %v10956_v27  ;;  %v10963_v38 = vadd.s32 4294967169, %v4075_v55  ;;  %vm13866_vm13 = vcmp.le.f32.partialorder %v3863_v11, 0.7853982 }
 0x23e   : > { %vm4001_vm7 = vcmp.lt.s32.totalorder %v3980_v20, 3  ;;  %vm4002_vm5 = vcmp.lt.s32.totalorder %v3980_v20, 4  ;;  %v3998_v56 = vor.u32 %v3997_v32, %v3996_v53  ;;  %v4007_v42 = vsel %vm3999_vm0, %v3986_v50, %v3989_v52 }
 0x23f   : > { %v3843_v18 = vxor.u32 2147483648, %v3842_v47  ;;  %v10957_v60 = vadd.s32 4294967294, %v3931_v44  ;;  %v4004_v17 = vsel %vm4002_vm5, %v3992_v1, 2102212464  ;;  %v4008_v4 = vsel %vm4002_vm5, %v3995_v51, 920167782 }
 0x240   : > { %v4003_v63 = vsel %vm3999_vm0, %v3983_v57, %v3986_v50  ;;  %v4009_v11 = vsel %vm4001_vm7, %v3992_v1, %v4008_v4  ;;  %v4005_v61 = vsel %vm4001_vm7, %v3989_v52, %v4004_v17  ;;  %v3950_v55 = vsel %vm3865_vm1, %v3949_v22, %v13829_v23 }
 0x241   : > { %v3844_v29 = vsel %vm3761_vm12, %v3843_v18, %v3842_v47  ;;  %vm10958_vm8 = vcmp.lt.s32.totalorder %v10957_v60, 0  ;;  %v4010_v33 = vsel %vm4000_vm2, %v4007_v42, %v4009_v11  ;;  %v4011_v19 = vsel %vm3999_vm0, %v3989_v52, %v3992_v1 }
 0x242   : > { %v3847_v34 = vsel %vm13799_vm14, %v13558_v62, %v3844_v29  ;;  %v3934_v48 = vsel %vm10958_vm8, 0, %v10957_v60  ;;  %v4012_v54 = vsel %vm4002_vm5, %v3998_v56, 1326507024  ;;  %v4081_v50 = vadd.s32 1, %v10963_v38 }
 0x243   : > { %11537 = vcosq.f32 %v3847_v34  ;;  %v3935_v28 = vsub.s32 32, %v3934_v48  ;;  %v3936_v3 = vshll.u32 %v13845_v5, %v3934_v48  ;;  %v3939_v16 = vsub.s32 4294967266, %v3934_v48 }
 0x244   : > { %11539 = vsinq.f32 %v3847_v34  ;;  %v4013_v35 = vsel %vm4001_vm7, %v3995_v51, %v4012_v54  ;;  %v4006_v53 = vsel %vm4000_vm2, %v4003_v63, %v4005_v61  ;;  %vm3851_vm12 = vweird.f32 %v13558_v62 }
 0x245   : > { %v3937_v27 = vshrl.u32 %v13835_v26, %v3935_v28  ;;  %v3940_v57 = vadd.s32 127, %v3939_v16  ;;  %v4014_v5 = vsel %vm4000_vm2, %v4011_v19, %v4013_v35  ;;  %vm3854_vm11 = vcmp.lt.s32.totalorder %v13831_v15, 2 }
 0x246   : > { %v13893_v32 = vmul.u32.u64.low %v13838_v30, %v4010_v33  ;;  %v13894_v47 = vmul.u32.u64.high %v13838_v30, %v4010_v33, %v13893_v32  ;;  %v13898_v52 = vmul.u32.u64.low %v13838_v30, %v4014_v5  ;;  %v13899_v1 = vmul.u32.u64.high %v13838_v30, %v4014_v5, %v13898_v52 }
 0x247   : > { %v3938_v23 = vor.u32 %v3937_v27, %v3936_v3  ;;  %v3941_v44 = vshll.u32 %v3940_v57, 23  ;;  %v13905_v26 = vsel %vm13866_vm13, 0, %v3950_v55  ;;  %vm4082_vm9 = vcmp.gt.s32.totalorder %v4081_v50, 0 }
 0x248   : > { %v13908_v20 = vmul.f32 %v3682_v25, %v11926_v13  ;;  %v4022_v38 = vmul.u32 %v13838_v30, %v4006_v53  ;;  %v4083_v18 = vsel %vm4082_vm9, %v4081_v50, 0  ;;  %vm3855_vm10 = vcmp.eq.s32.totalorder %v13831_v15, 0 }
 0x249   : > { %v3942_v22 = vor.u32 4788187, %v3941_v44  ;;  %v3945_v51 = vcvt.s32.f32 %v3938_v23  ;;  %vm3858_vm4 = vcmp.eq.s32.totalorder %v13831_v15, 2  ;;  %v4025_v60 = vadd.s32 1, %v13894_v47 }
 0x24a   : > { %17637 = vst [vmem:[#allocation18_spill] sm:$0xff] %v13908_v20  ;;  %v4085_v56 = vand.u32 31, %v4083_v18  ;;  %v3956_v42 = vadd.s32 3, %v13905_v26  ;;  %vm4024_vm14 = vc.u32 %v13899_v1, %v13893_v32  ;;  %v4079_v25 = vor.u32 8388608, %v13843_v14 }
 0x24b   : > { %v3943_v17 = vand.u32 2147483647, %v3942_v22  ;;  %v4026_v4 = vsel %vm4024_vm14, %v4025_v60, %v13894_v47  ;;  %v13919_v29 = vshrl.u32 %v4083_v18, 5  ;;  %v4178_v63 = vand.u32 2139095040, %v13908_v20 }
 0x24c   : > { %v4086_v30 = vsub.s32 32, %v4085_v56  ;;  %v4027_v48 = vadd.s32 %v4026_v4, %v4022_v38  ;;  %v4088_v61 = vshll.u32 %v17617_v40, %v4085_v56  ;;  %v4091_v33 = vshll.u32 %v17618_v31, %v4085_v56 }
 0x24d   : > { %v13922_v11 = vpop.eup %11537  ;;  %v3946_v34 = vmul.f32 %v3945_v51, %v3943_v17  ;;  %v4094_v55 = vshll.u32 %v17619_v9, %v4085_v56  ;;  %v4097_v57 = vshll.u32 %v17620_v59, %v4085_v56  ;;  %v4100_v18 = vshll.u32 %v17624_v58, %v4085_v56 }
 0x24e   : > { %v13926_v28 = vpop.eup %11539  ;;  %v17377_v3 = vxor.u32 2147483648, %v13922_v11  ;;  %v4089_v14 = vshrl.u32 %v17618_v31, %v4086_v30  ;;  %v4092_v16 = vshrl.u32 %v17619_v9, %v4086_v30  ;;  %v4028_v27 = vadd.s32 536870912, %v4027_v48 }
 0x24f   : > { %v17380_v19 = vxor.u32 2147483648, %v13926_v28  ;;  %v3947_v54 = vxor.u32 2147483648, %v3946_v34  ;;  %v4087_v50 = vshrl.u32 %v17617_v40, %v4086_v30  ;;  %v4095_v53 = vshrl.u32 %v17620_v59, %v4086_v30 }
 0x250   : > { %v3860_v35 = vsel %vm3858_vm4, %v17377_v3, %v13926_v28  ;;  %v4098_v5 = vshrl.u32 %v17624_v58, %v4086_v30  ;;  %v13949_v44 = vshrl.u32 %v4028_v27, 30  ;;  %v4090_v52 = vor.u32 %v4089_v14, %v4088_v61 }
 0x251   : > { %v3857_v47 = vsel %vm3855_vm10, %v13922_v11, %v17380_v19  ;;  %v3948_v23 = vsel %vm3865_vm1, %v3947_v54, %v3946_v34  ;;  %v4093_v38 = vor.u32 %v4092_v16, %v4091_v33  ;;  %v4101_v15 = vshrl.u32 %v17607_v37, %v4086_v30 }
 0x252   : > { %v3861_v22 = vsel %vm3854_vm11, %v3857_v47, %v3860_v35  ;;  %v3951_v51 = vsel %vm13866_vm13, %v13586_v46, %v3948_v23  ;;  %v4030_v17 = vshll.u32 %v13949_v44, 30  ;;  %v4099_v4 = vor.u32 %v4098_v5, %v4097_v57 }
 0x253   : > { %v3862_v60 = vsel %vm3851_vm12, nan, %v3861_v22  ;;  %11541 = vcosq.f32 %v3951_v51  ;;  %vm4103_vm15 = vcmp.lt.s32.totalorder %v13919_v29, 1  ;;  %v3957_v61 = vand.u32 3, %v3956_v42 }
 0x254   : > { %v5439_v34 = vrot.slane %v3862_v60, 5  ;;  %11543 = vsinq.f32 %v3951_v51  ;;  %v13962_v14 = vsub.s32 %v4027_v48, %v4030_v17  ;;  %v4096_v24 = vor.u32 %v4095_v53, %v4094_v55 }
 0x255   : > { %v4102_v33 = vor.u32 %v4101_v15, %v4100_v18  ;;  %vm4105_vm3 = vcmp.lt.s32.totalorder %v13919_v29, 3  ;;  %vm4106_vm6 = vcmp.lt.s32.totalorder %v13919_v29, 4  ;;  %v4179_v56 = vshrl.u32 %v4178_v63, 23 }
 0x256   : > { %5471 = vst [vmem:[%s11905_s26 + $0x80] sm:$0xf8] %v5439_v34  ;;  %v4033_v16 = vsub.s32 0, %v13962_v14  ;;  %vm4104_vm1 = vcmp.lt.s32.totalorder %v13919_v29, 2  ;;  %v4108_v54 = vsel %vm4106_vm6, %v4096_v24, 2102212464  ;;  %v4111_v30 = vsel %vm4103_vm15, %v4090_v52, %v4093_v38 }
 0x257   : > { %vm3955_vm0 = vweird.f32 %v13586_v46  ;;  %v4107_v42 = vsel %vm4103_vm15, %v4087_v50, %v4090_v52  ;;  %v4112_v48 = vsel %vm4106_vm6, %v4099_v4, 920167782  ;;  %v4116_v55 = vsel %vm4106_vm6, %v4102_v33, 1326507024 }
 0x258   : > { %v4119_v27 = vshll.u32 %v4079_v25, 8  ;;  %v10960_v57 = vmin.u32 %v4033_v16, %v13962_v14  ;;  %v4109_v63 = vsel %vm4105_vm3, %v4093_v38, %v4108_v54  ;;  %v4113_v35 = vsel %vm4105_vm3, %v4096_v24, %v4112_v48 }
 0x259   : > { %v4115_v53 = vsel %vm4103_vm15, %v4093_v38, %v4096_v24  ;;  %vm3969_vm2 = vcmp.lt.s32.totalorder %v13628_v2, 0  ;;  %v4114_v5 = vsel %vm4104_vm1, %v4111_v30, %v4113_v35  ;;  %v4117_v50 = vsel %vm4105_vm3, %v4099_v4, %v4116_v55 }
 0x25a   : > { %v10967_v25 = vadd.s32 4294967169, %v4179_v56  ;;  %vm3958_vm13 = vcmp.lt.s32.totalorder %v3957_v61, 2  ;;  %vm3959_vm7 = vcmp.eq.s32.totalorder %v3957_v61, 0  ;;  %vm3962_vm5 = vcmp.eq.s32.totalorder %v3957_v61, 2 }
 0x25b   : > { %v4035_v47 = vclz %v10960_v57  ;;  %v4110_v23 = vsel %vm4104_vm1, %v4107_v42, %v4109_v63  ;;  %v4118_v52 = vsel %vm4104_vm1, %v4115_v53, %v4117_v50  ;;  %v4023_v24 = vadd.s32 %v13893_v32, %v13899_v1 }
 0x25c   : > { %v13990_v22 = vmul.u32.u64.low %v4119_v27, %v4114_v5  ;;  %v13991_v51 = vmul.u32.u64.high %v4119_v27, %v4114_v5, %v13990_v22  ;;  %v13996_v60 = vmul.u32.u64.low %v4119_v27, %v4118_v52  ;;  %v13997_v17 = vmul.u32.u64.high %v4119_v27, %v4118_v52, %v13996_v60 }
 0x25d   : > { %v13994_v38 = vpop.eup %11541  ;;  %v10961_v18 = vadd.s32 4294967294, %v4035_v47  ;;  %v4185_v4 = vadd.s32 1, %v10967_v25  ;;  %v4053_v29 = vsub.s32 4, %v13949_v44  ;;  %v4175_v33 = vand.u32 2147483647, %v13908_v20 }
 0x25e   : > { %v13999_v34 = vpop.eup %11543  ;;  %v17375_v15 = vxor.u32 2147483648, %v13994_v38  ;;  %v4126_v16 = vmul.u32 %v4119_v27, %v4110_v23  ;;  %v4129_v42 = vadd.s32 1, %v13991_v51  ;;  %vm14020_vm9 = vcmp.le.f32.partialorder %v3967_v12, 0.7853982 }
 0x25f   : > { %v17376_v56 = vxor.u32 2147483648, %v13999_v34  ;;  %vm10962_vm8 = vcmp.lt.s32.totalorder %v10961_v18, 0  ;;  %vm4186_vm11 = vcmp.gt.s32.totalorder %v4185_v4, 0  ;;  %v4054_v35 = vsel %vm3969_vm2, %v4053_v29, %v13949_v44 }
 0x260   : > { %v3964_v54 = vsel %vm3962_vm5, %v17375_v15, %v13999_v34  ;;  %v4038_v30 = vsel %vm10962_vm8, 0, %v10961_v18  ;;  %v4187_v48 = vsel %vm4186_vm11, %v4185_v4, 0  ;;  %vm4128_vm10 = vc.u32 %v13997_v17, %v13990_v22 }
 0x261   : > { %v3961_v32 = vsel %vm3959_vm7, %v13994_v38, %v17376_v56  ;;  %v4039_v1 = vsub.s32 32, %v4038_v30  ;;  %v4040_v55 = vshll.u32 %v13962_v14, %v4038_v30  ;;  %v4043_v57 = vsub.s32 4294967266, %v4038_v30 }
 0x262   : > { %v3965_v27 = vsel %vm3958_vm13, %v3961_v32, %v3964_v54  ;;  %v4130_v5 = vsel %vm4128_vm10, %v4129_v42, %v13991_v51  ;;  %v14032_v12 = vshrl.u32 %v4187_v48, 5  ;;  %v4189_v47 = vand.u32 31, %v4187_v48 }
 0x263   : > { %v3966_v14 = vsel %vm3955_vm0, nan, %v3965_v27  ;;  %v4041_v53 = vshrl.u32 %v4023_v24, %v4039_v1  ;;  %v4044_v61 = vadd.s32 127, %v4043_v57  ;;  %v4131_v25 = vadd.s32 %v4130_v5, %v4126_v16 }
 0x264   : > { %v5440_v50 = vrot.slane %v3966_v14, 5  ;;  %v14036_v44 = vsel %vm14020_vm9, 0, %v4054_v35  ;;  %v4182_v18 = vand.u32 8388607, %v4175_v33  ;;  %v4190_v4 = vsub.s32 32, %v4189_v47 }
 0x265   : > { %v4042_v23 = vor.u32 %v4041_v53, %v4040_v55  ;;  %v4045_v52 = vshll.u32 %v4044_v61, 23  ;;  %v4132_v60 = vadd.s32 536870912, %v4131_v25  ;;  %v4192_v24 = vshll.u32 %v17617_v40, %v4189_v47 }
 0x266   : > { %5472 = vst [vmem:[%s11905_s26 + $0x88] sm:$0xf8] %v5440_v50  ;;  %v4195_v51 = vshll.u32 %v17618_v31, %v4189_v47  ;;  %v4198_v54 = vshll.u32 %v17619_v9, %v4189_v47  ;;  %v4201_v30 = vshll.u32 %v17620_v59, %v4189_v47  ;;  %v4193_v48 = vshrl.u32 %v17618_v31, %v4190_v4 }
 0x267   : > { %v4046_v29 = vor.u32 4788187, %v4045_v52  ;;  %v4049_v16 = vcvt.s32.f32 %v4042_v23  ;;  %v4133_v42 = vshrl.u32 %v4132_v60, 30  ;;  %v4196_v32 = vshrl.u32 %v17619_v9, %v4190_v4 }
 0x268   : > { %vm4207_vm4 = vcmp.lt.s32.totalorder %v14032_v12, 1  ;;  %v4199_v55 = vshrl.u32 %v17620_v59, %v4190_v4  ;;  %v4202_v57 = vshrl.u32 %v17624_v58, %v4190_v4  ;;  %v4204_v27 = vshll.u32 %v17624_v58, %v4189_v47 }
 0x269   : > { %v4047_v1 = vand.u32 2147483647, %v4046_v29  ;;  %v4134_v35 = vshll.u32 %v4133_v42, 30  ;;  %v4191_v14 = vshrl.u32 %v17617_v40, %v4190_v4  ;;  %v4194_v53 = vor.u32 %v4193_v48, %v4192_v24 }
 0x26a   : > { %v4197_v61 = vor.u32 %v4196_v32, %v4195_v51  ;;  %v4200_v50 = vor.u32 %v4199_v55, %v4198_v54  ;;  %v4203_v23 = vor.u32 %v4202_v57, %v4201_v30  ;;  %v4205_v52 = vshrl.u32 %v17607_v37, %v4190_v4 }
 0x26b   : > { %v4050_v5 = vmul.f32 %v4049_v16, %v4047_v1  ;;  %v4060_v60 = vadd.s32 3, %v14036_v44  ;;  %v14054_v15 = vsub.s32 %v4131_v25, %v4134_v35  ;;  %v4183_v29 = vor.u32 8388608, %v4182_v18 }
 0x26c   : > { %vm4210_vm14 = vcmp.lt.s32.totalorder %v14032_v12, 4  ;;  %v4206_v3 = vor.u32 %v4205_v52, %v4204_v27  ;;  %vm4209_vm15 = vcmp.lt.s32.totalorder %v14032_v12, 3  ;;  %vm4208_vm3 = vcmp.lt.s32.totalorder %v14032_v12, 2 }
 0x26d   : > { %v4051_v56 = vxor.u32 2147483648, %v4050_v5  ;;  %v4212_v47 = vsel %vm4210_vm14, %v4200_v50, 2102212464  ;;  %v4137_v24 = vsub.s32 0, %v14054_v15  ;;  %v4215_v4 = vsel %vm4207_vm4, %v4194_v53, %v4197_v61 }
 0x26e   : > { %v3686_v25 = vrot.slane %v12912_v41, %v11958_v39  ;;  %v4211_v51 = vsel %vm4207_vm4, %v4191_v14, %v4194_v53  ;;  %v4213_v16 = vsel %vm4209_vm15, %v4197_v61, %v4212_v47  ;;  %v4216_v54 = vsel %vm4210_vm14, %v4203_v23, 920167782 }
 0x26f   : > { %v4052_v18 = vsel %vm3969_vm2, %v4051_v56, %v4050_v5  ;;  %v10964_v48 = vmin.u32 %v4137_v24, %v14054_v15  ;;  %v4217_v32 = vsel %vm4209_vm15, %v4200_v50, %v4216_v54  ;;  %v4219_v56 = vsel %vm4207_vm4, %v4197_v61, %v4200_v50 }
 0x270   : > { %v4055_v30 = vsel %vm14020_vm9, %v13628_v2, %v4052_v18  ;;  %v4218_v1 = vsel %vm4208_vm3, %v4215_v4, %v4217_v32  ;;  %v4220_v55 = vsel %vm4210_vm14, %v4206_v3, 1326507024  ;;  %v4223_v57 = vshll.u32 %v4183_v29, 8 }
 0x271   : > { %11545 = vcosq.f32 %v4055_v30  ;;  %vm14088_vm6 = vcmp.le.f32.partialorder %v4071_v43, 0.7853982  ;;  %v4139_v27 = vclz %v10964_v48  ;;  %v4157_v35 = vsub.s32 4, %v4133_v42 }
 0x272   : > { %11547 = vsinq.f32 %v4055_v30  ;;  %v4221_v14 = vsel %vm4209_vm15, %v4203_v23, %v4220_v55  ;;  %v14094_v53 = vmul.u32.u64.low %v4223_v57, %v4218_v1  ;;  %v14095_v61 = vmul.u32.u64.high %v4223_v57, %v4218_v1, %v14094_v53 }
 0x273   : > { %v3690_v3 = vrot.slane %v12912_v41, %v12060_v10  ;;  %v10965_v5 = vadd.s32 4294967294, %v4139_v27  ;;  %v4214_v50 = vsel %vm4208_vm3, %v4211_v51, %v4213_v16  ;;  %v4222_v43 = vsel %vm4208_vm3, %v4219_v56, %v4221_v14 }
 0x274   : > { %v14105_v52 = vmul.f32 %v3686_v25, %v11926_v13  ;;  %v4061_v29 = vand.u32 3, %v4060_v60  ;;  %vm4073_vm1 = vcmp.lt.s32.totalorder %v13823_v49, 0  ;;  %vm4059_vm2 = vweird.f32 %v13628_v2 }
 0x275   : > { %v14108_v23 = vmul.u32.u64.low %v4223_v57, %v4222_v43  ;;  %v14109_v47 = vmul.u32.u64.high %v4223_v57, %v4222_v43, %v14108_v23  ;;  %v4127_v24 = vadd.s32 %v13990_v22, %v13997_v17  ;;  %vm10966_vm13 = vcmp.lt.s32.totalorder %v10965_v5, 0 }
 0x276   : > { %17642 = vst [vmem:[#allocation19_spill] sm:$0xff] %v14105_v52  ;;  %v4158_v4 = vsel %vm4073_vm1, %v4157_v35, %v4133_v42  ;;  %v4282_v12 = vand.u32 2139095040, %v14105_v52  ;;  %v4142_v18 = vsel %vm10966_vm13, 0, %v10965_v5  ;;  %v4230_v25 = vmul.u32 %v4223_v57, %v4214_v50 }
 0x277   : > { %v4233_v60 = vadd.s32 1, %v14095_v61  ;;  %v17382_v51 = vand.u32 2147483647, %v14105_v52  ;;  %v4143_v16 = vsub.s32 32, %v4142_v18  ;;  %v4144_v54 = vshll.u32 %v14054_v15, %v4142_v18 }
 0x278   : > { %v4147_v30 = vsub.s32 4294967266, %v4142_v18  ;;  %v14121_v48 = vmul.f32 %v3690_v3, %v11926_v13  ;;  %vm4062_vm7 = vcmp.lt.s32.totalorder %v4061_v29, 2  ;;  %vm4063_vm5 = vcmp.eq.s32.totalorder %v4061_v29, 0 }
 0x279   : > { %vm4232_vm8 = vc.u32 %v14109_v47, %v14094_v53  ;;  %v4283_v22 = vshrl.u32 %v4282_v12, 23  ;;  %v4145_v17 = vshrl.u32 %v4127_v24, %v4143_v16  ;;  %v14127_v32 = vsel %vm14088_vm6, 0, %v4158_v4 }
 0x27a   : > { %17643 = vst [vmem:[#allocation20_spill] sm:$0xff] %v14121_v48  ;;  %v4148_v42 = vadd.s32 127, %v4147_v30  ;;  %v4234_v56 = vsel %vm4232_vm8, %v4233_v60, %v14095_v61  ;;  %vm4066_vm11 = vcmp.eq.s32.totalorder %v4061_v29, 2  ;;  %v4286_v57 = vand.u32 8388607, %v17382_v51 }
 0x27b   : > { %v14130_v1 = vpop.eup %11545  ;;  %v4235_v15 = vadd.s32 %v4234_v56, %v4230_v25  ;;  %v10971_v55 = vadd.s32 4294967169, %v4283_v22  ;;  %v4146_v14 = vor.u32 %v4145_v17, %v4144_v54  ;;  %v4386_v5 = vand.u32 2139095040, %v14121_v48 }
 0x27c   : > { %17644 = vst [vmem:[#allocation21_spill] sm:$0xff] %v14130_v1  ;;  %v14134_v27 = vpop.eup %11547  ;;  %v17378_v35 = vxor.u32 2147483648, %v14130_v1  ;;  %v4149_v3 = vshll.u32 %v4148_v42, 23  ;;  %v4164_v61 = vadd.s32 3, %v14127_v32  ;;  %v17381_v18 = vand.u32 2147483647, %v14121_v48 }
 0x27d   : > { %v17379_v50 = vxor.u32 2147483648, %v14134_v27  ;;  %v4236_v43 = vadd.s32 536870912, %v4235_v15  ;;  %v4289_v23 = vadd.s32 1, %v10971_v55  ;;  %v4153_v12 = vcvt.s32.f32 %v4146_v14  ;;  %v17645_v55 = vld [vmem:[#allocation15_spill] sm:$0xff] }
 0x27e   : > { %v4068_v24 = vsel %vm4066_vm11, %v17378_v35, %v14134_v27  ;;  %v4150_v4 = vor.u32 4788187, %v4149_v3  ;;  %v4287_v16 = vor.u32 8388608, %v4286_v57  ;;  %v4387_v17 = vshrl.u32 %v4386_v5, 23 }
 0x27f   : > { %v4065_v25 = vsel %vm4063_vm5, %v14130_v1, %v17379_v50  ;;  %v14148_v60 = vshrl.u32 %v4236_v43, 30  ;;  %vm4290_vm9 = vcmp.gt.s32.totalorder %v4289_v23, 0  ;;  %v14156_v43 = vand.u32 3, %v4164_v61 }
 0x280   : > { %v4069_v54 = vsel %vm4062_vm7, %v4065_v25, %v4068_v24  ;;  %v4151_v30 = vand.u32 2147483647, %v4150_v4  ;;  %v4291_v22 = vsel %vm4290_vm9, %v4289_v23, 0  ;;  %v14160_v29 = vadd.s32 %v14094_v53, %v14109_v47 }
 0x281   : > { %v4070_v42 = vsel %vm4059_vm2, nan, %v4069_v54  ;;  %v4238_v56 = vshll.u32 %v14148_v60, 30  ;;  %v4293_v57 = vand.u32 31, %v4291_v22  ;;  %v14164_v5 = vshll.u32 %v4287_v16, 8 }
 0x282   : > { %v5441_v3 = vrot.slane %v4070_v42, 5  ;;  %v4154_v35 = vmul.f32 %v4153_v12, %v4151_v30  ;;  %v14168_v23 = vand.u32 8388607, %v17381_v18  ;;  %v10975_v61 = vadd.s32 4294967169, %v4387_v17 }
 0x283   : > { %v14162_v24 = vsub.s32 %v4235_v15, %v4238_v56  ;;  %v4294_v25 = vsub.s32 32, %v4293_v57  ;;  %v4296_v12 = vshll.u32 %v17617_v40, %v4293_v57  ;;  %v4261_v30 = vsub.s32 4, %v14148_v60 }
 0x284   : > { %5473 = vst [vmem:[%s11905_s26 + $0x90] sm:$0xf8] %v5441_v3  ;;  %v4155_v4 = vxor.u32 2147483648, %v4154_v35  ;;  %v4292_v53 = vshrl.u32 %v4291_v22, 5  ;;  %v4299_v47 = vshll.u32 %v17618_v31, %v4293_v57  ;;  %v4302_v56 = vshll.u32 %v17619_v9, %v4293_v57 }
 0x285   : > { %v4241_v54 = vsub.s32 0, %v14162_v24  ;;  %v4297_v16 = vshrl.u32 %v17618_v31, %v4294_v25  ;;  %v4300_v42 = vshrl.u32 %v17619_v9, %v4294_v25  ;;  %vm4177_vm10 = vcmp.lt.s32.totalorder %v13908_v20, 0 }
 0x286   : > { %v4156_v15 = vsel %vm4073_vm1, %v4155_v4, %v4154_v35  ;;  %v4295_v22 = vshrl.u32 %v17617_v40, %v4294_v25  ;;  %v4303_v50 = vshrl.u32 %v17620_v59, %v4294_v25  ;;  %v4305_v19 = vshll.u32 %v17620_v59, %v4293_v57 }
 0x287   : > { %v4159_v17 = vsel %vm14088_vm6, %v13823_v49, %v4156_v15  ;;  %v10968_v3 = vmin.u32 %v4241_v54, %v14162_v24  ;;  %v4298_v35 = vor.u32 %v4297_v16, %v4296_v12  ;;  %v4301_v4 = vor.u32 %v4300_v42, %v4299_v47 }
 0x288   : > { %11549 = vcosq.f32 %v4159_v17  ;;  %vm4311_vm4 = vcmp.lt.s32.totalorder %v4292_v53, 1  ;;  %vm4170_vm14 = vcmp.eq.s32.totalorder %v14156_v43, 2  ;;  %v4304_v63 = vor.u32 %v4303_v50, %v4302_v56 }
 0x289   : > { %11551 = vsinq.f32 %v4159_v17  ;;  %v4243_v18 = vclz %v10968_v3  ;;  %v4306_v15 = vshrl.u32 %v17624_v58, %v4294_v25  ;;  %v4308_v54 = vshll.u32 %v17624_v58, %v4293_v57 }
 0x28a   : > { %vm4312_vm15 = vcmp.lt.s32.totalorder %v4292_v53, 2  ;;  %vm4167_vm3 = vcmp.eq.s32.totalorder %v14156_v43, 0  ;;  %v4309_v12 = vshrl.u32 %v17607_v37, %v4294_v25  ;;  %vm4313_vm6 = vcmp.lt.s32.totalorder %v4292_v53, 3 }
 0x28b   : > { %v10969_v14 = vadd.s32 4294967294, %v4243_v18  ;;  %vm4314_vm1 = vcmp.lt.s32.totalorder %v4292_v53, 4  ;;  %vm4166_vm13 = vcmp.lt.s32.totalorder %v14156_v43, 2  ;;  %v4307_v47 = vor.u32 %v4306_v15, %v4305_v19 }
 0x28c   : > { %v4315_v16 = vsel %vm4311_vm4, %v4295_v22, %v4298_v35  ;;  %v4316_v42 = vsel %vm4314_vm1, %v4304_v63, 2102212464  ;;  %v4319_v50 = vsel %vm4311_vm4, %v4298_v35, %v4301_v4  ;;  %vm4163_vm7 = vweird.f32 %v13823_v49 }
 0x28d   : > { %vm10970_vm5 = vcmp.lt.s32.totalorder %v10969_v14, 0  ;;  %v4310_v57 = vor.u32 %v4309_v12, %v4308_v54  ;;  %v4317_v56 = vsel %vm4313_vm6, %v4301_v4, %v4316_v42  ;;  %v4323_v18 = vsel %vm4311_vm4, %v4301_v4, %v4304_v63 }
 0x28e   : > { %vm14203_vm8 = vcmp.le.f32.partialorder %v4175_v33, 0.7853982  ;;  %v4246_v19 = vsel %vm10970_vm5, 0, %v10969_v14  ;;  %v4318_v17 = vsel %vm4312_vm15, %v4315_v16, %v4317_v56  ;;  %v4320_v3 = vsel %vm4314_vm1, %v4307_v47, 920167782 }
 0x28f   : > { %v4393_v22 = vadd.s32 1, %v10975_v61  ;;  %v4247_v35 = vsub.s32 32, %v4246_v19  ;;  %v4248_v15 = vshll.u32 %v14162_v24, %v4246_v19  ;;  %v4251_v54 = vsub.s32 4294967266, %v4246_v19 }
 0x290   : > { %v4321_v12 = vsel %vm4313_vm6, %v4304_v63, %v4320_v3  ;;  %v4262_v4 = vsel %vm4177_vm10, %v4261_v30, %v14148_v60  ;;  %v4324_v42 = vsel %vm4314_vm1, %v4310_v57, 1326507024  ;;  %v4334_v60 = vmul.u32 %v14164_v5, %v4318_v17 }
 0x291   : > { %v4322_v33 = vsel %vm4312_vm15, %v4319_v50, %v4321_v12  ;;  %vm4394_vm11 = vcmp.gt.s32.totalorder %v4393_v22, 0  ;;  %v4249_v14 = vshrl.u32 %v14160_v29, %v4247_v35  ;;  %v4252_v16 = vadd.s32 127, %v4251_v54 }
 0x292   : > { %v4325_v61 = vsel %vm4313_vm6, %v4307_v47, %v4324_v42  ;;  %v4395_v56 = vsel %vm4394_vm11, %v4393_v22, 0  ;;  %v14218_v51 = vpop.eup %11549  ;;  %v14222_v63 = vmul.u32.u64.low %v14164_v5, %v4322_v33  ;;  %v14223_v19 = vmul.u32.u64.high %v14164_v5, %v4322_v33, %v14222_v63 }
 0x293   : > { %17648 = vst [vmem:[#allocation22_spill] sm:$0xff] %v14218_v51  ;;  %v4326_v24 = vsel %vm4312_vm15, %v4323_v18, %v4325_v61  ;;  %v14227_v30 = vpop.eup %11551  ;;  %v17383_v50 = vxor.u32 2147483648, %v14218_v51  ;;  %v4250_v29 = vor.u32 %v4249_v14, %v4248_v15  ;;  %v4253_v57 = vshll.u32 %v4252_v16, 23 }
 0x294   : > { %17649 = vst [vmem:[#allocation23_spill] sm:$0xff] %v14227_v30  ;;  %v4397_v3 = vand.u32 31, %v4395_v56  ;;  %v17384_v47 = vxor.u32 2147483648, %v14227_v30  ;;  %v14232_v22 = vmul.u32.u64.low %v14164_v5, %v4326_v24  ;;  %v14233_v53 = vmul.u32.u64.high %v14164_v5, %v4326_v24, %v14232_v22 }
 0x295   : > { %v14235_v18 = vshrl.u32 %v4395_v56, 5  ;;  %v4172_v17 = vsel %vm4170_vm14, %v17383_v50, %v14227_v30  ;;  %v4254_v35 = vor.u32 4788187, %v4253_v57  ;;  %v4257_v54 = vcvt.s32.f32 %v4250_v29 }
 0x296   : > { %v4398_v12 = vsub.s32 32, %v4397_v3  ;;  %v4169_v15 = vsel %vm4167_vm3, %v14218_v51, %v17384_v47  ;;  %v4337_v5 = vadd.s32 1, %v14223_v19  ;;  %v4400_v33 = vshll.u32 %v17617_v40, %v4397_v3 }
 0x297   : > { %v4403_v42 = vshll.u32 %v17618_v31, %v4397_v3  ;;  %v4173_v14 = vsel %vm4166_vm13, %v4169_v15, %v4172_v17  ;;  %v4255_v16 = vand.u32 2147483647, %v4254_v35  ;;  %v14254_v61 = vsel %vm14203_vm8, 0, %v4262_v4 }
 0x298   : > { %17650 = vst [vmem:[#allocation24_spill] sm:$0xff] %v14254_v61  ;;  %v4401_v56 = vshrl.u32 %v17618_v31, %v4398_v12  ;;  %v4174_v24 = vsel %vm4163_vm7, nan, %v4173_v14  ;;  %vm4336_vm9 = vc.u32 %v14233_v53, %v14222_v63  ;;  %v4404_v29 = vshrl.u32 %v17619_v9, %v4398_v12 }
 0x299   : > { %vm4415_vm4 = vcmp.lt.s32.totalorder %v14235_v18, 1  ;;  %v5442_v43 = vrot.slane %v4174_v24, 5  ;;  %v4258_v57 = vmul.f32 %v4257_v54, %v4255_v16  ;;  %v4338_v22 = vsel %vm4336_vm9, %v4337_v5, %v14223_v19 }
 0x29a   : > { %v4402_v17 = vor.u32 %v4401_v56, %v4400_v33  ;;  %v4339_v35 = vadd.s32 %v4338_v22, %v4334_v60  ;;  %v4405_v4 = vor.u32 %v4404_v29, %v4403_v42  ;;  %v4406_v15 = vshll.u32 %v17619_v9, %v4397_v3 }
 0x29b   : > { %v4407_v50 = vshrl.u32 %v17620_v59, %v4398_v12  ;;  %5474 = vst [vmem:[%s11905_s26 + $0x98] sm:$0xf8] %v5442_v43  ;;  %v4259_v14 = vxor.u32 2147483648, %v4258_v57  ;;  %v4409_v47 = vshll.u32 %v17620_v59, %v4397_v3  ;;  %v4410_v49 = vshrl.u32 %v17624_v58, %v4398_v12 }
 0x29c   : > { %v4412_v2 = vshll.u32 %v17624_v58, %v4397_v3  ;;  %v4340_v51 = vadd.s32 536870912, %v4339_v35  ;;  %v4399_v54 = vshrl.u32 %v17617_v40, %v4398_v12  ;;  %v4413_v19 = vshrl.u32 %v17607_v37, %v4398_v12 }
 0x29d   : > { %v4408_v16 = vor.u32 %v4407_v50, %v4406_v15  ;;  %v4260_v60 = vsel %vm4177_vm10, %v4259_v14, %v4258_v57  ;;  %v4411_v5 = vor.u32 %v4410_v49, %v4409_v47  ;;  %vm4416_vm14 = vcmp.lt.s32.totalorder %v14235_v18, 2 }
 0x29e   : > { %vm4418_vm15 = vcmp.lt.s32.totalorder %v14235_v18, 4  ;;  %v4263_v33 = vsel %vm14203_vm8, %v13908_v20, %v4260_v60  ;;  %v4341_v42 = vshrl.u32 %v4340_v51, 30  ;;  %v4414_v3 = vor.u32 %v4413_v19, %v4412_v2 }
 0x29f   : > { %vm4417_vm3 = vcmp.lt.s32.totalorder %v14235_v18, 3  ;;  %11553 = vcosq.f32 %v4263_v33  ;;  %v4420_v50 = vsel %vm4418_vm15, %v4408_v16, 2102212464  ;;  %v4423_v12 = vsel %vm4415_vm4, %v4402_v17, %v4405_v4 }
 0x2a0   : > { %v4424_v49 = vsel %vm4418_vm15, %v4411_v5, 920167782  ;;  %11555 = vsinq.f32 %v4263_v33  ;;  %v4268_v47 = vadd.s32 3, %v14254_v61  ;;  %v4342_v56 = vshll.u32 %v4341_v42, 30 }
 0x2a1   : > { %v4419_v51 = vsel %vm4415_vm4, %v4399_v54, %v4402_v17  ;;  %v4421_v2 = vsel %vm4417_vm3, %v4405_v4, %v4420_v50  ;;  %v4425_v25 = vsel %vm4417_vm3, %v4408_v16, %v4424_v49  ;;  %v4427_v24 = vsel %vm4415_vm4, %v4405_v4, %v4408_v16 }
 0x2a2   : > { %v4428_v29 = vsel %vm4418_vm15, %v4414_v3, 1326507024  ;;  %v14297_v43 = vsub.s32 %v4339_v35, %v4342_v56  ;;  %v4365_v57 = vsub.s32 4, %v4341_v42  ;;  %v4426_v22 = vsel %vm4416_vm14, %v4423_v12, %v4425_v25 }
 0x2a3   : > { %v4429_v17 = vsel %vm4417_vm3, %v4411_v5, %v4428_v29  ;;  %v17651_v14 = vor.u32 8388608, %v14168_v23  ;;  %v17652_v4 = vrot.slane %v12912_v41, %v17645_v55  ;;  %v4269_v35 = vand.u32 3, %v4268_v47 }
 0x2a4   : > { %v4430_v15 = vsel %vm4416_vm14, %v4427_v24, %v4429_v17  ;;  %vm4281_vm10 = vcmp.lt.s32.totalorder %v14105_v52, 0  ;;  %v4345_v19 = vsub.s32 0, %v14297_v43  ;;  %v4422_v60 = vsel %vm4416_vm14, %v4419_v51, %v4421_v2 }
 0x2a5   : > { %v4431_v54 = vshll.u32 %v17651_v14, 8  ;;  %v14311_v16 = vmul.f32 %v17652_v4, %v11926_v13  ;;  %v4366_v41 = vsel %vm4281_vm10, %v4365_v57, %v4341_v42  ;;  %vm17429_vm6 = vweird.f32 %v13908_v20 }
 0x2a6   : > { %v10972_v50 = vmin.u32 %v4345_v19, %v14297_v43  ;;  %v17654_v12 = vand.u32 2147483647, %v14105_v52  ;;  %vm4270_vm13 = vcmp.lt.s32.totalorder %v4269_v35, 2  ;;  %vm4274_vm5 = vcmp.eq.s32.totalorder %v4269_v35, 2 }
 0x2a7   : > { %17653 = vst [vmem:[#allocation25_spill] sm:$0xff] %v14311_v16  ;;  %v14317_v5 = vmul.u32.u64.low %v4431_v54, %v4430_v15  ;;  %v14318_v33 = vmul.u32.u64.high %v4431_v54, %v4430_v15, %v14317_v5  ;;  %v14320_v3 = vmul.u32.u64.low %v4431_v54, %v4426_v22  ;;  %v14321_v23 = vmul.u32.u64.high %v4431_v54, %v4426_v22, %v14320_v3 }
 0x2a8   : > { %vm14329_vm1 = vcmp.le.f32.partialorder %v17654_v12, 0.7853982  ;;  %v17391_v18 = vand.u32 2147483647, %v14311_v16  ;;  %v4490_v47 = vand.u32 2139095040, %v14311_v16  ;;  %v4347_v56 = vclz %v10972_v50 }
 0x2a9   : > { %v4438_v51 = vmul.u32 %v4431_v54, %v4422_v60  ;;  %v14335_v2 = vpop.eup %11553  ;;  %v14339_v42 = vsel %vm14329_vm1, 0, %v4366_v41  ;;  %vm4440_vm8 = vc.u32 %v14318_v33, %v14320_v3  ;;  %v4441_v25 = vadd.s32 1, %v14321_v23 }
 0x2aa   : > { %17657 = vst [vmem:[#allocation26_spill] sm:$0xff] %v14335_v2  ;;  %17658 = vst [vmem:[#allocation27_spill] sm:$0xff] %v14339_v42  ;;  %v4491_v24 = vshrl.u32 %v4490_v47, 23  ;;  %v14343_v29 = vpop.eup %11555  ;;  %vm4271_vm11 = vcmp.eq.s32.totalorder %v4269_v35, 0  ;;  %v17389_v57 = vxor.u32 2147483648, %v14335_v2  ;;  %v4335_v22 = vadd.s32 %v14222_v63, %v14233_v53 }
 0x2ab   : > { %17659 = vst [vmem:[#allocation28_spill] sm:$0xff] %v14343_v29  ;;  %v10973_v17 = vadd.s32 4294967294, %v4347_v56  ;;  %v17390_v15 = vxor.u32 2147483648, %v14343_v29  ;;  %v4442_v14 = vsel %vm4440_vm8, %v4441_v25, %v14321_v23  ;;  %v4494_v4 = vand.u32 8388607, %v17391_v18 }
 0x2ac   : > { %v10979_v54 = vadd.s32 4294967169, %v4491_v24  ;;  %v4276_v19 = vsel %vm4274_vm5, %v17389_v57, %v14343_v29  ;;  %v4372_v60 = vadd.s32 3, %v14339_v42  ;;  %v4443_v5 = vadd.s32 %v4442_v14, %v4438_v51 }
 0x2ad   : > { %vm10974_vm9 = vcmp.lt.s32.totalorder %v10973_v17, 0  ;;  %v4273_v63 = vsel %vm4271_vm11, %v14335_v2, %v17390_v15  ;;  %v3698_v23 = vrot.slane %v13780_v0, %v11912_v6  ;;  %v4495_v24 = vor.u32 8388608, %v4494_v4 }
 0x2ae   : > { %v4350_v53 = vsel %vm10974_vm9, 0, %v10973_v17  ;;  %v4497_v50 = vadd.s32 1, %v10979_v54  ;;  %v4277_v41 = vsel %vm4270_vm13, %v4273_v63, %v4276_v19  ;;  %v4444_v51 = vadd.s32 536870912, %v4443_v5 }
 0x2af   : > { %v4351_v12 = vsub.s32 32, %v4350_v53  ;;  %v4352_v47 = vshll.u32 %v14297_v43, %v4350_v53  ;;  %v4355_v56 = vsub.s32 4294967266, %v4350_v53  ;;  %v4278_v25 = vsel %vm17429_vm6, nan, %v4277_v41 }
 0x2b0   : > { %vm4498_vm4 = vcmp.gt.s32.totalorder %v4497_v50, 0  ;;  %v5443_v14 = vrot.slane %v4278_v25, 5  ;;  %v4445_v15 = vshrl.u32 %v4444_v51, 30  ;;  %vm4385_vm14 = vcmp.lt.s32.totalorder %v14121_v48, 0 }
 0x2b1   : > { %v4353_v57 = vshrl.u32 %v4335_v22, %v4351_v12  ;;  %v4356_v17 = vadd.s32 127, %v4355_v56  ;;  %v4499_v54 = vsel %vm4498_vm4, %v4497_v50, 0  ;;  %v14368_v19 = vand.u32 3, %v4372_v60 }
 0x2b2   : > { %v4501_v18 = vand.u32 31, %v4499_v54  ;;  %5475 = vst [vmem:[%s11905_s26 + $0xa0] sm:$0xf8] %v5443_v14  ;;  %v4439_v43 = vadd.s32 %v14320_v3, %v14318_v33  ;;  %v4446_v63 = vshll.u32 %v4445_v15, 30  ;;  %v14371_v20 = vshll.u32 %v4495_v24, 8 }
 0x2b3   : > { %v4354_v2 = vor.u32 %v4353_v57, %v4352_v47  ;;  %v4357_v35 = vshll.u32 %v4356_v17, 23  ;;  %v14374_v22 = vmul.f32 %v3698_v23, %v11926_v13  ;;  %v4469_v12 = vsub.s32 4, %v4445_v15 }
 0x2b4   : > { %v4502_v53 = vsub.s32 32, %v4501_v18  ;;  %v14376_v50 = vsub.s32 %v4443_v5, %v4446_v63  ;;  %v4500_v57 = vshrl.u32 %v4499_v54, 5  ;;  %v4504_v47 = vshll.u32 %v17617_v40, %v4501_v18 }
 0x2b5   : > { %v4358_v41 = vor.u32 4788187, %v4357_v35  ;;  %v4361_v4 = vcvt.s32.f32 %v4354_v2  ;;  %17660 = vst [vmem:[#allocation29_spill] sm:$0xff] %v14374_v22  ;;  %v4507_v33 = vshll.u32 %v17618_v31, %v4501_v18  ;;  %v4510_v25 = vshll.u32 %v17619_v9, %v4501_v18 }
 0x2b6   : > { %v4505_v60 = vshrl.u32 %v17618_v31, %v4502_v53  ;;  %v4508_v3 = vshrl.u32 %v17619_v9, %v4502_v53  ;;  %v4449_v2 = vsub.s32 0, %v14376_v50  ;;  %v4511_v23 = vshrl.u32 %v17620_v59, %v4502_v53 }
 0x2b7   : > { %v4359_v56 = vand.u32 2147483647, %v4358_v41  ;;  %v4513_v5 = vshll.u32 %v17620_v59, %v4501_v18  ;;  %v4514_v24 = vshrl.u32 %v17624_v58, %v4502_v53  ;;  %v4594_v17 = vand.u32 2139095040, %v14374_v22 }
 0x2b8   : > { %v10976_v54 = vmin.u32 %v4449_v2, %v14376_v50  ;;  %v4503_v35 = vshrl.u32 %v17617_v40, %v4502_v53  ;;  %v4516_v63 = vshll.u32 %v17624_v58, %v4501_v18  ;;  %v4517_v41 = vshrl.u32 %v17607_v37, %v4502_v53 }
 0x2b9   : > { %v4362_v51 = vmul.f32 %v4361_v4, %v4359_v56  ;;  %v4506_v42 = vor.u32 %v4505_v60, %v4504_v47  ;;  %v4509_v30 = vor.u32 %v4508_v3, %v4507_v33  ;;  %v4515_v61 = vor.u32 %v4514_v24, %v4513_v5 }
 0x2ba   : > { %v4451_v1 = vclz %v10976_v54  ;;  %v4470_v4 = vsel %vm4385_vm14, %v4469_v12, %v4445_v15  ;;  %v4512_v56 = vor.u32 %v4511_v23, %v4510_v25  ;;  %vm4519_vm15 = vcmp.lt.s32.totalorder %v4500_v57, 1 }
 0x2bb   : > { %v4363_v29 = vxor.u32 2147483648, %v4362_v51  ;;  %v4518_v2 = vor.u32 %v4517_v41, %v4516_v63  ;;  %vm4521_vm3 = vcmp.lt.s32.totalorder %v4500_v57, 3  ;;  %vm4522_vm13 = vcmp.lt.s32.totalorder %v4500_v57, 4 }
 0x2bc   : > { %v10977_v53 = vadd.s32 4294967294, %v4451_v1  ;;  %vm4520_vm5 = vcmp.lt.s32.totalorder %v4500_v57, 2  ;;  %v4524_v47 = vsel %vm4522_vm13, %v4512_v56, 2102212464  ;;  %v4523_v60 = vsel %vm4519_vm15, %v4503_v35, %v4506_v42 }
 0x2bd   : > { %v4364_v14 = vsel %vm4281_vm10, %v4363_v29, %v4362_v51  ;;  %v4527_v15 = vsel %vm4519_vm15, %v4506_v42, %v4509_v30  ;;  %v4528_v12 = vsel %vm4522_vm13, %v4515_v61, 920167782  ;;  %v4525_v29 = vsel %vm4521_vm3, %v4509_v30, %v4524_v47 }
 0x2be   : > { %v4367_v18 = vsel %vm14329_vm1, %v14105_v52, %v4364_v14  ;;  %vm10978_vm10 = vcmp.lt.s32.totalorder %v10977_v53, 0  ;;  %v4529_v33 = vsel %vm4521_vm3, %v4512_v56, %v4528_v12  ;;  %v4531_v1 = vsel %vm4519_vm15, %v4509_v30, %v4512_v56 }
 0x2bf   : > { %11557 = vcosq.f32 %v4367_v18  ;;  %v4454_v3 = vsel %vm10978_vm10, 0, %v10977_v53  ;;  %v4530_v49 = vsel %vm4520_vm5, %v4527_v15, %v4529_v33  ;;  %v4532_v25 = vsel %vm4522_vm13, %v4518_v2, 1326507024 }
 0x2c0   : > { %11559 = vsinq.f32 %v4367_v18  ;;  %v4455_v23 = vsub.s32 32, %v4454_v3  ;;  %v4456_v5 = vshll.u32 %v14376_v50, %v4454_v3  ;;  %v4459_v51 = vsub.s32 4294967266, %v4454_v3 }
 0x2c1   : > { %v4533_v42 = vsel %vm4521_vm3, %v4515_v61, %v4532_v25  ;;  %v4526_v24 = vsel %vm4520_vm5, %v4523_v60, %v4525_v29  ;;  %v14414_v54 = vmul.u32.u64.low %v14371_v20, %v4530_v49  ;;  %v14415_v35 = vmul.u32.u64.high %v14371_v20, %v4530_v49, %v14414_v54 }
 0x2c2   : > { %v4534_v14 = vsel %vm4520_vm5, %v4531_v1, %v4533_v42  ;;  %v4457_v63 = vshrl.u32 %v4439_v43, %v4455_v23  ;;  %v4460_v41 = vadd.s32 127, %v4459_v51  ;;  %vm17406_vm1 = vweird.f32 %v14105_v52 }
 0x2c3   : > { %v14419_v30 = vmul.u32.u64.low %v14371_v20, %v4534_v14  ;;  %v14420_v56 = vmul.u32.u64.high %v14371_v20, %v4534_v14, %v14419_v30  ;;  %v17661_v50 = vand.u32 2147483647, %v14121_v48  ;;  %v4595_v57 = vshrl.u32 %v4594_v17, 23 }
 0x2c4   : > { %v4458_v2 = vor.u32 %v4457_v63, %v4456_v5  ;;  %v4461_v18 = vshll.u32 %v4460_v41, 23  ;;  %v4542_v53 = vmul.u32 %v14371_v20, %v4526_v24  ;;  %v3702_v43 = vrot.slane %v13780_v0, %v11915_v7 }
 0x2c5   : > { %vm14425_vm8 = vcmp.le.f32.partialorder %v17661_v50, 0.7853982  ;;  %v4545_v60 = vadd.s32 1, %v14415_v35  ;;  %v10983_v15 = vadd.s32 4294967169, %v4595_v57  ;;  %v17664_v12 = vand.u32 2147483647, %v14374_v22 }
 0x2c6   : > { %v14434_v47 = vsel %vm14425_vm8, 0, %v4470_v4  ;;  %vm4374_vm11 = vcmp.lt.s32.totalorder %v14368_v19, 2  ;;  %v4462_v17 = vor.u32 4788187, %v4461_v18  ;;  %v4465_v33 = vcvt.s32.f32 %v4458_v2 }
 0x2c7   : > { %v4598_v29 = vand.u32 8388607, %v17664_v12  ;;  %vm4544_vm9 = vc.u32 %v14420_v56, %v14414_v54  ;;  %vm4375_vm4 = vcmp.eq.s32.totalorder %v14368_v19, 0  ;;  %vm4378_vm15 = vcmp.eq.s32.totalorder %v14368_v19, 2 }
 0x2c8   : > { %v4546_v4 = vsel %vm4544_vm9, %v4545_v60, %v14415_v35  ;;  %v4601_v3 = vadd.s32 1, %v10983_v15  ;;  %v4463_v25 = vand.u32 2147483647, %v4462_v17  ;;  %v4476_v23 = vadd.s32 3, %v14434_v47 }
 0x2c9   : > { %v14442_v20 = vpop.eup %11557  ;;  %v4547_v5 = vadd.s32 %v4546_v4, %v4542_v53  ;;  %v4599_v42 = vor.u32 8388608, %v4598_v29  ;;  %v14453_v24 = vmul.f32 %v3702_v43, %v11926_v13  ;;  %vm4489_vm13 = vcmp.lt.s32.totalorder %v14311_v16, 0 }
 0x2ca   : > { %v14447_v49 = vpop.eup %11559  ;;  %v17403_v1 = vxor.u32 2147483648, %v14442_v20  ;;  %vm4602_vm3 = vcmp.gt.s32.totalorder %v4601_v3, 0  ;;  %v4466_v35 = vmul.f32 %v4465_v33, %v4463_v25  ;;  %v14465_v18 = vand.u32 3, %v4476_v23 }
 0x2cb   : > { %v17404_v51 = vxor.u32 2147483648, %v14447_v49  ;;  %17665 = vst [vmem:[#allocation30_spill] sm:$0xff] %v14453_v24  ;;  %v4548_v63 = vadd.s32 536870912, %v4547_v5  ;;  %v4603_v41 = vsel %vm4602_vm3, %v4601_v3, 0  ;;  %v14469_v15 = vshll.u32 %v4599_v42, 8 }
 0x2cc   : > { %v4380_v14 = vsel %vm4378_vm15, %v17403_v1, %v14447_v49  ;;  %v4605_v50 = vand.u32 31, %v4603_v41  ;;  %v4467_v2 = vxor.u32 2147483648, %v4466_v35  ;;  %v4698_v12 = vand.u32 2139095040, %v14453_v24 }
 0x2cd   : > { %v4377_v30 = vsel %vm4375_vm4, %v14442_v20, %v17404_v51  ;;  %v4549_v53 = vshrl.u32 %v4548_v63, 30  ;;  %v17405_v61 = vand.u32 2147483647, %v14453_v24  ;;  %vm4479_vm5 = vcmp.eq.s32.totalorder %v14465_v18, 0 }
 0x2ce   : > { %v4381_v57 = vsel %vm4374_vm11, %v4377_v30, %v4380_v14  ;;  %v4606_v60 = vsub.s32 32, %v4605_v50  ;;  %v4468_v17 = vsel %vm4385_vm14, %v4467_v2, %v4466_v35  ;;  %v4608_v19 = vshll.u32 %v17617_v40, %v4605_v50 }
 0x2cf   : > { %v4382_v43 = vsel %vm17406_vm1, nan, %v4381_v57  ;;  %v4550_v33 = vshll.u32 %v4549_v53, 30  ;;  %v4471_v4 = vsel %vm14425_vm8, %v14121_v48, %v4468_v17  ;;  %v4611_v25 = vshll.u32 %v17618_v31, %v4605_v50 }
 0x2d0   : > { %v5444_v29 = vrot.slane %v4382_v43, 5  ;;  %v4609_v3 = vshrl.u32 %v17618_v31, %v4606_v60  ;;  %v4612_v23 = vshrl.u32 %v17619_v9, %v4606_v60  ;;  %11561 = vcosq.f32 %v4471_v4 }
 0x2d1   : > { %v14483_v42 = vsub.s32 %v4547_v5, %v4550_v33  ;;  %v4604_v14 = vshrl.u32 %v4603_v41, 5  ;;  %v4614_v35 = vshll.u32 %v17619_v9, %v4605_v50  ;;  %11563 = vsinq.f32 %v4471_v4 }
 0x2d2   : > { %5476 = vst [vmem:[%s11905_s26 + $0xa8] sm:$0xf8] %v5444_v29  ;;  %v4607_v63 = vshrl.u32 %v17617_v40, %v4606_v60  ;;  %v4699_v30 = vshrl.u32 %v4698_v12, 23  ;;  %vm4482_vm14 = vcmp.eq.s32.totalorder %v14465_v18, 2  ;;  %v4610_v2 = vor.u32 %v4609_v3, %v4608_v19 }
 0x2d3   : > { %v4553_v57 = vsub.s32 0, %v14483_v42  ;;  %v4615_v43 = vshrl.u32 %v17620_v59, %v4606_v60  ;;  %v4617_v29 = vshll.u32 %v17620_v59, %v4605_v50  ;;  %v4613_v5 = vor.u32 %v4612_v23, %v4611_v25 }
 0x2d4   : > { %v4618_v41 = vshrl.u32 %v17624_v58, %v4606_v60  ;;  %v4620_v17 = vshll.u32 %v17624_v58, %v4605_v50  ;;  %v4621_v33 = vshrl.u32 %v17607_v37, %v4606_v60  ;;  %vm4478_vm10 = vcmp.lt.s32.totalorder %v14465_v18, 2 }
 0x2d5   : > { %v10980_v12 = vmin.u32 %v4553_v57, %v14483_v42  ;;  %v4573_v4 = vsub.s32 4, %v4549_v53  ;;  %v4616_v1 = vor.u32 %v4615_v43, %v4614_v35  ;;  %vm4623_vm8 = vcmp.lt.s32.totalorder %v4604_v14, 1 }
 0x2d6   : > { %vm17428_vm11 = vweird.f32 %v14121_v48  ;;  %v4619_v19 = vor.u32 %v4618_v41, %v4617_v29  ;;  %v4622_v3 = vor.u32 %v4621_v33, %v4620_v17  ;;  %vm4625_vm9 = vcmp.lt.s32.totalorder %v4604_v14, 3 }
 0x2d7   : > { %vm4626_vm4 = vcmp.lt.s32.totalorder %v4604_v14, 4  ;;  %v17666_v25 = vand.u32 2147483647, %v14311_v16  ;;  %v4543_v50 = vadd.s32 %v14414_v54, %v14420_v56  ;;  %v4555_v60 = vclz %v10980_v12 }
 0x2d8   : > { %vm4624_vm3 = vcmp.lt.s32.totalorder %v4604_v14, 2  ;;  %v14509_v35 = vand.u32 8388607, %v17405_v61  ;;  %v4627_v57 = vsel %vm4623_vm8, %v4607_v63, %v4610_v2  ;;  %v4628_v43 = vsel %vm4626_vm4, %v4616_v1, 2102212464 }
 0x2d9   : > { %vm14501_vm15 = vcmp.le.f32.partialorder %v17666_v25, 0.7853982  ;;  %v4631_v29 = vsel %vm4623_vm8, %v4610_v2, %v4613_v5  ;;  %v4632_v41 = vsel %vm4626_vm4, %v4619_v19, 920167782  ;;  %v10981_v17 = vadd.s32 4294967294, %v4555_v60 }
 0x2da   : > { %v4629_v33 = vsel %vm4625_vm9, %v4613_v5, %v4628_v43  ;;  %v4633_v25 = vsel %vm4625_vm9, %v4616_v1, %v4632_v41  ;;  %v4635_v54 = vsel %vm4623_vm8, %v4613_v5, %v4616_v1  ;;  %v4574_v56 = vsel %vm4489_vm13, %v4573_v4, %v4549_v53  ;;  %v14522_v61 = vpop.eup %11561 }
 0x2db   : > { %v4634_v12 = vsel %vm4624_vm3, %v4631_v29, %v4633_v25  ;;  %v4636_v63 = vsel %vm4626_vm4, %v4622_v3, 1326507024  ;;  %v10987_v51 = vadd.s32 4294967169, %v4699_v30  ;;  %17669 = vst [vmem:[#allocation31_spill] sm:$0xff] %v14522_v61  ;;  %vm10982_vm1 = vcmp.lt.s32.totalorder %v10981_v17, 0  ;;  %v14530_v41 = vpop.eup %11563 }
 0x2dc   : > { %v4637_v2 = vsel %vm4625_vm9, %v4619_v19, %v4636_v63  ;;  %v14526_v60 = vmul.u32.u64.low %v14469_v15, %v4634_v12  ;;  %v14527_v43 = vmul.u32.u64.high %v14469_v15, %v4634_v12, %v14526_v60  ;;  %17670 = vst [vmem:[#allocation32_spill] sm:$0xff] %v14530_v41  ;;  %v17407_v1 = vxor.u32 2147483648, %v14522_v61 }
 0x2dd   : > { %v4558_v53 = vsel %vm10982_vm1, 0, %v10981_v17  ;;  %v4630_v5 = vsel %vm4624_vm3, %v4627_v57, %v4629_v33  ;;  %v4638_v4 = vsel %vm4624_vm3, %v4635_v54, %v4637_v2  ;;  %v17408_v30 = vxor.u32 2147483648, %v14530_v41 }
 0x2de   : > { %v4559_v3 = vsub.s32 32, %v4558_v53  ;;  %v4560_v29 = vshll.u32 %v14483_v42, %v4558_v53  ;;  %v4563_v19 = vsub.s32 4294967266, %v4558_v53  ;;  %v4484_v25 = vsel %vm4482_vm14, %v17407_v1, %v14530_v41 }
 0x2df   : > { %v14543_v12 = vmul.u32.u64.low %v14469_v15, %v4638_v4  ;;  %v14544_v63 = vmul.u32.u64.high %v14469_v15, %v4638_v4, %v14543_v12  ;;  %v4705_v17 = vadd.s32 1, %v10987_v51  ;;  %v4481_v14 = vsel %vm4479_vm5, %v14522_v61, %v17408_v30 }
 0x2e0   : > { %v4561_v57 = vshrl.u32 %v4543_v50, %v4559_v3  ;;  %v4564_v42 = vadd.s32 127, %v4563_v19  ;;  %v4649_v33 = vadd.s32 1, %v14527_v43  ;;  %v4485_v54 = vsel %vm4478_vm10, %v4481_v14, %v4484_v25 }
 0x2e1   : > { %v14556_v2 = vsel %vm14501_vm15, 0, %v4574_v56  ;;  %v4646_v51 = vmul.u32 %v14469_v15, %v4630_v5  ;;  %vm4706_vm1 = vcmp.gt.s32.totalorder %v4705_v17, 0  ;;  %v4486_v53 = vsel %vm17428_vm11, nan, %v4485_v54 }
 0x2e2   : > { %17671 = vst [vmem:[#allocation33_spill] sm:$0xff] %v14556_v2  ;;  %v4562_v4 = vor.u32 %v4561_v57, %v4560_v29  ;;  %v4565_v12 = vshll.u32 %v4564_v42, 23  ;;  %v4707_v50 = vsel %vm4706_vm1, %v4705_v17, 0  ;;  %v5445_v3 = vrot.slane %v4486_v53, 5 }
 0x2e3   : > { %vm4648_vm14 = vc.u32 %v14544_v63, %v14526_v60  ;;  %v4709_v14 = vand.u32 31, %v4707_v50  ;;  %v4580_v56 = vadd.s32 3, %v14556_v2  ;;  %v4703_v5 = vor.u32 8388608, %v14509_v35 }
 0x2e4   : > { %v4566_v19 = vor.u32 4788187, %v4565_v12  ;;  %v4569_v18 = vcvt.s32.f32 %v4562_v4  ;;  %v4650_v25 = vsel %vm4648_vm14, %v4649_v33, %v14527_v43  ;;  %5477 = vst [vmem:[%s11905_s26 + $0xb0] sm:$0xf8] %v5445_v3  ;;  %v3706_v29 = vrot.slane %v13780_v0, %v11918_v8 }
 0x2e5   : > { %v4651_v15 = vadd.s32 %v4650_v25, %v4646_v51  ;;  %v4710_v17 = vsub.s32 32, %v4709_v14  ;;  %v4712_v42 = vshll.u32 %v17617_v40, %v4709_v14  ;;  %v4715_v54 = vshll.u32 %v17618_v31, %v4709_v14 }
 0x2e6   : > { %v4567_v57 = vand.u32 2147483647, %v4566_v19  ;;  %v4708_v4 = vshrl.u32 %v4707_v50, 5  ;;  %v4718_v43 = vshll.u32 %v17619_v9, %v4709_v14  ;;  %v4721_v33 = vshll.u32 %v17620_v59, %v4709_v14 }
 0x2e7   : > { %v4652_v53 = vadd.s32 536870912, %v4651_v15  ;;  %v4713_v51 = vshrl.u32 %v17618_v31, %v4710_v17  ;;  %v4716_v35 = vshrl.u32 %v17619_v9, %v4710_v17  ;;  %v4724_v3 = vshll.u32 %v17624_v58, %v4709_v14 }
 0x2e8   : > { %v4570_v12 = vmul.f32 %v4569_v18, %v4567_v57  ;;  %v4719_v19 = vshrl.u32 %v17620_v59, %v4710_v17  ;;  %v4722_v1 = vshrl.u32 %v17624_v58, %v4710_v17  ;;  %v4725_v30 = vshrl.u32 %v17607_v37, %v4710_v17 }
 0x2e9   : > { %v4653_v25 = vshrl.u32 %v4652_v53, 30  ;;  %v4714_v50 = vor.u32 %v4713_v51, %v4712_v42  ;;  %v4717_v7 = vor.u32 %v4716_v35, %v4715_v54  ;;  %v14579_v48 = vshll.u32 %v4703_v5, 8 }
 0x2ea   : > { %v4571_v8 = vxor.u32 2147483648, %v4570_v12  ;;  %v4723_v18 = vor.u32 %v4722_v1, %v4721_v33  ;;  %vm4727_vm5 = vcmp.lt.s32.totalorder %v4708_v4, 1  ;;  %vm4730_vm10 = vcmp.lt.s32.totalorder %v4708_v4, 4 }
 0x2eb   : > { %v4654_v61 = vshll.u32 %v4653_v25, 30  ;;  %v4711_v14 = vshrl.u32 %v17617_v40, %v4710_v17  ;;  %v4720_v53 = vor.u32 %v4719_v19, %v4718_v43  ;;  %v4726_v41 = vor.u32 %v4725_v30, %v4724_v3 }
 0x2ec   : > { %v4572_v57 = vsel %vm4489_vm13, %v4571_v8, %v4570_v12  ;;  %vm4728_vm8 = vcmp.lt.s32.totalorder %v4708_v4, 2  ;;  %vm4729_vm9 = vcmp.lt.s32.totalorder %v4708_v4, 3  ;;  %v4735_v5 = vsel %vm4727_vm5, %v4714_v50, %v4717_v7 }
 0x2ed   : > { %v4575_v52 = vsel %vm14501_vm15, %v14311_v16, %v4572_v57  ;;  %v14587_v2 = vsub.s32 %v4651_v15, %v4654_v61  ;;  %v4732_v1 = vsel %vm4730_vm10, %v4720_v53, 2102212464  ;;  %v4736_v42 = vsel %vm4730_vm10, %v4723_v18, 920167782  ;;  %v14620_v57 = vld [vmem:[%s11892_s24 + $0x2] ss:$4 sm:$0xff] }
 0x2ee   : > { %11565 = vcosq.f32 %v4575_v52  ;;  %v14594_v30 = vmul.f32 %v3706_v29, %v11926_v13  ;;  %v4731_v23 = vsel %vm4727_vm5, %v4711_v14, %v4714_v50  ;;  %v4737_v17 = vsel %vm4729_vm9, %v4720_v53, %v4736_v42  ;;  %11213 = vst [vmem:[%s11905_s26 + $0x200] ss:$8 sm:$0xf] %v14620_v57  ;;  %11214 = vst [vmem:[%s11905_s26 + $0x200] ss:$8 sm:$0xf0] %v14620_v57 }
 0x2ef   : > { %11567 = vsinq.f32 %v4575_v52  ;;  %v4657_v8 = vsub.s32 0, %v14587_v2  ;;  %v4739_v61 = vsel %vm4727_vm5, %v4717_v7, %v4720_v53  ;;  %v4740_v15 = vsel %vm4730_vm10, %v4726_v41, 1326507024 }
 0x2f0   : > { %17672 = vst [vmem:[#allocation34_spill] sm:$0xff] %v14594_v30  ;;  %v4733_v43 = vsel %vm4729_vm9, %v4717_v7, %v4732_v1  ;;  %v4738_v33 = vsel %vm4728_vm8, %v4735_v5, %v4737_v17  ;;  %v4741_v52 = vsel %vm4729_vm9, %v4723_v18, %v4740_v15  ;;  %v4581_v12 = vand.u32 3, %v4580_v56 }
 0x2f1   : > { %v10984_v54 = vmin.u32 %v4657_v8, %v14587_v2  ;;  %v4742_v29 = vsel %vm4728_vm8, %v4739_v61, %v4741_v52  ;;  %v14603_v51 = vmul.u32.u64.low %v14579_v48, %v4738_v33  ;;  %v14604_v35 = vmul.u32.u64.high %v14579_v48, %v4738_v33, %v14603_v51 }
 0x2f2   : > { %vm17427_vm13 = vweird.f32 %v14311_v16  ;;  %v4677_v41 = vsub.s32 4, %v4653_v25  ;;  %v17673_v19 = vand.u32 2147483647, %v14374_v22  ;;  %v4734_v50 = vsel %vm4728_vm8, %v4731_v23, %v4733_v43 }
 0x2f3   : > { %v4659_v3 = vclz %v10984_v54  ;;  %v14616_v56 = vmul.u32.u64.low %v14579_v48, %v4742_v29  ;;  %v14617_v18 = vmul.u32.u64.high %v14579_v48, %v4742_v29, %v14616_v56  ;;  %vm4593_vm15 = vcmp.lt.s32.totalorder %v14374_v22, 0 }
 0x2f4   : > { %vm14610_vm4 = vcmp.le.f32.partialorder %v17673_v19, 0.7853982  ;;  %v4802_v53 = vand.u32 2139095040, %v14594_v30  ;;  %v3710_v1 = vrot.slane %v13780_v0, %v11942_v21  ;;  %vm4582_vm3 = vcmp.lt.s32.totalorder %v4581_v12, 2 }
 0x2f5   : > { %v10985_v14 = vadd.s32 4294967294, %v4659_v3  ;;  %vm4583_vm1 = vcmp.eq.s32.totalorder %v4581_v12, 0  ;;  %v4647_v4 = vadd.s32 %v14526_v60, %v14544_v63  ;;  %v4753_v5 = vadd.s32 1, %v14604_v35 }
 0x2f6   : > { %v4678_v42 = vsel %vm4593_vm15, %v4677_v41, %v4653_v25  ;;  %v4750_v8 = vmul.u32 %v14579_v48, %v4734_v50  ;;  %v4803_v23 = vshrl.u32 %v4802_v53, 23  ;;  %vm4586_vm5 = vcmp.eq.s32.totalorder %v4581_v12, 2 }
 0x2f7   : > { %vm10986_vm14 = vcmp.lt.s32.totalorder %v10985_v14, 0  ;;  %vm4752_vm10 = vc.u32 %v14617_v18, %v14603_v51  ;;  %v17423_v15 = vand.u32 2147483647, %v14594_v30  ;;  %v14648_v33 = vsel %vm14610_vm4, 0, %v4678_v42 }
 0x2f8   : > { %v14636_v17 = vpop.eup %11565  ;;  %v4662_v61 = vsel %vm10986_vm14, 0, %v10985_v14  ;;  %17678 = vst [vmem:[#allocation37_spill] sm:$0xff] %v14648_v33  ;;  %v4754_v52 = vsel %vm4752_vm10, %v4753_v5, %v14604_v35  ;;  %v10991_v29 = vadd.s32 4294967169, %v4803_v23  ;;  %v14661_v53 = vmul.f32 %v3710_v1, %v11926_v13 }
 0x2f9   : > { %17676 = vst [vmem:[#allocation35_spill] sm:$0xff] %v14636_v17  ;;  %v14641_v54 = vpop.eup %11567  ;;  %v17420_v60 = vxor.u32 2147483648, %v14636_v17  ;;  %v4663_v63 = vsub.s32 32, %v4662_v61  ;;  %v4664_v43 = vshll.u32 %v14587_v2, %v4662_v61  ;;  %v4667_v25 = vsub.s32 4294967266, %v4662_v61 }
 0x2fa   : > { %17677 = vst [vmem:[#allocation36_spill] sm:$0xff] %v14641_v54  ;;  %v17421_v48 = vxor.u32 2147483648, %v14641_v54  ;;  %v4755_v50 = vadd.s32 %v4754_v52, %v4750_v8  ;;  %v4806_v56 = vand.u32 8388607, %v17423_v15  ;;  %v4809_v14 = vadd.s32 1, %v10991_v29  ;;  %17679 = vst [vmem:[#allocation38_spill] sm:$0xff] %v14661_v53 }
 0x2fb   : > { %v4588_v3 = vsel %vm4586_vm5, %v17420_v60, %v14641_v54  ;;  %v4665_v41 = vshrl.u32 %v4647_v4, %v4663_v63  ;;  %v4668_v19 = vadd.s32 127, %v4667_v25  ;;  %v4684_v23 = vadd.s32 3, %v14648_v33 }
 0x2fc   : > { %v4585_v2 = vsel %vm4583_vm1, %v14636_v17, %v17421_v48  ;;  %v4756_v4 = vadd.s32 536870912, %v4755_v50  ;;  %vm4810_vm8 = vcmp.gt.s32.totalorder %v4809_v14, 0  ;;  %v4807_v29 = vor.u32 8388608, %v4806_v56 }
 0x2fd   : > { %v4589_v35 = vsel %vm4582_vm3, %v4585_v2, %v4588_v3  ;;  %v4666_v5 = vor.u32 %v4665_v41, %v4664_v43  ;;  %v4669_v42 = vshll.u32 %v4668_v19, 23  ;;  %v4811_v1 = vsel %vm4810_vm8, %v4809_v14, 0 }
 0x2fe   : > { %v4590_v8 = vsel %vm17427_vm13, nan, %v4589_v35  ;;  %v14667_v52 = vshrl.u32 %v4756_v4, 30  ;;  %v17422_v12 = vand.u32 2147483647, %v14661_v53  ;;  %v4906_v3 = vand.u32 2139095040, %v14661_v53 }
 0x2ff   : > { %v5446_v61 = vrot.slane %v4590_v8, 5  ;;  %v4670_v63 = vor.u32 4788187, %v4669_v42  ;;  %v4673_v25 = vcvt.s32.f32 %v4666_v5  ;;  %v14673_v19 = vand.u32 3, %v4684_v23 }
 0x300   : > { %v4758_v41 = vshll.u32 %v14667_v52, 30  ;;  %v4813_v2 = vand.u32 31, %v4811_v1  ;;  %v4751_v42 = vadd.s32 %v14603_v51, %v14617_v18  ;;  %v14681_v4 = vshll.u32 %v4807_v29, 8 }
 0x301   : > { %5478 = vst [vmem:[%s11905_s26 + $0xb8] sm:$0xf8] %v5446_v61  ;;  %v4671_v43 = vand.u32 2147483647, %v4670_v63  ;;  %v4907_v8 = vshrl.u32 %v4906_v3, 23  ;;  %vm4697_vm3 = vcmp.lt.s32.totalorder %v14453_v24, 0  ;;  %vm4683_vm13 = vweird.f32 %v14374_v22 }
 0x302   : > { %v14677_v5 = vsub.s32 %v4755_v50, %v4758_v41  ;;  %v4814_v14 = vsub.s32 32, %v4813_v2  ;;  %v14685_v61 = vand.u32 8388607, %v17422_v12  ;;  %v4819_v51 = vshll.u32 %v17618_v31, %v4813_v2 }
 0x303   : > { %v4674_v35 = vmul.f32 %v4673_v25, %v4671_v43  ;;  %v4816_v25 = vshll.u32 %v17617_v40, %v4813_v2  ;;  %v4812_v50 = vshrl.u32 %v4811_v1, 5  ;;  %v4822_v60 = vshll.u32 %v17619_v9, %v4813_v2 }
 0x304   : > { %v4761_v63 = vsub.s32 0, %v14677_v5  ;;  %v4817_v43 = vshrl.u32 %v17618_v31, %v4814_v14  ;;  %v4820_v29 = vshrl.u32 %v17619_v9, %v4814_v14  ;;  %v4823_v48 = vshrl.u32 %v17620_v59, %v4814_v14 }
 0x305   : > { %v4675_v23 = vxor.u32 2147483648, %v4674_v35  ;;  %v4815_v15 = vshrl.u32 %v17617_v40, %v4814_v14  ;;  %v4825_v1 = vshll.u32 %v17620_v59, %v4813_v2  ;;  %v10995_v56 = vadd.s32 4294967169, %v4907_v8 }
 0x306   : > { %v10988_v41 = vmin.u32 %v4761_v63, %v14677_v5  ;;  %v4818_v21 = vor.u32 %v4817_v43, %v4816_v25  ;;  %v4821_v16 = vor.u32 %v4820_v29, %v4819_v51  ;;  %vm4831_vm9 = vcmp.lt.s32.totalorder %v4812_v50, 1 }
 0x307   : > { %v4676_v3 = vsel %vm4593_vm15, %v4675_v23, %v4674_v35  ;;  %v4826_v35 = vshrl.u32 %v17624_v58, %v4814_v14  ;;  %v4828_v23 = vshll.u32 %v17624_v58, %v4813_v2  ;;  %vm4690_vm15 = vcmp.eq.s32.totalorder %v14673_v19, 2 }
 0x308   : > { %v4679_v12 = vsel %vm14610_vm4, %v14374_v22, %v4676_v3  ;;  %v4763_v18 = vclz %v10988_v41  ;;  %v4824_v63 = vor.u32 %v4823_v48, %v4822_v60  ;;  %v4829_v3 = vshrl.u32 %v17607_v37, %v4814_v14 }
 0x309   : > { %11569 = vcosq.f32 %v4679_v12  ;;  %vm4832_vm4 = vcmp.lt.s32.totalorder %v4812_v50, 2  ;;  %vm4687_vm1 = vcmp.eq.s32.totalorder %v14673_v19, 0  ;;  %v4827_v8 = vor.u32 %v4826_v35, %v4825_v1 }
 0x30a   : > { %11571 = vsinq.f32 %v4679_v12  ;;  %v10989_v7 = vadd.s32 4294967294, %v4763_v18  ;;  %vm4833_vm14 = vcmp.lt.s32.totalorder %v4812_v50, 3  ;;  %vm4834_vm5 = vcmp.lt.s32.totalorder %v4812_v50, 4 }
 0x30b   : > { %v4835_v12 = vsel %vm4831_vm9, %v4815_v15, %v4818_v21  ;;  %vm4686_vm10 = vcmp.lt.s32.totalorder %v14673_v19, 2  ;;  %v4830_v2 = vor.u32 %v4829_v3, %v4828_v23  ;;  %v4836_v25 = vsel %vm4834_vm5, %v4824_v63, 2102212464 }
 0x30c   : > { %vm10990_vm8 = vcmp.lt.s32.totalorder %v10989_v7, 0  ;;  %v4839_v51 = vsel %vm4831_vm9, %v4818_v21, %v4821_v16  ;;  %v17680_v60 = vand.u32 2147483647, %v14453_v24  ;;  %v4837_v18 = vsel %vm4833_vm14, %v4821_v16, %v4836_v25 }
 0x30d   : > { %v4766_v14 = vsel %vm10990_vm8, 0, %v10989_v7  ;;  %v4840_v15 = vsel %vm4834_vm5, %v4827_v8, 920167782  ;;  %v4913_v43 = vadd.s32 1, %v10995_v56  ;;  %v4843_v21 = vsel %vm4831_vm9, %v4821_v16, %v4824_v63 }
 0x30e   : > { %vm14716_vm11 = vcmp.le.f32.partialorder %v17680_v60, 0.7853982  ;;  %v4767_v29 = vsub.s32 32, %v4766_v14  ;;  %v4768_v41 = vshll.u32 %v14677_v5, %v4766_v14  ;;  %v4771_v1 = vsub.s32 4294967266, %v4766_v14 }
 0x30f   : > { %v4838_v35 = vsel %vm4832_vm4, %v4835_v12, %v4837_v18  ;;  %v4841_v23 = vsel %vm4833_vm14, %v4824_v63, %v4840_v15  ;;  %v4844_v3 = vsel %vm4834_vm5, %v4830_v2, 1326507024  ;;  %vm4914_vm6 = vcmp.gt.s32.totalorder %v4913_v43, 0 }
 0x310   : > { %v4769_v60 = vshrl.u32 %v4751_v42, %v4767_v29  ;;  %v4772_v7 = vadd.s32 127, %v4771_v1  ;;  %v4842_v25 = vsel %vm4832_vm4, %v4839_v51, %v4841_v23  ;;  %v4845_v17 = vsel %vm4833_vm14, %v4827_v8, %v4844_v3 }
 0x311   : > { %v4846_v56 = vsel %vm4832_vm4, %v4843_v21, %v4845_v17  ;;  %v14731_v5 = vmul.u32.u64.low %v14681_v4, %v4842_v25  ;;  %v14732_v14 = vmul.u32.u64.high %v14681_v4, %v4842_v25, %v14731_v5  ;;  %v4915_v16 = vsel %vm4914_vm6, %v4913_v43, 0 }
 0x312   : > { %v4770_v63 = vor.u32 %v4769_v60, %v4768_v41  ;;  %v4773_v18 = vshll.u32 %v4772_v7, 23  ;;  %v14738_v2 = vmul.u32.u64.low %v14681_v4, %v4846_v56  ;;  %v14739_v42 = vmul.u32.u64.high %v14681_v4, %v4846_v56, %v14738_v2 }
 0x313   : > { %v14735_v12 = vpop.eup %11569  ;;  %v17685_v17 = vsub.s32 4, %v14667_v52  ;;  %v4911_v51 = vor.u32 8388608, %v14685_v61  ;;  %v4917_v43 = vand.u32 31, %v4915_v16  ;;  %v4854_v21 = vmul.u32 %v14681_v4, %v4838_v35 }
 0x314   : > { %17683 = vst [vmem:[#allocation39_spill] sm:$0xff] %v14735_v12  ;;  %v14741_v15 = vpop.eup %11571  ;;  %v17432_v8 = vxor.u32 2147483648, %v14735_v12  ;;  %v4774_v41 = vor.u32 4788187, %v4773_v18  ;;  %v4777_v1 = vcvt.s32.f32 %v4770_v63  ;;  %v4857_v3 = vadd.s32 1, %v14732_v14 }
 0x315   : > { %17684 = vst [vmem:[#allocation40_spill] sm:$0xff] %v14741_v15  ;;  %v4782_v50 = vsel %vm4697_vm3, %v17685_v17, %v14667_v52  ;;  %v17433_v29 = vxor.u32 2147483648, %v14741_v15  ;;  %v4918_v60 = vsub.s32 32, %v4917_v43  ;;  %v4920_v52 = vshll.u32 %v17617_v40, %v4917_v43 }
 0x316   : > { %v4692_v23 = vsel %vm4690_vm15, %v17432_v8, %v14741_v15  ;;  %v4775_v7 = vand.u32 2147483647, %v4774_v41  ;;  %v14766_v4 = vsel %vm14716_vm11, 0, %v4782_v50  ;;  %vm4856_vm6 = vc.u32 %v14739_v42, %v14731_v5 }
 0x317   : > { %v4689_v61 = vsel %vm4687_vm1, %v14735_v12, %v17433_v29  ;;  %17686 = vst [vmem:[#allocation41_spill] sm:$0xff] %v14766_v4  ;;  %v4858_v25 = vsel %vm4856_vm6, %v4857_v3, %v14732_v14  ;;  %v14773_v56 = vshrl.u32 %v4915_v16, 5  ;;  %v4921_v63 = vshrl.u32 %v17618_v31, %v4918_v60 }
 0x318   : > { %v4693_v35 = vsel %vm4686_vm10, %v4689_v61, %v4692_v23  ;;  %v4778_v2 = vmul.f32 %v4777_v1, %v4775_v7  ;;  %v4859_v17 = vadd.s32 %v4858_v25, %v4854_v21  ;;  %v4923_v50 = vshll.u32 %v17618_v31, %v4917_v43 }
 0x319   : > { %v4694_v18 = vsel %vm4683_vm13, nan, %v4693_v35  ;;  %v4922_v8 = vor.u32 %v4921_v63, %v4920_v52  ;;  %v4924_v29 = vshrl.u32 %v17619_v9, %v4918_v60  ;;  %v4926_v19 = vshll.u32 %v17619_v9, %v4917_v43 }
 0x31a   : > { %v5447_v41 = vrot.slane %v4694_v18, 5  ;;  %v4779_v23 = vxor.u32 2147483648, %v4778_v2  ;;  %v4860_v61 = vadd.s32 536870912, %v4859_v17  ;;  %v4927_v14 = vshrl.u32 %v17620_v59, %v4918_v60 }
 0x31b   : > { %v4929_v16 = vshll.u32 %v17620_v59, %v4917_v43  ;;  %v4925_v3 = vor.u32 %v4924_v29, %v4923_v50  ;;  %v4930_v35 = vshrl.u32 %v17624_v58, %v4918_v60  ;;  %v4932_v1 = vshll.u32 %v17624_v58, %v4917_v43 }
 0x31c   : > { %5479 = vst [vmem:[%s11905_s26 + $0xc0] sm:$0xf8] %v5447_v41  ;;  %v4933_v21 = vshrl.u32 %v17607_v37, %v4918_v60  ;;  %v4780_v52 = vsel %vm4697_vm3, %v4779_v23, %v4778_v2  ;;  %v4861_v7 = vshrl.u32 %v4860_v61, 30  ;;  %vm4935_vm9 = vcmp.lt.s32.totalorder %v14773_v56, 1 }
 0x31d   : > { %v14790_v25 = vshll.u32 %v4911_v51, 8  ;;  %v4783_v63 = vsel %vm14716_vm11, %v14453_v24, %v4780_v52  ;;  %v4788_v29 = vadd.s32 3, %v14766_v4  ;;  %v4928_v18 = vor.u32 %v4927_v14, %v4926_v19 }
 0x31e   : > { %v4931_v50 = vor.u32 %v4930_v35, %v4929_v16  ;;  %11573 = vcosq.f32 %v4783_v63  ;;  %v4862_v43 = vshll.u32 %v4861_v7, 30  ;;  %v4934_v41 = vor.u32 %v4933_v21, %v4932_v1 }
 0x31f   : > { %vm4937_vm15 = vcmp.lt.s32.totalorder %v14773_v56, 3  ;;  %11575 = vsinq.f32 %v4783_v63  ;;  %vm4936_vm3 = vcmp.lt.s32.totalorder %v14773_v56, 2  ;;  %vm4938_vm4 = vcmp.lt.s32.totalorder %v14773_v56, 4 }
 0x320   : > { %v4943_v51 = vsel %vm4935_vm9, %v4922_v8, %v4925_v3  ;;  %v14801_v2 = vsub.s32 %v4859_v17, %v4862_v43  ;;  %v4919_v48 = vshrl.u32 %v17617_v40, %v4918_v60  ;;  %v4944_v23 = vsel %vm4938_vm4, %v4931_v50, 920167782 }
 0x321   : > { %v4940_v19 = vsel %vm4938_vm4, %v4928_v18, 2102212464  ;;  %v4945_v61 = vsel %vm4937_vm15, %v4928_v18, %v4944_v23  ;;  %v17687_v14 = vrot.slane %v13780_v0, %v11952_v36  ;;  %v4885_v1 = vsub.s32 4, %v4861_v7 }
 0x322   : > { %v4865_v35 = vsub.s32 0, %v14801_v2  ;;  %v4946_v17 = vsel %vm4936_vm3, %v4943_v51, %v4945_v61  ;;  %v4947_v60 = vsel %vm4935_vm9, %v4925_v3, %v4928_v18  ;;  %vm17478_vm11 = vweird.f32 %v14453_v24 }
 0x323   : > { %v14810_v16 = vmul.f32 %v17687_v14, %v11926_v13  ;;  %v4789_v21 = vand.u32 3, %v4788_v29  ;;  %v4948_v52 = vsel %vm4938_vm4, %v4934_v41, 1326507024  ;;  %v4939_v14 = vsel %vm4935_vm9, %v4919_v48, %v4922_v8 }
 0x324   : > { %v14819_v63 = vmul.u32.u64.low %v14790_v25, %v4946_v17  ;;  %v14820_v43 = vmul.u32.u64.high %v14790_v25, %v4946_v17, %v14819_v63  ;;  %v10992_v23 = vmin.u32 %v4865_v35, %v14801_v2  ;;  %v4941_v51 = vsel %vm4937_vm15, %v4925_v3, %v4940_v19 }
 0x325   : > { %v4949_v18 = vsel %vm4937_vm15, %v4931_v50, %v4948_v52  ;;  %v17688_v61 = vand.u32 2147483647, %v14594_v30  ;;  %vm4801_vm14 = vcmp.lt.s32.totalorder %v14594_v30, 0  ;;  %v5010_v35 = vand.u32 2139095040, %v14810_v16 }
 0x326   : > { %v4950_v41 = vsel %vm4936_vm3, %v4947_v60, %v4949_v18  ;;  %v4867_v8 = vclz %v10992_v23  ;;  %v4886_v3 = vsel %vm4801_vm14, %v4885_v1, %v4861_v7  ;;  %v17437_v48 = vand.u32 2147483647, %v14810_v16 }
 0x327   : > { %vm14832_vm1 = vcmp.le.f32.partialorder %v17688_v61, 0.7853982  ;;  %v3718_v50 = vrot.slane %v13780_v0, %v11958_v39  ;;  %v4942_v19 = vsel %vm4936_vm3, %v4939_v14, %v4941_v51  ;;  %v5011_v61 = vshrl.u32 %v5010_v35, 23 }
 0x328   : > { %v14848_v17 = vmul.u32.u64.low %v14790_v25, %v4950_v41  ;;  %v14849_v52 = vmul.u32.u64.high %v14790_v25, %v4950_v41, %v14848_v17  ;;  %v14851_v60 = vpop.eup %11573  ;;  %vm4790_vm5 = vcmp.lt.s32.totalorder %v4789_v21, 2  ;;  %vm4791_vm10 = vcmp.eq.s32.totalorder %v4789_v21, 0 }
 0x329   : > { %17691 = vst [vmem:[#allocation42_spill] sm:$0xff] %v14851_v60  ;;  %vm4794_vm8 = vcmp.eq.s32.totalorder %v4789_v21, 2  ;;  %v10993_v23 = vadd.s32 4294967294, %v4867_v8  ;;  %v14853_v7 = vpop.eup %11575  ;;  %v17434_v1 = vxor.u32 2147483648, %v14851_v60  ;;  %v4855_v18 = vadd.s32 %v14731_v5, %v14739_v42 }
 0x32a   : > { %17692 = vst [vmem:[#allocation43_spill] sm:$0xff] %v14853_v7  ;;  %v4961_v56 = vadd.s32 1, %v14820_v43  ;;  %v10999_v14 = vadd.s32 4294967169, %v5011_v61  ;;  %v17444_v51 = vxor.u32 2147483648, %v14853_v7  ;;  %v14862_v41 = vsel %vm14832_vm1, 0, %v4886_v3 }
 0x32b   : > { %vm10994_vm6 = vcmp.lt.s32.totalorder %v10993_v23, 0  ;;  %17693 = vst [vmem:[#allocation44_spill] sm:$0xff] %v14862_v41  ;;  %v4958_v35 = vmul.u32 %v14790_v25, %v4942_v19  ;;  %v4796_v8 = vsel %vm4794_vm8, %v17434_v1, %v14853_v7  ;;  %vm4960_vm9 = vc.u32 %v14849_v52, %v14819_v63 }
 0x32c   : > { %v4870_v17 = vsel %vm10994_vm6, 0, %v10993_v23  ;;  %v5014_v5 = vand.u32 8388607, %v17437_v48  ;;  %v4793_v42 = vsel %vm4791_vm10, %v14851_v60, %v17444_v51  ;;  %v4892_v23 = vadd.s32 3, %v14862_v41 }
 0x32d   : > { %v4871_v3 = vsub.s32 32, %v4870_v17  ;;  %v4872_v61 = vshll.u32 %v14801_v2, %v4870_v17  ;;  %v4875_v25 = vsub.s32 4294967266, %v4870_v17  ;;  %v4797_v19 = vsel %vm4790_vm5, %v4793_v42, %v4796_v8 }
 0x32e   : > { %v4962_v1 = vsel %vm4960_vm9, %v4961_v56, %v14820_v43  ;;  %v5017_v39 = vadd.s32 1, %v10999_v14  ;;  %v4798_v48 = vsel %vm17478_vm11, nan, %v4797_v19  ;;  %v5015_v51 = vor.u32 8388608, %v5014_v5 }
 0x32f   : > { %v4873_v36 = vshrl.u32 %v4855_v18, %v4871_v3  ;;  %v4876_v7 = vadd.s32 127, %v4875_v25  ;;  %v4963_v22 = vadd.s32 %v4962_v1, %v4958_v35  ;;  %v5448_v4 = vrot.slane %v4798_v48, 5 }
 0x330   : > { %vm5018_vm15 = vcmp.gt.s32.totalorder %v5017_v39, 0  ;;  %v14883_v2 = vmul.f32 %v3718_v50, %v11926_v13  ;;  %v14886_v14 = vand.u32 3, %v4892_v23  ;;  %vm4905_vm3 = vcmp.lt.s32.totalorder %v14661_v53, 0 }
 0x331   : > { %v4874_v21 = vor.u32 %v4873_v36, %v4872_v61  ;;  %v4877_v8 = vshll.u32 %v4876_v7, 23  ;;  %v4964_v17 = vadd.s32 536870912, %v4963_v22  ;;  %v5019_v42 = vsel %vm5018_vm15, %v5017_v39, 0  ;;  %5480 = vst [vmem:[%s11905_s26 + $0xc8] sm:$0xf8] %v5448_v4 }
 0x332   : > { %v5021_v41 = vand.u32 31, %v5019_v42  ;;  %v14889_v1 = vshrl.u32 %v5019_v42, 5  ;;  %v14891_v18 = vshll.u32 %v5015_v51, 8  ;;  %v5114_v50 = vand.u32 2139095040, %v14883_v2 }
 0x333   : > { %v4878_v43 = vor.u32 4788187, %v4877_v8  ;;  %v4881_v56 = vcvt.s32.f32 %v4874_v21  ;;  %v4965_v19 = vshrl.u32 %v4964_v17, 30  ;;  %v17694_v8 = vand.u32 2147483647, %v14661_v53 }
 0x334   : > { %v5022_v48 = vsub.s32 32, %v5021_v41  ;;  %v5024_v39 = vshll.u32 %v17617_v40, %v5021_v41  ;;  %v5027_v4 = vshll.u32 %v17618_v31, %v5021_v41  ;;  %v5030_v3 = vshll.u32 %v17619_v9, %v5021_v41 }
 0x335   : > { %v4879_v36 = vand.u32 2147483647, %v4878_v43  ;;  %v4966_v7 = vshll.u32 %v4965_v19, 30  ;;  %v5033_v51 = vshll.u32 %v17620_v59, %v5021_v41  ;;  %vm14906_vm4 = vcmp.le.f32.partialorder %v17694_v8, 0.7853982 }
 0x336   : > { %v5025_v35 = vshrl.u32 %v17618_v31, %v5022_v48  ;;  %v5028_v5 = vshrl.u32 %v17619_v9, %v5022_v48  ;;  %v5031_v61 = vshrl.u32 %v17620_v59, %v5022_v48  ;;  %v5034_v21 = vshrl.u32 %v17624_v58, %v5022_v48 }
 0x337   : > { %v4882_v25 = vmul.f32 %v4881_v56, %v4879_v36  ;;  %v14900_v23 = vsub.s32 %v4963_v22, %v4966_v7  ;;  %v4959_v42 = vadd.s32 %v14819_v63, %v14849_v52  ;;  %v4989_v43 = vsub.s32 4, %v4965_v19 }
 0x338   : > { %v5115_v60 = vshrl.u32 %v5114_v50, 23  ;;  %v5023_v36 = vshrl.u32 %v17617_v40, %v5022_v48  ;;  %v5026_v7 = vor.u32 %v5025_v35, %v5024_v39  ;;  %v5029_v12 = vor.u32 %v5028_v5, %v5027_v4 }
 0x339   : > { %v4883_v56 = vxor.u32 2147483648, %v4882_v25  ;;  %v4969_v22 = vsub.s32 0, %v14900_v23  ;;  %v5032_v15 = vor.u32 %v5031_v61, %v5030_v3  ;;  %v5036_v8 = vshll.u32 %v17624_v58, %v5021_v41 }
 0x33a   : > { %v5037_v54 = vshrl.u32 %v17607_v37, %v5022_v48  ;;  %v5035_v52 = vor.u32 %v5034_v21, %v5033_v51  ;;  %vm5039_vm5 = vcmp.lt.s32.totalorder %v14889_v1, 1  ;;  %vm5042_vm10 = vcmp.lt.s32.totalorder %v14889_v1, 4 }
 0x33b   : > { %v4884_v33 = vsel %vm4801_vm14, %v4883_v56, %v4882_v25  ;;  %v10996_v63 = vmin.u32 %v4969_v22, %v14900_v23  ;;  %v17697_v39 = vand.u32 2147483647, %v14883_v2  ;;  %v4990_v4 = vsel %vm4905_vm3, %v4989_v43, %v4965_v19 }
 0x33c   : > { %v4887_v50 = vsel %vm14832_vm1, %v14594_v30, %v4884_v33  ;;  %v5038_v24 = vor.u32 %v5037_v54, %v5036_v8  ;;  %vm5041_vm14 = vcmp.lt.s32.totalorder %v14889_v1, 3  ;;  %vm5040_vm8 = vcmp.lt.s32.totalorder %v14889_v1, 2 }
 0x33d   : > { %v5118_v41 = vand.u32 8388607, %v17697_v39  ;;  %11577 = vcosq.f32 %v4887_v50  ;;  %v4971_v48 = vclz %v10996_v63  ;;  %v5044_v29 = vsel %vm5042_vm10, %v5032_v15, 2102212464 }
 0x33e   : > { %11579 = vsinq.f32 %v4887_v50  ;;  %v5047_v54 = vsel %vm5039_vm5, %v5026_v7, %v5029_v12  ;;  %v5043_v35 = vsel %vm5039_vm5, %v5023_v36, %v5026_v7  ;;  %v5048_v5 = vsel %vm5042_vm10, %v5035_v52, 920167782 }
 0x33f   : > { %v10997_v33 = vadd.s32 4294967294, %v4971_v48  ;;  %v5051_v19 = vsel %vm5039_vm5, %v5029_v12, %v5032_v15  ;;  %v5045_v3 = vsel %vm5041_vm14, %v5029_v12, %v5044_v29  ;;  %v5049_v61 = vsel %vm5041_vm14, %v5032_v15, %v5048_v5 }
 0x340   : > { %v5052_v25 = vsel %vm5042_vm10, %v5038_v24, 1326507024  ;;  %v11003_v51 = vadd.s32 4294967169, %v5115_v60  ;;  %v14949_v21 = vsel %vm14906_vm4, 0, %v4990_v4  ;;  %v5050_v43 = vsel %vm5040_vm8, %v5047_v54, %v5049_v61 }
 0x341   : > { %vm10998_vm1 = vcmp.lt.s32.totalorder %v10997_v33, 0  ;;  %v5053_v56 = vsel %vm5041_vm14, %v5035_v52, %v5052_v25  ;;  %v14958_v15 = vmul.u32.u64.low %v14891_v18, %v5050_v43  ;;  %v14959_v36 = vmul.u32.u64.high %v14891_v18, %v5050_v43, %v14958_v15 }
 0x342   : > { %v4974_v22 = vsel %vm10998_vm1, 0, %v10997_v33  ;;  %v5054_v12 = vsel %vm5040_vm8, %v5051_v19, %v5053_v56  ;;  %v5046_v8 = vsel %vm5040_vm8, %v5043_v35, %v5045_v3  ;;  %vm17477_vm6 = vweird.f32 %v14594_v30 }
 0x343   : > { %v4975_v24 = vsub.s32 32, %v4974_v22  ;;  %v4976_v60 = vshll.u32 %v14900_v23, %v4974_v22  ;;  %v4979_v7 = vsub.s32 4294967266, %v4974_v22  ;;  %v5121_v50 = vadd.s32 1, %v11003_v51 }
 0x344   : > { %v14967_v63 = vmul.u32.u64.low %v14891_v18, %v5054_v12  ;;  %v14968_v52 = vmul.u32.u64.high %v14891_v18, %v5054_v12, %v14967_v63  ;;  %vm4898_vm9 = vcmp.eq.s32.totalorder %v14886_v14, 2  ;;  %v3722_v4 = vrot.slane %v13780_v0, %v12060_v10 }
 0x345   : > { %v4977_v39 = vshrl.u32 %v4959_v42, %v4975_v24  ;;  %v4980_v48 = vadd.s32 127, %v4979_v7  ;;  %v4996_v23 = vadd.s32 3, %v14949_v21  ;;  %v5062_v29 = vmul.u32 %v14891_v18, %v5046_v8 }
 0x346   : > { %v5065_v1 = vadd.s32 1, %v14959_v36  ;;  %vm5122_vm15 = vcmp.gt.s32.totalorder %v5121_v50, 0  ;;  %v5119_v5 = vor.u32 8388608, %v5118_v41  ;;  %vm4894_vm5 = vcmp.lt.s32.totalorder %v14886_v14, 2 }
 0x347   : > { %v14976_v54 = vpop.eup %11577  ;;  %v4978_v33 = vor.u32 %v4977_v39, %v4976_v60  ;;  %v4981_v35 = vshll.u32 %v4980_v48, 23  ;;  %v5123_v19 = vsel %vm5122_vm15, %v5121_v50, 0  ;;  %vm4895_vm10 = vcmp.eq.s32.totalorder %v14886_v14, 0 }
 0x348   : > { %v14978_v3 = vpop.eup %11579  ;;  %v17456_v42 = vxor.u32 2147483648, %v14976_v54  ;;  %vm5064_vm14 = vc.u32 %v14968_v52, %v14958_v15  ;;  %v5125_v56 = vand.u32 31, %v5123_v19  ;;  %v14993_v22 = vmul.f32 %v3722_v4, %v11926_v13 }
 0x349   : > { %v17457_v18 = vxor.u32 2147483648, %v14978_v3  ;;  %v4982_v61 = vor.u32 4788187, %v4981_v35  ;;  %v4985_v25 = vcvt.s32.f32 %v4978_v33  ;;  %v5066_v51 = vsel %vm5064_vm14, %v5065_v1, %v14959_v36 }
 0x34a   : > { %v4900_v41 = vsel %vm4898_vm9, %v17456_v42, %v14978_v3  ;;  %v5067_v43 = vadd.s32 %v5066_v51, %v5062_v29  ;;  %v14998_v60 = vand.u32 3, %v4996_v23  ;;  %v15000_v7 = vshll.u32 %v5119_v5, 8 }
 0x34b   : > { %v4897_v12 = vsel %vm4895_vm10, %v14976_v54, %v17457_v18  ;;  %v4983_v24 = vand.u32 2147483647, %v4982_v61  ;;  %v5124_v63 = vshrl.u32 %v5123_v19, 5  ;;  %v5126_v50 = vsub.s32 32, %v5125_v56 }
 0x34c   : > { %v4901_v36 = vsel %vm4894_vm5, %v4897_v12, %v4900_v41  ;;  %v5068_v8 = vadd.s32 536870912, %v5067_v43  ;;  %v5128_v4 = vshll.u32 %v17617_v40, %v5125_v56  ;;  %v5131_v29 = vshll.u32 %v17618_v31, %v5125_v56 }
 0x34d   : > { %v4902_v39 = vsel %vm17477_vm6, nan, %v4901_v36  ;;  %v4986_v48 = vmul.f32 %v4985_v25, %v4983_v24  ;;  %v5129_v33 = vshrl.u32 %v17618_v31, %v5126_v50  ;;  %v5134_v35 = vshll.u32 %v17619_v9, %v5125_v56 }
 0x34e   : > { %v5449_v1 = vrot.slane %v4902_v39, 5  ;;  %v5069_v23 = vshrl.u32 %v5068_v8, 30  ;;  %v5132_v5 = vshrl.u32 %v17619_v9, %v5126_v50  ;;  %v5135_v19 = vshrl.u32 %v17620_v59, %v5126_v50 }
 0x34f   : > { %v4987_v14 = vxor.u32 2147483648, %v4986_v48  ;;  %v5137_v61 = vshll.u32 %v17620_v59, %v5125_v56  ;;  %vm5009_vm8 = vcmp.lt.s32.totalorder %v14810_v16, 0  ;;  %v5127_v51 = vshrl.u32 %v17617_v40, %v5126_v50 }
 0x350   : > { %5481 = vst [vmem:[%s11905_s26 + $0xd0] sm:$0xf8] %v5449_v1  ;;  %v5070_v25 = vshll.u32 %v5069_v23, 30  ;;  %v5138_v41 = vshrl.u32 %v17624_v58, %v5126_v50  ;;  %vm5143_vm1 = vcmp.lt.s32.totalorder %v5124_v63, 1  ;;  %v5130_v24 = vor.u32 %v5129_v33, %v5128_v4 }
 0x351   : > { %v4988_v12 = vsel %vm4905_vm3, %v4987_v14, %v4986_v48  ;;  %v5133_v36 = vor.u32 %v5132_v5, %v5131_v29  ;;  %v5140_v8 = vshll.u32 %v17624_v58, %v5125_v56  ;;  %v5136_v42 = vor.u32 %v5135_v19, %v5134_v35 }
 0x352   : > { %v4991_v39 = vsel %vm14906_vm4, %v14661_v53, %v4988_v12  ;;  %v15023_v1 = vsub.s32 %v5067_v43, %v5070_v25  ;;  %v5139_v18 = vor.u32 %v5138_v41, %v5137_v61  ;;  %v5141_v10 = vshrl.u32 %v17607_v37, %v5126_v50 }
 0x353   : > { %11581 = vcosq.f32 %v4991_v39  ;;  %vm5145_vm9 = vcmp.lt.s32.totalorder %v5124_v63, 3  ;;  %vm5146_vm15 = vcmp.lt.s32.totalorder %v5124_v63, 4  ;;  %v5093_v4 = vsub.s32 4, %v5069_v23 }
 0x354   : > { %11583 = vsinq.f32 %v4991_v39  ;;  %v5073_v48 = vsub.s32 0, %v15023_v1  ;;  %vm5144_vm3 = vcmp.lt.s32.totalorder %v5124_v63, 2  ;;  %v5142_v29 = vor.u32 %v5141_v10, %v5140_v8 }
 0x355   : > { %v5148_v56 = vsel %vm5146_vm15, %v5136_v42, 2102212464  ;;  %v5151_v17 = vsel %vm5143_vm1, %v5130_v24, %v5133_v36  ;;  %v5152_v43 = vsel %vm5146_vm15, %v5139_v18, 920167782  ;;  %v5147_v35 = vsel %vm5143_vm1, %v5127_v51, %v5130_v24 }
 0x356   : > { %v11000_v33 = vmin.u32 %v5073_v48, %v15023_v1  ;;  %v5153_v50 = vsel %vm5145_vm9, %v5136_v42, %v5152_v43  ;;  %v5218_v14 = vand.u32 2139095040, %v14993_v22  ;;  %v5149_v5 = vsel %vm5145_vm9, %v5133_v36, %v5148_v56 }
 0x357   : > { %v5154_v19 = vsel %vm5144_vm3, %v5151_v17, %v5153_v50  ;;  %v5155_v10 = vsel %vm5143_vm1, %v5133_v36, %v5136_v42  ;;  %v5156_v61 = vsel %vm5146_vm15, %v5142_v29, 1326507024  ;;  %vm17476_vm4 = vweird.f32 %v14661_v53 }
 0x358   : > { %vm4998_vm5 = vcmp.lt.s32.totalorder %v14998_v60, 2  ;;  %v17698_v25 = vand.u32 2147483647, %v14810_v16  ;;  %v5075_v41 = vclz %v11000_v33  ;;  %v17462_v12 = vand.u32 2147483647, %v14993_v22 }
 0x359   : > { %v5094_v24 = vsel %vm5009_vm8, %v5093_v4, %v5069_v23  ;;  %v5157_v42 = vsel %vm5145_vm9, %v5139_v18, %v5156_v61  ;;  %v15051_v36 = vmul.u32.u64.low %v15000_v7, %v5154_v19  ;;  %v15052_v8 = vmul.u32.u64.high %v15000_v7, %v5154_v19, %v15051_v36 }
 0x35a   : > { %vm15042_vm10 = vcmp.le.f32.partialorder %v17698_v25, 0.7853982  ;;  %v11001_v39 = vadd.s32 4294967294, %v5075_v41  ;;  %v5150_v48 = vsel %vm5144_vm3, %v5147_v35, %v5149_v5  ;;  %v5158_v29 = vsel %vm5144_vm3, %v5155_v10, %v5157_v42 }
 0x35b   : > { %v5219_v56 = vshrl.u32 %v5218_v14, 23  ;;  %vm4999_vm14 = vcmp.eq.s32.totalorder %v14998_v60, 0  ;;  %vm5002_vm1 = vcmp.eq.s32.totalorder %v14998_v60, 2  ;;  %v5063_v18 = vadd.s32 %v14958_v15, %v14968_v52 }
 0x35c   : > { %v15060_v17 = vmul.u32.u64.low %v15000_v7, %v5158_v29  ;;  %v15061_v23 = vmul.u32.u64.high %v15000_v7, %v5158_v29, %v15060_v17  ;;  %vm11002_vm9 = vcmp.lt.s32.totalorder %v11001_v39, 0  ;;  %v15067_v4 = vsel %vm15042_vm10, 0, %v5094_v24 }
 0x35d   : > { %v11007_v43 = vadd.s32 4294967169, %v5219_v56  ;;  %v15069_v63 = vpop.eup %11581  ;;  %v5078_v33 = vsel %vm11002_vm9, 0, %v11001_v39  ;;  %v5166_v35 = vmul.u32 %v15000_v7, %v5150_v48  ;;  %v5169_v50 = vadd.s32 1, %v15052_v8 }
 0x35e   : > { %17701 = vst [vmem:[#allocation45_spill] sm:$0xff] %v15069_v63  ;;  %v5222_v14 = vand.u32 8388607, %v17462_v12  ;;  %v15075_v5 = vpop.eup %11583  ;;  %v17460_v15 = vxor.u32 2147483648, %v15069_v63  ;;  %v5079_v52 = vsub.s32 32, %v5078_v33  ;;  %v5080_v19 = vshll.u32 %v15023_v1, %v5078_v33 }
 0x35f   : > { %17702 = vst [vmem:[#allocation46_spill] sm:$0xff] %v15075_v5  ;;  %v5083_v10 = vsub.s32 4294967266, %v5078_v33  ;;  %v17461_v61 = vxor.u32 2147483648, %v15075_v5  ;;  %v5100_v25 = vadd.s32 3, %v15067_v4  ;;  %vm5168_vm15 = vc.u32 %v15061_v23, %v15051_v36 }
 0x360   : > { %v5225_v7 = vadd.s32 1, %v11007_v43  ;;  %v5004_v41 = vsel %vm5002_vm1, %v17460_v15, %v15075_v5  ;;  %v5081_v24 = vshrl.u32 %v5063_v18, %v5079_v52  ;;  %v5170_v39 = vsel %vm5168_vm15, %v5169_v50, %v15052_v8 }
 0x361   : > { %v5084_v42 = vadd.s32 127, %v5083_v10  ;;  %v5001_v1 = vsel %vm4999_vm14, %v15069_v63, %v17461_v61  ;;  %v5171_v48 = vadd.s32 %v5170_v39, %v5166_v35  ;;  %v3726_v29 = vrot.slane %v13780_v0, %v17645_v55 }
 0x362   : > { %vm5226_vm3 = vcmp.gt.s32.totalorder %v5225_v7, 0  ;;  %v5005_v56 = vsel %vm4998_vm5, %v5001_v1, %v5004_v41  ;;  %v5082_v17 = vor.u32 %v5081_v24, %v5080_v19  ;;  %vm5113_vm1 = vcmp.lt.s32.totalorder %v14883_v2, 0 }
 0x363   : > { %v5085_v18 = vshll.u32 %v5084_v42, 23  ;;  %v5227_v8 = vsel %vm5226_vm3, %v5225_v7, 0  ;;  %v5006_v43 = vsel %vm17476_vm4, nan, %v5005_v56  ;;  %v15101_v33 = vand.u32 3, %v5100_v25 }
 0x364   : > { %v5172_v50 = vadd.s32 536870912, %v5171_v48  ;;  %v5229_v35 = vand.u32 31, %v5227_v8  ;;  %v5450_v52 = vrot.slane %v5006_v43, 5  ;;  %v5089_v39 = vcvt.s32.f32 %v5082_v17 }
 0x365   : > { %v5086_v10 = vor.u32 4788187, %v5085_v18  ;;  %v5223_v0 = vor.u32 8388608, %v5222_v14  ;;  %v5228_v60 = vshrl.u32 %v5227_v8, 5  ;;  %v15104_v19 = vmul.f32 %v3726_v29, %v11926_v13 }
 0x366   : > { %v5173_v15 = vshrl.u32 %v5172_v50, 30  ;;  %v5230_v41 = vsub.s32 32, %v5229_v35  ;;  %5482 = vst [vmem:[%s11905_s26 + $0xd8] sm:$0xf8] %v5450_v52  ;;  %v5232_v7 = vshll.u32 %v17617_v40, %v5229_v35  ;;  %v5235_v42 = vshll.u32 %v17618_v31, %v5229_v35 }
 0x367   : > { %v5087_v24 = vand.u32 2147483647, %v5086_v10  ;;  %v5238_v25 = vshll.u32 %v17619_v9, %v5229_v35  ;;  %v5241_v14 = vshll.u32 %v17620_v59, %v5229_v35  ;;  %v17703_v8 = vand.u32 2147483647, %v14883_v2 }
 0x368   : > { %v5174_v1 = vshll.u32 %v5173_v15, 30  ;;  %v5197_v56 = vsub.s32 4, %v5173_v15  ;;  %v5233_v18 = vshrl.u32 %v17618_v31, %v5230_v41  ;;  %v5236_v43 = vshrl.u32 %v17619_v9, %v5230_v41 }
 0x369   : > { %v5090_v17 = vmul.f32 %v5089_v39, %v5087_v24  ;;  %vm15114_vm5 = vcmp.le.f32.partialorder %v17703_v8, 0.7853982  ;;  %v5239_v50 = vshrl.u32 %v17620_v59, %v5230_v41  ;;  %v5242_v52 = vshrl.u32 %v17624_v58, %v5230_v41 }
 0x36a   : > { %v15121_v10 = vsub.s32 %v5171_v48, %v5174_v1  ;;  %v5244_v61 = vshll.u32 %v17624_v58, %v5229_v35  ;;  %v5245_v12 = vshrl.u32 %v17607_v37, %v5230_v41  ;;  %v15125_v55 = vshll.u32 %v5223_v0, 8 }
 0x36b   : > { %v5091_v39 = vxor.u32 2147483648, %v5090_v17  ;;  %v5231_v24 = vshrl.u32 %v17617_v40, %v5230_v41  ;;  %v5322_v13 = vand.u32 2139095040, %v15104_v19  ;;  %v5198_v63 = vsel %vm5113_vm1, %v5197_v56, %v5173_v15 }
 0x36c   : > { %v5177_v53 = vsub.s32 0, %v15121_v10  ;;  %v5234_v48 = vor.u32 %v5233_v18, %v5232_v7  ;;  %v5237_v1 = vor.u32 %v5236_v43, %v5235_v42  ;;  %v5240_v5 = vor.u32 %v5239_v50, %v5238_v25 }
 0x36d   : > { %v5092_v35 = vsel %vm5009_vm8, %v5091_v39, %v5090_v17  ;;  %v5243_v0 = vor.u32 %v5242_v52, %v5241_v14  ;;  %vm5247_vm14 = vcmp.lt.s32.totalorder %v5228_v60, 1  ;;  %v5246_v30 = vor.u32 %v5245_v12, %v5244_v61 }
 0x36e   : > { %v5095_v41 = vsel %vm15042_vm10, %v14810_v16, %v5092_v35  ;;  %v11004_v8 = vmin.u32 %v5177_v53, %v15121_v10  ;;  %vm5250_vm9 = vcmp.lt.s32.totalorder %v5228_v60, 4  ;;  %vm5248_vm15 = vcmp.lt.s32.totalorder %v5228_v60, 2 }
 0x36f   : > { %11585 = vcosq.f32 %v5095_v41  ;;  %vm5249_vm3 = vcmp.lt.s32.totalorder %v5228_v60, 3  ;;  %v5252_v15 = vsel %vm5250_vm9, %v5240_v5, 2102212464  ;;  %v5251_v42 = vsel %vm5247_vm14, %v5231_v24, %v5234_v48 }
 0x370   : > { %11587 = vsinq.f32 %v5095_v41  ;;  %v5179_v7 = vclz %v11004_v8  ;;  %v5255_v25 = vsel %vm5247_vm14, %v5234_v48, %v5237_v1  ;;  %v5167_v56 = vadd.s32 %v15051_v36, %v15061_v23 }
 0x371   : > { %v5253_v51 = vsel %vm5249_vm3, %v5237_v1, %v5252_v15  ;;  %v5256_v53 = vsel %vm5250_vm9, %v5243_v0, 920167782  ;;  %v5259_v12 = vsel %vm5247_vm14, %v5237_v1, %v5240_v5  ;;  %v15149_v18 = vsel %vm15114_vm5, 0, %v5198_v63 }
 0x372   : > { %v11005_v61 = vadd.s32 4294967294, %v5179_v7  ;;  %v5257_v14 = vsel %vm5249_vm3, %v5240_v5, %v5256_v53  ;;  %v5260_v17 = vsel %vm5250_vm9, %v5246_v30, 1326507024  ;;  %v5254_v43 = vsel %vm5248_vm15, %v5251_v42, %v5253_v51 }
 0x373   : > { %v5258_v50 = vsel %vm5248_vm15, %v5255_v25, %v5257_v14  ;;  %v5261_v36 = vsel %vm5249_vm3, %v5243_v0, %v5260_v17  ;;  %v5323_v23 = vshrl.u32 %v5322_v13, 23  ;;  %vm17475_vm8 = vweird.f32 %v14810_v16 }
 0x374   : > { %vm11006_vm10 = vcmp.lt.s32.totalorder %v11005_v61, 0  ;;  %v5262_v52 = vsel %vm5248_vm15, %v5259_v12, %v5261_v36  ;;  %v15159_v39 = vmul.u32.u64.low %v15125_v55, %v5258_v50  ;;  %v15160_v63 = vmul.u32.u64.high %v15125_v55, %v5258_v50, %v15159_v39 }
 0x375   : > { %v5182_v24 = vsel %vm11006_vm10, 0, %v11005_v61  ;;  %v15163_v5 = vmul.u32.u64.low %v15125_v55, %v5262_v52  ;;  %v15164_v30 = vmul.u32.u64.high %v15125_v55, %v5262_v52, %v15163_v5  ;;  %v11011_v8 = vadd.s32 4294967169, %v5323_v23 }
 0x376   : > { %v5183_v48 = vsub.s32 32, %v5182_v24  ;;  %v5184_v1 = vshll.u32 %v15121_v10, %v5182_v24  ;;  %v5187_v35 = vsub.s32 4294967266, %v5182_v24  ;;  %vm5103_vm14 = vcmp.eq.s32.totalorder %v15101_v33, 0 }
 0x377   : > { %vm5106_vm9 = vcmp.eq.s32.totalorder %v15101_v33, 2  ;;  %v5270_v60 = vmul.u32 %v15125_v55, %v5254_v43  ;;  %v5329_v0 = vadd.s32 1, %v11011_v8  ;;  %v5204_v7 = vadd.s32 3, %v15149_v18 }
 0x378   : > { %v5185_v41 = vshrl.u32 %v5167_v56, %v5183_v48  ;;  %v5188_v15 = vadd.s32 127, %v5187_v35  ;;  %v5273_v42 = vadd.s32 1, %v15160_v63  ;;  %vm5272_vm15 = vc.u32 %v15164_v30, %v15159_v39 }
 0x379   : > { %v15174_v25 = vpop.eup %11585  ;;  %v17706_v10 = vand.u32 2147483647, %v15104_v19  ;;  %vm5330_vm3 = vcmp.gt.s32.totalorder %v5329_v0, 0  ;;  %v15180_v53 = vand.u32 3, %v13811_v45  ;;  %vm5102_vm10 = vcmp.lt.s32.totalorder %v15101_v33, 2 }
 0x37a   : > { %v15182_v12 = vpop.eup %11587  ;;  %v17472_v55 = vxor.u32 2147483648, %v15174_v25  ;;  %v5186_v56 = vor.u32 %v5185_v41, %v5184_v1  ;;  %v5189_v61 = vshll.u32 %v5188_v15, 23  ;;  %v5274_v14 = vsel %vm5272_vm15, %v5273_v42, %v15160_v63 }
 0x37b   : > { %v5326_v51 = vand.u32 8388607, %v17706_v10  ;;  %v17473_v17 = vxor.u32 2147483648, %v15182_v12  ;;  %v5275_v43 = vadd.s32 %v5274_v14, %v5270_v60  ;;  %v5331_v50 = vsel %vm5330_vm3, %v5329_v0, 0 }
 0x37c   : > { %v5108_v45 = vsel %vm5106_vm9, %v17472_v55, %v15182_v12  ;;  %v5190_v36 = vor.u32 4788187, %v5189_v61  ;;  %v5193_v23 = vcvt.s32.f32 %v5186_v56  ;;  %v15193_v52 = vand.u32 3, %v5204_v7 }
 0x37d   : > { %v5105_v63 = vsel %vm5103_vm14, %v15174_v25, %v17473_v17  ;;  %v5276_v24 = vadd.s32 536870912, %v5275_v43  ;;  %v5333_v5 = vand.u32 31, %v5331_v50  ;;  %vm5582_vm15 = vcmp.eq.s32.totalorder %v15180_v53, 0 }
 0x37e   : > { %v5109_v8 = vsel %vm5102_vm10, %v5105_v63, %v5108_v45  ;;  %v5191_v48 = vand.u32 2147483647, %v5190_v36  ;;  %v15202_v1 = vadd.s32 %v15159_v39, %v15164_v30  ;;  %v5327_v35 = vor.u32 8388608, %v5326_v51 }
 0x37f   : > { %v5110_v60 = vsel %vm17475_vm8, nan, %v5109_v8  ;;  %vm5217_vm9 = vcmp.lt.s32.totalorder %v14993_v22, 0  ;;  %v5277_v0 = vshrl.u32 %v5276_v24, 30  ;;  %v5332_v41 = vshrl.u32 %v5331_v50, 5 }
 0x380   : > { %v5334_v33 = vsub.s32 32, %v5333_v5  ;;  %v5451_v15 = vrot.slane %v5110_v60, 5  ;;  %v5194_v7 = vmul.f32 %v5193_v23, %v5191_v48  ;;  %v5336_v42 = vshll.u32 %v17617_v40, %v5333_v5 }
 0x381   : > { %v17707_v10 = vxor.u32 2147483648, %v13926_v28  ;;  %v5278_v61 = vshll.u32 %v5277_v0, 30  ;;  %v5339_v30 = vshll.u32 %v17618_v31, %v5333_v5  ;;  %v5342_v51 = vshll.u32 %v17619_v9, %v5333_v5 }
 0x382   : > { %v5337_v39 = vshrl.u32 %v17618_v31, %v5334_v33  ;;  %5483 = vst [vmem:[%s11905_s26 + $0xe0] sm:$0xf8] %v5451_v15  ;;  %v5195_v14 = vxor.u32 2147483648, %v5194_v7  ;;  %v17708_v50 = vand.u32 2147483647, %v14993_v22  ;;  %v5340_v36 = vshrl.u32 %v17619_v9, %v5334_v33 }
 0x383   : > { %v5584_v56 = vsel %vm5582_vm15, %v13922_v11, %v17707_v10  ;;  %v5343_v23 = vshrl.u32 %v17620_v59, %v5334_v33  ;;  %v5345_v63 = vshll.u32 %v17620_v59, %v5333_v5  ;;  %vm5581_vm3 = vcmp.lt.s32.totalorder %v15180_v53, 2 }
 0x384   : > { %vm15217_vm14 = vcmp.le.f32.partialorder %v17708_v50, 0.7853982  ;;  %v15225_v24 = vsub.s32 %v5275_v43, %v5278_v61  ;;  %v5346_v8 = vshrl.u32 %v17624_v58, %v5334_v33  ;;  %vm5351_vm10 = vcmp.lt.s32.totalorder %v5332_v41, 1 }
 0x385   : > { %v15228_v48 = vshll.u32 %v5327_v35, 8  ;;  %v5196_v60 = vsel %vm5113_vm1, %v5195_v14, %v5194_v7  ;;  %v5301_v15 = vsub.s32 4, %v5277_v0  ;;  %v5335_v10 = vshrl.u32 %v17617_v40, %v5334_v33 }
 0x386   : > { %v5338_v50 = vor.u32 %v5337_v39, %v5336_v42  ;;  %v5199_v13 = vsel %vm15114_vm5, %v14883_v2, %v5196_v60  ;;  %v5281_v55 = vsub.s32 0, %v15225_v24  ;;  %v5341_v43 = vor.u32 %v5340_v36, %v5339_v30 }
 0x387   : > { %v5344_v61 = vor.u32 %v5343_v23, %v5342_v51  ;;  %11589 = vcosq.f32 %v5199_v13  ;;  %v5347_v17 = vor.u32 %v5346_v8, %v5345_v63  ;;  %v5348_v35 = vshll.u32 %v17624_v58, %v5333_v5 }
 0x388   : > { %v5349_v59 = vshrl.u32 %v17607_v37, %v5334_v33  ;;  %11591 = vsinq.f32 %v5199_v13  ;;  %v11008_v7 = vmin.u32 %v5281_v55, %v15225_v24  ;;  %vm5354_vm1 = vcmp.lt.s32.totalorder %v5332_v41, 4 }
 0x389   : > { %vm5585_vm15 = vcmp.eq.s32.totalorder %v15180_v53, 2  ;;  %v5302_v29 = vsel %vm5217_vm9, %v5301_v15, %v5277_v0  ;;  %vm5353_vm5 = vcmp.lt.s32.totalorder %v5332_v41, 3  ;;  %v5356_v39 = vsel %vm5354_vm1, %v5344_v61, 2102212464 }
 0x38a   : > { %v5350_v42 = vor.u32 %v5349_v59, %v5348_v35  ;;  %vm5207_vm8 = vcmp.eq.s32.totalorder %v15193_v52, 0  ;;  %v5283_v30 = vclz %v11008_v7  ;;  %vm5352_vm4 = vcmp.lt.s32.totalorder %v5332_v41, 2 }
 0x38b   : > { %v5355_v5 = vsel %vm5351_vm10, %v5335_v10, %v5338_v50  ;;  %v5359_v33 = vsel %vm5351_vm10, %v5338_v50, %v5341_v43  ;;  %vm5206_vm6 = vcmp.lt.s32.totalorder %v15193_v52, 2  ;;  %v5357_v13 = vsel %vm5353_vm5, %v5341_v43, %v5356_v39 }
 0x38c   : > { %v5360_v55 = vsel %vm5354_vm1, %v5347_v17, 920167782  ;;  %v5363_v51 = vsel %vm5351_vm10, %v5341_v43, %v5344_v61  ;;  %v5364_v14 = vsel %vm5354_vm1, %v5350_v42, 1326507024  ;;  %vm17479_vm11 = vweird.f32 %v14883_v2 }
 0x38d   : > { %v11009_v59 = vadd.s32 4294967294, %v5283_v30  ;;  %v15252_v0 = vsel %vm15217_vm14, 0, %v5302_v29  ;;  %v5361_v36 = vsel %vm5353_vm5, %v5344_v61, %v5360_v55  ;;  %v5365_v23 = vsel %vm5353_vm5, %v5347_v17, %v5364_v14 }
 0x38e   : > { %v5358_v63 = vsel %vm5352_vm4, %v5355_v5, %v5357_v13  ;;  %v5362_v8 = vsel %vm5352_vm4, %v5359_v33, %v5361_v36  ;;  %v5366_v60 = vsel %vm5352_vm4, %v5363_v51, %v5365_v23  ;;  %v17711_v15 = vxor.u32 2147483648, %v13922_v11 }
 0x38f   : > { %vm11010_vm10 = vcmp.lt.s32.totalorder %v11009_v59, 0  ;;  %v15262_v50 = vmul.u32.u64.low %v15228_v48, %v5366_v60  ;;  %v15263_v43 = vmul.u32.u64.high %v15228_v48, %v5366_v60, %v15262_v50  ;;  %v5683_v42 = vand.u32 3, %v13905_v26 }
 0x390   : > { %v5587_v10 = vsel %vm5585_vm15, %v17711_v15, %v13926_v28  ;;  %v5286_v61 = vsel %vm11010_vm10, 0, %v11009_v59  ;;  %v15268_v17 = vmul.u32.u64.low %v15228_v48, %v5362_v8  ;;  %v15269_v41 = vmul.u32.u64.high %v15228_v48, %v5362_v8, %v15268_v17 }
 0x391   : > { %v5588_v35 = vsel %vm5581_vm3, %v5584_v56, %v5587_v10  ;;  %v5287_v7 = vsub.s32 32, %v5286_v61  ;;  %v5288_v28 = vshll.u32 %v15225_v24, %v5286_v61  ;;  %v5291_v29 = vsub.s32 4294967266, %v5286_v61  ;;  %v15277_v39 = vpop.eup %11589 }
 0x392   : > { %v5589_v11 = vsel %vm3851_vm12, nan, %v5588_v35  ;;  %vm5210_vm4 = vcmp.eq.s32.totalorder %v15193_v52, 2  ;;  %v15281_v53 = vadd.s32 3, %v15252_v0  ;;  %v5374_v56 = vmul.u32 %v15228_v48, %v5358_v63  ;;  %v15285_v62 = vpop.eup %11591 }
 0x393   : > { %7135 = vst [vmem:[%s11905_s26 + $0x100] sm:$0x1f] %v5589_v11  ;;  %v5786_v30 = vand.u32 3, %v14036_v44  ;;  %v5211_v5 = vxor.u32 2147483648, %v15277_v39  ;;  %v5289_v24 = vshrl.u32 %v15202_v1, %v5287_v7  ;;  %v5292_v33 = vadd.s32 127, %v5291_v29  ;;  %v17715_v7 = vld [vmem:[#allocation21_spill] sm:$0xff] }
 0x394   : > { %v5889_v26 = vand.u32 3, %v14127_v32  ;;  %v5208_v13 = vxor.u32 2147483648, %v15285_v62  ;;  %vm5376_vm12 = vc.u32 %v15263_v43, %v15268_v17  ;;  %v5377_v55 = vadd.s32 1, %v15269_v41  ;;  %v17716_v29 = vld [vmem:[#allocation24_spill] sm:$0xff] }
 0x395   : > { %vm5684_vm3 = vcmp.lt.s32.totalorder %v5683_v42, 2  ;;  %v5212_v44 = vsel %vm5210_vm4, %v5211_v5, %v15285_v62  ;;  %v5290_v48 = vor.u32 %v5289_v24, %v5288_v28  ;;  %v5293_v51 = vshll.u32 %v5292_v33, 23 }
 0x396   : > { %vm5685_vm1 = vcmp.eq.s32.totalorder %v5683_v42, 0  ;;  %v5209_v32 = vsel %vm5207_vm8, %v15277_v39, %v5208_v13  ;;  %v5378_v1 = vsel %vm5376_vm12, %v5377_v55, %v15269_v41  ;;  %v17712_v14 = vxor.u32 2147483648, %v13999_v34 }
 0x397   : > { %vm5688_vm15 = vcmp.eq.s32.totalorder %v5683_v42, 2  ;;  %v5213_v36 = vsel %vm5206_vm6, %v5209_v32, %v5212_v44  ;;  %v5294_v23 = vor.u32 4788187, %v5293_v51  ;;  %v5297_v63 = vcvt.s32.f32 %v5290_v48  ;;  %v17721_v44 = vld [vmem:[#allocation23_spill] sm:$0xff]  ;;  %v17723_v51 = vld [vmem:[#allocation22_spill] sm:$0xff] }
 0x398   : > { %v5687_v59 = vsel %vm5685_vm1, %v13994_v38, %v17712_v14  ;;  %v5379_v8 = vadd.s32 %v5378_v1, %v5374_v56  ;;  %v5214_v60 = vsel %vm17479_vm11, nan, %v5213_v36  ;;  %vm5321_vm8 = vcmp.lt.s32.totalorder %v15104_v19, 0  ;;  %v17737_v36 = vld [vmem:[#allocation37_spill] sm:$0xff] }
 0x399   : > { %v17713_v15 = vxor.u32 2147483648, %v13994_v38  ;;  %vm5787_vm5 = vcmp.lt.s32.totalorder %v5786_v30, 2  ;;  %vm5788_vm10 = vcmp.eq.s32.totalorder %v5786_v30, 0  ;;  %v5452_v50 = vrot.slane %v5214_v60, 5 }
 0x39a   : > { %v5295_v35 = vand.u32 2147483647, %v5294_v23  ;;  %v5380_v52 = vadd.s32 536870912, %v5379_v8  ;;  %v17714_v11 = vxor.u32 2147483648, %v14134_v27  ;;  %vm5791_vm6 = vcmp.eq.s32.totalorder %v5786_v30, 2  ;;  %v17726_v30 = vld [vmem:[#allocation27_spill] sm:$0xff] }
 0x39b   : > { %v5690_v10 = vsel %vm5688_vm15, %v17713_v15, %v13999_v34  ;;  %v5992_v56 = vand.u32 3, %v17716_v29  ;;  %5484 = vst [vmem:[%s11905_s26 + $0xe8] sm:$0xf8] %v5452_v50  ;;  %v17717_v24 = vxor.u32 2147483648, %v17715_v7  ;;  %vm5891_vm4 = vcmp.eq.s32.totalorder %v5889_v26, 0 }
 0x39c   : > { %v5691_v61 = vsel %vm5684_vm3, %v5687_v59, %v5690_v10  ;;  %v5790_v28 = vsel %vm5788_vm10, %v17715_v7, %v17714_v11  ;;  %v5298_v38 = vmul.f32 %v5297_v63, %v5295_v35  ;;  %v5381_v34 = vshrl.u32 %v5380_v52, 30  ;;  %v17730_v7 = vld [vmem:[#allocation26_spill] sm:$0xff] }
 0x39d   : > { %v5692_v41 = vsel %vm3955_vm0, nan, %v5691_v61  ;;  %v5793_v42 = vsel %vm5791_vm6, %v17717_v24, %v14134_v27  ;;  %v17718_v46 = vand.u32 2147483647, %v15104_v19  ;;  %vm5890_vm12 = vcmp.lt.s32.totalorder %v5889_v26, 2  ;;  %v17732_v24 = vld [vmem:[#allocation18_spill] sm:$0xff] }
 0x39e   : > { %7136 = vst [vmem:[%s11905_s26 + $0x108] sm:$0x1f] %v5692_v41  ;;  %v5794_v55 = vsel %vm5787_vm5, %v5790_v28, %v5793_v42  ;;  %v17722_v48 = vxor.u32 2147483648, %v17721_v44  ;;  %vm5894_vm3 = vcmp.eq.s32.totalorder %v5889_v26, 2  ;;  %v5299_v1 = vxor.u32 2147483648, %v5298_v38  ;;  %v17728_v41 = vld [vmem:[#allocation28_spill] sm:$0xff] }
 0x39f   : > { %vm15328_vm0 = vcmp.le.f32.partialorder %v17718_v46, 0.7853982  ;;  %v5382_v14 = vshll.u32 %v5381_v34, 30  ;;  %v5405_v59 = vsub.s32 4, %v5381_v34  ;;  %v5795_v27 = vsel %vm4059_vm2, nan, %v5794_v55 }
 0x3a0   : > { %v5893_v32 = vsel %vm5891_vm4, %v17723_v51, %v17722_v48  ;;  %7137 = vst [vmem:[%s11905_s26 + $0x110] sm:$0x1f] %v5795_v27  ;;  %v17725_v23 = vxor.u32 2147483648, %v17723_v51  ;;  %vm5994_vm1 = vcmp.eq.s32.totalorder %v5992_v56, 0  ;;  %vm5997_vm15 = vcmp.eq.s32.totalorder %v5992_v56, 2  ;;  %v17736_v51 = vld [vmem:[#allocation33_spill] sm:$0xff] }
 0x3a1   : > { %v6095_v60 = vand.u32 3, %v17726_v30  ;;  %v5300_v15 = vsel %vm5217_vm9, %v5299_v1, %v5298_v38  ;;  %v15345_v26 = vsub.s32 %v5379_v8, %v5382_v14  ;;  %vm5993_vm5 = vcmp.lt.s32.totalorder %v5992_v56, 2 }
 0x3a2   : > { %v5896_v63 = vsel %vm5894_vm3, %v17725_v23, %v17721_v44  ;;  %v5303_v50 = vsel %vm15217_vm14, %v14993_v22, %v5300_v15  ;;  %v15351_v35 = vand.u32 3, %v15281_v53  ;;  %v17729_v11 = vxor.u32 2147483648, %v17728_v41 }
 0x3a3   : > { %v5897_v10 = vsel %vm5890_vm12, %v5893_v32, %v5896_v63  ;;  %11593 = vcosq.f32 %v5303_v50  ;;  %v5385_v8 = vsub.s32 0, %v15345_v26  ;;  %v5406_v29 = vsel %vm5321_vm8, %v5405_v59, %v5381_v34  ;;  %v17740_v63 = vld [vmem:[#allocation32_spill] sm:$0xff] }
 0x3a4   : > { %v5898_v61 = vsel %vm4163_vm7, nan, %v5897_v10  ;;  %v5996_v28 = vsel %vm5994_vm1, %v17730_v7, %v17729_v11  ;;  %v17731_v45 = vxor.u32 2147483648, %v17730_v7  ;;  %11595 = vsinq.f32 %v5303_v50  ;;  %v17744_v50 = vld [vmem:[#allocation20_spill] sm:$0xff]  ;;  %v17748_v11 = vld [vmem:[#allocation35_spill] sm:$0xff] }
 0x3a5   : > { %7138 = vst [vmem:[%s11905_s26 + $0x118] sm:$0x1f] %v5898_v61  ;;  %vm6097_vm2 = vcmp.eq.s32.totalorder %v6095_v60, 0  ;;  %vm6100_vm7 = vcmp.eq.s32.totalorder %v6095_v60, 2  ;;  %v11012_v38 = vmin.u32 %v5385_v8, %v15345_v26  ;;  %vm17733_vm9 = vweird.f32 %v17732_v24  ;;  %v17746_v61 = vld [vmem:[#allocation36_spill] sm:$0xff] }
 0x3a6   : > { %v5999_v53 = vsel %vm5997_vm15, %v17731_v45, %v17728_v41  ;;  %vm6096_vm14 = vcmp.lt.s32.totalorder %v6095_v60, 2  ;;  %v17734_v46 = vxor.u32 2147483648, %v14447_v49  ;;  %vm5311_vm10 = vcmp.eq.s32.totalorder %v15351_v35, 0 }
 0x3a7   : > { %v6000_v56 = vsel %vm5993_vm5, %v5996_v28, %v5999_v53  ;;  %vm5314_vm6 = vcmp.eq.s32.totalorder %v15351_v35, 2  ;;  %v17735_v34 = vxor.u32 2147483648, %v14442_v20  ;;  %v6198_v48 = vand.u32 3, %v14434_v47 }
 0x3a8   : > { %v6001_v42 = vsel %vm17733_vm9, nan, %v6000_v56  ;;  %v6099_v55 = vsel %vm6097_vm2, %v14442_v20, %v17734_v46  ;;  %v6301_v32 = vand.u32 3, %v17736_v51  ;;  %vm5310_vm4 = vcmp.lt.s32.totalorder %v15351_v35, 2  ;;  %v17754_v51 = vld [vmem:[#allocation39_spill] sm:$0xff] }
 0x3a9   : > { %7139 = vst [vmem:[%s11905_s26 + $0x120] sm:$0x1f] %v6001_v42  ;;  %v6102_v44 = vsel %vm6100_vm7, %v17735_v34, %v14447_v49  ;;  %v5375_v1 = vadd.s32 %v15268_v17, %v15263_v43  ;;  %v5387_v14 = vclz %v11012_v38  ;;  %v15384_v59 = vsel %vm15328_vm0, 0, %v5406_v29  ;;  %v17738_v49 = vld [vmem:[#allocation19_spill] sm:$0xff]  ;;  %v17750_v42 = vld [vmem:[#allocation25_spill] sm:$0xff] }
 0x3aa   : > { %v6404_v27 = vand.u32 3, %v17737_v36  ;;  %vm5307_vm12 = vweird.f32 %v14993_v22  ;;  %v6103_v20 = vsel %vm6096_vm14, %v6099_v55, %v6102_v44  ;;  %vm6199_vm3 = vcmp.lt.s32.totalorder %v6198_v48, 2  ;;  %v17742_v17 = vld [vmem:[#allocation31_spill] sm:$0xff]  ;;  %v17752_v44 = vld [vmem:[#allocation40_spill] sm:$0xff] }
 0x3ab   : > { %vm6200_vm1 = vcmp.eq.s32.totalorder %v6198_v48, 0  ;;  %vm6203_vm15 = vcmp.eq.s32.totalorder %v6198_v48, 2  ;;  %v11013_v47 = vadd.s32 4294967294, %v5387_v14  ;;  %vm17739_vm5 = vweird.f32 %v17738_v49  ;;  %v17755_v14 = vld [vmem:[#allocation41_spill] sm:$0xff] }
 0x3ac   : > { %v6104_v23 = vsel %vm17739_vm5, nan, %v6103_v20  ;;  %v17741_v43 = vxor.u32 2147483648, %v17740_v63  ;;  %v17743_v60 = vxor.u32 2147483648, %v17742_v17  ;;  %vm6302_vm2 = vcmp.lt.s32.totalorder %v6301_v32, 2 }
 0x3ad   : > { %7140 = vst [vmem:[%s11905_s26 + $0x128] sm:$0x1f] %v6104_v23  ;;  %vm6303_vm7 = vcmp.eq.s32.totalorder %v6301_v32, 0  ;;  %vm6306_vm9 = vcmp.eq.s32.totalorder %v6301_v32, 2  ;;  %vm11014_vm14 = vcmp.lt.s32.totalorder %v11013_v47, 0  ;;  %vm17745_vm11 = vweird.f32 %v17744_v50  ;;  %v15406_v53 = vpop.eup %11593  ;;  %v17758_v50 = vld [vmem:[#allocation43_spill] sm:$0xff] }
 0x3ae   : > { %v6202_v30 = vsel %vm6200_vm1, %v17742_v17, %v17741_v43  ;;  %v6205_v15 = vsel %vm6203_vm15, %v17743_v60, %v17740_v63  ;;  %v17747_v41 = vxor.u32 2147483648, %v17746_v61  ;;  %v17749_v28 = vxor.u32 2147483648, %v17748_v11  ;;  %v15411_v55 = vpop.eup %11595  ;;  %v17773_v60 = vld [vmem:[#allocation38_spill] sm:$0xff] }
 0x3af   : > { %v6206_v10 = vsel %vm6199_vm3, %v6202_v30, %v6205_v15  ;;  %v5390_v29 = vsel %vm11014_vm14, 0, %v11013_v47  ;;  %vm6405_vm3 = vcmp.lt.s32.totalorder %v6404_v27, 2  ;;  %vm6406_vm1 = vcmp.eq.s32.totalorder %v6404_v27, 0 }
 0x3b0   : > { %v6207_v52 = vsel %vm17745_vm11, nan, %v6206_v10  ;;  %v6305_v7 = vsel %vm6303_vm7, %v17748_v11, %v17747_v41  ;;  %v6308_v8 = vsel %vm6306_vm9, %v17749_v28, %v17746_v61  ;;  %v5391_v56 = vsub.s32 32, %v5390_v29  ;;  %v17761_v41 = vld [vmem:[#allocation44_spill] sm:$0xff] }
 0x3b1   : > { %7141 = vst [vmem:[%s11905_s26 + $0x130] sm:$0x1f] %v6207_v52  ;;  %v6309_v45 = vsel %vm6302_vm2, %v6305_v7, %v6308_v8  ;;  %v5392_v38 = vshll.u32 %v15345_v26, %v5390_v29  ;;  %v5395_v24 = vsub.s32 4294967266, %v5390_v29  ;;  %vm17751_vm11 = vweird.f32 %v17750_v42  ;;  %v17760_v52 = vld [vmem:[#allocation42_spill] sm:$0xff] }
 0x3b2   : > { %v6310_v46 = vsel %vm17751_vm11, nan, %v6309_v45  ;;  %v5315_v34 = vxor.u32 2147483648, %v15406_v53  ;;  %v17753_v48 = vxor.u32 2147483648, %v17752_v44  ;;  %vm6409_vm15 = vcmp.eq.s32.totalorder %v6404_v27, 2 }
 0x3b3   : > { %7142 = vst [vmem:[%s11905_s26 + $0x138] sm:$0x1f] %v6310_v46  ;;  %v6507_v36 = vand.u32 3, %v17755_v14  ;;  %v5312_v20 = vxor.u32 2147483648, %v15411_v55  ;;  %v5393_v26 = vshrl.u32 %v5375_v1, %v5391_v56  ;;  %v5396_v47 = vadd.s32 127, %v5395_v24  ;;  %v17763_v24 = vld [vmem:[#allocation30_spill] sm:$0xff] }
 0x3b4   : > { %v6408_v32 = vsel %vm6406_vm1, %v17754_v51, %v17753_v48  ;;  %v17756_v49 = vxor.u32 2147483648, %v17754_v51  ;;  %v5316_v63 = vsel %vm5314_vm6, %v5315_v34, %v15411_v55  ;;  %v17759_v27 = vxor.u32 2147483648, %v17758_v50 }
 0x3b5   : > { %vm6508_vm5 = vcmp.lt.s32.totalorder %v6507_v36, 2  ;;  %vm6509_vm2 = vcmp.eq.s32.totalorder %v6507_v36, 0  ;;  %v5313_v1 = vsel %vm5311_vm10, %v15406_v53, %v5312_v20  ;;  %v5394_v17 = vor.u32 %v5393_v26, %v5392_v38 }
 0x3b6   : > { %v6411_v23 = vsel %vm6409_vm15, %v17756_v49, %v17752_v44  ;;  %v5397_v30 = vshll.u32 %v5396_v47, 23  ;;  %v5317_v10 = vsel %vm5310_vm4, %v5313_v1, %v5316_v63  ;;  %v6511_v61 = vsel %vm6509_vm2, %v17760_v52, %v17759_v27  ;;  %v17767_v63 = vld [vmem:[#allocation34_spill] sm:$0xff] }
 0x3b7   : > { %v6412_v43 = vsel %vm6405_vm3, %v6408_v32, %v6411_v23  ;;  %vm6512_vm6 = vcmp.eq.s32.totalorder %v6507_v36, 2  ;;  %v6610_v11 = vand.u32 3, %v17761_v41  ;;  %v5318_v7 = vsel %vm5307_vm12, nan, %v5317_v10 }
 0x3b8   : > { %v6413_v15 = vsel %vm4683_vm13, nan, %v6412_v43  ;;  %v5398_v28 = vor.u32 4788187, %v5397_v30  ;;  %v5401_v8 = vcvt.s32.f32 %v5394_v17  ;;  %v17762_v29 = vxor.u32 2147483648, %v17760_v52 }
 0x3b9   : > { %7143 = vst [vmem:[%s11905_s26 + $0x140] sm:$0x1f] %v6413_v15  ;;  %v5453_v45 = vrot.slane %v5318_v7, 5  ;;  %vm6611_vm13 = vcmp.lt.s32.totalorder %v6610_v11, 2  ;;  %vm6612_vm10 = vcmp.eq.s32.totalorder %v6610_v11, 0  ;;  %vm17764_vm4 = vweird.f32 %v17763_v24 }
 0x3ba   : > { %v6514_v35 = vsel %vm6512_vm6, %v17762_v29, %v17758_v50  ;;  %v5399_v38 = vand.u32 2147483647, %v5398_v28  ;;  %v17765_v46 = vxor.u32 2147483648, %v14978_v3  ;;  %vm6615_vm7 = vcmp.eq.s32.totalorder %v6610_v11, 2  ;;  %v17782_v29 = vld [vmem:[#allocation9_spill] sm:$0xff] }
 0x3bb   : > { %v6515_v56 = vsel %vm6508_vm5, %v6511_v61, %v6514_v35  ;;  %5485 = vst [vmem:[%s11905_s26 + $0xf0] sm:$0xf8] %v5453_v45  ;;  %v17766_v48 = vxor.u32 2147483648, %v14976_v54  ;;  %v6713_v32 = vand.u32 3, %v14949_v21  ;;  %v6816_v14 = vand.u32 3, %v15067_v4  ;;  %v17769_v21 = vld [vmem:[#allocation46_spill] sm:$0xff] }
 0x3bc   : > { %v6516_v42 = vsel %vm17764_vm4, nan, %v6515_v56  ;;  %v6614_v44 = vsel %vm6612_vm10, %v14976_v54, %v17765_v46  ;;  %v6919_v36 = vand.u32 3, %v15149_v18  ;;  %v5402_v26 = vmul.f32 %v5401_v8, %v5399_v38  ;;  %v17771_v4 = vld [vmem:[#allocation45_spill] sm:$0xff]  ;;  %v17781_v8 = vld [vmem:[#allocation8_spill] sm:$0xff] }
 0x3bd   : > { %7144 = vst [vmem:[%s11905_s26 + $0x148] sm:$0x1f] %v6516_v42  ;;  %v6617_v51 = vsel %vm6615_vm7, %v17766_v48, %v14978_v3  ;;  %v5412_v47 = vadd.s32 3, %v15384_v59  ;;  %v7022_v23 = vand.u32 3, %v15252_v0  ;;  %vm17768_vm9 = vweird.f32 %v17767_v63 }
 0x3be   : > { %v6618_v49 = vsel %vm6611_vm13, %v6614_v44, %v6617_v51  ;;  %vm6714_vm14 = vcmp.lt.s32.totalorder %v6713_v32, 2  ;;  %vm6715_vm3 = vcmp.eq.s32.totalorder %v6713_v32, 0  ;;  %vm6718_vm1 = vcmp.eq.s32.totalorder %v6713_v32, 2 }
 0x3bf   : > { %v6619_v43 = vsel %vm17768_vm9, nan, %v6618_v49  ;;  %v5403_v54 = vxor.u32 2147483648, %v5402_v26  ;;  %v17770_v3 = vxor.u32 2147483648, %v17769_v21  ;;  %v17772_v18 = vxor.u32 2147483648, %v17771_v4 }
 0x3c0   : > { %7145 = vst [vmem:[%s11905_s26 + $0x150] sm:$0x1f] %v6619_v43  ;;  %vm6817_vm11 = vcmp.lt.s32.totalorder %v6816_v14, 2  ;;  %vm6818_vm15 = vcmp.eq.s32.totalorder %v6816_v14, 0  ;;  %vm6821_vm5 = vcmp.eq.s32.totalorder %v6816_v14, 2  ;;  %vm6920_vm2 = vcmp.lt.s32.totalorder %v6919_v36, 2 }
 0x3c1   : > { %v6717_v1 = vsel %vm6715_vm3, %v17771_v4, %v17770_v3  ;;  %v6720_v17 = vsel %vm6718_vm1, %v17772_v18, %v17769_v21  ;;  %v5404_v0 = vsel %vm5321_vm8, %v5403_v54, %v5402_v26  ;;  %vm17774_vm6 = vweird.f32 %v17773_v60 }
 0x3c2   : > { %v6721_v30 = vsel %vm6714_vm14, %v6717_v1, %v6720_v17  ;;  %v17775_v10 = vxor.u32 2147483648, %v15182_v12  ;;  %v17776_v27 = vxor.u32 2147483648, %v15174_v25  ;;  %v5407_v61 = vsel %vm15328_vm0, %v15104_v19, %v5404_v0 }
 0x3c3   : > { %v6722_v15 = vsel %vm17774_vm6, nan, %v6721_v30  ;;  %vm6921_vm13 = vcmp.eq.s32.totalorder %v6919_v36, 0  ;;  %vm6924_vm8 = vcmp.eq.s32.totalorder %v6919_v36, 2  ;;  %11597 = vcosq.f32 %v5407_v61 }
 0x3c4   : > { %v6820_v50 = vsel %vm6818_vm15, %v15174_v25, %v17775_v10  ;;  %v6823_v52 = vsel %vm6821_vm5, %v17776_v27, %v15182_v12  ;;  %7146 = vst [vmem:[%s11905_s26 + $0x158] sm:$0x1f] %v6722_v15  ;;  %vm17777_vm10 = vweird.f32 %v14810_v16  ;;  %v6923_v7 = vsel %vm6921_vm13, %v15277_v39, %v5208_v13 }
 0x3c5   : > { %v6824_v41 = vsel %vm6817_vm11, %v6820_v50, %v6823_v52  ;;  %v6926_v25 = vsel %vm6924_vm8, %v5211_v5, %v15285_v62  ;;  %11599 = vsinq.f32 %v5407_v61  ;;  %vm7023_vm0 = vcmp.lt.s32.totalorder %v7022_v23, 2  ;;  %v17779_v62 = vld [vmem:[#allocation10_spill] sm:$0xff] }
 0x3c6   : > { %v6825_v11 = vsel %vm17777_vm10, nan, %v6824_v41  ;;  %v6927_v12 = vsel %vm6920_vm2, %v6923_v7, %v6926_v25  ;;  %vm7024_vm4 = vcmp.eq.s32.totalorder %v7022_v23, 0  ;;  %vm17778_vm7 = vweird.f32 %v14883_v2 }
 0x3c7   : > { %7147 = vst [vmem:[%s11905_s26 + $0x160] sm:$0x1f] %v6825_v11  ;;  %v6928_v33 = vsel %vm17778_vm7, nan, %v6927_v12  ;;  %v7026_v16 = vsel %vm7024_vm4, %v15406_v53, %v5312_v20  ;;  %vm7027_vm9 = vcmp.eq.s32.totalorder %v7022_v23, 2  ;;  %v17780_v5 = vrot.slane %v14620_v57, %v11912_v6 }
 0x3c8   : > { %7148 = vst [vmem:[%s11905_s26 + $0x168] sm:$0x1f] %v6928_v33  ;;  %v7029_v39 = vsel %vm7027_vm9, %v5315_v34, %v15411_v55  ;;  %v7170_v2 = vrot.slane %v14620_v57, %v17781_v8  ;;  %v7174_v35 = vrot.slane %v14620_v57, %v17782_v29  ;;  %v5413_v20 = vand.u32 3, %v5412_v47 }
 0x3c9   : > { %v15510_v13 = vmul.f32 %v17780_v5, %v17779_v62  ;;  %v7030_v28 = vsel %vm7023_vm0, %v7026_v16, %v7029_v39  ;;  %v7125_v34 = vand.u32 3, %v15384_v59  ;;  %vm5411_vm14 = vweird.f32 %v15104_v19 }
 0x3ca   : > { %v7031_v45 = vsel %vm5307_vm12, nan, %v7030_v28  ;;  %v15523_v56 = vmul.f32 %v7170_v2, %v17779_v62  ;;  %v15531_v46 = vmul.f32 %v7174_v35, %v17779_v62  ;;  %vm5414_vm12 = vcmp.lt.s32.totalorder %v5413_v20, 2 }
 0x3cb   : > { %v7259_v53 = vand.u32 2147483647, %v15510_v13  ;;  %v7262_v55 = vand.u32 2139095040, %v15510_v13  ;;  %7149 = vst [vmem:[%s11905_s26 + $0x170] sm:$0x1f] %v7031_v45  ;;  %vm5415_vm3 = vcmp.eq.s32.totalorder %v5413_v20, 0 }
 0x3cc   : > { %v7363_v42 = vand.u32 2147483647, %v15523_v56  ;;  %v7366_v22 = vand.u32 2139095040, %v15523_v56  ;;  %17783 = vst [vmem:[#allocation21_spill] sm:$0xff] %v15531_v46  ;;  %vm5418_vm1 = vcmp.eq.s32.totalorder %v5413_v20, 2  ;;  %vm7126_vm11 = vcmp.lt.s32.totalorder %v7125_v34, 2 }
 0x3cd   : > { %v7263_v38 = vshrl.u32 %v7262_v55, 23  ;;  %v7266_v24 = vand.u32 8388607, %v7259_v53  ;;  %v11598_v48 = vpop.eup %11597  ;;  %vm7130_vm15 = vcmp.eq.s32.totalorder %v7125_v34, 2  ;;  %vm7127_vm5 = vcmp.eq.s32.totalorder %v7125_v34, 0 }
 0x3ce   : > { %v7367_v51 = vshrl.u32 %v7366_v22, 23  ;;  %v5419_v14 = vxor.u32 2147483648, %v11598_v48  ;;  %v7370_v26 = vand.u32 8388607, %v7363_v42  ;;  %v7467_v23 = vand.u32 2147483647, %v15531_v46 }
 0x3cf   : > { %v11085_v44 = vadd.s32 4294967169, %v7263_v38  ;;  %v7267_v59 = vor.u32 8388608, %v7266_v24  ;;  %v11600_v32 = vpop.eup %11599  ;;  %v7470_v63 = vand.u32 2139095040, %v15531_v46  ;;  %v17784_v25 = vmov 2102212464  }
 0x3d0   : > { %v5416_v47 = vxor.u32 2147483648, %v11600_v32  ;;  %v11089_v49 = vadd.s32 4294967169, %v7367_v51  ;;  %v5420_v43 = vsel %vm5418_vm1, %v5419_v14, %v11600_v32  ;;  %v7132_v54 = vsel %vm7130_vm15, %v5419_v14, %v11600_v32 }
 0x3d1   : > { %v7269_v36 = vadd.s32 1, %v11085_v44  ;;  %v15537_v21 = vshll.u32 %v7267_v59, 8  ;;  %v7371_v60 = vor.u32 8388608, %v7370_v26  ;;  %v7471_v27 = vshrl.u32 %v7470_v63, 23 }
 0x3d2   : > { %v5417_v3 = vsel %vm5415_vm3, %v11598_v48, %v5416_v47  ;;  %v7129_v4 = vsel %vm7127_vm5, %v11598_v48, %v5416_v47  ;;  %v7373_v18 = vadd.s32 1, %v11089_v49  ;;  %vm15646_vm15 = vcmp.le.f32.partialorder %v7259_v53, 0.7853982 }
 0x3d3   : > { %vm7270_vm2 = vcmp.gt.s32.totalorder %v7269_v36, 0  ;;  %v5421_v17 = vsel %vm5414_vm12, %v5417_v3, %v5420_v43  ;;  %v7133_v30 = vsel %vm7126_vm11, %v7129_v4, %v7132_v54  ;;  %v15560_v14 = vshll.u32 %v7371_v60, 8 }
 0x3d4   : > { %v7271_v1 = vsel %vm7270_vm2, %v7269_v36, 0  ;;  %v5422_v15 = vsel %vm5411_vm14, nan, %v5421_v17  ;;  %v7134_v10 = vsel %vm5411_vm14, nan, %v7133_v30  ;;  %vm7374_vm6 = vcmp.gt.s32.totalorder %v7373_v18, 0 }
 0x3d5   : > { %v7273_v0 = vand.u32 31, %v7271_v1  ;;  %v7272_v50 = vshrl.u32 %v7271_v1, 5  ;;  %v5454_v52 = vrot.slane %v5422_v15, 5  ;;  %7150 = vst [vmem:[%s11905_s26 + $0x178] sm:$0x1f] %v7134_v10  ;;  %v7375_v38 = vsel %vm7374_vm6, %v7373_v18, 0 }
 0x3d6   : > { %v7376_v47 = vshrl.u32 %v7375_v38, 5  ;;  %v7377_v49 = vand.u32 31, %v7375_v38  ;;  %v11093_v3 = vadd.s32 4294967169, %v7471_v27  ;;  %vm7261_vm11 = vcmp.lt.s32.totalorder %v15510_v13, 0 }
 0x3d7   : > { %v7274_v61 = vsub.s32 32, %v7273_v0  ;;  %v7276_v41 = vshll.u32 %v17617_v40, %v7273_v0  ;;  %v7279_v11 = vshll.u32 %v17618_v31, %v7273_v0  ;;  %v7282_v7 = vshll.u32 %v17619_v9, %v7273_v0  ;;  %5486 = vst [vmem:[%s11905_s26 + $0xf8] sm:$0xf8] %v5454_v52 }
 0x3d8   : > { %v7285_v12 = vshll.u32 %v17784_v25, %v7273_v0  ;;  %v7288_v33 = vshll.u32 %v17624_v58, %v7273_v0  ;;  %vm7291_vm13 = vcmp.lt.s32.totalorder %v7272_v50, 1  ;;  %vm7292_vm8 = vcmp.lt.s32.totalorder %v7272_v50, 2 }
 0x3d9   : > { %v7275_v19 = vshrl.u32 %v17617_v40, %v7274_v61  ;;  %v7277_v16 = vshrl.u32 %v17618_v31, %v7274_v61  ;;  %v7280_v39 = vshrl.u32 %v17619_v9, %v7274_v61  ;;  %v7283_v5 = vshrl.u32 %v17784_v25, %v7274_v61 }
 0x3da   : > { %v7286_v28 = vshrl.u32 %v17624_v58, %v7274_v61  ;;  %v7289_v2 = vshrl.u32 %v17607_v37, %v7274_v61  ;;  %vm7294_vm10 = vcmp.lt.s32.totalorder %v7272_v50, 4  ;;  %vm7293_vm0 = vcmp.lt.s32.totalorder %v7272_v50, 3 }
 0x3db   : > { %v7278_v35 = vor.u32 %v7277_v16, %v7276_v41  ;;  %v7281_v20 = vor.u32 %v7280_v39, %v7279_v11  ;;  %v7284_v45 = vor.u32 %v7283_v5, %v7282_v7  ;;  %v7378_v30 = vsub.s32 32, %v7377_v49 }
 0x3dc   : > { %v7287_v55 = vor.u32 %v7286_v28, %v7285_v12  ;;  %v7290_v34 = vor.u32 %v7289_v2, %v7288_v33  ;;  %v7380_v0 = vshll.u32 %v17617_v40, %v7377_v49  ;;  %v7383_v60 = vshll.u32 %v17618_v31, %v7377_v49 }
 0x3dd   : > { %v7295_v24 = vsel %vm7291_vm13, %v7275_v19, %v7278_v35  ;;  %v7296_v22 = vsel %vm7294_vm10, %v7284_v45, 2102212464  ;;  %v7299_v44 = vsel %vm7291_vm13, %v7278_v35, %v7281_v20  ;;  %v7303_v59 = vsel %vm7291_vm13, %v7281_v20, %v7284_v45 }
 0x3de   : > { %v7297_v48 = vsel %vm7293_vm0, %v7281_v20, %v7296_v22  ;;  %v7300_v51 = vsel %vm7294_vm10, %v7287_v55, 920167782  ;;  %v7304_v32 = vsel %vm7294_vm10, %v7290_v34, 1326507024  ;;  %v7386_v15 = vshll.u32 %v17619_v9, %v7377_v49 }
 0x3df   : > { %v7301_v36 = vsel %vm7293_vm0, %v7284_v45, %v7300_v51  ;;  %v7305_v26 = vsel %vm7293_vm0, %v7287_v55, %v7304_v32  ;;  %v7298_v63 = vsel %vm7292_vm8, %v7295_v24, %v7297_v48  ;;  %v7389_v50 = vshll.u32 %v17784_v25, %v7377_v49 }
 0x3e0   : > { %v7302_v43 = vsel %vm7292_vm8, %v7299_v44, %v7301_v36  ;;  %v7306_v54 = vsel %vm7292_vm8, %v7303_v59, %v7305_v26  ;;  %v7314_v10 = vmul.u32 %v15537_v21, %v7298_v63  ;;  %v7392_v27 = vshll.u32 %v17624_v58, %v7377_v49 }
 0x3e1   : > { %v15566_v4 = vmul.u32.u64.low %v15537_v21, %v7306_v54  ;;  %v15567_v1 = vmul.u32.u64.high %v15537_v21, %v7306_v54, %v15566_v4  ;;  %v15570_v18 = vmul.u32.u64.low %v15537_v21, %v7302_v43  ;;  %v15571_v17 = vmul.u32.u64.high %v15537_v21, %v7302_v43, %v15570_v18  ;;  %v15607_v54 = vld [vmem:[%s11892_s24 + $0x22] ss:$4 sm:$0xff] }
 0x3e2   : > { %vm7395_vm4 = vcmp.lt.s32.totalorder %v7376_v47, 1  ;;  %v7379_v52 = vshrl.u32 %v17617_v40, %v7378_v30  ;;  %v7381_v61 = vshrl.u32 %v17618_v31, %v7378_v30  ;;  %v7384_v41 = vshrl.u32 %v17619_v9, %v7378_v30  ;;  %11215 = vst [vmem:[%s11905_s26 + $0x240] ss:$8 sm:$0xf] %v15607_v54 }
 0x3e3   : > { %v7387_v11 = vshrl.u32 %v17784_v25, %v7378_v30  ;;  %vm7316_vm7 = vc.u32 %v15567_v1, %v15570_v18  ;;  %v7317_v7 = vadd.s32 1, %v15571_v17  ;;  %v7390_v21 = vshrl.u32 %v17624_v58, %v7378_v30  ;;  %11216 = vst [vmem:[%s11905_s26 + $0x240] ss:$8 sm:$0xf0] %v15607_v54 }
 0x3e4   : > { %vm7396_vm9 = vcmp.lt.s32.totalorder %v7376_v47, 2  ;;  %v7382_v12 = vor.u32 %v7381_v61, %v7380_v0  ;;  %v7385_v33 = vor.u32 %v7384_v41, %v7383_v60  ;;  %v7393_v16 = vshrl.u32 %v17607_v37, %v7378_v30  ;;  %v17785_v60 = vld [vmem:[#allocation11_spill] sm:$0xff] }
 0x3e5   : > { %v7388_v19 = vor.u32 %v7387_v11, %v7386_v15  ;;  %v7318_v39 = vsel %vm7316_vm7, %v7317_v7, %v15571_v17  ;;  %v7391_v5 = vor.u32 %v7390_v21, %v7389_v50  ;;  %vm7397_vm14 = vcmp.lt.s32.totalorder %v7376_v47, 3  ;;  %v17787_v21 = vld [vmem:[#allocation12_spill] sm:$0xff] }
 0x3e6   : > { %vm7398_vm12 = vcmp.lt.s32.totalorder %v7376_v47, 4  ;;  %v7319_v28 = vadd.s32 %v7318_v39, %v7314_v10  ;;  %v7394_v2 = vor.u32 %v7393_v16, %v7392_v27  ;;  %v7399_v35 = vsel %vm7395_vm4, %v7379_v52, %v7382_v12 }
 0x3e7   : > { %v7400_v20 = vsel %vm7398_vm12, %v7388_v19, 2102212464  ;;  %v7403_v55 = vsel %vm7395_vm4, %v7382_v12, %v7385_v33  ;;  %v7404_v34 = vsel %vm7398_vm12, %v7391_v5, 920167782  ;;  %v7407_v38 = vsel %vm7395_vm4, %v7385_v33, %v7388_v19 }
 0x3e8   : > { %v7401_v45 = vsel %vm7397_vm14, %v7385_v33, %v7400_v20  ;;  %v7320_v24 = vadd.s32 536870912, %v7319_v28  ;;  %v7405_v22 = vsel %vm7397_vm14, %v7388_v19, %v7404_v34  ;;  %v7408_v44 = vsel %vm7398_vm12, %v7394_v2, 1326507024 }
 0x3e9   : > { %v7474_v59 = vand.u32 8388607, %v7467_v23  ;;  %v7402_v48 = vsel %vm7396_vm9, %v7399_v35, %v7401_v45  ;;  %v7406_v51 = vsel %vm7396_vm9, %v7403_v55, %v7405_v22  ;;  %v7409_v32 = vsel %vm7397_vm14, %v7391_v5, %v7408_v44 }
 0x3ea   : > { %v7477_v36 = vadd.s32 1, %v11093_v3  ;;  %v7321_v26 = vshrl.u32 %v7320_v24, 30  ;;  %v7410_v49 = vsel %vm7396_vm9, %v7407_v38, %v7409_v32  ;;  %v7418_v47 = vmul.u32 %v15560_v14, %v7402_v48 }
 0x3eb   : > { %v15602_v63 = vmul.u32.u64.low %v15560_v14, %v7406_v51  ;;  %v15603_v43 = vmul.u32.u64.high %v15560_v14, %v7406_v51, %v15602_v63  ;;  %v15610_v4 = vmul.u32.u64.low %v15560_v14, %v7410_v49  ;;  %v15611_v17 = vmul.u32.u64.high %v15560_v14, %v7410_v49, %v15610_v4 }
 0x3ec   : > { %vm7478_vm3 = vcmp.gt.s32.totalorder %v7477_v36, 0  ;;  %v7322_v3 = vshll.u32 %v7321_v26, 30  ;;  %v7178_v15 = vrot.slane %v14620_v57, %v17785_v60  ;;  %v7475_v27 = vor.u32 8388608, %v7474_v59 }
 0x3ed   : > { %v7479_v30 = vsel %vm7478_vm3, %v7477_v36, 0  ;;  %v7421_v50 = vadd.s32 1, %v15603_v43  ;;  %vm7420_vm1 = vc.u32 %v15611_v17, %v15602_v63  ;;  %v7315_v14 = vadd.s32 %v15570_v18, %v15567_v1 }
 0x3ee   : > { %v7481_v0 = vand.u32 31, %v7479_v30  ;;  %v15620_v10 = vsub.s32 %v7319_v28, %v7322_v3  ;;  %v15631_v7 = vmul.f32 %v7178_v15, %v17779_v62  ;;  %v7182_v12 = vrot.slane %v14620_v57, %v17787_v21 }
 0x3ef   : > { %v7422_v41 = vsel %vm7420_vm1, %v7421_v50, %v15603_v43  ;;  %v7345_v19 = vsub.s32 4, %v7321_v26  ;;  %v15637_v39 = vshll.u32 %v7475_v27, 8  ;;  %v7480_v35 = vshrl.u32 %v7479_v30, 5 }
 0x3f0   : > { %v7482_v52 = vsub.s32 32, %v7481_v0  ;;  %v7325_v61 = vsub.s32 0, %v15620_v10  ;;  %v7423_v11 = vadd.s32 %v7422_v41, %v7418_v47  ;;  %17786 = vst [vmem:[#allocation24_spill] sm:$0xff] %v15631_v7  ;;  %v7484_v16 = vshll.u32 %v17617_v40, %v7481_v0 }
 0x3f1   : > { %v7487_v2 = vshll.u32 %v17618_v31, %v7481_v0  ;;  %v7493_v20 = vshll.u32 %v17784_v25, %v7481_v0  ;;  %v7571_v45 = vand.u32 2147483647, %v15631_v7  ;;  %v7490_v38 = vshll.u32 %v17619_v9, %v7481_v0 }
 0x3f2   : > { %v11086_v33 = vmin.u32 %v7325_v61, %v15620_v10  ;;  %v7424_v5 = vadd.s32 536870912, %v7423_v11  ;;  %v7485_v28 = vshrl.u32 %v17618_v31, %v7482_v52  ;;  %v7488_v1 = vshrl.u32 %v17619_v9, %v7482_v52 }
 0x3f3   : > { %v7491_v24 = vshrl.u32 %v17784_v25, %v7482_v52  ;;  %v7494_v22 = vshrl.u32 %v17624_v58, %v7482_v52  ;;  %v7346_v59 = vsel %vm7261_vm11, %v7345_v19, %v7321_v26  ;;  %v7483_v48 = vshrl.u32 %v17617_v40, %v7482_v52 }
 0x3f4   : > { %v7327_v18 = vclz %v11086_v33  ;;  %v7425_v34 = vshrl.u32 %v7424_v5, 30  ;;  %v7574_v51 = vand.u32 2139095040, %v15631_v7  ;;  %v7486_v53 = vor.u32 %v7485_v28, %v7484_v16 }
 0x3f5   : > { %v7489_v36 = vor.u32 %v7488_v1, %v7487_v2  ;;  %v7496_v49 = vshll.u32 %v17624_v58, %v7481_v0  ;;  %v7495_v43 = vor.u32 %v7494_v22, %v7493_v20  ;;  %v7497_v4 = vshrl.u32 %v17607_v37, %v7482_v52 }
 0x3f6   : > { %v11087_v44 = vadd.s32 4294967294, %v7327_v18  ;;  %v7426_v32 = vshll.u32 %v7425_v34, 30  ;;  %vm7499_vm2 = vcmp.lt.s32.totalorder %v7480_v35, 1  ;;  %v7492_v47 = vor.u32 %v7491_v24, %v7490_v38 }
 0x3f7   : > { %vm7502_vm6 = vcmp.lt.s32.totalorder %v7480_v35, 4  ;;  %vm7365_vm13 = vcmp.lt.s32.totalorder %v15523_v56, 0  ;;  %vm7501_vm8 = vcmp.lt.s32.totalorder %v7480_v35, 3  ;;  %vm7500_vm10 = vcmp.lt.s32.totalorder %v7480_v35, 2 }
 0x3f8   : > { %vm11088_vm5 = vcmp.lt.s32.totalorder %v11087_v44, 0  ;;  %v15659_v30 = vsub.s32 %v7423_v11, %v7426_v32  ;;  %v7504_v0 = vsel %vm7502_vm6, %v7492_v47, 2102212464  ;;  %v7507_v52 = vsel %vm7499_vm2, %v7486_v53, %v7489_v36 }
 0x3f9   : > { %v7330_v3 = vsel %vm11088_vm5, 0, %v11087_v44  ;;  %v7498_v11 = vor.u32 %v7497_v4, %v7496_v49  ;;  %v7508_v33 = vsel %vm7502_vm6, %v7495_v43, 920167782  ;;  %v7505_v16 = vsel %vm7501_vm8, %v7489_v36, %v7504_v0 }
 0x3fa   : > { %v7331_v26 = vsub.s32 32, %v7330_v3  ;;  %v7332_v15 = vshll.u32 %v15620_v10, %v7330_v3  ;;  %v7335_v50 = vsub.s32 4294967266, %v7330_v3  ;;  %v7429_v27 = vsub.s32 0, %v15659_v30 }
 0x3fb   : > { %v7503_v10 = vsel %vm7499_vm2, %v7483_v48, %v7486_v53  ;;  %v7509_v5 = vsel %vm7501_vm8, %v7492_v47, %v7508_v33  ;;  %v15673_v1 = vsel %vm15646_vm15, 0, %v7346_v59  ;;  %v7419_v18 = vadd.s32 %v15602_v63, %v15611_v17 }
 0x3fc   : > { %v7333_v61 = vshrl.u32 %v7315_v14, %v7331_v26  ;;  %v7336_v41 = vadd.s32 127, %v7335_v50  ;;  %v11090_v19 = vmin.u32 %v7429_v27, %v15659_v30  ;;  %v7510_v14 = vsel %vm7500_vm10, %v7507_v52, %v7509_v5 }
 0x3fd   : > { %v7449_v38 = vsub.s32 4, %v7425_v34  ;;  %v7511_v24 = vsel %vm7499_vm2, %v7489_v36, %v7492_v47  ;;  %v7506_v48 = vsel %vm7500_vm10, %v7503_v10, %v7505_v16  ;;  %v7512_v32 = vsel %vm7502_vm6, %v7498_v11, 1326507024 }
 0x3fe   : > { %v7334_v28 = vor.u32 %v7333_v61, %v7332_v15  ;;  %v7337_v2 = vshll.u32 %v7336_v41, 23  ;;  %v7431_v20 = vclz %v11090_v19  ;;  %v7513_v49 = vsel %vm7501_vm8, %v7495_v43, %v7512_v32 }
 0x3ff   : > { %v15683_v59 = vmul.u32.u64.low %v15637_v39, %v7510_v14  ;;  %v15684_v4 = vmul.u32.u64.high %v15637_v39, %v7510_v14, %v15683_v59  ;;  %v7352_v63 = vadd.s32 3, %v15673_v1  ;;  %v7514_v17 = vsel %vm7500_vm10, %v7511_v24, %v7513_v49 }
 0x400   : > { %v7338_v22 = vor.u32 4788187, %v7337_v2  ;;  %v7341_v44 = vcvt.s32.f32 %v7334_v28  ;;  %v11091_v53 = vadd.s32 4294967294, %v7431_v20  ;;  %v7575_v26 = vshrl.u32 %v7574_v51, 23 }
 0x401   : > { %v7450_v36 = vsel %vm7365_vm13, %v7449_v38, %v7425_v34  ;;  %v15691_v47 = vmul.u32.u64.low %v15637_v39, %v7514_v17  ;;  %v15692_v15 = vmul.u32.u64.high %v15637_v39, %v7514_v17, %v15691_v47  ;;  %v7522_v27 = vmul.u32 %v15637_v39, %v7506_v48 }
 0x402   : > { %v7339_v3 = vand.u32 2147483647, %v7338_v22  ;;  %vm11092_vm0 = vcmp.lt.s32.totalorder %v11091_v53, 0  ;;  %v11097_v0 = vadd.s32 4294967169, %v7575_v26  ;;  %v7525_v35 = vadd.s32 1, %v15684_v4 }
 0x403   : > { %v7434_v43 = vsel %vm11092_vm0, 0, %v11091_v53  ;;  %vm15699_vm4 = vcmp.le.f32.partialorder %v7363_v42, 0.7853982  ;;  %v7578_v11 = vand.u32 8388607, %v7571_v45  ;;  %vm7524_vm7 = vc.u32 %v15692_v15, %v15683_v59 }
 0x404   : > { %v7342_v50 = vmul.f32 %v7341_v44, %v7339_v3  ;;  %v7435_v52 = vsub.s32 32, %v7434_v43  ;;  %v7436_v61 = vshll.u32 %v15659_v30, %v7434_v43  ;;  %v7439_v41 = vsub.s32 4294967266, %v7434_v43 }
 0x405   : > { %v7581_v33 = vadd.s32 1, %v11097_v0  ;;  %v15707_v10 = vsel %vm15699_vm4, 0, %v7450_v36  ;;  %v15712_v16 = vand.u32 3, %v7352_v63  ;;  %v7526_v42 = vsel %vm7524_vm7, %v7525_v35, %v15684_v4 }
 0x406   : > { %v7343_v51 = vxor.u32 2147483648, %v7342_v50  ;;  %v7437_v19 = vshrl.u32 %v7419_v18, %v7435_v52  ;;  %v7440_v39 = vadd.s32 127, %v7439_v41  ;;  %v7527_v14 = vadd.s32 %v7526_v42, %v7522_v27 }
 0x407   : > { %vm7582_vm9 = vcmp.gt.s32.totalorder %v7581_v33, 0  ;;  %v7456_v18 = vadd.s32 3, %v15707_v10  ;;  %v7579_v20 = vor.u32 8388608, %v7578_v11  ;;  %v15723_v32 = vmul.f32 %v7182_v12, %v17779_v62 }
 0x408   : > { %v7344_v30 = vsel %vm7261_vm11, %v7343_v51, %v7342_v50  ;;  %v7438_v28 = vor.u32 %v7437_v19, %v7436_v61  ;;  %v7441_v2 = vshll.u32 %v7440_v39, 23  ;;  %v7583_v38 = vsel %vm7582_vm9, %v7581_v33, 0 }
 0x409   : > { %v7347_v5 = vsel %vm15646_vm15, %v15510_v13, %v7344_v30  ;;  %v7528_v44 = vadd.s32 536870912, %v7527_v14  ;;  %v7585_v48 = vand.u32 31, %v7583_v38  ;;  %17792 = vst [vmem:[#allocation23_spill] sm:$0xff] %v15723_v32  ;;  %vm7469_vm14 = vcmp.lt.s32.totalorder %v15531_v46, 0 }
 0x40a   : > { %11601 = vcosq.f32 %v7347_v5  ;;  %v7442_v24 = vor.u32 4788187, %v7441_v2  ;;  %v7445_v22 = vcvt.s32.f32 %v7438_v28  ;;  %vm7354_vm12 = vcmp.lt.s32.totalorder %v15712_v16, 2 }
 0x40b   : > { %11603 = vsinq.f32 %v7347_v5  ;;  %v7529_v53 = vshrl.u32 %v7528_v44, 30  ;;  %vm7355_vm3 = vcmp.eq.s32.totalorder %v15712_v16, 0  ;;  %vm7358_vm1 = vcmp.eq.s32.totalorder %v15712_v16, 2 }
 0x40c   : > { %v7443_v55 = vand.u32 2147483647, %v7442_v24  ;;  %v15729_v49 = vand.u32 3, %v7456_v18  ;;  %v7586_v4 = vsub.s32 32, %v7585_v48  ;;  %vm7351_vm11 = vweird.f32 %v15510_v13 }
 0x40d   : > { %v15733_v63 = vadd.s32 %v15683_v59, %v15692_v15  ;;  %v7530_v12 = vshll.u32 %v7529_v53, 30  ;;  %v15735_v17 = vshll.u32 %v7579_v20, 8  ;;  %v7553_v26 = vsub.s32 4, %v7529_v53 }
 0x40e   : > { %v7446_v3 = vmul.f32 %v7445_v22, %v7443_v55  ;;  %v15737_v36 = vshrl.u32 %v7583_v38, 5  ;;  %v7588_v47 = vshll.u32 %v17617_v40, %v7585_v48  ;;  %v7678_v50 = vand.u32 2139095040, %v15723_v32 }
 0x40f   : > { %v15741_v27 = vsub.s32 %v7527_v14, %v7530_v12  ;;  %v7589_v0 = vshrl.u32 %v17618_v31, %v7586_v4  ;;  %v7591_v52 = vshll.u32 %v17618_v31, %v7585_v48  ;;  %v7592_v59 = vshrl.u32 %v17619_v9, %v7586_v4 }
 0x410   : > { %v7447_v43 = vxor.u32 2147483648, %v7446_v3  ;;  %v7594_v15 = vshll.u32 %v17619_v9, %v7585_v48  ;;  %v7597_v61 = vshll.u32 %v17784_v25, %v7585_v48  ;;  %v7598_v41 = vshrl.u32 %v17624_v58, %v7586_v4 }
 0x411   : > { %v7533_v51 = vsub.s32 0, %v15741_v27  ;;  %v7587_v11 = vshrl.u32 %v17617_v40, %v7586_v4  ;;  %v7595_v33 = vshrl.u32 %v17784_v25, %v7586_v4  ;;  %v7554_v30 = vsel %vm7469_vm14, %v7553_v26, %v7529_v53 }
 0x412   : > { %v7448_v35 = vsel %vm7365_vm13, %v7447_v43, %v7446_v3  ;;  %v7600_v42 = vshll.u32 %v17624_v58, %v7585_v48  ;;  %v7601_v5 = vshrl.u32 %v17607_v37, %v7586_v4  ;;  %v7590_v18 = vor.u32 %v7589_v0, %v7588_v47 }
 0x413   : > { %v7451_v39 = vsel %vm15699_vm4, %v15523_v56, %v7448_v35  ;;  %v11094_v14 = vmin.u32 %v7533_v51, %v15741_v27  ;;  %v7593_v34 = vor.u32 %v7592_v59, %v7591_v52  ;;  %v7599_v38 = vor.u32 %v7598_v41, %v7597_v61 }
 0x414   : > { %v15754_v19 = vpop.eup %11601  ;;  %11605 = vcosq.f32 %v7451_v39  ;;  %vm7462_vm15 = vcmp.eq.s32.totalorder %v15729_v49, 2  ;;  %vm15776_vm5 = vcmp.le.f32.partialorder %v7467_v23, 0.7853982  ;;  %v7596_v48 = vor.u32 %v7595_v33, %v7594_v15 }
 0x415   : > { %v15763_v28 = vpop.eup %11603  ;;  %v17484_v2 = vxor.u32 2147483648, %v15754_v19  ;;  %11607 = vsinq.f32 %v7451_v39  ;;  %v7535_v44 = vclz %v11094_v14  ;;  %vm7603_vm2 = vcmp.lt.s32.totalorder %v15737_v36, 1 }
 0x416   : > { %v17485_v20 = vxor.u32 2147483648, %v15763_v28  ;;  %vm7459_vm6 = vcmp.eq.s32.totalorder %v15729_v49, 0  ;;  %v7602_v53 = vor.u32 %v7601_v5, %v7600_v42  ;;  %vm7605_vm13 = vcmp.lt.s32.totalorder %v15737_v36, 3 }
 0x417   : > { %v7360_v24 = vsel %vm7358_vm1, %v17484_v2, %v15763_v28  ;;  %vm7606_vm8 = vcmp.lt.s32.totalorder %v15737_v36, 4  ;;  %vm7458_vm10 = vcmp.lt.s32.totalorder %v15729_v49, 2  ;;  %v11095_v4 = vadd.s32 4294967294, %v7535_v44 }
 0x418   : > { %v7357_v55 = vsel %vm7355_vm3, %v15754_v19, %v17485_v20  ;;  %vm7604_vm0 = vcmp.lt.s32.totalorder %v15737_v36, 2  ;;  %v7608_v3 = vsel %vm7606_vm8, %v7596_v48, 2102212464  ;;  %vm7455_vm4 = vweird.f32 %v15523_v56 }
 0x419   : > { %v7361_v23 = vsel %vm7354_vm12, %v7357_v55, %v7360_v24  ;;  %v7607_v26 = vsel %vm7603_vm2, %v7587_v11, %v7590_v18  ;;  %v7611_v16 = vsel %vm7603_vm2, %v7590_v18, %v7593_v34  ;;  %v7612_v47 = vsel %vm7606_vm8, %v7599_v38, 920167782 }
 0x41a   : > { %v7362_v12 = vsel %vm7351_vm11, nan, %v7361_v23  ;;  %vm11096_vm7 = vcmp.lt.s32.totalorder %v11095_v4, 0  ;;  %v7609_v0 = vsel %vm7605_vm13, %v7593_v34, %v7608_v3  ;;  %v7613_v52 = vsel %vm7605_vm13, %v7596_v48, %v7612_v47 }
 0x41b   : > { %v8939_v43 = vrot.slane %v7362_v12, 2  ;;  %v7538_v59 = vsel %vm11096_vm7, 0, %v11095_v4  ;;  %v7614_v15 = vsel %vm7604_vm0, %v7611_v16, %v7613_v52  ;;  %v7615_v61 = vsel %vm7603_vm2, %v7593_v34, %v7596_v48  ;;  %v17795_v16 = vld [vmem:[#allocation13_spill] sm:$0xff] }
 0x41c   : > { %v7616_v41 = vsel %vm7606_vm8, %v7602_v53, 1326507024  ;;  %v7539_v35 = vsub.s32 32, %v7538_v59  ;;  %v7540_v51 = vshll.u32 %v15741_v27, %v7538_v59  ;;  %v7543_v11 = vsub.s32 4294967266, %v7538_v59 }
 0x41d   : > { %8971 = vst [vmem:[%s11905_s26 + $0x180] ss:$-124 sps:$4 sm:$0xc7] %v8939_v43   ;;  %v7617_v33 = vsel %vm7605_vm13, %v7599_v38, %v7616_v41  ;;  %v7610_v39 = vsel %vm7604_vm0, %v7607_v26, %v7609_v0  ;;  %v15823_v5 = vmul.u32.u64.low %v15735_v17, %v7614_v15  ;;  %v15824_v14 = vmul.u32.u64.high %v15735_v17, %v7614_v15, %v15823_v5 }
 0x41e   : > { %v7618_v42 = vsel %vm7604_vm0, %v7615_v61, %v7617_v33  ;;  %v15827_v18 = vpop.eup %11605  ;;  %v7541_v34 = vshrl.u32 %v15733_v63, %v7539_v35  ;;  %v7544_v27 = vadd.s32 127, %v7543_v11  ;;  %v15839_v36 = vsel %vm15776_vm5, 0, %v7554_v30 }
 0x41f   : > { %v15831_v24 = vmul.u32.u64.low %v15735_v17, %v7618_v42  ;;  %v15832_v44 = vmul.u32.u64.high %v15735_v17, %v7618_v42, %v15831_v24  ;;  %v15834_v38 = vpop.eup %11607  ;;  %v17480_v48 = vxor.u32 2147483648, %v15827_v18  ;;  %v17487_v55 = vand.u32 2147483647, %v15723_v32 }
 0x420   : > { %v7679_v53 = vshrl.u32 %v7678_v50, 23  ;;  %v17481_v63 = vxor.u32 2147483648, %v15834_v38  ;;  %v7542_v23 = vor.u32 %v7541_v34, %v7540_v51  ;;  %v7545_v4 = vshll.u32 %v7544_v27, 23 }
 0x421   : > { %v7626_v3 = vmul.u32 %v15735_v17, %v7610_v39  ;;  %v7464_v12 = vsel %vm7462_vm15, %v17480_v48, %v15834_v38  ;;  %v7629_v30 = vadd.s32 1, %v15824_v14  ;;  %v7186_v47 = vrot.slane %v14620_v57, %v17795_v16 }
 0x422   : > { %v11101_v26 = vadd.s32 4294967169, %v7679_v53  ;;  %v7461_v50 = vsel %vm7459_vm6, %v15827_v18, %v17481_v63  ;;  %v7546_v43 = vor.u32 4788187, %v7545_v4  ;;  %v7549_v17 = vcvt.s32.f32 %v7542_v23 }
 0x423   : > { %v7465_v0 = vsel %vm7458_vm10, %v7461_v50, %v7464_v12  ;;  %vm7628_vm9 = vc.u32 %v15832_v44, %v15823_v5  ;;  %v7682_v52 = vand.u32 8388607, %v17487_v55  ;;  %v7560_v41 = vadd.s32 3, %v15839_v36 }
 0x424   : > { %v7685_v59 = vadd.s32 1, %v11101_v26  ;;  %v7466_v15 = vsel %vm7455_vm4, nan, %v7465_v0  ;;  %v7547_v61 = vand.u32 2147483647, %v7546_v43  ;;  %v7630_v35 = vsel %vm7628_vm9, %v7629_v30, %v15824_v14 }
 0x425   : > { %v8940_v51 = vrot.slane %v7466_v15, 2  ;;  %v7631_v11 = vadd.s32 %v7630_v35, %v7626_v3  ;;  %v15870_v49 = vmul.f32 %v7186_v47, %v17779_v62  ;;  %v15873_v24 = vand.u32 3, %v7560_v41 }
 0x426   : > { %vm7686_vm12 = vcmp.gt.s32.totalorder %v7685_v59, 0  ;;  %v7550_v33 = vmul.f32 %v7549_v17, %v7547_v61  ;;  %v7683_v23 = vor.u32 8388608, %v7682_v52  ;;  %vm7559_vm2 = vweird.f32 %v15531_v46 }
 0x427   : > { %17796 = vst [vmem:[#allocation22_spill] sm:$0xff] %v15870_v49  ;;  %v7687_v39 = vsel %vm7686_vm12, %v7685_v59, 0  ;;  %8972 = vst [vmem:[%s11905_s26 + $0x188] ss:$-124 sps:$4 sm:$0xc7] %v8940_v51   ;;  %v7632_v42 = vadd.s32 536870912, %v7631_v11 }
 0x428   : > { %v7689_v34 = vand.u32 31, %v7687_v39  ;;  %v7551_v27 = vxor.u32 2147483648, %v7550_v33  ;;  %v7782_v14 = vand.u32 2139095040, %v15870_v49  ;;  %v7688_v12 = vshrl.u32 %v7687_v39, 5 }
 0x429   : > { %v15875_v53 = vshrl.u32 %v7632_v42, 30  ;;  %vm7563_vm3 = vcmp.eq.s32.totalorder %v15873_v24, 0  ;;  %vm7562_vm1 = vcmp.lt.s32.totalorder %v15873_v24, 2  ;;  %vm7573_vm8 = vcmp.lt.s32.totalorder %v15631_v7, 0 }
 0x42a   : > { %v7690_v4 = vsub.s32 32, %v7689_v34  ;;  %v7552_v3 = vsel %vm7469_vm14, %v7551_v27, %v7550_v33  ;;  %v7692_v30 = vshll.u32 %v17617_v40, %v7689_v34  ;;  %v7695_v26 = vshll.u32 %v17618_v31, %v7689_v34 }
 0x42b   : > { %v7555_v47 = vsel %vm15776_vm5, %v15531_v46, %v7552_v3  ;;  %v7634_v50 = vshll.u32 %v15875_v53, 30  ;;  %v7698_v43 = vshll.u32 %v17619_v9, %v7689_v34  ;;  %v7701_v17 = vshll.u32 %v17784_v25, %v7689_v34 }
 0x42c   : > { %11609 = vcosq.f32 %v7555_v47  ;;  %v7693_v0 = vshrl.u32 %v17618_v31, %v7690_v4  ;;  %v7696_v52 = vshrl.u32 %v17619_v9, %v7690_v4  ;;  %v7699_v59 = vshrl.u32 %v17784_v25, %v7690_v4 }
 0x42d   : > { %11611 = vsinq.f32 %v7555_v47  ;;  %v15891_v15 = vsub.s32 %v7631_v11, %v7634_v50  ;;  %v7702_v61 = vshrl.u32 %v17624_v58, %v7690_v4  ;;  %v7704_v22 = vshll.u32 %v17624_v58, %v7689_v34  ;;  %v17797_v34 = vld [vmem:[#allocation14_spill] sm:$0xff] }
 0x42e   : > { %vm7566_vm14 = vcmp.eq.s32.totalorder %v15873_v24, 2  ;;  %v7691_v41 = vshrl.u32 %v17617_v40, %v7690_v4  ;;  %v7694_v35 = vor.u32 %v7693_v0, %v7692_v30  ;;  %v7697_v51 = vor.u32 %v7696_v52, %v7695_v26 }
 0x42f   : > { %v7637_v33 = vsub.s32 0, %v15891_v15  ;;  %v7700_v39 = vor.u32 %v7699_v59, %v7698_v43  ;;  %v7703_v42 = vor.u32 %v7702_v61, %v7701_v17  ;;  %v7705_v27 = vshrl.u32 %v17607_v37, %v7690_v4 }
 0x430   : > { %vm7707_vm15 = vcmp.lt.s32.totalorder %v7688_v12, 1  ;;  %vm7710_vm5 = vcmp.lt.s32.totalorder %v7688_v12, 4  ;;  %v7783_v11 = vshrl.u32 %v7782_v14, 23  ;;  %v7190_v3 = vrot.slane %v14620_v57, %v17797_v34 }
 0x431   : > { %v11098_v30 = vmin.u32 %v7637_v33, %v15891_v15  ;;  %v7706_v26 = vor.u32 %v7705_v27, %v7704_v22  ;;  %vm7709_vm6 = vcmp.lt.s32.totalorder %v7688_v12, 3  ;;  %v7723_v47 = vshll.u32 %v7683_v23, 8 }
 0x432   : > { %vm7708_vm13 = vcmp.lt.s32.totalorder %v7688_v12, 2  ;;  %v7712_v50 = vsel %vm7710_vm5, %v7700_v39, 2102212464  ;;  %v7715_v4 = vsel %vm7707_vm15, %v7694_v35, %v7697_v51  ;;  %v7716_v43 = vsel %vm7710_vm5, %v7703_v42, 920167782 }
 0x433   : > { %v7627_v14 = vadd.s32 %v15823_v5, %v15832_v44  ;;  %v7639_v17 = vclz %v11098_v30  ;;  %v7711_v0 = vsel %vm7707_vm15, %v7691_v41, %v7694_v35  ;;  %v7719_v52 = vsel %vm7707_vm15, %v7697_v51, %v7700_v39 }
 0x434   : > { %v7713_v59 = vsel %vm7709_vm6, %v7697_v51, %v7712_v50  ;;  %v7717_v23 = vsel %vm7709_vm6, %v7700_v39, %v7716_v43  ;;  %v7720_v61 = vsel %vm7710_vm5, %v7706_v26, 1326507024  ;;  %v11105_v22 = vadd.s32 4294967169, %v7783_v11 }
 0x435   : > { %v11099_v33 = vadd.s32 4294967294, %v7639_v17  ;;  %v7718_v27 = vsel %vm7708_vm13, %v7715_v4, %v7717_v23  ;;  %v7721_v48 = vsel %vm7709_vm6, %v7703_v42, %v7720_v61  ;;  %v17486_v63 = vand.u32 2147483647, %v15870_v49 }
 0x436   : > { %v15919_v5 = vpop.eup %11609  ;;  %v7714_v44 = vsel %vm7708_vm13, %v7711_v0, %v7713_v59  ;;  %v7722_v41 = vsel %vm7708_vm13, %v7719_v52, %v7721_v48  ;;  %v15923_v35 = vmul.u32.u64.low %v7723_v47, %v7718_v27  ;;  %v15924_v51 = vmul.u32.u64.high %v7723_v47, %v7718_v27, %v15923_v35 }
 0x437   : > { %v15927_v39 = vpop.eup %11611  ;;  %v17482_v11 = vxor.u32 2147483648, %v15919_v5  ;;  %vm11100_vm10 = vcmp.lt.s32.totalorder %v11099_v33, 0  ;;  %v15930_v30 = vmul.u32.u64.low %v7723_v47, %v7722_v41  ;;  %v15931_v26 = vmul.u32.u64.high %v7723_v47, %v7722_v41, %v15930_v30 }
 0x438   : > { %v17483_v42 = vxor.u32 2147483648, %v15927_v39  ;;  %v7642_v50 = vsel %vm11100_vm10, 0, %v11099_v33  ;;  %v7657_v4 = vsub.s32 4, %v15875_v53  ;;  %v7789_v43 = vadd.s32 1, %v11105_v22 }
 0x439   : > { %v7568_v48 = vsel %vm7566_vm14, %v17482_v11, %v15927_v39  ;;  %v7643_v12 = vsub.s32 32, %v7642_v50  ;;  %v7644_v17 = vshll.u32 %v15891_v15, %v7642_v50  ;;  %v7647_v0 = vsub.s32 4294967266, %v7642_v50 }
 0x43a   : > { %v7565_v52 = vsel %vm7563_vm3, %v15919_v5, %v17483_v42  ;;  %v7730_v59 = vmul.u32 %v7723_v47, %v7714_v44  ;;  %v7733_v23 = vadd.s32 1, %v15924_v51  ;;  %vm7790_vm0 = vcmp.gt.s32.totalorder %v7789_v43, 0 }
 0x43b   : > { %v7569_v61 = vsel %vm7562_vm1, %v7565_v52, %v7568_v48  ;;  %v7645_v22 = vshrl.u32 %v7627_v14, %v7643_v12  ;;  %v7648_v33 = vadd.s32 127, %v7647_v0  ;;  %v7786_v15 = vand.u32 8388607, %v17486_v63 }
 0x43c   : > { %v7570_v27 = vsel %vm7559_vm2, nan, %v7569_v61  ;;  %v7658_v41 = vsel %vm7573_vm8, %v7657_v4, %v15875_v53  ;;  %vm7732_vm7 = vc.u32 %v15931_v26, %v15923_v35  ;;  %v7791_v47 = vsel %vm7790_vm0, %v7789_v43, 0 }
 0x43d   : > { %v8941_v44 = vrot.slane %v7570_v27, 2  ;;  %v7646_v24 = vor.u32 %v7645_v22, %v7644_v17  ;;  %v7649_v30 = vshll.u32 %v7648_v33, 23  ;;  %v7734_v14 = vsel %vm7732_vm7, %v7733_v23, %v15924_v51 }
 0x43e   : > { %vm15961_vm9 = vcmp.le.f32.partialorder %v7571_v45, 0.7853982  ;;  %v7735_v48 = vadd.s32 %v7734_v14, %v7730_v59  ;;  %v7793_v12 = vand.u32 31, %v7791_v47  ;;  %v15966_v0 = vmul.f32 %v7190_v3, %v17779_v62 }
 0x43f   : > { %8973 = vst [vmem:[%s11905_s26 + $0x190] ss:$-124 sps:$4 sm:$0xc7] %v8941_v44   ;;  %v7650_v53 = vor.u32 4788187, %v7649_v30  ;;  %v7653_v4 = vcvt.s32.f32 %v7646_v24  ;;  %v15971_v43 = vsel %vm15961_vm9, 0, %v7658_v41  ;;  %vm7663_vm15 = vweird.f32 %v15631_v7 }
 0x440   : > { %17800 = vst [vmem:[#allocation16_spill] sm:$0xff] %v15966_v0  ;;  %v7787_v17 = vor.u32 8388608, %v7786_v15  ;;  %v7736_v51 = vadd.s32 536870912, %v7735_v48  ;;  %v7792_v52 = vshrl.u32 %v7791_v47, 5  ;;  %v7794_v23 = vsub.s32 32, %v7793_v12 }
 0x441   : > { %v7796_v45 = vshll.u32 %v17617_v40, %v7793_v12  ;;  %v7651_v61 = vand.u32 2147483647, %v7650_v53  ;;  %v7799_v59 = vshll.u32 %v17618_v31, %v7793_v12  ;;  %v7802_v22 = vshll.u32 %v17619_v9, %v7793_v12 }
 0x442   : > { %v7805_v3 = vshll.u32 %v17784_v25, %v7793_v12  ;;  %v15977_v33 = vshrl.u32 %v7736_v51, 30  ;;  %v7797_v27 = vshrl.u32 %v17618_v31, %v7794_v23  ;;  %v7800_v41 = vshrl.u32 %v17619_v9, %v7794_v23 }
 0x443   : > { %v7808_v15 = vshll.u32 %v17624_v58, %v7793_v12  ;;  %v7654_v44 = vmul.f32 %v7653_v4, %v7651_v61  ;;  %v7803_v47 = vshrl.u32 %v17784_v25, %v7794_v23  ;;  %v7806_v24 = vshrl.u32 %v17624_v58, %v7794_v23 }
 0x444   : > { %v7809_v30 = vshrl.u32 %v17607_v37, %v7794_v23  ;;  %v7664_v14 = vadd.s32 3, %v15971_v43  ;;  %v7738_v53 = vshll.u32 %v15977_v33, 30  ;;  %v15987_v11 = vshll.u32 %v7787_v17, 8 }
 0x445   : > { %v7655_v51 = vxor.u32 2147483648, %v7654_v44  ;;  %v7795_v42 = vshrl.u32 %v17617_v40, %v7794_v23  ;;  %v7807_v2 = vor.u32 %v7806_v24, %v7805_v3  ;;  %v7886_v20 = vand.u32 2139095040, %v15966_v0 }
 0x446   : > { %v15991_v12 = vsub.s32 %v7735_v48, %v7738_v53  ;;  %v7798_v4 = vor.u32 %v7797_v27, %v7796_v45  ;;  %v7801_v61 = vor.u32 %v7800_v41, %v7799_v59  ;;  %v7804_v63 = vor.u32 %v7803_v47, %v7802_v22 }
 0x447   : > { %v7656_v55 = vsel %vm7573_vm8, %v7655_v51, %v7654_v44  ;;  %v7810_v46 = vor.u32 %v7809_v30, %v7808_v15  ;;  %vm7811_vm12 = vcmp.lt.s32.totalorder %v7792_v52, 1  ;;  %vm7814_vm14 = vcmp.lt.s32.totalorder %v7792_v52, 4 }
 0x448   : > { %v7659_v17 = vsel %vm15961_vm9, %v15631_v7, %v7656_v55  ;;  %v7741_v23 = vsub.s32 0, %v15991_v12  ;;  %vm7812_vm3 = vcmp.lt.s32.totalorder %v7792_v52, 2  ;;  %vm7813_vm1 = vcmp.lt.s32.totalorder %v7792_v52, 3 }
 0x449   : > { %11613 = vcosq.f32 %v7659_v17  ;;  %v7815_v48 = vsel %vm7811_vm12, %v7795_v42, %v7798_v4  ;;  %v7816_v3 = vsel %vm7814_vm14, %v7804_v63, 2102212464  ;;  %v7820_v45 = vsel %vm7814_vm14, %v7807_v2, 920167782 }
 0x44a   : > { %11615 = vsinq.f32 %v7659_v17  ;;  %v11102_v59 = vmin.u32 %v7741_v23, %v15991_v12  ;;  %v7817_v22 = vsel %vm7813_vm1, %v7801_v61, %v7816_v3  ;;  %v7819_v27 = vsel %vm7811_vm12, %v7798_v4, %v7801_v61 }
 0x44b   : > { %v7821_v41 = vsel %vm7813_vm1, %v7804_v63, %v7820_v45  ;;  %v7823_v15 = vsel %vm7811_vm12, %v7801_v61, %v7804_v63  ;;  %v7824_v44 = vsel %vm7814_vm14, %v7810_v46, 1326507024  ;;  %v7665_v50 = vand.u32 3, %v7664_v14 }
 0x44c   : > { %v7743_v55 = vclz %v11102_v59  ;;  %v7818_v47 = vsel %vm7812_vm3, %v7815_v48, %v7817_v22  ;;  %v7822_v24 = vsel %vm7812_vm3, %v7819_v27, %v7821_v41  ;;  %v7825_v42 = vsel %vm7813_vm1, %v7807_v2, %v7824_v44 }
 0x44d   : > { %v7887_v30 = vshrl.u32 %v7886_v20, 23  ;;  %v7826_v51 = vsel %vm7812_vm3, %v7823_v15, %v7825_v42  ;;  %v16007_v17 = vmul.u32.u64.low %v15987_v11, %v7822_v24  ;;  %v16008_v23 = vmul.u32.u64.high %v15987_v11, %v7822_v24, %v16007_v17 }
 0x44e   : > { %v11103_v53 = vadd.s32 4294967294, %v7743_v55  ;;  %v16013_v46 = vmul.u32.u64.low %v15987_v11, %v7826_v51  ;;  %v16014_v63 = vmul.u32.u64.high %v15987_v11, %v7826_v51, %v16013_v46  ;;  %vm7667_vm5 = vcmp.eq.s32.totalorder %v7665_v50, 0 }
 0x44f   : > { %v11109_v14 = vadd.s32 4294967169, %v7887_v30  ;;  %vm7677_vm6 = vcmp.lt.s32.totalorder %v15723_v32, 0  ;;  %v7731_v2 = vadd.s32 %v15923_v35, %v15931_v26  ;;  %v7834_v52 = vmul.u32 %v15987_v11, %v7818_v47 }
 0x450   : > { %vm11104_vm13 = vcmp.lt.s32.totalorder %v11103_v53, 0  ;;  %v17491_v4 = vand.u32 2147483647, %v15966_v0  ;;  %v7837_v59 = vadd.s32 1, %v16008_v23  ;;  %vm7670_vm8 = vcmp.eq.s32.totalorder %v7665_v50, 2 }
 0x451   : > { %v7746_v20 = vsel %vm11104_vm13, 0, %v11103_v53  ;;  %v7893_v61 = vadd.s32 1, %v11109_v14  ;;  %v7761_v27 = vsub.s32 4, %v15977_v33  ;;  %vm7836_vm10 = vc.u32 %v16014_v63, %v16007_v17 }
 0x452   : > { %v7747_v48 = vsub.s32 32, %v7746_v20  ;;  %v7748_v3 = vshll.u32 %v15991_v12, %v7746_v20  ;;  %v7751_v45 = vsub.s32 4294967266, %v7746_v20  ;;  %v7838_v12 = vsel %vm7836_vm10, %v7837_v59, %v16008_v23 }
 0x453   : > { %v16023_v22 = vpop.eup %11613  ;;  %vm7894_vm0 = vcmp.gt.s32.totalorder %v7893_v61, 0  ;;  %vm7666_vm7 = vcmp.lt.s32.totalorder %v7665_v50, 2  ;;  %v7839_v44 = vadd.s32 %v7838_v12, %v7834_v52  ;;  %v7890_v30 = vand.u32 8388607, %v17491_v4 }
 0x454   : > { %17801 = vst [vmem:[#allocation27_spill] sm:$0xff] %v16023_v22  ;;  %v16028_v35 = vpop.eup %11615  ;;  %v17489_v11 = vxor.u32 2147483648, %v16023_v22  ;;  %v7749_v26 = vshrl.u32 %v7731_v2, %v7747_v48  ;;  %v7752_v41 = vadd.s32 127, %v7751_v45  ;;  %v7895_v55 = vsel %vm7894_vm0, %v7893_v61, 0 }
 0x455   : > { %v17490_v15 = vxor.u32 2147483648, %v16028_v35  ;;  %v7762_v51 = vsel %vm7677_vm6, %v7761_v27, %v15977_v33  ;;  %v7840_v23 = vadd.s32 536870912, %v7839_v44  ;;  %v7897_v46 = vand.u32 31, %v7895_v55 }
 0x456   : > { %v7672_v47 = vsel %vm7670_vm8, %v17489_v11, %v16028_v35  ;;  %v7750_v24 = vor.u32 %v7749_v26, %v7748_v3  ;;  %v7753_v42 = vshll.u32 %v7752_v41, 23  ;;  %v17802_v61 = vand.u32 2147483647, %v15723_v32 }
 0x457   : > { %v7669_v53 = vsel %vm7667_vm5, %v16023_v22, %v17490_v15  ;;  %v16053_v50 = vshrl.u32 %v7840_v23, 30  ;;  %v7898_v3 = vsub.s32 32, %v7897_v46  ;;  %v7891_v27 = vor.u32 8388608, %v7890_v30 }
 0x458   : > { %v7673_v14 = vsel %vm7666_vm7, %v7669_v53, %v7672_v47  ;;  %v7754_v2 = vor.u32 4788187, %v7753_v42  ;;  %v7757_v20 = vcvt.s32.f32 %v7750_v24  ;;  %vm16049_vm9 = vcmp.le.f32.partialorder %v17802_v61, 0.7853982 }
 0x459   : > { %v7674_v52 = vsel %vm7663_vm15, nan, %v7673_v14  ;;  %v16057_v59 = vsel %vm16049_vm9, 0, %v7762_v51  ;;  %v7842_v26 = vshll.u32 %v16053_v50, 30  ;;  %v7896_v41 = vshrl.u32 %v7895_v55, 5 }
 0x45a   : > { %v8942_v45 = vrot.slane %v7674_v52, 2  ;;  %v7755_v33 = vand.u32 2147483647, %v7754_v2  ;;  %v7900_v12 = vshll.u32 %v17617_v40, %v7897_v46  ;;  %v7901_v47 = vshrl.u32 %v17618_v31, %v7898_v3 }
 0x45b   : > { %v7903_v42 = vshll.u32 %v17618_v31, %v7897_v46  ;;  %v7904_v53 = vshrl.u32 %v17619_v9, %v7898_v3  ;;  %v7909_v23 = vshll.u32 %v17784_v25, %v7897_v46  ;;  %v16066_v14 = vsub.s32 %v7839_v44, %v7842_v26 }
 0x45c   : > { %8974 = vst [vmem:[%s11905_s26 + $0x198] ss:$-124 sps:$4 sm:$0xc7] %v8942_v45   ;;  %v7758_v24 = vmul.f32 %v7757_v20, %v7755_v33  ;;  %v7906_v51 = vshll.u32 %v17619_v9, %v7897_v46  ;;  %v7907_v30 = vshrl.u32 %v17784_v25, %v7898_v3  ;;  %v7910_v55 = vshrl.u32 %v17624_v58, %v7898_v3  ;;  %v17805_v20 = vld [vmem:[#allocation15_spill] sm:$0xff] }
 0x45d   : > { %v7768_v52 = vadd.s32 3, %v16057_v59  ;;  %v16072_v61 = vshll.u32 %v7891_v27, 8  ;;  %v7194_v45 = vrot.slane %v14620_v57, %v17805_v20  ;;  %v7845_v33 = vsub.s32 0, %v16066_v14 }
 0x45e   : > { %v7759_v2 = vxor.u32 2147483648, %v7758_v24  ;;  %v7902_v11 = vor.u32 %v7901_v47, %v7900_v12  ;;  %v7912_v44 = vshll.u32 %v17624_v58, %v7897_v46  ;;  %vm7915_vm12 = vcmp.lt.s32.totalorder %v7896_v41, 1 }
 0x45f   : > { %v7905_v15 = vor.u32 %v7904_v53, %v7903_v42  ;;  %v7911_v4 = vor.u32 %v7910_v55, %v7909_v23  ;;  %v7913_v7 = vshrl.u32 %v17607_v37, %v7898_v3  ;;  %v11106_v22 = vmin.u32 %v7845_v33, %v16066_v14 }
 0x460   : > { %v7760_v26 = vsel %vm7677_vm6, %v7759_v2, %v7758_v24  ;;  %v7908_v57 = vor.u32 %v7907_v30, %v7906_v51  ;;  %vm7918_vm14 = vcmp.lt.s32.totalorder %v7896_v41, 4  ;;  %v7899_v12 = vshrl.u32 %v17617_v40, %v7898_v3 }
 0x461   : > { %v7763_v27 = vsel %vm16049_vm9, %v15723_v32, %v7760_v26  ;;  %v7914_v46 = vor.u32 %v7913_v7, %v7912_v44  ;;  %vm7917_vm3 = vcmp.lt.s32.totalorder %v7896_v41, 3  ;;  %v7847_v47 = vclz %v11106_v22 }
 0x462   : > { %11617 = vcosq.f32 %v7763_v27  ;;  %vm7916_vm1 = vcmp.lt.s32.totalorder %v7896_v41, 2  ;;  %v7920_v24 = vsel %vm7918_vm14, %v7908_v57, 2102212464  ;;  %v7769_v42 = vand.u32 3, %v7768_v52 }
 0x463   : > { %11619 = vsinq.f32 %v7763_v27  ;;  %v7923_v53 = vsel %vm7915_vm12, %v7902_v11, %v7905_v15  ;;  %v7924_v48 = vsel %vm7918_vm14, %v7911_v4, 920167782  ;;  %v16090_v23 = vmul.f32 %v7194_v45, %v17779_v62 }
 0x464   : > { %vm7781_vm5 = vcmp.lt.s32.totalorder %v15870_v49, 0  ;;  %v7835_v3 = vadd.s32 %v16007_v17, %v16014_v63  ;;  %v11107_v7 = vadd.s32 4294967294, %v7847_v47  ;;  %v7925_v51 = vsel %vm7917_vm3, %v7908_v57, %v7924_v48 }
 0x465   : > { %17806 = vst [vmem:[#allocation17_spill] sm:$0xff] %v16090_v23  ;;  %v7927_v22 = vsel %vm7915_vm12, %v7905_v15, %v7908_v57  ;;  %v7919_v30 = vsel %vm7915_vm12, %v7899_v12, %v7902_v11  ;;  %v7921_v55 = vsel %vm7917_vm3, %v7905_v15, %v7920_v24  ;;  %v7926_v2 = vsel %vm7916_vm1, %v7923_v53, %v7925_v51 }
 0x466   : > { %v7928_v52 = vsel %vm7918_vm14, %v7914_v46, 1326507024  ;;  %vm17569_vm6 = vweird.f32 %v15723_v32  ;;  %vm11108_vm13 = vcmp.lt.s32.totalorder %v11107_v7, 0  ;;  %v17807_v33 = vand.u32 2147483647, %v15870_v49 }
 0x467   : > { %v7929_v45 = vsel %vm7917_vm3, %v7911_v4, %v7928_v52  ;;  %v16104_v17 = vmul.u32.u64.low %v16072_v61, %v7926_v2  ;;  %v16105_v63 = vmul.u32.u64.high %v16072_v61, %v7926_v2, %v16104_v17  ;;  %v7850_v15 = vsel %vm11108_vm13, 0, %v11107_v7 }
 0x468   : > { %vm16110_vm8 = vcmp.le.f32.partialorder %v17807_v33, 0.7853982  ;;  %v7930_v44 = vsel %vm7916_vm1, %v7927_v22, %v7929_v45  ;;  %v7990_v26 = vand.u32 2139095040, %v16090_v23  ;;  %v7851_v27 = vsub.s32 32, %v7850_v15 }
 0x469   : > { %v7852_v57 = vshll.u32 %v16066_v14, %v7850_v15  ;;  %v7855_v4 = vsub.s32 4294967266, %v7850_v15  ;;  %v7922_v12 = vsel %vm7916_vm1, %v7919_v30, %v7921_v55  ;;  %v7865_v46 = vsub.s32 4, %v16053_v50 }
 0x46a   : > { %v16120_v47 = vmul.u32.u64.low %v16072_v61, %v7930_v44  ;;  %v16121_v24 = vmul.u32.u64.high %v16072_v61, %v7930_v44, %v16120_v47  ;;  %v7991_v53 = vshrl.u32 %v7990_v26, 23  ;;  %vm7770_vm10 = vcmp.lt.s32.totalorder %v7769_v42, 2 }
 0x46b   : > { %v7853_v48 = vshrl.u32 %v7835_v3, %v7851_v27  ;;  %v7856_v7 = vadd.s32 127, %v7855_v4  ;;  %v7941_v51 = vadd.s32 1, %v16105_v63  ;;  %vm7774_vm0 = vcmp.eq.s32.totalorder %v7769_v42, 2 }
 0x46c   : > { %v16124_v22 = vpop.eup %11617  ;;  %v7938_v14 = vmul.u32 %v16072_v61, %v7922_v12  ;;  %v17497_v41 = vand.u32 2147483647, %v16090_v23  ;;  %v11113_v30 = vadd.s32 4294967169, %v7991_v53  ;;  %vm7771_vm7 = vcmp.eq.s32.totalorder %v7769_v42, 0 }
 0x46d   : > { %17810 = vst [vmem:[#allocation28_spill] sm:$0xff] %v16124_v22  ;;  %v16128_v55 = vpop.eup %11619  ;;  %v17495_v2 = vxor.u32 2147483648, %v16124_v22  ;;  %v7854_v52 = vor.u32 %v7853_v48, %v7852_v57  ;;  %v7857_v45 = vshll.u32 %v7856_v7, 23  ;;  %v7866_v33 = vsel %vm7781_vm5, %v7865_v46, %v16053_v50 }
 0x46e   : > { %17811 = vst [vmem:[#allocation26_spill] sm:$0xff] %v16128_v55  ;;  %v17496_v3 = vxor.u32 2147483648, %v16128_v55  ;;  %vm7940_vm9 = vc.u32 %v16121_v24, %v16104_v17  ;;  %v7997_v61 = vadd.s32 1, %v11113_v30  ;;  %v7994_v50 = vand.u32 8388607, %v17497_v41 }
 0x46f   : > { %v7776_v15 = vsel %vm7774_vm0, %v17495_v2, %v16128_v55  ;;  %v7858_v44 = vor.u32 4788187, %v7857_v45  ;;  %v7861_v26 = vcvt.s32.f32 %v7854_v52  ;;  %v7942_v27 = vsel %vm7940_vm9, %v7941_v51, %v16105_v63 }
 0x470   : > { %v7773_v57 = vsel %vm7771_vm7, %v16124_v22, %v17496_v3  ;;  %v7943_v4 = vadd.s32 %v7942_v27, %v7938_v14  ;;  %vm7998_vm12 = vcmp.gt.s32.totalorder %v7997_v61, 0  ;;  %v16149_v47 = vsel %vm16110_vm8, 0, %v7866_v33 }
 0x471   : > { %v7777_v12 = vsel %vm7770_vm10, %v7773_v57, %v7776_v15  ;;  %v7859_v46 = vand.u32 2147483647, %v7858_v44  ;;  %17812 = vst [vmem:[#allocation18_spill] sm:$0xff] %v16149_v47  ;;  %v7999_v53 = vsel %vm7998_vm12, %v7997_v61, 0  ;;  %v7198_v30 = vrot.slane %v15607_v54, %v11912_v6 }
 0x472   : > { %v7778_v63 = vsel %vm17569_vm6, nan, %v7777_v12  ;;  %v7944_v48 = vadd.s32 536870912, %v7943_v4  ;;  %v8001_v7 = vand.u32 31, %v7999_v53  ;;  %v7872_v52 = vadd.s32 3, %v16149_v47 }
 0x473   : > { %v8943_v51 = vrot.slane %v7778_v63, 2  ;;  %v7862_v14 = vmul.f32 %v7861_v26, %v7859_v46  ;;  %v7995_v33 = vor.u32 8388608, %v7994_v50  ;;  %v8000_v44 = vshrl.u32 %v7999_v53, 5 }
 0x474   : > { %v16158_v45 = vshrl.u32 %v7944_v48, 30  ;;  %v8002_v15 = vsub.s32 32, %v8001_v7  ;;  %v8004_v27 = vshll.u32 %v17617_v40, %v8001_v7  ;;  %v8007_v57 = vshll.u32 %v17618_v31, %v8001_v7 }
 0x475   : > { %8975 = vst [vmem:[%s11905_s26 + $0x1a0] ss:$-124 sps:$4 sm:$0xc7] %v8943_v51   ;;  %v7863_v61 = vxor.u32 2147483648, %v7862_v14  ;;  %v8010_v12 = vshll.u32 %v17619_v9, %v8001_v7  ;;  %v8013_v46 = vshll.u32 %v17784_v25, %v8001_v7  ;;  %v16175_v2 = vand.u32 3, %v7872_v52 }
 0x476   : > { %v7946_v26 = vshll.u32 %v16158_v45, 30  ;;  %v8005_v6 = vshrl.u32 %v17618_v31, %v8002_v15  ;;  %v8008_v50 = vshrl.u32 %v17619_v9, %v8002_v15  ;;  %v8011_v48 = vshrl.u32 %v17784_v25, %v8002_v15 }
 0x477   : > { %v7864_v63 = vsel %vm7781_vm5, %v7863_v61, %v7862_v14  ;;  %v8014_v53 = vshrl.u32 %v17624_v58, %v8002_v15  ;;  %v16180_v41 = vmul.f32 %v7198_v30, %v17779_v62  ;;  %v8016_v61 = vshll.u32 %v17624_v58, %v8001_v7 }
 0x478   : > { %v7867_v51 = vsel %vm16110_vm8, %v15870_v49, %v7864_v63  ;;  %v16177_v3 = vsub.s32 %v7943_v4, %v7946_v26  ;;  %v8006_v42 = vor.u32 %v8005_v6, %v8004_v27  ;;  %v8009_v14 = vor.u32 %v8008_v50, %v8007_v57 }
 0x479   : > { %17813 = vst [vmem:[#allocation33_spill] sm:$0xff] %v16180_v41  ;;  %11621 = vcosq.f32 %v7867_v51  ;;  %v8003_v32 = vshrl.u32 %v17617_v40, %v8002_v15  ;;  %v8015_v22 = vor.u32 %v8014_v53, %v8013_v46  ;;  %v8012_v11 = vor.u32 %v8011_v48, %v8010_v12 }
 0x47a   : > { %11623 = vsinq.f32 %v7867_v51  ;;  %v7949_v47 = vsub.s32 0, %v16177_v3  ;;  %v8017_v52 = vshrl.u32 %v17607_v37, %v8002_v15  ;;  %vm8019_vm14 = vcmp.lt.s32.totalorder %v8000_v44, 1 }
 0x47b   : > { %v8035_v4 = vshll.u32 %v7995_v33, 8  ;;  %vm8020_vm3 = vcmp.lt.s32.totalorder %v8000_v44, 2  ;;  %vm8021_vm1 = vcmp.lt.s32.totalorder %v8000_v44, 3  ;;  %vm8022_vm5 = vcmp.lt.s32.totalorder %v8000_v44, 4 }
 0x47c   : > { %v11110_v26 = vmin.u32 %v7949_v47, %v16177_v3  ;;  %vm7885_vm13 = vcmp.lt.s32.totalorder %v15966_v0, 0  ;;  %v8018_v30 = vor.u32 %v8017_v52, %v8016_v61  ;;  %v8024_v7 = vsel %vm8022_vm5, %v8012_v11, 2102212464 }
 0x47d   : > { %v8027_v27 = vsel %vm8019_vm14, %v8006_v42, %v8009_v14  ;;  %v8028_v57 = vsel %vm8022_vm5, %v8015_v22, 920167782  ;;  %vm17533_vm8 = vweird.f32 %v15870_v49  ;;  %v7939_v6 = vadd.s32 %v16104_v17, %v16121_v24 }
 0x47e   : > { %v7951_v15 = vclz %v11110_v26  ;;  %v8023_v33 = vsel %vm8019_vm14, %v8003_v32, %v8006_v42  ;;  %v8094_v47 = vand.u32 2139095040, %v16180_v41  ;;  %v8025_v12 = vsel %vm8021_vm1, %v8009_v14, %v8024_v7 }
 0x47f   : > { %v8029_v46 = vsel %vm8021_vm1, %v8012_v11, %v8028_v57  ;;  %v8031_v63 = vsel %vm8019_vm14, %v8009_v14, %v8012_v11  ;;  %v8032_v50 = vsel %vm8022_vm5, %v8018_v30, 1326507024  ;;  %v17814_v48 = vand.u32 2147483647, %v15966_v0 }
 0x480   : > { %v11111_v51 = vadd.s32 4294967294, %v7951_v15  ;;  %v7969_v17 = vsub.s32 4, %v16158_v45  ;;  %v8030_v32 = vsel %vm8020_vm3, %v8027_v27, %v8029_v46  ;;  %v8033_v24 = vsel %vm8021_vm1, %v8015_v22, %v8032_v50 }
 0x481   : > { %vm16199_vm10 = vcmp.le.f32.partialorder %v17814_v48, 0.7853982  ;;  %v8026_v42 = vsel %vm8020_vm3, %v8023_v33, %v8025_v12  ;;  %v8034_v61 = vsel %vm8020_vm3, %v8031_v63, %v8033_v24  ;;  %v8095_v30 = vshrl.u32 %v8094_v47, 23 }
 0x482   : > { %v16208_v52 = vmul.u32.u64.low %v8035_v4, %v8030_v32  ;;  %v16209_v14 = vmul.u32.u64.high %v8035_v4, %v8030_v32, %v16208_v52  ;;  %vm11112_vm0 = vcmp.lt.s32.totalorder %v11111_v51, 0  ;;  %vm7874_vm7 = vcmp.lt.s32.totalorder %v16175_v2, 2 }
 0x483   : > { %v16212_v11 = vmul.u32.u64.low %v8035_v4, %v8034_v61  ;;  %v16213_v26 = vmul.u32.u64.high %v8035_v4, %v8034_v61, %v16212_v11  ;;  %v16215_v7 = vpop.eup %11621  ;;  %vm7875_vm9 = vcmp.eq.s32.totalorder %v16175_v2, 0  ;;  %vm7878_vm12 = vcmp.eq.s32.totalorder %v16175_v2, 2 }
 0x484   : > { %17817 = vst [vmem:[#allocation37_spill] sm:$0xff] %v16215_v7  ;;  %v7954_v22 = vsel %vm11112_vm0, 0, %v11111_v51  ;;  %v16220_v44 = vpop.eup %11623  ;;  %v17502_v27 = vxor.u32 2147483648, %v16215_v7  ;;  %v8042_v47 = vmul.u32 %v8035_v4, %v8026_v42  ;;  %v8045_v46 = vadd.s32 1, %v16209_v14 }
 0x485   : > { %17818 = vst [vmem:[#allocation19_spill] sm:$0xff] %v16220_v44  ;;  %v7955_v57 = vsub.s32 32, %v7954_v22  ;;  %v7956_v15 = vshll.u32 %v16177_v3, %v7954_v22  ;;  %v7959_v33 = vsub.s32 4294967266, %v7954_v22  ;;  %v17503_v12 = vxor.u32 2147483648, %v16220_v44 }
 0x486   : > { %v11117_v63 = vadd.s32 4294967169, %v8095_v30  ;;  %v7880_v50 = vsel %vm7878_vm12, %v17502_v27, %v16220_v44  ;;  %v7970_v32 = vsel %vm7885_vm13, %v7969_v17, %v16158_v45  ;;  %vm8044_vm14 = vc.u32 %v16213_v26, %v16208_v52 }
 0x487   : > { %v7957_v48 = vshrl.u32 %v7939_v6, %v7955_v57  ;;  %v7960_v51 = vadd.s32 127, %v7959_v33  ;;  %v7877_v3 = vsel %vm7875_vm9, %v16215_v7, %v17503_v12  ;;  %v17504_v4 = vand.u32 2147483647, %v16180_v41 }
 0x488   : > { %v8101_v24 = vadd.s32 1, %v11117_v63  ;;  %v7881_v6 = vsel %vm7874_vm7, %v7877_v3, %v7880_v50  ;;  %v8046_v45 = vsel %vm8044_vm14, %v8045_v46, %v16209_v14  ;;  %v16247_v11 = vsel %vm16199_vm10, 0, %v7970_v32 }
 0x489   : > { %v7958_v42 = vor.u32 %v7957_v48, %v7956_v15  ;;  %v7961_v61 = vshll.u32 %v7960_v51, 23  ;;  %v7882_v17 = vsel %vm17533_vm8, nan, %v7881_v6  ;;  %17819 = vst [vmem:[#allocation32_spill] sm:$0xff] %v16247_v11  ;;  %v8047_v30 = vadd.s32 %v8046_v45, %v8042_v47 }
 0x48a   : > { %vm8102_vm3 = vcmp.gt.s32.totalorder %v8101_v24, 0  ;;  %v8944_v22 = vrot.slane %v7882_v17, 2  ;;  %v7976_v50 = vadd.s32 3, %v16247_v11  ;;  %v17820_v14 = vrot.slane %v15607_v54, %v17781_v8 }
 0x48b   : > { %v7962_v57 = vor.u32 4788187, %v7961_v61  ;;  %v7965_v33 = vcvt.s32.f32 %v7958_v42  ;;  %v8103_v63 = vsel %vm8102_vm3, %v8101_v24, 0  ;;  %v8048_v27 = vadd.s32 536870912, %v8047_v30 }
 0x48c   : > { %v8105_v2 = vand.u32 31, %v8103_v63  ;;  %8976 = vst [vmem:[%s11905_s26 + $0x1a8] ss:$-124 sps:$4 sm:$0xc7] %v8944_v22   ;;  %v16255_v46 = vmul.f32 %v17820_v14, %v17779_v62  ;;  %v8098_v47 = vand.u32 8388607, %v17504_v4  ;;  %v7206_v12 = vrot.slane %v15607_v54, %v17782_v29 }
 0x48d   : > { %v7963_v15 = vand.u32 2147483647, %v7962_v57  ;;  %v8049_v48 = vshrl.u32 %v8048_v27, 30  ;;  %v8104_v51 = vshrl.u32 %v8103_v63, 5  ;;  %vm7989_vm1 = vcmp.lt.s32.totalorder %v16090_v23, 0 }
 0x48e   : > { %17821 = vst [vmem:[#allocation31_spill] sm:$0xff] %v16255_v46  ;;  %v8106_v32 = vsub.s32 32, %v8105_v2  ;;  %v8108_v24 = vshll.u32 %v17617_v40, %v8105_v2  ;;  %v8111_v6 = vshll.u32 %v17618_v31, %v8105_v2  ;;  %v8114_v42 = vshll.u32 %v17619_v9, %v8105_v2 }
 0x48f   : > { %v7966_v3 = vmul.f32 %v7965_v33, %v7963_v15  ;;  %v8050_v61 = vshll.u32 %v8049_v48, 30  ;;  %v8117_v8 = vshll.u32 %v17784_v25, %v8105_v2  ;;  %v8120_v17 = vshll.u32 %v17624_v58, %v8105_v2 }
 0x490   : > { %v8109_v45 = vshrl.u32 %v17618_v31, %v8106_v32  ;;  %v8112_v22 = vshrl.u32 %v17619_v9, %v8106_v32  ;;  %v8115_v57 = vshrl.u32 %v17784_v25, %v8106_v32  ;;  %v8118_v33 = vshrl.u32 %v17624_v58, %v8106_v32 }
 0x491   : > { %v7967_v27 = vxor.u32 2147483648, %v7966_v3  ;;  %v16269_v63 = vsub.s32 %v8047_v30, %v8050_v61  ;;  %v8099_v15 = vor.u32 8388608, %v8098_v47  ;;  %v8121_v14 = vshrl.u32 %v17607_v37, %v8106_v32 }
 0x492   : > { %v16276_v4 = vand.u32 3, %v7976_v50  ;;  %v8107_v49 = vshrl.u32 %v17617_v40, %v8106_v32  ;;  %v8110_v7 = vor.u32 %v8109_v45, %v8108_v24  ;;  %v8113_v47 = vor.u32 %v8112_v22, %v8111_v6 }
 0x493   : > { %v7968_v2 = vsel %vm7885_vm13, %v7967_v27, %v7966_v3  ;;  %v8053_v30 = vsub.s32 0, %v16269_v63  ;;  %v8116_v61 = vor.u32 %v8115_v57, %v8114_v42  ;;  %v8119_v11 = vor.u32 %v8118_v33, %v8117_v8 }
 0x494   : > { %v7971_v44 = vsel %vm16199_vm10, %v15966_v0, %v7968_v2  ;;  %v8122_v55 = vor.u32 %v8121_v14, %v8120_v17  ;;  %vm8123_vm5 = vcmp.lt.s32.totalorder %v8104_v51, 1  ;;  %v17822_v3 = vand.u32 2147483647, %v16090_v23 }
 0x495   : > { %11625 = vcosq.f32 %v7971_v44  ;;  %v8043_v32 = vadd.s32 %v16208_v52, %v16213_v26  ;;  %v11114_v53 = vmin.u32 %v8053_v30, %v16269_v63  ;;  %v8139_v24 = vshll.u32 %v8099_v15, 8 }
 0x496   : > { %11627 = vsinq.f32 %v7971_v44  ;;  %vm16285_vm13 = vcmp.le.f32.partialorder %v17822_v3, 0.7853982  ;;  %v8073_v45 = vsub.s32 4, %v8049_v48  ;;  %vm8125_vm10 = vcmp.lt.s32.totalorder %v8104_v51, 3 }
 0x497   : > { %vm8126_vm0 = vcmp.lt.s32.totalorder %v8104_v51, 4  ;;  %v8198_v6 = vand.u32 2139095040, %v16255_v46  ;;  %v8055_v42 = vclz %v11114_v53  ;;  %vm8124_vm7 = vcmp.lt.s32.totalorder %v8104_v51, 2 }
 0x498   : > { %v8131_v44 = vsel %vm8123_vm5, %v8110_v7, %v8113_v47  ;;  %v8135_v8 = vsel %vm8123_vm5, %v8113_v47, %v8116_v61  ;;  %vm7978_vm9 = vcmp.lt.s32.totalorder %v16276_v4, 2  ;;  %v8127_v17 = vsel %vm8123_vm5, %v8107_v49, %v8110_v7 }
 0x499   : > { %v8128_v27 = vsel %vm8126_vm0, %v8116_v61, 2102212464  ;;  %v8132_v22 = vsel %vm8126_vm0, %v8119_v11, 920167782  ;;  %v8136_v57 = vsel %vm8126_vm0, %v8122_v55, 1326507024  ;;  %vm17532_vm12 = vweird.f32 %v15966_v0 }
 0x49a   : > { %v11115_v52 = vadd.s32 4294967294, %v8055_v42  ;;  %v8129_v26 = vsel %vm8125_vm10, %v8113_v47, %v8128_v27  ;;  %v8133_v33 = vsel %vm8125_vm10, %v8116_v61, %v8132_v22  ;;  %v8137_v15 = vsel %vm8125_vm10, %v8119_v11, %v8136_v57 }
 0x49b   : > { %v8074_v14 = vsel %vm7989_vm1, %v8073_v45, %v8049_v48  ;;  %v8134_v2 = vsel %vm8124_vm7, %v8131_v44, %v8133_v33  ;;  %v8138_v30 = vsel %vm8124_vm7, %v8135_v8, %v8137_v15  ;;  %v8199_v49 = vshrl.u32 %v8198_v6, 23 }
 0x49c   : > { %vm11116_vm14 = vcmp.lt.s32.totalorder %v11115_v52, 0  ;;  %v8130_v55 = vsel %vm8124_vm7, %v8127_v17, %v8129_v26  ;;  %v16303_v7 = vmul.u32.u64.low %v8139_v24, %v8138_v30  ;;  %v16304_v3 = vmul.u32.u64.high %v8139_v24, %v8138_v30, %v16303_v7 }
 0x49d   : > { %v8058_v53 = vsel %vm11116_vm14, 0, %v11115_v52  ;;  %v16306_v47 = vmul.u32.u64.low %v8139_v24, %v8134_v2  ;;  %v16307_v42 = vmul.u32.u64.high %v8139_v24, %v8134_v2, %v16306_v47  ;;  %v11121_v11 = vadd.s32 4294967169, %v8199_v49 }
 0x49e   : > { %vm7979_vm3 = vcmp.eq.s32.totalorder %v16276_v4, 0  ;;  %v8059_v48 = vsub.s32 32, %v8058_v53  ;;  %v8060_v61 = vshll.u32 %v16269_v63, %v8058_v53  ;;  %v8063_v45 = vsub.s32 4294967266, %v8058_v53 }
 0x49f   : > { %v16312_v44 = vpop.eup %11625  ;;  %vm7982_vm5 = vcmp.eq.s32.totalorder %v16276_v4, 2  ;;  %v16317_v51 = vsel %vm16285_vm13, 0, %v8074_v14  ;;  %v17518_v6 = vand.u32 2147483647, %v16255_v46  ;;  %v8205_v8 = vadd.s32 1, %v11121_v11 }
 0x4a0   : > { %17825 = vst [vmem:[#allocation20_spill] sm:$0xff] %v16312_v44  ;;  %v16320_v17 = vpop.eup %11627  ;;  %v17513_v27 = vxor.u32 2147483648, %v16312_v44  ;;  %v8061_v22 = vshrl.u32 %v8043_v32, %v8059_v48  ;;  %v8064_v57 = vadd.s32 127, %v8063_v45  ;;  %v8146_v52 = vmul.u32 %v8139_v24, %v8130_v55 }
 0x4a1   : > { %17826 = vst [vmem:[#allocation36_spill] sm:$0xff] %v16320_v17  ;;  %v17514_v63 = vxor.u32 2147483648, %v16320_v17  ;;  %vm8148_vm10 = vc.u32 %v16304_v3, %v16306_v47  ;;  %v8149_v26 = vadd.s32 1, %v16307_v42  ;;  %vm8206_vm0 = vcmp.gt.s32.totalorder %v8205_v8, 0 }
 0x4a2   : > { %v7984_v33 = vsel %vm7982_vm5, %v17513_v27, %v16320_v17  ;;  %v8062_v15 = vor.u32 %v8061_v22, %v8060_v61  ;;  %v8065_v14 = vshll.u32 %v8064_v57, 23  ;;  %v8207_v2 = vsel %vm8206_vm0, %v8205_v8, 0 }
 0x4a3   : > { %v7981_v32 = vsel %vm7979_vm3, %v16312_v44, %v17514_v63  ;;  %v8080_v24 = vadd.s32 3, %v16317_v51  ;;  %v8150_v30 = vsel %vm8148_vm10, %v8149_v26, %v16307_v42  ;;  %v8209_v49 = vand.u32 31, %v8207_v2 }
 0x4a4   : > { %v7985_v55 = vsel %vm7978_vm9, %v7981_v32, %v7984_v33  ;;  %v8066_v7 = vor.u32 4788187, %v8065_v14  ;;  %v8069_v53 = vcvt.s32.f32 %v8062_v15  ;;  %v8151_v11 = vadd.s32 %v8150_v30, %v8146_v52 }
 0x4a5   : > { %v7986_v48 = vsel %vm17532_vm12, nan, %v7985_v55  ;;  %v8208_v61 = vshrl.u32 %v8207_v2, 5  ;;  %v8210_v45 = vsub.s32 32, %v8209_v49  ;;  %v8212_v8 = vshll.u32 %v17617_v40, %v8209_v49 }
 0x4a6   : > { %v8945_v22 = vrot.slane %v7986_v48, 2  ;;  %v8067_v57 = vand.u32 2147483647, %v8066_v7  ;;  %v8152_v27 = vadd.s32 536870912, %v8151_v11  ;;  %v8215_v42 = vshll.u32 %v17618_v31, %v8209_v49 }
 0x4a7   : > { %v8213_v26 = vshrl.u32 %v17618_v31, %v8210_v45  ;;  %v8216_v4 = vshrl.u32 %v17619_v9, %v8210_v45  ;;  %v8218_v33 = vshll.u32 %v17619_v9, %v8209_v49  ;;  %v8219_v52 = vshrl.u32 %v17784_v25, %v8210_v45 }
 0x4a8   : > { %8977 = vst [vmem:[%s11905_s26 + $0x1b0] ss:$-124 sps:$4 sm:$0xc7] %v8945_v22   ;;  %v8070_v15 = vmul.f32 %v8069_v53, %v8067_v57  ;;  %v8153_v14 = vshrl.u32 %v8152_v27, 30  ;;  %v8221_v2 = vshll.u32 %v17784_v25, %v8209_v49  ;;  %v8222_v32 = vshrl.u32 %v17624_v58, %v8210_v45 }
 0x4a9   : > { %v16350_v30 = vand.u32 3, %v8080_v24  ;;  %v8202_v55 = vand.u32 8388607, %v17518_v6  ;;  %v8224_v7 = vshll.u32 %v17624_v58, %v8209_v49  ;;  %v16359_v48 = vmul.f32 %v7206_v12, %v17779_v62 }
 0x4aa   : > { %v8071_v22 = vxor.u32 2147483648, %v8070_v15  ;;  %v8154_v53 = vshll.u32 %v8153_v14, 30  ;;  %v8211_v27 = vshrl.u32 %v17617_v40, %v8210_v45  ;;  %v8214_v57 = vor.u32 %v8213_v26, %v8212_v8 }
 0x4ab   : > { %17827 = vst [vmem:[#allocation35_spill] sm:$0xff] %v16359_v48  ;;  %v8217_v63 = vor.u32 %v8216_v4, %v8215_v42  ;;  %v8220_v0 = vor.u32 %v8219_v52, %v8218_v33  ;;  %v8223_v24 = vor.u32 %v8222_v32, %v8221_v2  ;;  %v8225_v44 = vshrl.u32 %v17607_v37, %v8210_v45 }
 0x4ac   : > { %v8072_v6 = vsel %vm7989_vm1, %v8071_v22, %v8070_v15  ;;  %v16365_v49 = vsub.s32 %v8151_v11, %v8154_v53  ;;  %vm8227_vm7 = vcmp.lt.s32.totalorder %v8208_v61, 1  ;;  %vm8230_vm9 = vcmp.lt.s32.totalorder %v8208_v61, 4 }
 0x4ad   : > { %v8075_v29 = vsel %vm16285_vm13, %v16090_v23, %v8072_v6  ;;  %v8203_v12 = vor.u32 8388608, %v8202_v55  ;;  %v8226_v17 = vor.u32 %v8225_v44, %v8224_v7  ;;  %vm8229_vm14 = vcmp.lt.s32.totalorder %v8208_v61, 3 }
 0x4ae   : > { %11629 = vcosq.f32 %v8075_v29  ;;  %v8157_v8 = vsub.s32 0, %v16365_v49  ;;  %vm8228_vm3 = vcmp.lt.s32.totalorder %v8208_v61, 2  ;;  %v8232_v45 = vsel %vm8230_vm9, %v8220_v0, 2102212464 }
 0x4af   : > { %11631 = vsinq.f32 %v8075_v29  ;;  %v8235_v42 = vsel %vm8227_vm7, %v8214_v57, %v8217_v63  ;;  %v8236_v11 = vsel %vm8230_vm9, %v8223_v24, 920167782  ;;  %v8302_v26 = vand.u32 2139095040, %v16359_v48 }
 0x4b0   : > { %v11118_v4 = vmin.u32 %v8157_v8, %v16365_v49  ;;  %v8231_v50 = vsel %vm8227_vm7, %v8211_v27, %v8214_v57  ;;  %v8233_v44 = vsel %vm8229_vm14, %v8217_v63, %v8232_v45  ;;  %v8237_v6 = vsel %vm8229_vm14, %v8220_v0, %v8236_v11 }
 0x4b1   : > { %v8238_v33 = vsel %vm8228_vm3, %v8235_v42, %v8237_v6  ;;  %v8239_v52 = vsel %vm8227_vm7, %v8217_v63, %v8220_v0  ;;  %v8240_v15 = vsel %vm8230_vm9, %v8226_v17, 1326507024  ;;  %v8243_v2 = vshll.u32 %v8203_v12, 8 }
 0x4b2   : > { %vm8093_vm1 = vcmp.lt.s32.totalorder %v16180_v41, 0  ;;  %v8159_v32 = vclz %v11118_v4  ;;  %vm17530_vm13 = vweird.f32 %v16090_v23  ;;  %v8177_v55 = vsub.s32 4, %v8153_v14 }
 0x4b3   : > { %v8241_v7 = vsel %vm8229_vm14, %v8223_v24, %v8240_v15  ;;  %v16385_v22 = vmul.u32.u64.low %v8243_v2, %v8238_v33  ;;  %v16386_v53 = vmul.u32.u64.high %v8243_v2, %v8238_v33, %v16385_v22  ;;  %v8234_v57 = vsel %vm8228_vm3, %v8231_v50, %v8233_v44 }
 0x4b4   : > { %v11119_v27 = vadd.s32 4294967294, %v8159_v32  ;;  %v8242_v0 = vsel %vm8228_vm3, %v8239_v52, %v8241_v7  ;;  %v8303_v63 = vshrl.u32 %v8302_v26, 23  ;;  %vm8082_vm5 = vcmp.lt.s32.totalorder %v16350_v30, 2 }
 0x4b5   : > { %v17828_v17 = vand.u32 2147483647, %v16180_v41  ;;  %v16398_v12 = vmul.u32.u64.low %v8243_v2, %v8242_v0  ;;  %v16399_v24 = vmul.u32.u64.high %v8243_v2, %v8242_v0, %v16398_v12  ;;  %vm8086_vm0 = vcmp.eq.s32.totalorder %v16350_v30, 2 }
 0x4b6   : > { %v8147_v8 = vadd.s32 %v16306_v47, %v16304_v3  ;;  %vm11120_vm7 = vcmp.lt.s32.totalorder %v11119_v27, 0  ;;  %v11125_v61 = vadd.s32 4294967169, %v8303_v63  ;;  %v8178_v42 = vsel %vm8093_vm1, %v8177_v55, %v8153_v14 }
 0x4b7   : > { %vm16394_vm10 = vcmp.le.f32.partialorder %v17828_v17, 0.7853982  ;;  %v8162_v45 = vsel %vm11120_vm7, 0, %v11119_v27  ;;  %v8250_v11 = vmul.u32 %v8243_v2, %v8234_v57  ;;  %v8253_v26 = vadd.s32 1, %v16386_v53 }
 0x4b8   : > { %v16407_v4 = vpop.eup %11629  ;;  %v8163_v50 = vsub.s32 32, %v8162_v45  ;;  %v8164_v44 = vshll.u32 %v16365_v49, %v8162_v45  ;;  %v8167_v6 = vsub.s32 4294967266, %v8162_v45  ;;  %v8309_v33 = vadd.s32 1, %v11125_v61 }
 0x4b9   : > { %17831 = vst [vmem:[#allocation25_spill] sm:$0xff] %v16407_v4  ;;  %v16410_v52 = vpop.eup %11631  ;;  %vm8083_vm9 = vcmp.eq.s32.totalorder %v16350_v30, 0  ;;  %v17521_v3 = vxor.u32 2147483648, %v16407_v4  ;;  %vm8252_vm14 = vc.u32 %v16399_v24, %v16385_v22  ;;  %v17523_v47 = vand.u32 2147483647, %v16359_v48 }
 0x4ba   : > { %17832 = vst [vmem:[#allocation40_spill] sm:$0xff] %v16410_v52  ;;  %v17522_v14 = vxor.u32 2147483648, %v16410_v52  ;;  %v8165_v15 = vshrl.u32 %v8147_v8, %v8163_v50  ;;  %v8168_v2 = vadd.s32 127, %v8167_v6  ;;  %v8254_v32 = vsel %vm8252_vm14, %v8253_v26, %v16386_v53 }
 0x4bb   : > { %v8088_v49 = vsel %vm8086_vm0, %v17521_v3, %v16410_v52  ;;  %v16426_v55 = vsel %vm16394_vm10, 0, %v8178_v42  ;;  %v8255_v7 = vadd.s32 %v8254_v32, %v8250_v11  ;;  %vm8310_vm3 = vcmp.gt.s32.totalorder %v8309_v33, 0 }
 0x4bc   : > { %v8085_v27 = vsel %vm8083_vm9, %v16407_v4, %v17522_v14  ;;  %v8166_v57 = vor.u32 %v8165_v15, %v8164_v44  ;;  %v8169_v0 = vshll.u32 %v8168_v2, 23  ;;  %v8311_v63 = vsel %vm8310_vm3, %v8309_v33, 0 }
 0x4bd   : > { %v8089_v53 = vsel %vm8082_vm5, %v8085_v27, %v8088_v49  ;;  %v8256_v17 = vadd.s32 536870912, %v8255_v7  ;;  %v8313_v12 = vand.u32 31, %v8311_v63  ;;  %v8184_v42 = vadd.s32 3, %v16426_v55 }
 0x4be   : > { %v8090_v8 = vsel %vm17530_vm13, nan, %v8089_v53  ;;  %v8170_v61 = vor.u32 4788187, %v8169_v0  ;;  %v8173_v45 = vcvt.s32.f32 %v8166_v57  ;;  %v8306_v50 = vand.u32 8388607, %v17523_v47 }
 0x4bf   : > { %v8946_v11 = vrot.slane %v8090_v8, 2  ;;  %v16436_v26 = vshrl.u32 %v8256_v17, 30  ;;  %v8314_v44 = vsub.s32 32, %v8313_v12  ;;  %v8312_v30 = vshrl.u32 %v8311_v63, 5 }
 0x4c0   : > { %v8171_v6 = vand.u32 2147483647, %v8170_v61  ;;  %v8316_v33 = vshll.u32 %v17617_v40, %v8313_v12  ;;  %v8319_v15 = vshll.u32 %v17618_v31, %v8313_v12  ;;  %v8322_v49 = vshll.u32 %v17619_v9, %v8313_v12 }
 0x4c1   : > { %8978 = vst [vmem:[%s11905_s26 + $0x1b8] ss:$-124 sps:$4 sm:$0xc7] %v8946_v11   ;;  %v8258_v2 = vshll.u32 %v16436_v26, 30  ;;  %v8317_v32 = vshrl.u32 %v17618_v31, %v8314_v44  ;;  %v8325_v27 = vshll.u32 %v17784_v25, %v8313_v12  ;;  %v8320_v0 = vshrl.u32 %v17619_v9, %v8314_v44 }
 0x4c2   : > { %v8174_v57 = vmul.f32 %v8173_v45, %v8171_v6  ;;  %v8323_v53 = vshrl.u32 %v17784_v25, %v8314_v44  ;;  %v8326_v63 = vshrl.u32 %v17624_v58, %v8314_v44  ;;  %v16450_v17 = vand.u32 3, %v8184_v42 }
 0x4c3   : > { %v16452_v8 = vsub.s32 %v8255_v7, %v8258_v2  ;;  %v8307_v61 = vor.u32 8388608, %v8306_v50  ;;  %v8328_v11 = vshll.u32 %v17624_v58, %v8313_v12  ;;  %v8251_v14 = vadd.s32 %v16385_v22, %v16399_v24 }
 0x4c4   : > { %v8175_v3 = vxor.u32 2147483648, %v8174_v57  ;;  %v8315_v47 = vshrl.u32 %v17617_v40, %v8314_v44  ;;  %v7210_v45 = vrot.slane %v15607_v54, %v17785_v60  ;;  %v8318_v23 = vor.u32 %v8317_v32, %v8316_v33 }
 0x4c5   : > { %v8261_v6 = vsub.s32 0, %v16452_v8  ;;  %v8321_v4 = vor.u32 %v8320_v0, %v8319_v15  ;;  %v8329_v42 = vshrl.u32 %v17607_v37, %v8314_v44  ;;  %vm8197_vm5 = vcmp.lt.s32.totalorder %v16255_v46, 0 }
 0x4c6   : > { %v8176_v7 = vsel %vm8093_vm1, %v8175_v3, %v8174_v57  ;;  %v8324_v12 = vor.u32 %v8323_v53, %v8322_v49  ;;  %v8327_v50 = vor.u32 %v8326_v63, %v8325_v27  ;;  %vm8331_vm0 = vcmp.lt.s32.totalorder %v8312_v30, 1 }
 0x4c7   : > { %v8179_v22 = vsel %vm16394_vm10, %v16180_v41, %v8176_v7  ;;  %v11122_v60 = vmin.u32 %v8261_v6, %v16452_v8  ;;  %v8330_v24 = vor.u32 %v8329_v42, %v8328_v11  ;;  %v8347_v2 = vshll.u32 %v8307_v61, 8 }
 0x4c8   : > { %11633 = vcosq.f32 %v8179_v22  ;;  %vm8332_vm7 = vcmp.lt.s32.totalorder %v8312_v30, 2  ;;  %vm8333_vm9 = vcmp.lt.s32.totalorder %v8312_v30, 3  ;;  %vm8334_vm14 = vcmp.lt.s32.totalorder %v8312_v30, 4 }
 0x4c9   : > { %11635 = vsinq.f32 %v8179_v22  ;;  %v17833_v3 = vand.u32 2147483647, %v16255_v46  ;;  %v8263_v33 = vclz %v11122_v60  ;;  %v8335_v15 = vsel %vm8331_vm0, %v8315_v47, %v8318_v23 }
 0x4ca   : > { %v8339_v29 = vsel %vm8331_vm0, %v8318_v23, %v8321_v4  ;;  %v8281_v32 = vsub.s32 4, %v16436_v26  ;;  %v8336_v49 = vsel %vm8334_vm14, %v8324_v12, 2102212464  ;;  %v8340_v27 = vsel %vm8334_vm14, %v8327_v50, 920167782 }
 0x4cb   : > { %vm16471_vm1 = vcmp.le.f32.partialorder %v17833_v3, 0.7853982  ;;  %v8343_v57 = vsel %vm8331_vm0, %v8321_v4, %v8324_v12  ;;  %v11123_v0 = vadd.s32 4294967294, %v8263_v33  ;;  %v8337_v53 = vsel %vm8333_vm9, %v8321_v4, %v8336_v49 }
 0x4cc   : > { %v8341_v63 = vsel %vm8333_vm9, %v8324_v12, %v8340_v27  ;;  %v8344_v61 = vsel %vm8334_vm14, %v8330_v24, 1326507024  ;;  %v8338_v11 = vsel %vm8332_vm7, %v8335_v15, %v8337_v53  ;;  %v16485_v23 = vmul.f32 %v7210_v45, %v17779_v62 }
 0x4cd   : > { %v8342_v6 = vsel %vm8332_vm7, %v8339_v29, %v8341_v63  ;;  %v8345_v47 = vsel %vm8333_vm9, %v8327_v50, %v8344_v61  ;;  %vm11124_vm10 = vcmp.lt.s32.totalorder %v11123_v0, 0  ;;  %vm8186_vm3 = vcmp.lt.s32.totalorder %v16450_v17, 2 }
 0x4ce   : > { %v8346_v42 = vsel %vm8332_vm7, %v8343_v57, %v8345_v47  ;;  %v16488_v7 = vmul.u32.u64.low %v8347_v2, %v8342_v6  ;;  %v16489_v22 = vmul.u32.u64.high %v8347_v2, %v8342_v6, %v16488_v7  ;;  %v8266_v4 = vsel %vm11124_vm10, 0, %v11123_v0 }
 0x4cf   : > { %v16492_v12 = vmul.u32.u64.low %v8347_v2, %v8346_v42  ;;  %v16493_v60 = vmul.u32.u64.high %v8347_v2, %v8346_v42, %v16492_v12  ;;  %v8267_v24 = vsub.s32 32, %v8266_v4  ;;  %v8268_v3 = vshll.u32 %v16452_v8, %v8266_v4 }
 0x4d0   : > { %v8271_v33 = vsub.s32 4294967266, %v8266_v4  ;;  %v8282_v45 = vsel %vm8197_vm5, %v8281_v32, %v16436_v26  ;;  %vm8187_vm0 = vcmp.eq.s32.totalorder %v16450_v17, 0  ;;  %v8354_v30 = vmul.u32 %v8347_v2, %v8338_v11 }
 0x4d1   : > { %v17534_v50 = vand.u32 2147483647, %v16485_v23  ;;  %v8406_v15 = vand.u32 2139095040, %v16485_v23  ;;  %vm8190_vm7 = vcmp.eq.s32.totalorder %v16450_v17, 2  ;;  %v8269_v29 = vshrl.u32 %v8251_v14, %v8267_v24 }
 0x4d2   : > { %v8272_v49 = vadd.s32 127, %v8271_v33  ;;  %v8357_v27 = vadd.s32 1, %v16489_v22  ;;  %v16504_v57 = vpop.eup %11633  ;;  %v16508_v8 = vsel %vm16471_vm1, 0, %v8282_v45  ;;  %vm8356_vm9 = vc.u32 %v16493_v60, %v16488_v7 }
 0x4d3   : > { %17836 = vst [vmem:[#allocation39_spill] sm:$0xff] %v16504_v57  ;;  %17837 = vst [vmem:[#allocation41_spill] sm:$0xff] %v16508_v8  ;;  %v8407_v26 = vshrl.u32 %v8406_v15, 23  ;;  %v7214_v2 = vrot.slane %v15607_v54, %v17787_v21  ;;  %v16513_v32 = vpop.eup %11635  ;;  %v17527_v0 = vxor.u32 2147483648, %v16504_v57  ;;  %v8270_v14 = vor.u32 %v8269_v29, %v8268_v3 }
 0x4d4   : > { %17838 = vst [vmem:[#allocation29_spill] sm:$0xff] %v16513_v32  ;;  %v8273_v53 = vshll.u32 %v8272_v49, 23  ;;  %v8358_v63 = vsel %vm8356_vm9, %v8357_v27, %v16489_v22  ;;  %v17528_v61 = vxor.u32 2147483648, %v16513_v32  ;;  %v8410_v47 = vand.u32 8388607, %v17534_v50 }
 0x4d5   : > { %v8359_v11 = vadd.s32 %v8358_v63, %v8354_v30  ;;  %v11129_v6 = vadd.s32 4294967169, %v8407_v26  ;;  %vm17529_vm14 = vweird.f32 %v16180_v41  ;;  %v8192_v21 = vsel %vm8190_vm7, %v17527_v0, %v16513_v32 }
 0x4d6   : > { %v8274_v42 = vor.u32 4788187, %v8273_v53  ;;  %v8277_v4 = vcvt.s32.f32 %v8270_v14  ;;  %v8189_v22 = vsel %vm8187_vm0, %v16504_v57, %v17528_v61  ;;  %v8288_v45 = vadd.s32 3, %v16508_v8 }
 0x4d7   : > { %v8360_v12 = vadd.s32 536870912, %v8359_v11  ;;  %v8413_v24 = vadd.s32 1, %v11129_v6  ;;  %v8193_v3 = vsel %vm8186_vm3, %v8189_v22, %v8192_v21  ;;  %v16535_v30 = vmul.f32 %v7214_v2, %v17779_v62 }
 0x4d8   : > { %v8275_v33 = vand.u32 2147483647, %v8274_v42  ;;  %v8194_v15 = vsel %vm17529_vm14, nan, %v8193_v3  ;;  %v8411_v49 = vor.u32 8388608, %v8410_v47  ;;  %v16543_v6 = vand.u32 3, %v8288_v45 }
 0x4d9   : > { %v16539_v29 = vshrl.u32 %v8360_v12, 30  ;;  %vm8414_vm10 = vcmp.gt.s32.totalorder %v8413_v24, 0  ;;  %v8947_v27 = vrot.slane %v8194_v15, 2  ;;  %v16546_v2 = vadd.s32 %v16488_v7, %v16493_v60 }
 0x4da   : > { %v8278_v26 = vmul.f32 %v8277_v4, %v8275_v33  ;;  %v8415_v14 = vsel %vm8414_vm10, %v8413_v24, 0  ;;  %v16550_v22 = vshll.u32 %v8411_v49, 8  ;;  %v8510_v47 = vand.u32 2139095040, %v16535_v30 }
 0x4db   : > { %v8362_v53 = vshll.u32 %v16539_v29, 30  ;;  %v8417_v17 = vand.u32 31, %v8415_v14  ;;  %8979 = vst [vmem:[%s11905_s26 + $0x1c0] ss:$-124 sps:$4 sm:$0xc7] %v8947_v27   ;;  %vm8290_vm3 = vcmp.lt.s32.totalorder %v16543_v6, 2  ;;  %vm17565_vm9 = vweird.f32 %v16255_v46 }
 0x4dc   : > { %v8279_v63 = vxor.u32 2147483648, %v8278_v26  ;;  %v17531_v3 = vand.u32 2147483647, %v16535_v30  ;;  %vm8301_vm0 = vcmp.lt.s32.totalorder %v16359_v48, 0 }
 0x4dd   : > { %v16548_v21 = vsub.s32 %v8359_v11, %v8362_v53  ;;  %v8418_v42 = vsub.s32 32, %v8417_v17  ;;  %v8420_v12 = vshll.u32 %v17617_v40, %v8417_v17  ;;  %v8423_v24 = vshll.u32 %v17618_v31, %v8417_v17 }
 0x4de   : > { %v8280_v4 = vsel %vm8197_vm5, %v8279_v63, %v8278_v26  ;;  %v8416_v11 = vshrl.u32 %v8415_v14, 5  ;;  %v8426_v33 = vshll.u32 %v17619_v9, %v8417_v17  ;;  %v8429_v26 = vshll.u32 %v17784_v25, %v8417_v17 }
 0x4df   : > { %v8283_v7 = vsel %vm16471_vm1, %v16255_v46, %v8280_v4  ;;  %v8365_v60 = vsub.s32 0, %v16548_v21  ;;  %v8421_v45 = vshrl.u32 %v17618_v31, %v8418_v42  ;;  %v8424_v15 = vshrl.u32 %v17619_v9, %v8418_v42 }
 0x4e0   : > { %11637 = vcosq.f32 %v8283_v7  ;;  %v8427_v49 = vshrl.u32 %v17784_v25, %v8418_v42  ;;  %v8511_v53 = vshrl.u32 %v8510_v47, 23  ;;  %vm8294_vm5 = vcmp.eq.s32.totalorder %v16543_v6, 2 }
 0x4e1   : > { %11639 = vsinq.f32 %v8283_v7  ;;  %v11126_v27 = vmin.u32 %v8365_v60, %v16548_v21  ;;  %v8422_v44 = vor.u32 %v8421_v45, %v8420_v12  ;;  %v8425_v63 = vor.u32 %v8424_v15, %v8423_v24 }
 0x4e2   : > { %v8430_v14 = vshrl.u32 %v17624_v58, %v8418_v42  ;;  %v16572_v4 = vand.u32 8388607, %v17531_v3  ;;  %vm8291_vm1 = vcmp.eq.s32.totalorder %v16543_v6, 0  ;;  %v8385_v7 = vsub.s32 4, %v16539_v29 }
 0x4e3   : > { %v8367_v0 = vclz %v11126_v27  ;;  %v8419_v60 = vshrl.u32 %v17617_v40, %v8418_v42  ;;  %v8428_v61 = vor.u32 %v8427_v49, %v8426_v33  ;;  %v8432_v12 = vshll.u32 %v17624_v58, %v8417_v17 }
 0x4e4   : > { %v8431_v47 = vor.u32 %v8430_v14, %v8429_v26  ;;  %v8433_v24 = vshrl.u32 %v17607_v37, %v8418_v42  ;;  %vm8435_vm7 = vcmp.lt.s32.totalorder %v8416_v11, 1  ;;  %vm8437_vm10 = vcmp.lt.s32.totalorder %v8416_v11, 3 }
 0x4e5   : > { %v11127_v45 = vadd.s32 4294967294, %v8367_v0  ;;  %vm8438_vm14 = vcmp.lt.s32.totalorder %v8416_v11, 4  ;;  %v11133_v15 = vadd.s32 4294967169, %v8511_v53  ;;  %vm8436_vm13 = vcmp.lt.s32.totalorder %v8416_v11, 2 }
 0x4e6   : > { %v8434_v27 = vor.u32 %v8433_v24, %v8432_v12  ;;  %v8440_v3 = vsel %vm8438_vm14, %v8428_v61, 2102212464  ;;  %v8443_v33 = vsel %vm8435_vm7, %v8422_v44, %v8425_v63  ;;  %v17839_v49 = vand.u32 2147483647, %v16359_v48 }
 0x4e7   : > { %vm11128_vm8 = vcmp.lt.s32.totalorder %v11127_v45, 0  ;;  %v8439_v17 = vsel %vm8435_vm7, %v8419_v60, %v8422_v44  ;;  %v8441_v42 = vsel %vm8437_vm10, %v8425_v63, %v8440_v3  ;;  %v8444_v0 = vsel %vm8438_vm14, %v8431_v47, 920167782 }
 0x4e8   : > { %vm16585_vm12 = vcmp.le.f32.partialorder %v17839_v49, 0.7853982  ;;  %v8370_v14 = vsel %vm11128_vm8, 0, %v11127_v45  ;;  %v8445_v53 = vsel %vm8437_vm10, %v8428_v61, %v8444_v0  ;;  %v8447_v12 = vsel %vm8435_vm7, %v8425_v63, %v8428_v61 }
 0x4e9   : > { %v8448_v24 = vsel %vm8438_vm14, %v8434_v27, 1326507024  ;;  %v8371_v50 = vsub.s32 32, %v8370_v14  ;;  %v8372_v41 = vshll.u32 %v16548_v21, %v8370_v14  ;;  %v8375_v8 = vsub.s32 4294967266, %v8370_v14 }
 0x4ea   : > { %v8446_v49 = vsel %vm8436_vm13, %v8443_v33, %v8445_v53  ;;  %v16595_v57 = vpop.eup %11637  ;;  %v8442_v32 = vsel %vm8436_vm13, %v8439_v17, %v8441_v42  ;;  %v8449_v44 = vsel %vm8437_vm10, %v8431_v47, %v8448_v24  ;;  %v8517_v47 = vadd.s32 1, %v11133_v15 }
 0x4eb   : > { %17842 = vst [vmem:[#allocation43_spill] sm:$0xff] %v16595_v57  ;;  %v16600_v3 = vmul.u32.u64.low %v16550_v22, %v8446_v49  ;;  %v16601_v60 = vmul.u32.u64.high %v16550_v22, %v8446_v49, %v16600_v3  ;;  %v16604_v45 = vpop.eup %11639  ;;  %v17541_v61 = vxor.u32 2147483648, %v16595_v57  ;;  %v8373_v21 = vshrl.u32 %v16546_v2, %v8371_v50 }
 0x4ec   : > { %17843 = vst [vmem:[#allocation42_spill] sm:$0xff] %v16604_v45  ;;  %v8376_v63 = vadd.s32 127, %v8375_v8  ;;  %v8450_v27 = vsel %vm8436_vm13, %v8447_v12, %v8449_v44  ;;  %v17542_v33 = vxor.u32 2147483648, %v16604_v45  ;;  %v8386_v50 = vsel %vm8301_vm0, %v8385_v7, %v16539_v29 }
 0x4ed   : > { %v16611_v17 = vmul.u32.u64.low %v16550_v22, %v8450_v27  ;;  %v16612_v42 = vmul.u32.u64.high %v16550_v22, %v8450_v27, %v16611_v17  ;;  %v8296_v0 = vsel %vm8294_vm5, %v17541_v61, %v16604_v45  ;;  %v8374_v14 = vor.u32 %v8373_v21, %v8372_v41 }
 0x4ee   : > { %v8377_v53 = vshll.u32 %v8376_v63, 23  ;;  %v8293_v8 = vsel %vm8291_vm1, %v16595_v57, %v17542_v33  ;;  %v8458_v2 = vmul.u32 %v16550_v22, %v8442_v32  ;;  %v8461_v11 = vadd.s32 1, %v16601_v60 }
 0x4ef   : > { %vm8518_vm8 = vcmp.gt.s32.totalorder %v8517_v47, 0  ;;  %v8297_v41 = vsel %vm8290_vm3, %v8293_v8, %v8296_v0  ;;  %v8381_v12 = vcvt.s32.f32 %v8374_v14  ;;  %v16635_v7 = vsel %vm16585_vm12, 0, %v8386_v50 }
 0x4f0   : > { %v8378_v15 = vor.u32 4788187, %v8377_v53  ;;  %v8519_v24 = vsel %vm8518_vm8, %v8517_v47, 0  ;;  %v8298_v29 = vsel %vm17565_vm9, nan, %v8297_v41  ;;  %17844 = vst [vmem:[#allocation44_spill] sm:$0xff] %v16635_v7  ;;  %vm8460_vm13 = vc.u32 %v16612_v42, %v16600_v3 }
 0x4f1   : > { %v8948_v32 = vrot.slane %v8298_v29, 2  ;;  %v8462_v49 = vsel %vm8460_vm13, %v8461_v11, %v16601_v60  ;;  %v8521_v6 = vand.u32 31, %v8519_v24  ;;  %v8515_v21 = vor.u32 8388608, %v16572_v4 }
 0x4f2   : > { %v8379_v22 = vand.u32 2147483647, %v8378_v15  ;;  %v8463_v44 = vadd.s32 %v8462_v49, %v8458_v2  ;;  %v8520_v63 = vshrl.u32 %v8519_v24, 5  ;;  %v7218_v27 = vrot.slane %v15607_v54, %v17795_v16 }
 0x4f3   : > { %8980 = vst [vmem:[%s11905_s26 + $0x1c8] ss:$-124 sps:$4 sm:$0xc7] %v8948_v32   ;;  %v8522_v47 = vsub.s32 32, %v8521_v6  ;;  %v8524_v0 = vshll.u32 %v17617_v40, %v8521_v6  ;;  %v8527_v14 = vshll.u32 %v17618_v31, %v8521_v6  ;;  %v8392_v53 = vadd.s32 3, %v16635_v7 }
 0x4f4   : > { %v8382_v17 = vmul.f32 %v8381_v12, %v8379_v22  ;;  %v8464_v50 = vadd.s32 536870912, %v8463_v44  ;;  %v8530_v60 = vshll.u32 %v17619_v9, %v8521_v6  ;;  %v8533_v8 = vshll.u32 %v17784_v25, %v8521_v6 }
 0x4f5   : > { %v8525_v4 = vshrl.u32 %v17618_v31, %v8522_v47  ;;  %v8528_v11 = vshrl.u32 %v17619_v9, %v8522_v47  ;;  %v8536_v16 = vshll.u32 %v17624_v58, %v8521_v6  ;;  %v8531_v15 = vshrl.u32 %v17784_v25, %v8522_v47 }
 0x4f6   : > { %v8383_v2 = vxor.u32 2147483648, %v8382_v17  ;;  %v8465_v41 = vshrl.u32 %v8464_v50, 30  ;;  %v8534_v12 = vshrl.u32 %v17624_v58, %v8522_v47  ;;  %v8537_v24 = vshrl.u32 %v17607_v37, %v8522_v47 }
 0x4f7   : > { %v8526_v32 = vor.u32 %v8525_v4, %v8524_v0  ;;  %v8529_v22 = vor.u32 %v8528_v11, %v8527_v14  ;;  %vm8539_vm14 = vcmp.lt.s32.totalorder %v8520_v63, 1  ;;  %v8532_v33 = vor.u32 %v8531_v15, %v8530_v60 }
 0x4f8   : > { %v8384_v29 = vsel %vm8301_vm0, %v8383_v2, %v8382_v17  ;;  %v8466_v61 = vshll.u32 %v8465_v41, 30  ;;  %vm8542_vm5 = vcmp.lt.s32.totalorder %v8520_v63, 4  ;;  %v8535_v6 = vor.u32 %v8534_v12, %v8533_v8 }
 0x4f9   : > { %v8387_v49 = vsel %vm16585_vm12, %v16359_v48, %v8384_v29  ;;  %v8538_v50 = vor.u32 %v8537_v24, %v8536_v16  ;;  %vm8541_vm1 = vcmp.lt.s32.totalorder %v8520_v63, 3  ;;  %v8523_v57 = vshrl.u32 %v17617_v40, %v8522_v47 }
 0x4fa   : > { %11641 = vcosq.f32 %v8387_v49  ;;  %v16660_v46 = vsub.s32 %v8463_v44, %v8466_v61  ;;  %vm8540_vm3 = vcmp.lt.s32.totalorder %v8520_v63, 2  ;;  %v8544_v17 = vsel %vm8542_vm5, %v8532_v33, 2102212464 }
 0x4fb   : > { %11643 = vsinq.f32 %v8387_v49  ;;  %v8547_v0 = vsel %vm8539_vm14, %v8526_v32, %v8529_v22  ;;  %v8548_v26 = vsel %vm8542_vm5, %v8535_v6, 920167782  ;;  %v8555_v14 = vshll.u32 %v8515_v21, 8 }
 0x4fc   : > { %v8469_v60 = vsub.s32 0, %v16660_v46  ;;  %v8489_v2 = vsub.s32 4, %v8465_v41  ;;  %v8549_v8 = vsel %vm8541_vm1, %v8532_v33, %v8548_v26  ;;  %v16669_v4 = vmul.f32 %v7218_v27, %v17779_v62 }
 0x4fd   : > { %v8393_v61 = vand.u32 3, %v8392_v53  ;;  %v8550_v44 = vsel %vm8540_vm3, %v8547_v0, %v8549_v8  ;;  %v8551_v47 = vsel %vm8539_vm14, %v8529_v22, %v8532_v33  ;;  %v8552_v11 = vsel %vm8542_vm5, %v8538_v50, 1326507024 }
 0x4fe   : > { %vm17564_vm12 = vweird.f32 %v16359_v48  ;;  %v11130_v16 = vmin.u32 %v8469_v60, %v16660_v46  ;;  %v8543_v21 = vsel %vm8539_vm14, %v8523_v57, %v8526_v32  ;;  %v8545_v15 = vsel %vm8541_vm1, %v8529_v22, %v8544_v17 }
 0x4ff   : > { %v8553_v12 = vsel %vm8541_vm1, %v8535_v6, %v8552_v11  ;;  %vm8405_vm0 = vcmp.lt.s32.totalorder %v16485_v23, 0  ;;  %v16681_v53 = vmul.u32.u64.low %v8555_v14, %v8550_v44  ;;  %v16682_v24 = vmul.u32.u64.high %v8555_v14, %v8550_v44, %v16681_v53 }
 0x500   : > { %v8554_v27 = vsel %vm8540_vm3, %v8551_v47, %v8553_v12  ;;  %v17845_v33 = vand.u32 2147483647, %v16485_v23  ;;  %v8471_v49 = vclz %v11130_v16  ;;  %v8490_v57 = vsel %vm8405_vm0, %v8489_v2, %v8465_v41 }
 0x501   : > { %v17548_v32 = vand.u32 2147483647, %v16669_v4  ;;  %v8546_v22 = vsel %vm8540_vm3, %v8543_v21, %v8545_v15  ;;  %v16694_v6 = vmul.u32.u64.low %v8555_v14, %v8554_v27  ;;  %v16695_v50 = vmul.u32.u64.high %v8555_v14, %v8554_v27, %v16694_v6 }
 0x502   : > { %vm16686_vm7 = vcmp.le.f32.partialorder %v17845_v33, 0.7853982  ;;  %v8614_v17 = vand.u32 2139095040, %v16669_v4  ;;  %vm8394_vm10 = vcmp.lt.s32.totalorder %v8393_v61, 2  ;;  %vm8395_vm8 = vcmp.eq.s32.totalorder %v8393_v61, 0 }
 0x503   : > { %vm8398_vm13 = vcmp.eq.s32.totalorder %v8393_v61, 2  ;;  %v11131_v0 = vadd.s32 4294967294, %v8471_v49  ;;  %v8459_v60 = vadd.s32 %v16600_v3, %v16612_v42  ;;  %v16704_v41 = vsel %vm16686_vm7, 0, %v8490_v57 }
 0x504   : > { %v16698_v26 = vpop.eup %11641  ;;  %17849 = vst [vmem:[#allocation34_spill] sm:$0xff] %v16704_v41  ;;  %v8565_v63 = vadd.s32 1, %v16682_v24  ;;  %v8615_v2 = vshrl.u32 %v8614_v17, 23  ;;  %v8562_v47 = vmul.u32 %v8555_v14, %v8546_v22  ;;  %v8618_v11 = vand.u32 8388607, %v17548_v32 }
 0x505   : > { %17848 = vst [vmem:[#allocation30_spill] sm:$0xff] %v16698_v26  ;;  %v16707_v8 = vpop.eup %11643  ;;  %v17546_v44 = vxor.u32 2147483648, %v16698_v26  ;;  %vm11132_vm14 = vcmp.lt.s32.totalorder %v11131_v0, 0  ;;  %vm8564_vm5 = vc.u32 %v16695_v50, %v16681_v53  ;;  %v7222_v3 = vrot.slane %v15607_v54, %v17797_v34 }
 0x506   : > { %17850 = vst [vmem:[#allocation46_spill] sm:$0xff] %v16707_v8  ;;  %v17547_v16 = vxor.u32 2147483648, %v16707_v8  ;;  %v8474_v21 = vsel %vm11132_vm14, 0, %v11131_v0  ;;  %v8496_v33 = vadd.s32 3, %v16704_v41  ;;  %v8566_v49 = vsel %vm8564_vm5, %v8565_v63, %v16682_v24 }
 0x507   : > { %v8400_v42 = vsel %vm8398_vm13, %v17546_v44, %v16707_v8  ;;  %v8475_v15 = vsub.s32 32, %v8474_v21  ;;  %v8476_v12 = vshll.u32 %v16660_v46, %v8474_v21  ;;  %v8479_v14 = vsub.s32 4294967266, %v8474_v21 }
 0x508   : > { %v8397_v27 = vsel %vm8395_vm8, %v16698_v26, %v17547_v16  ;;  %v11137_v34 = vadd.s32 4294967169, %v8615_v2  ;;  %v8567_v17 = vadd.s32 %v8566_v49, %v8562_v47  ;;  %v8619_v0 = vor.u32 8388608, %v8618_v11 }
 0x509   : > { %v8401_v57 = vsel %vm8394_vm10, %v8397_v27, %v8400_v42  ;;  %v8477_v22 = vshrl.u32 %v8459_v60, %v8475_v15  ;;  %v8480_v6 = vadd.s32 127, %v8479_v14  ;;  %v16731_v44 = vmul.f32 %v7222_v3, %v17779_v62 }
 0x50a   : > { %v8402_v46 = vsel %vm17564_vm12, nan, %v8401_v57  ;;  %v8621_v21 = vadd.s32 1, %v11137_v34  ;;  %v8568_v8 = vadd.s32 536870912, %v8567_v17  ;;  %v16735_v47 = vand.u32 3, %v8496_v33 }
 0x50b   : > { %v8949_v16 = vrot.slane %v8402_v46, 2  ;;  %v8478_v32 = vor.u32 %v8477_v22, %v8476_v12  ;;  %v8481_v26 = vshll.u32 %v8480_v6, 23  ;;  %v17553_v24 = vand.u32 2147483647, %v16731_v44 }
 0x50c   : > { %vm8622_vm1 = vcmp.gt.s32.totalorder %v8621_v21, 0  ;;  %v8569_v63 = vshrl.u32 %v8568_v8, 30  ;;  %vm8509_vm3 = vcmp.lt.s32.totalorder %v16535_v30, 0  ;;  %v17851_v15 = vand.u32 2147483647, %v16535_v30 }
 0x50d   : > { %8981 = vst [vmem:[%s11905_s26 + $0x1d0] ss:$-124 sps:$4 sm:$0xc7] %v8949_v16   ;;  %v8482_v61 = vor.u32 4788187, %v8481_v26  ;;  %v8485_v60 = vcvt.s32.f32 %v8478_v32  ;;  %v8623_v2 = vsel %vm8622_vm1, %v8621_v21, 0  ;;  %v16747_v26 = vadd.s32 %v16681_v53, %v16695_v50 }
 0x50e   : > { %v8625_v11 = vand.u32 31, %v8623_v2  ;;  %vm16742_vm10 = vcmp.le.f32.partialorder %v17851_v15, 0.7853982  ;;  %v8570_v32 = vshll.u32 %v8569_v63, 30  ;;  %v16749_v8 = vshll.u32 %v8619_v0, 8 }
 0x50f   : > { %v8483_v42 = vand.u32 2147483647, %v8482_v61  ;;  %v8593_v16 = vsub.s32 4, %v8569_v63  ;;  %v8718_v27 = vand.u32 2139095040, %v16731_v44  ;;  %v16754_v33 = vand.u32 8388607, %v17553_v24 }
 0x510   : > { %v8626_v14 = vsub.s32 32, %v8625_v11  ;;  %v16756_v34 = vsub.s32 %v8567_v17, %v8570_v32  ;;  %v8628_v57 = vshll.u32 %v17617_v40, %v8625_v11  ;;  %v8631_v22 = vshll.u32 %v17618_v31, %v8625_v11 }
 0x511   : > { %v8486_v49 = vmul.f32 %v8485_v60, %v8483_v42  ;;  %v8634_v6 = vshll.u32 %v17619_v9, %v8625_v11  ;;  %v8637_v46 = vshll.u32 %v17784_v25, %v8625_v11  ;;  %v8624_v61 = vshrl.u32 %v8623_v2, 5 }
 0x512   : > { %v8629_v53 = vshrl.u32 %v17618_v31, %v8626_v14  ;;  %v8632_v50 = vshrl.u32 %v17619_v9, %v8626_v14  ;;  %v8573_v21 = vsub.s32 0, %v16756_v34  ;;  %v8635_v60 = vshrl.u32 %v17784_v25, %v8626_v14 }
 0x513   : > { %v8487_v0 = vxor.u32 2147483648, %v8486_v49  ;;  %v8594_v17 = vsel %vm8509_vm3, %v8593_v16, %v8569_v63  ;;  %v8627_v42 = vshrl.u32 %v17617_v40, %v8626_v14  ;;  %v8638_v15 = vshrl.u32 %v17624_v58, %v8626_v14 }
 0x514   : > { %v8640_v32 = vshll.u32 %v17624_v58, %v8625_v11  ;;  %v11134_v3 = vmin.u32 %v8573_v21, %v16756_v34  ;;  %v8630_v48 = vor.u32 %v8629_v53, %v8628_v57  ;;  %v8633_v45 = vor.u32 %v8632_v50, %v8631_v22 }
 0x515   : > { %v8488_v24 = vsel %vm8405_vm0, %v8487_v0, %v8486_v49  ;;  %v8636_v41 = vor.u32 %v8635_v60, %v8634_v6  ;;  %v8639_v7 = vor.u32 %v8638_v15, %v8637_v46  ;;  %v8641_v63 = vshrl.u32 %v17607_v37, %v8626_v14 }
 0x516   : > { %v8491_v2 = vsel %vm16686_vm7, %v16485_v23, %v8488_v24  ;;  %v8575_v16 = vclz %v11134_v3  ;;  %vm8643_vm8 = vcmp.lt.s32.totalorder %v8624_v61, 1  ;;  %v8719_v52 = vshrl.u32 %v8718_v27, 23 }
 0x517   : > { %11645 = vcosq.f32 %v8491_v2  ;;  %v16780_v11 = vsel %vm16742_vm10, 0, %v8594_v17  ;;  %v8642_v49 = vor.u32 %v8641_v63, %v8640_v32  ;;  %vm8644_vm0 = vcmp.lt.s32.totalorder %v8624_v61, 2 }
 0x518   : > { %11647 = vsinq.f32 %v8491_v2  ;;  %v11135_v57 = vadd.s32 4294967294, %v8575_v16  ;;  %vm8645_vm13 = vcmp.lt.s32.totalorder %v8624_v61, 3  ;;  %vm8646_vm14 = vcmp.lt.s32.totalorder %v8624_v61, 4 }
 0x519   : > { %v8647_v29 = vsel %vm8643_vm8, %v8627_v42, %v8630_v48  ;;  %v8648_v24 = vsel %vm8646_vm14, %v8636_v41, 2102212464  ;;  %v8651_v22 = vsel %vm8643_vm8, %v8630_v48, %v8633_v45  ;;  %v8652_v53 = vsel %vm8646_vm14, %v8639_v7, 920167782 }
 0x51a   : > { %v8655_v50 = vsel %vm8643_vm8, %v8633_v45, %v8636_v41  ;;  %vm8498_vm7 = vcmp.lt.s32.totalorder %v16735_v47, 2  ;;  %vm11136_vm5 = vcmp.lt.s32.totalorder %v11135_v57, 0  ;;  %v8649_v3 = vsel %vm8645_vm13, %v8633_v45, %v8648_v24 }
 0x51b   : > { %v8653_v14 = vsel %vm8645_vm13, %v8636_v41, %v8652_v53  ;;  %v8656_v27 = vsel %vm8646_vm14, %v8642_v49, 1326507024  ;;  %vm17563_vm1 = vweird.f32 %v16485_v23  ;;  %v8578_v6 = vsel %vm11136_vm5, 0, %v11135_v57 }
 0x51c   : > { %v8650_v46 = vsel %vm8644_vm0, %v8647_v29, %v8649_v3  ;;  %v8654_v0 = vsel %vm8644_vm0, %v8651_v22, %v8653_v14  ;;  %v8657_v21 = vsel %vm8645_vm13, %v8639_v7, %v8656_v27  ;;  %v8579_v48 = vsub.s32 32, %v8578_v6 }
 0x51d   : > { %v8580_v60 = vshll.u32 %v16756_v34, %v8578_v6  ;;  %v8583_v17 = vsub.s32 4294967266, %v8578_v6  ;;  %v8658_v42 = vsel %vm8644_vm0, %v8655_v50, %v8657_v21  ;;  %vm8499_vm8 = vcmp.eq.s32.totalorder %v16735_v47, 0 }
 0x51e   : > { %v16792_v45 = vmul.u32.u64.low %v16749_v8, %v8658_v42  ;;  %v16793_v15 = vmul.u32.u64.high %v16749_v8, %v8658_v42, %v16792_v45  ;;  %v16796_v41 = vmul.u32.u64.low %v16749_v8, %v8654_v0  ;;  %v16797_v32 = vmul.u32.u64.high %v16749_v8, %v8654_v0, %v16796_v41 }
 0x51f   : > { %v8581_v2 = vshrl.u32 %v16747_v26, %v8579_v48  ;;  %v8584_v7 = vadd.s32 127, %v8583_v17  ;;  %v11141_v63 = vadd.s32 4294967169, %v8719_v52  ;;  %vm8502_vm13 = vcmp.eq.s32.totalorder %v16735_v47, 2 }
 0x520   : > { %v8600_v34 = vadd.s32 3, %v16780_v11  ;;  %v17854_v61 = vrot.slane %v15607_v54, %v17805_v20  ;;  %v16811_v49 = vand.u32 3, %v15673_v1  ;;  %v8666_v26 = vmul.u32 %v16749_v8, %v8650_v46 }
 0x521   : > { %v16813_v57 = vpop.eup %11645  ;;  %v8582_v29 = vor.u32 %v8581_v2, %v8580_v60  ;;  %v8585_v24 = vshll.u32 %v8584_v7, 23  ;;  %v8725_v52 = vadd.s32 1, %v11141_v63  ;;  %vm8668_vm0 = vc.u32 %v16793_v15, %v16796_v41 }
 0x522   : > { %v16808_v16 = vmul.f32 %v17854_v61, %v17779_v62  ;;  %v16816_v22 = vpop.eup %11647  ;;  %v17561_v53 = vxor.u32 2147483648, %v16813_v57  ;;  %v8669_v62 = vadd.s32 1, %v16797_v32  ;;  %v8723_v54 = vor.u32 8388608, %v16754_v33 }
 0x523   : > { %v17562_v1 = vxor.u32 2147483648, %v16816_v22  ;;  %v8586_v20 = vor.u32 4788187, %v8585_v24  ;;  %v8589_v50 = vcvt.s32.f32 %v8582_v29  ;;  %vm8726_vm14 = vcmp.gt.s32.totalorder %v8725_v52, 0 }
 0x524   : > { %v8504_v8 = vsel %vm8502_vm13, %v17561_v53, %v16816_v22  ;;  %v16829_v3 = vand.u32 3, %v8600_v34  ;;  %vm8613_vm5 = vcmp.lt.s32.totalorder %v16669_v4, 0  ;;  %v8670_v14 = vsel %vm8668_vm0, %v8669_v62, %v16797_v32 }
 0x525   : > { %v8727_v27 = vsel %vm8726_vm14, %v8725_v52, 0  ;;  %v8501_v33 = vsel %vm8499_vm8, %v16813_v57, %v17562_v1  ;;  %v8587_v6 = vand.u32 2147483647, %v8586_v20  ;;  %v8671_v46 = vadd.s32 %v8670_v14, %v8666_v26 }
 0x526   : > { %v16838_v0 = vshrl.u32 %v8727_v27, 5  ;;  %v8505_v21 = vsel %vm8498_vm7, %v8501_v33, %v8504_v8  ;;  %v17855_v48 = vand.u32 2147483647, %v16669_v4  ;;  %v8729_v17 = vand.u32 31, %v8727_v27 }
 0x527   : > { %v16848_v42 = vshll.u32 %v8723_v54, 8  ;;  %v8819_v45 = vand.u32 2147483647, %v16808_v16  ;;  %v8506_v32 = vsel %vm17563_vm1, nan, %v8505_v21  ;;  %v8590_v2 = vmul.f32 %v8589_v50, %v8587_v6 }
 0x528   : > { %vm16844_vm13 = vcmp.le.f32.partialorder %v17855_v48, 0.7853982  ;;  %v8672_v7 = vadd.s32 536870912, %v8671_v46  ;;  %v8822_v47 = vand.u32 2139095040, %v16808_v16  ;;  %v8950_v63 = vrot.slane %v8506_v32, 2 }
 0x529   : > { %v8730_v34 = vsub.s32 32, %v8729_v17  ;;  %v8732_v61 = vshll.u32 %v17617_v40, %v8729_v17  ;;  %v8735_v29 = vshll.u32 %v17618_v31, %v8729_v17  ;;  %v8591_v24 = vxor.u32 2147483648, %v8590_v2 }
 0x52a   : > { %v8673_v26 = vshrl.u32 %v8672_v7, 30  ;;  %v8741_v52 = vshll.u32 %v17784_v25, %v8729_v17  ;;  %vm8747_vm7 = vcmp.lt.s32.totalorder %v16838_v0, 1  ;;  %8982 = vst [vmem:[%s11905_s26 + $0x1d8] ss:$-124 sps:$4 sm:$0xc7] %v8950_v63   ;;  %v8738_v20 = vshll.u32 %v17619_v9, %v8729_v17 }
 0x52b   : > { %v8733_v62 = vshrl.u32 %v17618_v31, %v8730_v34  ;;  %v8736_v54 = vshrl.u32 %v17619_v9, %v8730_v34  ;;  %v8739_v50 = vshrl.u32 %v17784_v25, %v8730_v34  ;;  %v8592_v8 = vsel %vm8509_vm3, %v8591_v24, %v8590_v2 }
 0x52c   : > { %v8674_v14 = vshll.u32 %v8673_v26, 30  ;;  %v8697_v27 = vsub.s32 4, %v8673_v26  ;;  %v8742_v33 = vshrl.u32 %v17624_v58, %v8730_v34  ;;  %v8595_v6 = vsel %vm16742_vm10, %v16535_v30, %v8592_v8 }
 0x52d   : > { %v8731_v21 = vshrl.u32 %v17617_v40, %v8730_v34  ;;  %v8734_v48 = vor.u32 %v8733_v62, %v8732_v61  ;;  %v8737_v32 = vor.u32 %v8736_v54, %v8735_v29  ;;  %11649 = vcosq.f32 %v8595_v6 }
 0x52e   : > { %v16870_v7 = vsub.s32 %v8671_v46, %v8674_v14  ;;  %v8698_v63 = vsel %vm8613_vm5, %v8697_v27, %v8673_v26  ;;  %v8743_v53 = vor.u32 %v8742_v33, %v8741_v52  ;;  %11651 = vsinq.f32 %v8595_v6 }
 0x52f   : > { %v8740_v2 = vor.u32 %v8739_v50, %v8738_v20  ;;  %v8744_v24 = vshll.u32 %v17624_v58, %v8729_v17  ;;  %v8745_v1 = vshrl.u32 %v17607_v37, %v8730_v34  ;;  %v16879_v8 = vsel %vm16844_vm13, 0, %v8698_v63 }
 0x530   : > { %v8677_v12 = vsub.s32 0, %v16870_v7  ;;  %vm8749_vm3 = vcmp.lt.s32.totalorder %v16838_v0, 3  ;;  %v8823_v46 = vshrl.u32 %v8822_v47, 23  ;;  %vm8748_vm10 = vcmp.lt.s32.totalorder %v16838_v0, 2 }
 0x531   : > { %v8746_v61 = vor.u32 %v8745_v1, %v8744_v24  ;;  %vm8750_vm8 = vcmp.lt.s32.totalorder %v16838_v0, 4  ;;  %v8751_v29 = vsel %vm8747_vm7, %v8731_v21, %v8734_v48  ;;  %v8755_v26 = vsel %vm8747_vm7, %v8734_v48, %v8737_v32 }
 0x532   : > { %v11138_v17 = vmin.u32 %v8677_v12, %v16870_v7  ;;  %v8752_v34 = vsel %vm8750_vm8, %v8740_v2, 2102212464  ;;  %v8756_v52 = vsel %vm8750_vm8, %v8743_v53, 920167782  ;;  %vm17568_vm0 = vweird.f32 %v16535_v30 }
 0x533   : > { %v8753_v47 = vsel %vm8749_vm3, %v8737_v32, %v8752_v34  ;;  %v8757_v1 = vsel %vm8749_vm3, %v8740_v2, %v8756_v52  ;;  %v8759_v62 = vsel %vm8747_vm7, %v8737_v32, %v8740_v2  ;;  %v8760_v54 = vsel %vm8750_vm8, %v8746_v61, 1326507024 }
 0x534   : > { %vm8602_vm14 = vcmp.lt.s32.totalorder %v16829_v3, 2  ;;  %v8679_v20 = vclz %v11138_v17  ;;  %v8704_v50 = vadd.s32 3, %v16879_v8  ;;  %v8826_v14 = vand.u32 8388607, %v8819_v45 }
 0x535   : > { %v8754_v27 = vsel %vm8748_vm10, %v8751_v29, %v8753_v47  ;;  %v8758_v33 = vsel %vm8748_vm10, %v8755_v26, %v8757_v1  ;;  %v8761_v6 = vsel %vm8749_vm3, %v8743_v53, %v8760_v54  ;;  %v11145_v21 = vadd.s32 4294967169, %v8823_v46 }
 0x536   : > { %v11139_v48 = vadd.s32 4294967294, %v8679_v20  ;;  %v8762_v32 = vsel %vm8748_vm10, %v8759_v62, %v8761_v6  ;;  %v16909_v63 = vmul.u32.u64.low %v16848_v42, %v8758_v33  ;;  %v16910_v2 = vmul.u32.u64.high %v16848_v42, %v8758_v33, %v16909_v63 }
 0x537   : > { %vm8603_vm7 = vcmp.eq.s32.totalorder %v16829_v3, 0  ;;  %vm8606_vm8 = vcmp.eq.s32.totalorder %v16829_v3, 2  ;;  %v16916_v24 = vmul.u32.u64.low %v16848_v42, %v8762_v32  ;;  %v16917_v12 = vmul.u32.u64.high %v16848_v42, %v8762_v32, %v16916_v24  ;;  %v16919_v61 = vpop.eup %11649 }
 0x538   : > { %v8667_v53 = vadd.s32 %v16796_v41, %v16793_v15  ;;  %vm11140_vm3 = vcmp.lt.s32.totalorder %v11139_v48, 0  ;;  %v16923_v0 = vand.u32 3, %v8704_v50  ;;  %v8829_v46 = vadd.s32 1, %v11145_v21  ;;  %v16925_v29 = vpop.eup %11651 }
 0x539   : > { %v17566_v17 = vxor.u32 2147483648, %v16919_v61  ;;  %v8682_v34 = vsel %vm11140_vm3, 0, %v11139_v48  ;;  %v8770_v26 = vmul.u32 %v16848_v42, %v8754_v27  ;;  %v8827_v52 = vor.u32 8388608, %v8826_v14 }
 0x53a   : > { %v17567_v47 = vxor.u32 2147483648, %v16925_v29  ;;  %v8683_v1 = vsub.s32 32, %v8682_v34  ;;  %v8684_v62 = vshll.u32 %v16870_v7, %v8682_v34  ;;  %v8687_v54 = vsub.s32 4294967266, %v8682_v34 }
 0x53b   : > { %vm9097_vm10 = vcmp.lt.s32.totalorder %v16811_v49, 2  ;;  %v8608_v15 = vsel %vm8606_vm8, %v17566_v17, %v16925_v29  ;;  %vm8772_vm3 = vc.u32 %v16917_v12, %v16909_v63  ;;  %v8773_v41 = vadd.s32 1, %v16910_v2 }
 0x53c   : > { %vm9098_vm1 = vcmp.eq.s32.totalorder %v16811_v49, 0  ;;  %v8605_v42 = vsel %vm8603_vm7, %v16919_v61, %v17567_v47  ;;  %v8685_v7 = vshrl.u32 %v8667_v53, %v8683_v1  ;;  %v8688_v20 = vadd.s32 127, %v8687_v54 }
 0x53d   : > { %vm8830_vm12 = vcmp.gt.s32.totalorder %v8829_v46, 0  ;;  %v8609_v50 = vsel %vm8602_vm14, %v8605_v42, %v8608_v15  ;;  %vm8717_vm8 = vcmp.lt.s32.totalorder %v16731_v44, 0  ;;  %v8774_v14 = vsel %vm8772_vm3, %v8773_v41, %v16910_v2 }
 0x53e   : > { %v8831_v27 = vsel %vm8830_vm12, %v8829_v46, 0  ;;  %vm9101_vm9 = vcmp.eq.s32.totalorder %v16811_v49, 2  ;;  %v8610_v33 = vsel %vm17568_vm0, nan, %v8609_v50  ;;  %v8686_v6 = vor.u32 %v8685_v7, %v8684_v62 }
 0x53f   : > { %v8689_v21 = vshll.u32 %v8688_v20, 23  ;;  %v17858_v48 = vand.u32 2147483647, %v16731_v44  ;;  %v8775_v3 = vadd.s32 %v8774_v14, %v8770_v26  ;;  %v8951_v24 = vrot.slane %v8610_v33, 2 }
 0x540   : > { %v8833_v53 = vand.u32 31, %v8831_v27  ;;  %v16959_v34 = vshll.u32 %v8827_v52, 8  ;;  %v17861_v2 = vxor.u32 2147483648, %v15763_v28  ;;  %v8693_v62 = vcvt.s32.f32 %v8686_v6 }
 0x541   : > { %vm16955_vm7 = vcmp.le.f32.partialorder %v17858_v48, 0.7853982  ;;  %v8690_v1 = vor.u32 4788187, %v8689_v21  ;;  %v8776_v54 = vadd.s32 536870912, %v8775_v3  ;;  %v16966_v15 = vshrl.u32 %v8831_v27, 5 }
 0x542   : > { %v9100_v46 = vsel %vm9098_vm1, %v15754_v19, %v17861_v2  ;;  %8983 = vst [vmem:[%s11905_s26 + $0x1e0] ss:$-124 sps:$4 sm:$0xc7] %v8951_v24   ;;  %v8834_v41 = vsub.s32 32, %v8833_v53  ;;  %v8836_v42 = vshll.u32 %v17617_v40, %v8833_v53  ;;  %v8839_v26 = vshll.u32 %v17618_v31, %v8833_v53 }
 0x543   : > { %v17862_v52 = vxor.u32 2147483648, %v15754_v19  ;;  %v8691_v20 = vand.u32 2147483647, %v8690_v1  ;;  %v8777_v50 = vshrl.u32 %v8776_v54, 30  ;;  %v8842_v14 = vshll.u32 %v17619_v9, %v8833_v53 }
 0x544   : > { %v8845_v33 = vshll.u32 %v17784_v25, %v8833_v53  ;;  %v8837_v27 = vshrl.u32 %v17618_v31, %v8834_v41  ;;  %v8840_v6 = vshrl.u32 %v17619_v9, %v8834_v41  ;;  %v8843_v21 = vshrl.u32 %v17784_v25, %v8834_v41 }
 0x545   : > { %v9103_v7 = vsel %vm9101_vm9, %v17862_v52, %v15763_v28  ;;  %v8848_v48 = vshll.u32 %v17624_v58, %v8833_v53  ;;  %v8694_v24 = vmul.f32 %v8693_v62, %v8691_v20  ;;  %v8778_v2 = vshll.u32 %v8777_v50, 30 }
 0x546   : > { %v8801_v19 = vsub.s32 4, %v8777_v50  ;;  %v8846_v17 = vshrl.u32 %v17624_v58, %v8834_v41  ;;  %v8835_v28 = vshrl.u32 %v17617_v40, %v8834_v41  ;;  %v8838_v1 = vor.u32 %v8837_v27, %v8836_v42 }
 0x547   : > { %v8849_v54 = vshrl.u32 %v17607_v37, %v8834_v41  ;;  %v9104_v52 = vsel %vm9097_vm10, %v9100_v46, %v9103_v7  ;;  %v8695_v31 = vxor.u32 2147483648, %v8694_v24  ;;  %v16987_v47 = vsub.s32 %v8775_v3, %v8778_v2 }
 0x548   : > { %v8802_v9 = vsel %vm8717_vm8, %v8801_v19, %v8777_v50  ;;  %v8841_v25 = vor.u32 %v8840_v6, %v8839_v26  ;;  %v8844_v58 = vor.u32 %v8843_v21, %v8842_v14  ;;  %v8847_v62 = vor.u32 %v8846_v17, %v8845_v33 }
 0x549   : > { %v16993_v53 = vsel %vm16955_vm7, 0, %v8802_v9  ;;  %v8850_v40 = vor.u32 %v8849_v54, %v8848_v48  ;;  %v8696_v37 = vsel %vm8613_vm5, %v8695_v31, %v8694_v24  ;;  %v8781_v49 = vsub.s32 0, %v16987_v47 }
 0x54a   : > { %vm8851_vm9 = vcmp.lt.s32.totalorder %v16966_v15, 1  ;;  %vm8852_vm12 = vcmp.lt.s32.totalorder %v16966_v15, 2  ;;  %v8699_v3 = vsel %vm16844_vm13, %v16669_v4, %v8696_v37  ;;  %v8808_v46 = vadd.s32 3, %v16993_v53 }
 0x54b   : > { %vm8853_vm1 = vcmp.lt.s32.totalorder %v16966_v15, 3  ;;  %vm8854_vm14 = vcmp.lt.s32.totalorder %v16966_v15, 4  ;;  %11653 = vcosq.f32 %v8699_v3  ;;  %v11142_v17 = vmin.u32 %v8781_v49, %v16987_v47 }
 0x54c   : > { %v8855_v41 = vsel %vm8851_vm9, %v8835_v28, %v8838_v1  ;;  %v8856_v42 = vsel %vm8854_vm14, %v8844_v58, 2102212464  ;;  %11655 = vsinq.f32 %v8699_v3  ;;  %v8859_v26 = vsel %vm8851_vm9, %v8838_v1, %v8841_v25 }
 0x54d   : > { %v8857_v60 = vsel %vm8853_vm1, %v8841_v25, %v8856_v42  ;;  %v8860_v7 = vsel %vm8854_vm14, %v8847_v62, 920167782  ;;  %vm8710_vm5 = vcmp.eq.s32.totalorder %v16923_v0, 2  ;;  %v8771_v20 = vadd.s32 %v16909_v63, %v16917_v12 }
 0x54e   : > { %v8783_v50 = vclz %v11142_v17  ;;  %v8863_v14 = vsel %vm8851_vm9, %v8841_v25, %v8844_v58  ;;  %vm8707_vm13 = vcmp.eq.s32.totalorder %v16923_v0, 0  ;;  %v17023_v33 = vand.u32 3, %v8808_v46 }
 0x54f   : > { %v8861_v27 = vsel %vm8853_vm1, %v8844_v58, %v8860_v7  ;;  %v8864_v6 = vsel %vm8854_vm14, %v8850_v40, 1326507024  ;;  %v9105_v21 = vsel %vm7351_vm11, nan, %v9104_v52  ;;  %vm8706_vm10 = vcmp.lt.s32.totalorder %v16923_v0, 2 }
 0x550   : > { %v11143_v63 = vadd.s32 4294967294, %v8783_v50  ;;  %v8858_v12 = vsel %vm8852_vm12, %v8855_v41, %v8857_v60  ;;  %v8862_v48 = vsel %vm8852_vm12, %v8859_v26, %v8861_v27  ;;  %v8865_v24 = vsel %vm8853_vm1, %v8847_v62, %v8864_v6 }
 0x551   : > { %vm8703_vm3 = vweird.f32 %v16669_v4  ;;  %v8866_v2 = vsel %vm8852_vm12, %v8863_v14, %v8865_v24  ;;  %v17042_v13 = vmul.u32.u64.low %v16959_v34, %v8862_v48  ;;  %v17043_v19 = vmul.u32.u64.high %v16959_v34, %v8862_v48, %v17042_v13 }
 0x552   : > { %v10667_v28 = vrot.slane %v9105_v21, 5  ;;  %vm11144_vm11 = vcmp.lt.s32.totalorder %v11143_v63, 0  ;;  %v17047_v1 = vmul.u32.u64.low %v16959_v34, %v8866_v2  ;;  %v17048_v54 = vmul.u32.u64.high %v16959_v34, %v8866_v2, %v17047_v1 }
 0x553   : > { %v9199_v52 = vand.u32 3, %v15707_v10  ;;  %v8786_v31 = vsel %vm11144_vm11, 0, %v11143_v63  ;;  %v8874_v9 = vmul.u32 %v16959_v34, %v8858_v12  ;;  %v9302_v15 = vand.u32 3, %v15839_v36 }
 0x554   : > { %10699 = vst [vmem:[%s11905_s26 + $0x180] sm:$0xf8] %v10667_v28  ;;  %v17055_v25 = vand.u32 3, %v15971_v43  ;;  %v8787_v58 = vsub.s32 32, %v8786_v31  ;;  %v8788_v62 = vshll.u32 %v16987_v47, %v8786_v31  ;;  %v8791_v40 = vsub.s32 4294967266, %v8786_v31 }
 0x555   : > { %v17059_v37 = vand.u32 3, %v16057_v59  ;;  %v8877_v49 = vadd.s32 1, %v17043_v19  ;;  %vm9200_vm9 = vcmp.lt.s32.totalorder %v9199_v52, 2  ;;  %vm9201_vm12 = vcmp.eq.s32.totalorder %v9199_v52, 0  ;;  %v17062_v10 = vpop.eup %11653 }
 0x556   : > { %vm9204_vm1 = vcmp.eq.s32.totalorder %v9199_v52, 2  ;;  %v8789_v34 = vshrl.u32 %v8771_v20, %v8787_v58  ;;  %v8792_v3 = vadd.s32 127, %v8791_v40  ;;  %vm8876_vm14 = vc.u32 %v17048_v54, %v17042_v13  ;;  %v17066_v36 = vpop.eup %11655  ;;  %v17871_v40 = vld [vmem:[#allocation27_spill] sm:$0xff] }
 0x557   : > { %vm9303_vm11 = vcmp.lt.s32.totalorder %v9302_v15, 2  ;;  %v8711_v43 = vxor.u32 2147483648, %v17062_v10  ;;  %vm8821_vm0 = vcmp.lt.s32.totalorder %v16808_v16, 0  ;;  %v8878_v59 = vsel %vm8876_vm14, %v8877_v49, %v17043_v19 }
 0x558   : > { %v17863_v47 = vxor.u32 2147483648, %v15834_v38  ;;  %v17864_v17 = vxor.u32 2147483648, %v15827_v18  ;;  %v8708_v42 = vxor.u32 2147483648, %v17066_v36  ;;  %v8790_v60 = vor.u32 %v8789_v34, %v8788_v62 }
 0x559   : > { %v8793_v26 = vshll.u32 %v8792_v3, 23  ;;  %vm17080_vm6 = vcmp.le.f32.partialorder %v8819_v45, 0.7853982  ;;  %v8879_v20 = vadd.s32 %v8878_v59, %v8874_v9  ;;  %v8712_v50 = vsel %vm8710_vm5, %v8711_v43, %v17066_v36 }
 0x55a   : > { %v9203_v46 = vsel %vm9201_vm12, %v15827_v18, %v17863_v47  ;;  %v9206_v41 = vsel %vm9204_vm1, %v17864_v17, %v15834_v38  ;;  %vm9304_vm12 = vcmp.eq.s32.totalorder %v9302_v15, 0  ;;  %vm9307_vm1 = vcmp.eq.s32.totalorder %v9302_v15, 2 }
 0x55b   : > { %v9207_v18 = vsel %vm9200_vm9, %v9203_v46, %v9206_v41  ;;  %v8709_v38 = vsel %vm8707_vm13, %v17062_v10, %v8708_v42  ;;  %v8794_v45 = vor.u32 4788187, %v8793_v26  ;;  %v8797_v14 = vcvt.s32.f32 %v8790_v60 }
 0x55c   : > { %v8880_v27 = vadd.s32 536870912, %v8879_v20  ;;  %v8713_v6 = vsel %vm8706_vm10, %v8709_v38, %v8712_v50  ;;  %v9208_v21 = vsel %vm7455_vm4, nan, %v9207_v18  ;;  %v17867_v63 = vxor.u32 2147483648, %v15927_v39  ;;  %v17874_v18 = vld [vmem:[#allocation26_spill] sm:$0xff] }
 0x55d   : > { %v17868_v48 = vxor.u32 2147483648, %v15919_v5  ;;  %v8714_v2 = vsel %vm8703_vm3, nan, %v8713_v6  ;;  %v8795_v19 = vand.u32 2147483647, %v8794_v45  ;;  %v10668_v0 = vrot.slane %v9208_v21, 5  ;;  %v17876_v45 = vld [vmem:[#allocation28_spill] sm:$0xff] }
 0x55e   : > { %v9306_v12 = vsel %vm9304_vm12, %v15919_v5, %v17867_v63  ;;  %v8881_v28 = vshrl.u32 %v8880_v27, 30  ;;  %v8952_v1 = vrot.slane %v8714_v2, 2  ;;  %vm9406_vm4 = vcmp.lt.s32.totalorder %v17055_v25, 2  ;;  %v17881_v2 = vld [vmem:[#allocation32_spill] sm:$0xff] }
 0x55f   : > { %v9309_v24 = vsel %vm9307_vm1, %v17868_v48, %v15927_v39  ;;  %vm9407_vm5 = vcmp.eq.s32.totalorder %v17055_v25, 0  ;;  %v8798_v56 = vmul.f32 %v8797_v14, %v8795_v19  ;;  %10700 = vst [vmem:[%s11905_s26 + $0x188] sm:$0xf8] %v10668_v0  ;;  %v17870_v62 = vxor.u32 2147483648, %v16028_v35  ;;  %v17880_v48 = vld [vmem:[#allocation18_spill] sm:$0xff] }
 0x560   : > { %v9310_v52 = vsel %vm9303_vm11, %v9306_v12, %v9309_v24  ;;  %v8882_v31 = vshll.u32 %v8881_v28, 30  ;;  %v8905_v9 = vsub.s32 4, %v8881_v28  ;;  %8984 = vst [vmem:[%s11905_s26 + $0x1e8] ss:$-124 sps:$4 sm:$0xc7] %v8952_v1   ;;  %vm9410_vm13 = vcmp.eq.s32.totalorder %v17055_v25, 2 }
 0x561   : > { %v9311_v39 = vsel %vm7559_vm2, nan, %v9310_v52  ;;  %v9409_v49 = vsel %vm9407_vm5, %v17871_v40, %v17870_v62  ;;  %vm9509_vm10 = vcmp.lt.s32.totalorder %v17059_v37, 2  ;;  %v8799_v15 = vxor.u32 2147483648, %v8798_v56  ;;  %v17878_v12 = vld [vmem:[#allocation23_spill] sm:$0xff]  ;;  %v17886_v62 = vld [vmem:[#allocation22_spill] sm:$0xff] }
 0x562   : > { %v10669_v58 = vrot.slane %v9311_v39, 5  ;;  %v17119_v34 = vsub.s32 %v8879_v20, %v8882_v31  ;;  %v8906_v3 = vsel %vm8821_vm0, %v8905_v9, %v8881_v28  ;;  %v17872_v59 = vxor.u32 2147483648, %v17871_v40  ;;  %v17884_v9 = vld [vmem:[#allocation37_spill] sm:$0xff] }
 0x563   : > { %v17128_v46 = vsel %vm17080_vm6, 0, %v8906_v3  ;;  %vm9510_vm2 = vcmp.eq.s32.totalorder %v17059_v37, 0  ;;  %vm9513_vm9 = vcmp.eq.s32.totalorder %v17059_v37, 2  ;;  %v8800_v41 = vsel %vm8717_vm8, %v8799_v15, %v8798_v56  ;;  %v17882_v56 = vld [vmem:[#allocation19_spill] sm:$0xff]  ;;  %v17890_v3 = vld [vmem:[#allocation20_spill] sm:$0xff] }
 0x564   : > { %v9412_v47 = vsel %vm9410_vm13, %v17872_v59, %v16028_v35  ;;  %10701 = vst [vmem:[%s11905_s26 + $0x190] sm:$0xf8] %v10669_v58  ;;  %v8885_v60 = vsub.s32 0, %v17119_v34  ;;  %v8912_v35 = vadd.s32 3, %v17128_v46  ;;  %v8803_v25 = vsel %vm16955_vm7, %v16731_v44, %v8800_v41 }
 0x565   : > { %v9413_v17 = vsel %vm9406_vm4, %v9409_v49, %v9412_v47  ;;  %v17875_v38 = vxor.u32 2147483648, %v17874_v18  ;;  %v17877_v27 = vxor.u32 2147483648, %v17876_v45  ;;  %11657 = vcosq.f32 %v8803_v25  ;;  %v17888_v49 = vld [vmem:[#allocation36_spill] sm:$0xff] }
 0x566   : > { %v9414_v20 = vsel %vm7663_vm15, nan, %v9413_v17  ;;  %v11146_v21 = vmin.u32 %v8885_v60, %v17119_v34  ;;  %11659 = vsinq.f32 %v8803_v25  ;;  %vm17879_vm15 = vweird.f32 %v17878_v12  ;;  %v17892_v25 = vld [vmem:[#allocation16_spill] sm:$0xff] }
 0x567   : > { %v10670_v50 = vrot.slane %v9414_v20, 5  ;;  %v9512_v14 = vsel %vm9510_vm2, %v17876_v45, %v17875_v38  ;;  %v9515_v6 = vsel %vm9513_vm9, %v17877_v27, %v17874_v18  ;;  %v9611_v24 = vand.u32 3, %v17880_v48 }
 0x568   : > { %v9516_v63 = vsel %vm9509_vm10, %v9512_v14, %v9515_v6  ;;  %v9714_v19 = vand.u32 3, %v17881_v2  ;;  %vm8814_vm8 = vcmp.eq.s32.totalorder %v17023_v33, 2  ;;  %v8875_v28 = vadd.s32 %v17042_v13, %v17048_v54  ;;  %v17894_v6 = vld [vmem:[#allocation40_spill] sm:$0xff] }
 0x569   : > { %10702 = vst [vmem:[%s11905_s26 + $0x198] sm:$0xf8] %v10670_v50  ;;  %v9517_v32 = vsel %vm17879_vm15, nan, %v9516_v63  ;;  %v8887_v0 = vclz %v11146_v21  ;;  %v17161_v1 = vand.u32 3, %v8912_v35  ;;  %vm8811_vm7 = vcmp.eq.s32.totalorder %v17023_v33, 0  ;;  %v17896_v63 = vld [vmem:[#allocation25_spill] sm:$0xff] }
 0x56a   : > { %v10671_v37 = vrot.slane %v9517_v32, 5  ;;  %vm9612_vm14 = vcmp.lt.s32.totalorder %v9611_v24, 2  ;;  %vm9613_vm11 = vcmp.eq.s32.totalorder %v9611_v24, 0  ;;  %vm9616_vm12 = vcmp.eq.s32.totalorder %v9611_v24, 2 }
 0x56b   : > { %vm8810_vm1 = vcmp.lt.s32.totalorder %v17023_v33, 2  ;;  %v11147_v52 = vadd.s32 4294967294, %v8887_v0  ;;  %v17883_v31 = vxor.u32 2147483648, %v17882_v56  ;;  %v17885_v39 = vxor.u32 2147483648, %v17884_v9  ;;  %v17898_v0 = vld [vmem:[#allocation17_spill] sm:$0xff] }
 0x56c   : > { %vm9715_vm4 = vcmp.lt.s32.totalorder %v9714_v19, 2  ;;  %vm8807_vm5 = vweird.f32 %v16731_v44  ;;  %10703 = vst [vmem:[%s11905_s26 + $0x1a0] sm:$0xf8] %v10671_v37  ;;  %vm9716_vm13 = vcmp.eq.s32.totalorder %v9714_v19, 0  ;;  %vm9719_vm10 = vcmp.eq.s32.totalorder %v9714_v19, 2 }
 0x56d   : > { %v9615_v5 = vsel %vm9613_vm11, %v17884_v9, %v17883_v31  ;;  %v9618_v13 = vsel %vm9616_vm12, %v17885_v39, %v17882_v56  ;;  %v9817_v58 = vand.u32 3, %v16317_v51  ;;  %vm11148_vm2 = vcmp.lt.s32.totalorder %v11147_v52, 0  ;;  %v17900_v31 = vld [vmem:[#allocation29_spill] sm:$0xff] }
 0x56e   : > { %v9619_v54 = vsel %vm9612_vm14, %v9615_v5, %v9618_v13  ;;  %vm17887_vm9 = vweird.f32 %v17886_v62  ;;  %v17889_v15 = vxor.u32 2147483648, %v17888_v49  ;;  %v17891_v47 = vxor.u32 2147483648, %v17890_v3  ;;  %v17902_v5 = vld [vmem:[#allocation39_spill] sm:$0xff] }
 0x56f   : > { %v9620_v40 = vsel %vm17887_vm9, nan, %v9619_v54  ;;  %v8890_v41 = vsel %vm11148_vm2, 0, %v11147_v52  ;;  %vm9818_vm15 = vcmp.lt.s32.totalorder %v9817_v58, 2  ;;  %vm17893_vm14 = vweird.f32 %v17892_v25  ;;  %v17187_v45 = vpop.eup %11657 }
 0x570   : > { %v9718_v59 = vsel %vm9716_vm13, %v17890_v3, %v17889_v15  ;;  %v9721_v17 = vsel %vm9719_vm10, %v17891_v47, %v17888_v49  ;;  %v10672_v60 = vrot.slane %v9620_v40, 5  ;;  %v8891_v26 = vsub.s32 32, %v8890_v41  ;;  %v17195_v48 = vpop.eup %11659  ;;  %v17904_v3 = vld [vmem:[#allocation41_spill] sm:$0xff]  ;;  %v17905_v47 = vld [vmem:[#allocation44_spill] sm:$0xff] }
 0x571   : > { %v9722_v35 = vsel %vm9715_vm4, %v9718_v59, %v9721_v17  ;;  %v8892_v51 = vshll.u32 %v17119_v34, %v8890_v41  ;;  %v8895_v20 = vsub.s32 4294967266, %v8890_v41  ;;  %vm9819_vm11 = vcmp.eq.s32.totalorder %v9817_v58, 0 }
 0x572   : > { %v9723_v50 = vsel %vm17893_vm14, nan, %v9722_v35  ;;  %10704 = vst [vmem:[%s11905_s26 + $0x1a8] sm:$0xf8] %v10672_v60  ;;  %vm9822_vm12 = vcmp.eq.s32.totalorder %v9817_v58, 2  ;;  %v9920_v38 = vand.u32 3, %v16426_v55  ;;  %v8893_v14 = vshrl.u32 %v8875_v28, %v8891_v26  ;;  %v17906_v35 = vld [vmem:[#allocation33_spill] sm:$0xff] }
 0x573   : > { %v10673_v18 = vrot.slane %v9723_v50, 5  ;;  %v8896_v27 = vadd.s32 127, %v8895_v20  ;;  %v17895_v21 = vxor.u32 2147483648, %v17894_v6  ;;  %v17897_v34 = vxor.u32 2147483648, %v17896_v63 }
 0x574   : > { %v8815_v24 = vxor.u32 2147483648, %v17187_v45  ;;  %vm9921_vm4 = vcmp.lt.s32.totalorder %v9920_v38, 2  ;;  %vm9922_vm13 = vcmp.eq.s32.totalorder %v9920_v38, 0  ;;  %v8812_v55 = vxor.u32 2147483648, %v17195_v48 }
 0x575   : > { %v9821_v12 = vsel %vm9819_vm11, %v17896_v63, %v17895_v21  ;;  %v9824_v32 = vsel %vm9822_vm12, %v17897_v34, %v17894_v6  ;;  %10705 = vst [vmem:[%s11905_s26 + $0x1b0] sm:$0xf8] %v10673_v18  ;;  %v8894_v19 = vor.u32 %v8893_v14, %v8892_v51  ;;  %v8897_v28 = vshll.u32 %v8896_v27, 23  ;;  %v17908_v51 = vld [vmem:[#allocation34_spill] sm:$0xff]  ;;  %v17911_v14 = vld [vmem:[#allocation43_spill] sm:$0xff] }
 0x576   : > { %v9825_v2 = vsel %vm9818_vm15, %v9821_v12, %v9824_v32  ;;  %vm17899_vm10 = vweird.f32 %v17898_v0  ;;  %v8816_v52 = vsel %vm8814_vm8, %v8815_v24, %v17195_v48  ;;  %v17901_v9 = vxor.u32 2147483648, %v17900_v31  ;;  %v17909_v18 = vld [vmem:[#allocation42_spill] sm:$0xff] }
 0x577   : > { %v9826_v37 = vsel %vm17899_vm10, nan, %v9825_v2  ;;  %vm9925_vm2 = vcmp.eq.s32.totalorder %v9920_v38, 2  ;;  %v8813_v13 = vsel %vm8811_vm7, %v17187_v45, %v8812_v55  ;;  %v8898_v54 = vor.u32 4788187, %v8897_v28  ;;  %v17913_v34 = vld [vmem:[#allocation46_spill] sm:$0xff] }
 0x578   : > { %v10674_v56 = vrot.slane %v9826_v37, 5  ;;  %v9924_v39 = vsel %vm9922_vm13, %v17902_v5, %v17901_v9  ;;  %v8901_v58 = vcvt.s32.f32 %v8894_v19  ;;  %v17903_v62 = vxor.u32 2147483648, %v17902_v5  ;;  %v17915_v2 = vld [vmem:[#allocation30_spill] sm:$0xff]  ;;  %v17917_v37 = vld [vmem:[#allocation31_spill] sm:$0xff] }
 0x579   : > { %v8817_v49 = vsel %vm8810_vm1, %v8813_v13, %v8816_v52  ;;  %v10023_v59 = vand.u32 3, %v17904_v3  ;;  %v10126_v17 = vand.u32 3, %v17905_v47  ;;  %v8899_v60 = vand.u32 2147483647, %v8898_v54  ;;  %v17919_v5 = vld [vmem:[#allocation35_spill] sm:$0xff] }
 0x57a   : > { %v9927_v40 = vsel %vm9925_vm2, %v17903_v62, %v17900_v31  ;;  %10706 = vst [vmem:[%s11905_s26 + $0x1b8] sm:$0xf8] %v10674_v56  ;;  %v8818_v41 = vsel %vm8807_vm5, nan, %v8817_v49  ;;  %vm17907_vm8 = vweird.f32 %v17906_v35  ;;  %v10229_v20 = vand.u32 3, %v17908_v51 }
 0x57b   : > { %v9928_v15 = vsel %vm9921_vm4, %v9924_v39, %v9927_v40  ;;  %v8953_v33 = vrot.slane %v8818_v41, 2  ;;  %vm10024_vm7 = vcmp.lt.s32.totalorder %v10023_v59, 2  ;;  %vm10025_vm1 = vcmp.eq.s32.totalorder %v10023_v59, 0 }
 0x57c   : > { %v9929_v26 = vsel %vm17907_vm8, nan, %v9928_v15  ;;  %v8902_v50 = vmul.f32 %v8901_v58, %v8899_v60  ;;  %v17910_v38 = vxor.u32 2147483648, %v17909_v18  ;;  %vm10028_vm9 = vcmp.eq.s32.totalorder %v10023_v59, 2 }
 0x57d   : > { %v10675_v25 = vrot.slane %v9929_v26, 5  ;;  %vm10127_vm15 = vcmp.lt.s32.totalorder %v10126_v17, 2  ;;  %8985 = vst [vmem:[%s11905_s26 + $0x1f0] ss:$-124 sps:$4 sm:$0xc7] %v8953_v33   ;;  %v17912_v6 = vxor.u32 2147483648, %v17911_v14  ;;  %vm17918_vm4 = vweird.f32 %v17917_v37 }
 0x57e   : > { %v10027_v27 = vsel %vm10025_vm1, %v17911_v14, %v17910_v38  ;;  %vm10128_vm14 = vcmp.eq.s32.totalorder %v10126_v17, 0  ;;  %vm10131_vm11 = vcmp.eq.s32.totalorder %v10126_v17, 2  ;;  %vm10230_vm12 = vcmp.lt.s32.totalorder %v10229_v20, 2 }
 0x57f   : > { %10707 = vst [vmem:[%s11905_s26 + $0x1c0] sm:$0xf8] %v10675_v25  ;;  %v10030_v21 = vsel %vm10028_vm9, %v17912_v6, %v17909_v18  ;;  %v8903_v63 = vxor.u32 2147483648, %v8902_v50  ;;  %v17914_v32 = vxor.u32 2147483648, %v17913_v34  ;;  %v17916_v28 = vxor.u32 2147483648, %v17915_v2 }
 0x580   : > { %v10031_v12 = vsel %vm10024_vm7, %v10027_v27, %v10030_v21  ;;  %vm10231_vm13 = vcmp.eq.s32.totalorder %v10229_v20, 0  ;;  %vm10234_vm10 = vcmp.eq.s32.totalorder %v10229_v20, 2  ;;  %vm17920_vm2 = vweird.f32 %v17919_v5 }
 0x581   : > { %v10130_v19 = vsel %vm10128_vm14, %v17915_v2, %v17914_v32  ;;  %v10133_v0 = vsel %vm10131_vm11, %v17916_v28, %v17913_v34  ;;  %v10032_v52 = vsel %vm17918_vm4, nan, %v10031_v12  ;;  %v8904_v31 = vsel %vm8821_vm0, %v8903_v63, %v8902_v50 }
 0x582   : > { %v10134_v56 = vsel %vm10127_vm15, %v10130_v19, %v10133_v0  ;;  %v10676_v9 = vrot.slane %v10032_v52, 5  ;;  %v17921_v13 = vxor.u32 2147483648, %v16816_v22  ;;  %v8907_v58 = vsel %vm17080_vm6, %v16808_v16, %v8904_v31 }
 0x583   : > { %v10135_v39 = vsel %vm17920_vm2, nan, %v10134_v56  ;;  %v17922_v40 = vxor.u32 2147483648, %v16813_v57  ;;  %v10332_v15 = vand.u32 3, %v16780_v11  ;;  %11661 = vcosq.f32 %v8907_v58 }
 0x584   : > { %v10233_v54 = vsel %vm10231_vm13, %v16813_v57, %v17921_v13  ;;  %v10677_v62 = vrot.slane %v10135_v39, 5  ;;  %10708 = vst [vmem:[%s11905_s26 + $0x1c8] sm:$0xf8] %v10676_v9  ;;  %v10435_v59 = vand.u32 3, %v16879_v8  ;;  %v10538_v47 = vand.u32 3, %v16993_v53 }
 0x585   : > { %v10236_v49 = vsel %vm10234_vm10, %v17922_v40, %v16816_v22  ;;  %11663 = vsinq.f32 %v8907_v58  ;;  %vm17923_vm6 = vweird.f32 %v16485_v23  ;;  %vm10333_vm0 = vcmp.lt.s32.totalorder %v10332_v15, 2 }
 0x586   : > { %v10237_v3 = vsel %vm10230_vm12, %v10233_v54, %v10236_v49  ;;  %10709 = vst [vmem:[%s11905_s26 + $0x1d0] sm:$0xf8] %v10677_v62  ;;  %vm10334_vm8 = vcmp.eq.s32.totalorder %v10332_v15, 0  ;;  %v17924_v22 = vxor.u32 2147483648, %v16925_v29  ;;  %vm10337_vm7 = vcmp.eq.s32.totalorder %v10332_v15, 2 }
 0x587   : > { %v10238_v7 = vsel %vm17923_vm6, nan, %v10237_v3  ;;  %vm10436_vm1 = vcmp.lt.s32.totalorder %v10435_v59, 2  ;;  %v17925_v17 = vxor.u32 2147483648, %v16919_v61  ;;  %vm10437_vm9 = vcmp.eq.s32.totalorder %v10435_v59, 0 }
 0x588   : > { %v10678_v57 = vrot.slane %v10238_v7, 5  ;;  %v10336_v11 = vsel %vm10334_vm8, %v16919_v61, %v17924_v22  ;;  %vm10440_vm15 = vcmp.eq.s32.totalorder %v10435_v59, 2  ;;  %vm10539_vm14 = vcmp.lt.s32.totalorder %v10538_v47, 2 }
 0x589   : > { %v10339_v8 = vsel %vm10337_vm7, %v17925_v17, %v16925_v29  ;;  %v10439_v53 = vsel %vm10437_vm9, %v17062_v10, %v8708_v42  ;;  %v10442_v41 = vsel %vm10440_vm15, %v8711_v43, %v17066_v36  ;;  %vm10540_vm11 = vcmp.eq.s32.totalorder %v10538_v47, 0 }
 0x58a   : > { %10710 = vst [vmem:[%s11905_s26 + $0x1d8] sm:$0xf8] %v10678_v57  ;;  %v10340_v23 = vsel %vm10333_vm0, %v10336_v11, %v10339_v8  ;;  %vm17926_vm12 = vweird.f32 %v16535_v30  ;;  %v10443_v29 = vsel %vm10436_vm1, %v10439_v53, %v10442_v41  ;;  %v10542_v60 = vsel %vm10540_vm11, %v17187_v45, %v8812_v55 }
 0x58b   : > { %v10341_v61 = vsel %vm17926_vm12, nan, %v10340_v23  ;;  %vm10543_vm4 = vcmp.eq.s32.totalorder %v10538_v47, 2  ;;  %v10444_v26 = vsel %vm8703_vm3, nan, %v10443_v29  ;;  %v10641_v36 = vand.u32 3, %v17128_v46 }
 0x58c   : > { %v10679_v35 = vrot.slane %v10341_v61, 5  ;;  %v10545_v10 = vsel %vm10543_vm4, %v8815_v24, %v17195_v48  ;;  %v10680_v43 = vrot.slane %v10444_v26, 5  ;;  %vm8918_vm13 = vcmp.eq.s32.totalorder %v17161_v1, 2 }
 0x58d   : > { %v10546_v30 = vsel %vm10539_vm14, %v10542_v60, %v10545_v10  ;;  %v11662_v51 = vpop.eup %11661  ;;  %vm10646_vm3 = vcmp.eq.s32.totalorder %v10641_v36, 2  ;;  %vm8915_vm10 = vcmp.eq.s32.totalorder %v17161_v1, 0  ;;  %vm10643_vm2 = vcmp.eq.s32.totalorder %v10641_v36, 0 }
 0x58e   : > { %10711 = vst [vmem:[%s11905_s26 + $0x1e0] sm:$0xf8] %v10679_v35  ;;  %v10547_v42 = vsel %vm8807_vm5, nan, %v10546_v30  ;;  %10712 = vst [vmem:[%s11905_s26 + $0x1e8] sm:$0xf8] %v10680_v43  ;;  %v8919_v45 = vxor.u32 2147483648, %v11662_v51  ;;  %vm8911_vm5 = vweird.f32 %v16808_v16 }
 0x58f   : > { %v10681_v55 = vrot.slane %v10547_v42, 5  ;;  %v11664_v4 = vpop.eup %11663  ;;  %vm8914_vm6 = vcmp.lt.s32.totalorder %v17161_v1, 2  ;;  %vm10642_vm0 = vcmp.lt.s32.totalorder %v10641_v36, 2 }
 0x590   : > { %v8916_v46 = vxor.u32 2147483648, %v11664_v4  ;;  %v8920_v44 = vsel %vm8918_vm13, %v8919_v45, %v11664_v4  ;;  %v10648_v48 = vsel %vm10646_vm3, %v8919_v45, %v11664_v4 }
 0x591   : > { %10713 = vst [vmem:[%s11905_s26 + $0x1f0] sm:$0xf8] %v10681_v55 }
 0x592   : > { %v8917_v24 = vsel %vm8915_vm10, %v11662_v51, %v8916_v46  ;;  %v10645_v20 = vsel %vm10643_vm2, %v11662_v51, %v8916_v46 }
 0x593   : > { %v8921_v33 = vsel %vm8914_vm6, %v8917_v24, %v8920_v44  ;;  %v10649_v25 = vsel %vm10642_vm0, %v10645_v20, %v10648_v48 }
 0x594   : > { %v8922_v1 = vsel %vm8911_vm5, nan, %v8921_v33  ;;  %v10650_v50 = vsel %vm8911_vm5, nan, %v10649_v25 }
 0x595   : > { %v8954_v16 = vrot.slane %v8922_v1, 2  ;;  %v10682_v18 = vrot.slane %v10650_v50, 5 }
 0x597   : > { %8986 = vst [vmem:[%s11905_s26 + $0x1f8] ss:$-124 sps:$4 sm:$0xc7] %v8954_v16   ;;  %10714 = vst [vmem:[%s11905_s26 + $0x1f8] sm:$0xf8] %v10682_v18 }
 0x598   : > { %11708 = shalt.err (!%p11705_p3)
}
 0x599   : > { %s11709_s11 = scalar_lea.hbm %s17305_s30, 10240  ;;  %s11713_s16 = scalar_lea.hbm %s17353_s1, 30720 }
 0x59a   : > { %p11710_p5 = scmp.ne.s32.totalorder %s17305_s30, %s11709_s11  ;;  %p11714_p13 = scmp.lt.u32.totalorder %s17305_s30, %s17353_s1 }
 0x59b   : > { %p11715_p0 = scmp.lt.u32.totalorder %s11713_s16, %s11709_s11  ;;  %p11717_p6 = scmp.lt.u32.totalorder %s11709_s11, %s17305_s30 }
 0x59c   : > { %p11711_p7 = pnand %p11710_p5, %p17927_p10 }
 0x59d   : > { %p11716_p2 = por %p11715_p0, %p11714_p13 }
 0x59e   : > { %p11712_p8 = pneg %p11711_p7 }
 0x59f   : > { %p11718_p11 = por %p11717_p6, %p11716_p2 }
 0x5a1   : > { %p11719_p12 = pnand %p11718_p11, %p11712_p8 }
 0x5a3   : > { %11722 = shalt.err (!%p11719_p12)
}
 0x5a4   : > { %s11771_s23 = smov 2048   ;;  %s11772_s24 = smov 6144  }
 0x5a5   : > { %s11773_s25 = smov 128  }
 0x5a6   : > { %11418 = dma.vmem_to_hbm [thread:$0]  (%p17927_p10), %s17307_s27, 10240, %s17305_s30, %s10722_s10, %s11771_s23, %s11772_s24, %s11773_s25  }
 0x5a7 PF: > { %p11429_p4 = scmp.ge.s32.totalorder %s11761_s9, 2  ;;  %s10750_s26 = sand.u32 1, %s11749_s6  }
 0x5a8   : > { %p17928_p9 = scmp.ne.s32.totalorder %s17573_s19, 0  ;;  %s10751_s17 = scalar_lea.sflag [#allocation4], %s10750_s26 }
 0x5aa   : > { %p11425_p1 = pnand %p11429_p4, %p17928_p9 }
 0x5ac   : > { %11744 = dma.done.wait (!%p11425_p1), %s10751_s17, 10240  }
 0x5ad   : > { %11746 = vsyncadd (!%p11425_p1), %s10751_s17, 4294957056  ;;  %p14_p3 = scmp.ge.s32.totalorder %s11809_s12, 5   ;;  %s17929_s6 = smov %s11753_s7 }
 0x5ae   : > { %s17930_s7 = smov %s11757_s8  ;;  %s17931_s8 = smov %s11821_s15 }
 0x5af   : > { %s17932_s9 = smov %s11809_s12  ;;  %16 = sbr.rel (!%p14_p3) target bundleno = 5 (0x5), region = 80 }
 0x5b6   :  { %10756 = vsyncpa [#allocation3], 1 }
 0x5b7   :  { %10758 = vsyncpa [#allocation3 + $0x1], 1 }
 0x5b8   :  { %10759 = vsyncpa [#allocation4], 1 }
 0x5b9   :  { %10761 = vsyncpa [#allocation4 + $0x1], 1 }

</bundles_post_ra>
